<compile_context>
chip_gen: v6e
topology: v6e:2x2x1
jax: 0.10.0
libtpu: 0.0.40
codegen_flags: <defaults>
</compile_context>

<pallas_src>
import functools

import jax
import jax.numpy as jnp
from jax.experimental import pallas as pl
from jax.experimental.pallas import tpu as pltpu

EPS = 1e-5                      # nn.LayerNorm default eps
MATMUL_DTYPE = jnp.bfloat16     # MXU operand dtype (f32 accumulation). Use
                                # jnp.float32 for bit-closer parity with torch.


# --------------------------------------------------------------------------
# In-kernel helpers (traced into the single fused kernel, all VMEM-resident)
# --------------------------------------------------------------------------

def _dot(a, b):
    """2-D MXU matmul: bf16 operands, f32 accumulation."""
    return jnp.dot(a.astype(MATMUL_DTYPE), b.astype(MATMUL_DTYPE),
                   preferred_element_type=jnp.float32)


def _proj(x, w, b=None):
    """[B,S,Din] @ [Din,Dout] (+ bias [1,Dout]) -> [B,S,Dout]."""
    bsz, s, din = x.shape
    y = _dot(x.reshape(bsz * s, din), w).reshape(bsz, s, w.shape[-1])
    return y if b is None else y + b


def _layernorm(y, g, b):
    """LayerNorm over the last dim (f32)."""
    mu = jnp.mean(y, axis=-1, keepdims=True)
    var = jnp.mean((y - mu) ** 2, axis=-1, keepdims=True)
    return (y - mu) * jax.lax.rsqrt(var + EPS) * g + b


def _softmax(s):
    """Row softmax; normalization via approximate reciprocal (EUP)."""
    s = s - jnp.max(s, axis=-1, keepdims=True)
    p = jnp.exp(s)
    return p * pl.reciprocal(jnp.sum(p, axis=-1, keepdims=True), approx=True)


def _mha(xq, xkv, qkv_w, qkv_b, o_w, o_b, num_heads):
    """Fused multi-head attention on VMEM-resident activations.

    xq:  [B, Sq, D] query stream
    xkv: [B, Sk, D] key/value stream (same object as xq for self-attention)
    qkv_w: [D, 3D], qkv_b: [1, 3D], o_w: [D, D], o_b: [1, D]
    """
    B, Sq, D = xq.shape
    Dh = D // num_heads
    scale = 1.0 / float(Dh) ** 0.5

    if xq is xkv:
        # Self-attention: single fused QKV matmul ([D, 3D] weight).
        qkv = _proj(xq, qkv_w, qkv_b)
        q, k, v = qkv[..., :D], qkv[..., D:2 * D], qkv[..., 2 * D:]
    else:
        # Cross-attention: Q from decoder stream, fused K/V from memory.
        q = _proj(xq, qkv_w[:, :D], qkv_b[:, :D])
        kv = _proj(xkv, qkv_w[:, D:], qkv_b[:, D:])
        k, v = kv[..., :D], kv[..., D:]

    q = q * scale   # fold 1/sqrt(Dh) into Q once (not into the score tile)

    # Heads = static lane slices; head merge folded into the O-projection so
    # no transpose / concat is needed.
    acc = jnp.zeros((B, Sq, D), jnp.float32)
    for h in range(num_heads):
        sl = slice(h * Dh, (h + 1) * Dh)
        s = jnp.einsum('bqd,bkd->bqk',
                       q[..., sl].astype(MATMUL_DTYPE),
                       k[..., sl].astype(MATMUL_DTYPE),
                       preferred_element_type=jnp.float32)
        p = _softmax(s)
        oh = jnp.einsum('bqk,bkd->bqd',
                        p.astype(MATMUL_DTYPE),
                        v[..., sl].astype(MATMUL_DTYPE),
                        preferred_element_type=jnp.float32)
        acc = acc + _proj(oh, o_w[sl, :])
    return acc + o_b


def _ffn(x, w1, b1, w2, b2):
    """Linear -> ReLU -> Linear (ReLU in f32, matmuls on the MXU)."""
    h = jnp.maximum(_proj(x, w1, b1), 0.0)
    return _proj(h, w2, b2)


# --------------------------------------------------------------------------
# The single fused transformer kernel
# --------------------------------------------------------------------------

# Order of the weight operands passed to pallas_call (after src, tgt).
PARAM_ORDER = (
    # encoder (stacked over layers)
    "e_qkv_w", "e_qkv_b", "e_o_w", "e_o_b", "e_ln1_g", "e_ln1_b",
    "e_w1", "e_b1", "e_w2", "e_b2", "e_ln2_g", "e_ln2_b",
    "e_norm_g", "e_norm_b",
    # decoder (stacked over layers)
    "d_sa_qkv_w", "d_sa_qkv_b", "d_sa_o_w", "d_sa_o_b", "d_ln1_g", "d_ln1_b",
    "d_ca_qkv_w", "d_ca_qkv_b", "d_ca_o_w", "d_ca_o_b", "d_ln2_g", "d_ln2_b",
    "d_w1", "d_b1", "d_w2", "d_b2", "d_ln3_g", "d_ln3_b",
    "d_norm_g", "d_norm_b",
    # output head (lane-padded)
    "fc_w", "fc_b",
)


def _transformer_kernel(
    src_ref, tgt_ref,
    # encoder (stacked over layers: leading dim L)
    e_qkv_w, e_qkv_b, e_o_w, e_o_b, e_ln1_g, e_ln1_b,
    e_w1, e_b1, e_w2, e_b2, e_ln2_g, e_ln2_b,
    e_norm_g, e_norm_b,
    # decoder (stacked over layers)
    d_sa_qkv_w, d_sa_qkv_b, d_sa_o_w, d_sa_o_b, d_ln1_g, d_ln1_b,
    d_ca_qkv_w, d_ca_qkv_b, d_ca_o_w, d_ca_o_b, d_ln2_g, d_ln2_b,
    d_w1, d_b1, d_w2, d_b2, d_ln3_g, d_ln3_b,
    d_norm_g, d_norm_b,
    # output head
    fc_w, fc_b,
    # output
    out_ref,
    *, num_layers, num_heads):

    # ----- encoder stack (post-norm) -----
    x = src_ref[...]                                     # [B, Ss, D] f32
    for l in range(num_layers):
        a = _mha(x, x, e_qkv_w[l], e_qkv_b[l], e_o_w[l], e_o_b[l], num_heads)
        x = _layernorm(x + a, e_ln1_g[l], e_ln1_b[l])
        f = _ffn(x, e_w1[l], e_b1[l], e_w2[l], e_b2[l])
        x = _layernorm(x + f, e_ln2_g[l], e_ln2_b[l])
    memory = _layernorm(x, e_norm_g[...], e_norm_b[...])  # final encoder norm

    # ----- decoder stack (post-norm) -----
    y = tgt_ref[...]                                     # [B, St, D] f32
    for l in range(num_layers):
        a = _mha(y, y, d_sa_qkv_w[l], d_sa_qkv_b[l],
                 d_sa_o_w[l], d_sa_o_b[l], num_heads)
        y = _layernorm(y + a, d_ln1_g[l], d_ln1_b[l])
        c = _mha(y, memory, d_ca_qkv_w[l], d_ca_qkv_b[l],
                 d_ca_o_w[l], d_ca_o_b[l], num_heads)
        y = _layernorm(y + c, d_ln2_g[l], d_ln2_b[l])
        f = _ffn(y, d_w1[l], d_b1[l], d_w2[l], d_b2[l])
        y = _layernorm(y + f, d_ln3_g[l], d_ln3_b[l])
    y = _layernorm(y, d_norm_g[...], d_norm_b[...])      # final decoder norm

    # ----- output projection (lane-padded to a multiple of 128) -----
    out_ref[...] = _proj(y, fc_w[...], fc_b[...])


# --------------------------------------------------------------------------
# Model glue (plain JAX): embeddings + positional encoding + the fused call
# --------------------------------------------------------------------------

def positional_encoding(x):
    """Matches the module: pe[pos,i] = sin/cos(pos / 10000**((i//2)/D))."""
    _, S, D = x.shape
    pos = jnp.arange(S, dtype=jnp.float32)[:, None]
    i = jnp.arange(D)
    k = (i // 2).astype(jnp.float32)
    angle = pos / jnp.power(10000.0, k / D)
    pe = jnp.where((i % 2) == 0, jnp.sin(angle), jnp.cos(angle))
    return x + pe[None, :, :]


def transformer_forward(params, src_ids, tgt_ids, *, num_heads, num_layers,
                        vocab_tgt):
    src = positional_encoding(jnp.take(params["embedding_src"], src_ids, axis=0))
    tgt = positional_encoding(jnp.take(params["embedding_tgt"], tgt_ids, axis=0))

    B, St, _ = tgt.shape
    vpad = params["fc_w"].shape[1]           # vocab padded to multiple of 128

    kernel = functools.partial(_transformer_kernel,
                               num_layers=num_layers, num_heads=num_heads)
    out = pl.pallas_call(
        kernel,
        out_shape=jax.ShapeDtypeStruct((B, St, vpad), jnp.float32),
        compiler_params=pltpu.CompilerParams(
            vmem_limit_bytes=32 * 1024 * 1024),
    )(src, tgt, *[params[k] for k in PARAM_ORDER])

    return out[:, :, :vocab_tgt]             # drop lane padding


# --------------------------------------------------------------------------
# Deterministic parameter init (synthetic weights, same shapes as the module)
# --------------------------------------------------------------------------

def init_params(key, vocab_src, vocab_tgt, d, num_layers, dff):
    keys = iter(jax.random.split(key, 1024))
    L = num_layers

    def w(*shape):
        return jax.random.normal(next(keys), shape, jnp.float32) * 0.02

    def stack_w(*shape):
        return jnp.stack([w(*shape) for _ in range(L)], axis=0)

    def zeros(*shape):
        return jnp.zeros(shape, jnp.float32)

    def ones(*shape):
        return jnp.ones(shape, jnp.float32)

    vpad = ((vocab_tgt + 127) // 128) * 128
    fc_w = jnp.pad(w(d, vocab_tgt), ((0, 0), (0, vpad - vocab_tgt)))

    return {
        "embedding_src": w(vocab_src, d),
        "embedding_tgt": w(vocab_tgt, d),
        # encoder
        "e_qkv_w": stack_w(d, 3 * d), "e_qkv_b": zeros(L, 1, 3 * d),
        "e_o_w": stack_w(d, d),       "e_o_b": zeros(L, 1, d),
        "e_ln1_g": ones(L, 1, d),     "e_ln1_b": zeros(L, 1, d),
        "e_w1": stack_w(d, dff),      "e_b1": zeros(L, 1, dff),
        "e_w2": stack_w(dff, d),      "e_b2": zeros(L, 1, d),
        "e_ln2_g": ones(L, 1, d),     "e_ln2_b": zeros(L, 1, d),
        "e_norm_g": ones(1, d),       "e_norm_b": zeros(1, d),
        # decoder
        "d_sa_qkv_w": stack_w(d, 3 * d), "d_sa_qkv_b": zeros(L, 1, 3 * d),
        "d_sa_o_w": stack_w(d, d),       "d_sa_o_b": zeros(L, 1, d),
        "d_ln1_g": ones(L, 1, d),        "d_ln1_b": zeros(L, 1, d),
        "d_ca_qkv_w": stack_w(d, 3 * d), "d_ca_qkv_b": zeros(L, 1, 3 * d),
        "d_ca_o_w": stack_w(d, d),       "d_ca_o_b": zeros(L, 1, d),
        "d_ln2_g": ones(L, 1, d),        "d_ln2_b": zeros(L, 1, d),
        "d_w1": stack_w(d, dff),         "d_b1": zeros(L, 1, dff),
        "d_w2": stack_w(dff, d),         "d_b2": zeros(L, 1, d),
        "d_ln3_g": ones(L, 1, d),        "d_ln3_b": zeros(L, 1, d),
        "d_norm_g": ones(1, d),          "d_norm_b": zeros(1, d),
        # output head (lane-padded to a multiple of 128)
        "fc_w": fc_w, "fc_b": zeros(1, vpad),
    }


# --------------------------------------------------------------------------
# Example run
# --------------------------------------------------------------------------

if __name__ == "__main__":
    VOCAB_SRC, VOCAB_TGT = 20, 24
    EMBED_DIM, NUM_HEADS, NUM_LAYERS, DFF = 32, 4, 2, 512
    B, S_SRC, S_TGT = 2, 8, 8

    root = jax.random.PRNGKey(0)
    k_params, k_src, k_tgt = jax.random.split(root, 3)

    params = init_params(k_params, VOCAB_SRC, VOCAB_TGT, EMBED_DIM,
                         NUM_LAYERS, DFF)
    src_ids = jax.random.randint(k_src, (B, S_SRC), 0, VOCAB_SRC, dtype=jnp.int32)
    tgt_ids = jax.random.randint(k_tgt, (B, S_TGT), 0, VOCAB_TGT, dtype=jnp.int32)

    fwd = jax.jit(functools.partial(transformer_forward,
                                    num_heads=NUM_HEADS,
                                    num_layers=NUM_LAYERS,
                                    vocab_tgt=VOCAB_TGT))
    out = fwd(params, src_ids, tgt_ids)
    jax.block_until_ready(out)

    assert out.shape == (B, S_TGT, VOCAB_TGT), out.shape
    assert out.dtype == jnp.float32
    assert bool(jnp.all(jnp.isfinite(out)))
    print("KERNEL_OK")
</pallas_src>

<mosaic_0001>
module attributes {stable_mosaic.version = 11 : i64} {
  func.func @_transformer_kernel(%arg0: memref<2x8x32xf32, #tpu.memory_space<vmem>>, %arg1: memref<2x8x32xf32, #tpu.memory_space<vmem>>, %arg2: memref<2x32x96xf32, #tpu.memory_space<vmem>>, %arg3: memref<2x1x96xf32, #tpu.memory_space<vmem>>, %arg4: memref<2x32x32xf32, #tpu.memory_space<vmem>>, %arg5: memref<2x1x32xf32, #tpu.memory_space<vmem>>, %arg6: memref<2x1x32xf32, #tpu.memory_space<vmem>>, %arg7: memref<2x1x32xf32, #tpu.memory_space<vmem>>, %arg8: memref<2x32x512xf32, #tpu.memory_space<vmem>>, %arg9: memref<2x1x512xf32, #tpu.memory_space<vmem>>, %arg10: memref<2x512x32xf32, #tpu.memory_space<vmem>>, %arg11: memref<2x1x32xf32, #tpu.memory_space<vmem>>, %arg12: memref<2x1x32xf32, #tpu.memory_space<vmem>>, %arg13: memref<2x1x32xf32, #tpu.memory_space<vmem>>, %arg14: memref<1x32xf32, #tpu.memory_space<vmem>>, %arg15: memref<1x32xf32, #tpu.memory_space<vmem>>, %arg16: memref<2x32x96xf32, #tpu.memory_space<vmem>>, %arg17: memref<2x1x96xf32, #tpu.memory_space<vmem>>, %arg18: memref<2x32x32xf32, #tpu.memory_space<vmem>>, %arg19: memref<2x1x32xf32, #tpu.memory_space<vmem>>, %arg20: memref<2x1x32xf32, #tpu.memory_space<vmem>>, %arg21: memref<2x1x32xf32, #tpu.memory_space<vmem>>, %arg22: memref<2x32x96xf32, #tpu.memory_space<vmem>>, %arg23: memref<2x1x96xf32, #tpu.memory_space<vmem>>, %arg24: memref<2x32x32xf32, #tpu.memory_space<vmem>>, %arg25: memref<2x1x32xf32, #tpu.memory_space<vmem>>, %arg26: memref<2x1x32xf32, #tpu.memory_space<vmem>>, %arg27: memref<2x1x32xf32, #tpu.memory_space<vmem>>, %arg28: memref<2x32x512xf32, #tpu.memory_space<vmem>>, %arg29: memref<2x1x512xf32, #tpu.memory_space<vmem>>, %arg30: memref<2x512x32xf32, #tpu.memory_space<vmem>>, %arg31: memref<2x1x32xf32, #tpu.memory_space<vmem>>, %arg32: memref<2x1x32xf32, #tpu.memory_space<vmem>>, %arg33: memref<2x1x32xf32, #tpu.memory_space<vmem>>, %arg34: memref<1x32xf32, #tpu.memory_space<vmem>>, %arg35: memref<1x32xf32, #tpu.memory_space<vmem>>, %arg36: memref<32x128xf32, #tpu.memory_space<vmem>>, %arg37: memref<1x128xf32, #tpu.memory_space<vmem>>, %arg38: memref<2x8x128xf32, #tpu.memory_space<vmem>>) attributes {dimension_semantics = [], scalar_prefetch = 0 : i64, scratch_operands = 0 : i64, tpu.core_type = #tpu.core_type<tc>} {
    %c0 = arith.constant 0 : index
    %c0_0 = arith.constant 0 : index
    %c0_1 = arith.constant 0 : index
    %0 = vector.load %arg0[%c0, %c0_0, %c0_1] : memref<2x8x32xf32, #tpu.memory_space<vmem>>, vector<2x8x32xf32>
    %c0_2 = arith.constant 0 : index
    %c0_3 = arith.constant 0 : index
    %c0_4 = arith.constant 0 : index
    %1 = vector.load %arg2[%c0_2, %c0_3, %c0_4] : memref<2x32x96xf32, #tpu.memory_space<vmem>>, vector<1x32x96xf32>
    %2 = vector.shape_cast %1 : vector<1x32x96xf32> to vector<32x96xf32>
    %c0_5 = arith.constant 0 : index
    %c0_6 = arith.constant 0 : index
    %c0_7 = arith.constant 0 : index
    %3 = vector.load %arg3[%c0_5, %c0_6, %c0_7] : memref<2x1x96xf32, #tpu.memory_space<vmem>>, vector<1x1x96xf32>
    %4 = vector.shape_cast %3 : vector<1x1x96xf32> to vector<1x96xf32>
    %c0_8 = arith.constant 0 : index
    %c0_9 = arith.constant 0 : index
    %c0_10 = arith.constant 0 : index
    %5 = vector.load %arg4[%c0_8, %c0_9, %c0_10] : memref<2x32x32xf32, #tpu.memory_space<vmem>>, vector<1x32x32xf32>
    %6 = vector.shape_cast %5 : vector<1x32x32xf32> to vector<32x32xf32>
    %c0_11 = arith.constant 0 : index
    %c0_12 = arith.constant 0 : index
    %c0_13 = arith.constant 0 : index
    %7 = vector.load %arg5[%c0_11, %c0_12, %c0_13] : memref<2x1x32xf32, #tpu.memory_space<vmem>>, vector<1x1x32xf32>
    %8 = vector.shape_cast %7 : vector<1x1x32xf32> to vector<1x32xf32>
    %9 = vector.shape_cast %0 : vector<2x8x32xf32> to vector<16x32xf32>
    %10 = arith.truncf %9 : vector<16x32xf32> to vector<16x32xbf16>
    %11 = arith.truncf %2 : vector<32x96xf32> to vector<32x96xbf16>
    %cst = arith.constant dense<0.000000e+00> : vector<16x96xf32>
    %12 = tpu.matmul %10, %11, %cst {dimension_numbers = #tpu.dot_dimension_numbers<[1], [0], [0], [1], [0, 0, 1, 1], [], []>} : vector<16x32xbf16>, vector<32x96xbf16>, vector<16x96xf32> -> vector<16x96xf32>
    %13 = vector.shape_cast %12 : vector<16x96xf32> to vector<2x8x96xf32>
    %14 = vector.shape_cast %4 : vector<1x96xf32> to vector<1x1x96xf32>
    %15 = vector.broadcast %14 : vector<1x1x96xf32> to vector<2x8x96xf32>
    %16 = arith.addf %13, %15 : vector<2x8x96xf32>
    %17 = vector.extract_strided_slice %16 {offsets = [0, 0, 0], sizes = [2, 8, 32], strides = [1, 1, 1]} : vector<2x8x96xf32> to vector<2x8x32xf32>
    %18 = vector.extract_strided_slice %16 {offsets = [0, 0, 32], sizes = [2, 8, 32], strides = [1, 1, 1]} : vector<2x8x96xf32> to vector<2x8x32xf32>
    %19 = vector.extract_strided_slice %16 {offsets = [0, 0, 64], sizes = [2, 8, 32], strides = [1, 1, 1]} : vector<2x8x96xf32> to vector<2x8x32xf32>
    %cst_14 = arith.constant 0.353553385 : f32
    %20 = vector.broadcast %cst_14 : f32 to vector<2x8x32xf32>
    %21 = arith.mulf %17, %20 : vector<2x8x32xf32>
    %cst_15 = arith.constant 0.000000e+00 : f32
    %22 = vector.broadcast %cst_15 : f32 to vector<2x8x32xf32>
    %23 = vector.extract_strided_slice %21 {offsets = [0, 0, 0], sizes = [2, 8, 8], strides = [1, 1, 1]} : vector<2x8x32xf32> to vector<2x8x8xf32>
    %24 = arith.truncf %23 : vector<2x8x8xf32> to vector<2x8x8xbf16>
    %25 = vector.extract_strided_slice %18 {offsets = [0, 0, 0], sizes = [2, 8, 8], strides = [1, 1, 1]} : vector<2x8x32xf32> to vector<2x8x8xf32>
    %26 = arith.truncf %25 : vector<2x8x8xf32> to vector<2x8x8xbf16>
    "tpu.trace_start"() <{level = 10 : i32, message = "bqd,bkd->bqk"}> : () -> ()
    %cst_16 = arith.constant dense<0.000000e+00> : vector<2x8x8xf32>
    %27 = tpu.matmul %24, %26, %cst_16 {dimension_numbers = #tpu.dot_dimension_numbers<[2], [2], [1], [1], [0, 0, 0, 1, 1, 1], [0], [0]>} : vector<2x8x8xbf16>, vector<2x8x8xbf16>, vector<2x8x8xf32> -> vector<2x8x8xf32>
    "tpu.trace_stop"() : () -> ()
    %cst_17 = arith.constant dense<0xFF800000> : vector<2x8xf32>
    %28 = vector.multi_reduction <maximumf>, %27, %cst_17 [2] : vector<2x8x8xf32> to vector<2x8xf32>
    %29 = vector.shape_cast %28 : vector<2x8xf32> to vector<2x8x1xf32>
    %30 = vector.broadcast %29 : vector<2x8x1xf32> to vector<2x8x8xf32>
    %31 = arith.subf %27, %30 : vector<2x8x8xf32>
    %32 = math.exp %31 : vector<2x8x8xf32>
    %cst_18 = arith.constant dense<0.000000e+00> : vector<2x8xf32>
    %33 = vector.multi_reduction <add>, %32, %cst_18 [2] : vector<2x8x8xf32> to vector<2x8xf32>
    %34 = vector.shape_cast %33 : vector<2x8xf32> to vector<2x8x1xf32>
    %35 = tpu.reciprocal %34 {approx = true} : vector<2x8x1xf32> -> vector<2x8x1xf32>
    %36 = vector.broadcast %35 : vector<2x8x1xf32> to vector<2x8x8xf32>
    %37 = arith.mulf %32, %36 : vector<2x8x8xf32>
    %38 = arith.truncf %37 : vector<2x8x8xf32> to vector<2x8x8xbf16>
    %39 = vector.extract_strided_slice %19 {offsets = [0, 0, 0], sizes = [2, 8, 8], strides = [1, 1, 1]} : vector<2x8x32xf32> to vector<2x8x8xf32>
    %40 = arith.truncf %39 : vector<2x8x8xf32> to vector<2x8x8xbf16>
    "tpu.trace_start"() <{level = 10 : i32, message = "bqk,bkd->bqd"}> : () -> ()
    %cst_19 = arith.constant dense<0.000000e+00> : vector<2x8x8xf32>
    %41 = tpu.matmul %38, %40, %cst_19 {dimension_numbers = #tpu.dot_dimension_numbers<[2], [1], [1], [2], [0, 0, 0, 1, 1, 2], [0], [0]>} : vector<2x8x8xbf16>, vector<2x8x8xbf16>, vector<2x8x8xf32> -> vector<2x8x8xf32>
    "tpu.trace_stop"() : () -> ()
    %42 = vector.extract_strided_slice %6 {offsets = [0, 0], sizes = [8, 32], strides = [1, 1]} : vector<32x32xf32> to vector<8x32xf32>
    %43 = vector.shape_cast %41 : vector<2x8x8xf32> to vector<16x8xf32>
    %44 = arith.truncf %43 : vector<16x8xf32> to vector<16x8xbf16>
    %45 = arith.truncf %42 : vector<8x32xf32> to vector<8x32xbf16>
    %cst_20 = arith.constant dense<0.000000e+00> : vector<16x32xf32>
    %46 = tpu.matmul %44, %45, %cst_20 {dimension_numbers = #tpu.dot_dimension_numbers<[1], [0], [0], [1], [0, 0, 1, 1], [], []>} : vector<16x8xbf16>, vector<8x32xbf16>, vector<16x32xf32> -> vector<16x32xf32>
    %47 = vector.shape_cast %46 : vector<16x32xf32> to vector<2x8x32xf32>
    %48 = arith.addf %22, %47 : vector<2x8x32xf32>
    %49 = vector.extract_strided_slice %21 {offsets = [0, 0, 8], sizes = [2, 8, 8], strides = [1, 1, 1]} : vector<2x8x32xf32> to vector<2x8x8xf32>
    %50 = arith.truncf %49 : vector<2x8x8xf32> to vector<2x8x8xbf16>
    %51 = vector.extract_strided_slice %18 {offsets = [0, 0, 8], sizes = [2, 8, 8], strides = [1, 1, 1]} : vector<2x8x32xf32> to vector<2x8x8xf32>
    %52 = arith.truncf %51 : vector<2x8x8xf32> to vector<2x8x8xbf16>
    "tpu.trace_start"() <{level = 10 : i32, message = "bqd,bkd->bqk"}> : () -> ()
    %cst_21 = arith.constant dense<0.000000e+00> : vector<2x8x8xf32>
    %53 = tpu.matmul %50, %52, %cst_21 {dimension_numbers = #tpu.dot_dimension_numbers<[2], [2], [1], [1], [0, 0, 0, 1, 1, 1], [0], [0]>} : vector<2x8x8xbf16>, vector<2x8x8xbf16>, vector<2x8x8xf32> -> vector<2x8x8xf32>
    "tpu.trace_stop"() : () -> ()
    %cst_22 = arith.constant dense<0xFF800000> : vector<2x8xf32>
    %54 = vector.multi_reduction <maximumf>, %53, %cst_22 [2] : vector<2x8x8xf32> to vector<2x8xf32>
    %55 = vector.shape_cast %54 : vector<2x8xf32> to vector<2x8x1xf32>
    %56 = vector.broadcast %55 : vector<2x8x1xf32> to vector<2x8x8xf32>
    %57 = arith.subf %53, %56 : vector<2x8x8xf32>
    %58 = math.exp %57 : vector<2x8x8xf32>
    %cst_23 = arith.constant dense<0.000000e+00> : vector<2x8xf32>
    %59 = vector.multi_reduction <add>, %58, %cst_23 [2] : vector<2x8x8xf32> to vector<2x8xf32>
    %60 = vector.shape_cast %59 : vector<2x8xf32> to vector<2x8x1xf32>
    %61 = tpu.reciprocal %60 {approx = true} : vector<2x8x1xf32> -> vector<2x8x1xf32>
    %62 = vector.broadcast %61 : vector<2x8x1xf32> to vector<2x8x8xf32>
    %63 = arith.mulf %58, %62 : vector<2x8x8xf32>
    %64 = arith.truncf %63 : vector<2x8x8xf32> to vector<2x8x8xbf16>
    %65 = vector.extract_strided_slice %19 {offsets = [0, 0, 8], sizes = [2, 8, 8], strides = [1, 1, 1]} : vector<2x8x32xf32> to vector<2x8x8xf32>
    %66 = arith.truncf %65 : vector<2x8x8xf32> to vector<2x8x8xbf16>
    "tpu.trace_start"() <{level = 10 : i32, message = "bqk,bkd->bqd"}> : () -> ()
    %cst_24 = arith.constant dense<0.000000e+00> : vector<2x8x8xf32>
    %67 = tpu.matmul %64, %66, %cst_24 {dimension_numbers = #tpu.dot_dimension_numbers<[2], [1], [1], [2], [0, 0, 0, 1, 1, 2], [0], [0]>} : vector<2x8x8xbf16>, vector<2x8x8xbf16>, vector<2x8x8xf32> -> vector<2x8x8xf32>
    "tpu.trace_stop"() : () -> ()
    %68 = vector.extract_strided_slice %6 {offsets = [8, 0], sizes = [8, 32], strides = [1, 1]} : vector<32x32xf32> to vector<8x32xf32>
    %69 = vector.shape_cast %67 : vector<2x8x8xf32> to vector<16x8xf32>
    %70 = arith.truncf %69 : vector<16x8xf32> to vector<16x8xbf16>
    %71 = arith.truncf %68 : vector<8x32xf32> to vector<8x32xbf16>
    %cst_25 = arith.constant dense<0.000000e+00> : vector<16x32xf32>
    %72 = tpu.matmul %70, %71, %cst_25 {dimension_numbers = #tpu.dot_dimension_numbers<[1], [0], [0], [1], [0, 0, 1, 1], [], []>} : vector<16x8xbf16>, vector<8x32xbf16>, vector<16x32xf32> -> vector<16x32xf32>
    %73 = vector.shape_cast %72 : vector<16x32xf32> to vector<2x8x32xf32>
    %74 = arith.addf %48, %73 : vector<2x8x32xf32>
    %75 = vector.extract_strided_slice %21 {offsets = [0, 0, 16], sizes = [2, 8, 8], strides = [1, 1, 1]} : vector<2x8x32xf32> to vector<2x8x8xf32>
    %76 = arith.truncf %75 : vector<2x8x8xf32> to vector<2x8x8xbf16>
    %77 = vector.extract_strided_slice %18 {offsets = [0, 0, 16], sizes = [2, 8, 8], strides = [1, 1, 1]} : vector<2x8x32xf32> to vector<2x8x8xf32>
    %78 = arith.truncf %77 : vector<2x8x8xf32> to vector<2x8x8xbf16>
    "tpu.trace_start"() <{level = 10 : i32, message = "bqd,bkd->bqk"}> : () -> ()
    %cst_26 = arith.constant dense<0.000000e+00> : vector<2x8x8xf32>
    %79 = tpu.matmul %76, %78, %cst_26 {dimension_numbers = #tpu.dot_dimension_numbers<[2], [2], [1], [1], [0, 0, 0, 1, 1, 1], [0], [0]>} : vector<2x8x8xbf16>, vector<2x8x8xbf16>, vector<2x8x8xf32> -> vector<2x8x8xf32>
    "tpu.trace_stop"() : () -> ()
    %cst_27 = arith.constant dense<0xFF800000> : vector<2x8xf32>
    %80 = vector.multi_reduction <maximumf>, %79, %cst_27 [2] : vector<2x8x8xf32> to vector<2x8xf32>
    %81 = vector.shape_cast %80 : vector<2x8xf32> to vector<2x8x1xf32>
    %82 = vector.broadcast %81 : vector<2x8x1xf32> to vector<2x8x8xf32>
    %83 = arith.subf %79, %82 : vector<2x8x8xf32>
    %84 = math.exp %83 : vector<2x8x8xf32>
    %cst_28 = arith.constant dense<0.000000e+00> : vector<2x8xf32>
    %85 = vector.multi_reduction <add>, %84, %cst_28 [2] : vector<2x8x8xf32> to vector<2x8xf32>
    %86 = vector.shape_cast %85 : vector<2x8xf32> to vector<2x8x1xf32>
    %87 = tpu.reciprocal %86 {approx = true} : vector<2x8x1xf32> -> vector<2x8x1xf32>
    %88 = vector.broadcast %87 : vector<2x8x1xf32> to vector<2x8x8xf32>
    %89 = arith.mulf %84, %88 : vector<2x8x8xf32>
    %90 = arith.truncf %89 : vector<2x8x8xf32> to vector<2x8x8xbf16>
    %91 = vector.extract_strided_slice %19 {offsets = [0, 0, 16], sizes = [2, 8, 8], strides = [1, 1, 1]} : vector<2x8x32xf32> to vector<2x8x8xf32>
    %92 = arith.truncf %91 : vector<2x8x8xf32> to vector<2x8x8xbf16>
    "tpu.trace_start"() <{level = 10 : i32, message = "bqk,bkd->bqd"}> : () -> ()
    %cst_29 = arith.constant dense<0.000000e+00> : vector<2x8x8xf32>
    %93 = tpu.matmul %90, %92, %cst_29 {dimension_numbers = #tpu.dot_dimension_numbers<[2], [1], [1], [2], [0, 0, 0, 1, 1, 2], [0], [0]>} : vector<2x8x8xbf16>, vector<2x8x8xbf16>, vector<2x8x8xf32> -> vector<2x8x8xf32>
    "tpu.trace_stop"() : () -> ()
    %94 = vector.extract_strided_slice %6 {offsets = [16, 0], sizes = [8, 32], strides = [1, 1]} : vector<32x32xf32> to vector<8x32xf32>
    %95 = vector.shape_cast %93 : vector<2x8x8xf32> to vector<16x8xf32>
    %96 = arith.truncf %95 : vector<16x8xf32> to vector<16x8xbf16>
    %97 = arith.truncf %94 : vector<8x32xf32> to vector<8x32xbf16>
    %cst_30 = arith.constant dense<0.000000e+00> : vector<16x32xf32>
    %98 = tpu.matmul %96, %97, %cst_30 {dimension_numbers = #tpu.dot_dimension_numbers<[1], [0], [0], [1], [0, 0, 1, 1], [], []>} : vector<16x8xbf16>, vector<8x32xbf16>, vector<16x32xf32> -> vector<16x32xf32>
    %99 = vector.shape_cast %98 : vector<16x32xf32> to vector<2x8x32xf32>
    %100 = arith.addf %74, %99 : vector<2x8x32xf32>
    %101 = vector.extract_strided_slice %21 {offsets = [0, 0, 24], sizes = [2, 8, 8], strides = [1, 1, 1]} : vector<2x8x32xf32> to vector<2x8x8xf32>
    %102 = arith.truncf %101 : vector<2x8x8xf32> to vector<2x8x8xbf16>
    %103 = vector.extract_strided_slice %18 {offsets = [0, 0, 24], sizes = [2, 8, 8], strides = [1, 1, 1]} : vector<2x8x32xf32> to vector<2x8x8xf32>
    %104 = arith.truncf %103 : vector<2x8x8xf32> to vector<2x8x8xbf16>
    "tpu.trace_start"() <{level = 10 : i32, message = "bqd,bkd->bqk"}> : () -> ()
    %cst_31 = arith.constant dense<0.000000e+00> : vector<2x8x8xf32>
    %105 = tpu.matmul %102, %104, %cst_31 {dimension_numbers = #tpu.dot_dimension_numbers<[2], [2], [1], [1], [0, 0, 0, 1, 1, 1], [0], [0]>} : vector<2x8x8xbf16>, vector<2x8x8xbf16>, vector<2x8x8xf32> -> vector<2x8x8xf32>
    "tpu.trace_stop"() : () -> ()
    %cst_32 = arith.constant dense<0xFF800000> : vector<2x8xf32>
    %106 = vector.multi_reduction <maximumf>, %105, %cst_32 [2] : vector<2x8x8xf32> to vector<2x8xf32>
    %107 = vector.shape_cast %106 : vector<2x8xf32> to vector<2x8x1xf32>
    %108 = vector.broadcast %107 : vector<2x8x1xf32> to vector<2x8x8xf32>
    %109 = arith.subf %105, %108 : vector<2x8x8xf32>
    %110 = math.exp %109 : vector<2x8x8xf32>
    %cst_33 = arith.constant dense<0.000000e+00> : vector<2x8xf32>
    %111 = vector.multi_reduction <add>, %110, %cst_33 [2] : vector<2x8x8xf32> to vector<2x8xf32>
    %112 = vector.shape_cast %111 : vector<2x8xf32> to vector<2x8x1xf32>
    %113 = tpu.reciprocal %112 {approx = true} : vector<2x8x1xf32> -> vector<2x8x1xf32>
    %114 = vector.broadcast %113 : vector<2x8x1xf32> to vector<2x8x8xf32>
    %115 = arith.mulf %110, %114 : vector<2x8x8xf32>
    %116 = arith.truncf %115 : vector<2x8x8xf32> to vector<2x8x8xbf16>
    %117 = vector.extract_strided_slice %19 {offsets = [0, 0, 24], sizes = [2, 8, 8], strides = [1, 1, 1]} : vector<2x8x32xf32> to vector<2x8x8xf32>
    %118 = arith.truncf %117 : vector<2x8x8xf32> to vector<2x8x8xbf16>
    "tpu.trace_start"() <{level = 10 : i32, message = "bqk,bkd->bqd"}> : () -> ()
    %cst_34 = arith.constant dense<0.000000e+00> : vector<2x8x8xf32>
    %119 = tpu.matmul %116, %118, %cst_34 {dimension_numbers = #tpu.dot_dimension_numbers<[2], [1], [1], [2], [0, 0, 0, 1, 1, 2], [0], [0]>} : vector<2x8x8xbf16>, vector<2x8x8xbf16>, vector<2x8x8xf32> -> vector<2x8x8xf32>
    "tpu.trace_stop"() : () -> ()
    %120 = vector.extract_strided_slice %6 {offsets = [24, 0], sizes = [8, 32], strides = [1, 1]} : vector<32x32xf32> to vector<8x32xf32>
    %121 = vector.shape_cast %119 : vector<2x8x8xf32> to vector<16x8xf32>
    %122 = arith.truncf %121 : vector<16x8xf32> to vector<16x8xbf16>
    %123 = arith.truncf %120 : vector<8x32xf32> to vector<8x32xbf16>
    %cst_35 = arith.constant dense<0.000000e+00> : vector<16x32xf32>
    %124 = tpu.matmul %122, %123, %cst_35 {dimension_numbers = #tpu.dot_dimension_numbers<[1], [0], [0], [1], [0, 0, 1, 1], [], []>} : vector<16x8xbf16>, vector<8x32xbf16>, vector<16x32xf32> -> vector<16x32xf32>
    %125 = vector.shape_cast %124 : vector<16x32xf32> to vector<2x8x32xf32>
    %126 = arith.addf %100, %125 : vector<2x8x32xf32>
    %127 = vector.shape_cast %8 : vector<1x32xf32> to vector<1x1x32xf32>
    %128 = vector.broadcast %127 : vector<1x1x32xf32> to vector<2x8x32xf32>
    %129 = arith.addf %126, %128 : vector<2x8x32xf32>
    %130 = arith.addf %0, %129 : vector<2x8x32xf32>
    %c0_36 = arith.constant 0 : index
    %c0_37 = arith.constant 0 : index
    %c0_38 = arith.constant 0 : index
    %131 = vector.load %arg6[%c0_36, %c0_37, %c0_38] : memref<2x1x32xf32, #tpu.memory_space<vmem>>, vector<1x1x32xf32>
    %132 = vector.shape_cast %131 : vector<1x1x32xf32> to vector<1x32xf32>
    %c0_39 = arith.constant 0 : index
    %c0_40 = arith.constant 0 : index
    %c0_41 = arith.constant 0 : index
    %133 = vector.load %arg7[%c0_39, %c0_40, %c0_41] : memref<2x1x32xf32, #tpu.memory_space<vmem>>, vector<1x1x32xf32>
    %134 = vector.shape_cast %133 : vector<1x1x32xf32> to vector<1x32xf32>
    %cst_42 = arith.constant dense<0.000000e+00> : vector<2x8xf32>
    %135 = vector.multi_reduction <add>, %130, %cst_42 [2] : vector<2x8x32xf32> to vector<2x8xf32>
    %136 = vector.shape_cast %135 : vector<2x8xf32> to vector<2x8x1xf32>
    %cst_43 = arith.constant 3.200000e+01 : f32
    %137 = vector.broadcast %cst_43 : f32 to vector<2x8x1xf32>
    %138 = arith.divf %136, %137 : vector<2x8x1xf32>
    %139 = vector.broadcast %138 : vector<2x8x1xf32> to vector<2x8x32xf32>
    %140 = arith.subf %130, %139 : vector<2x8x32xf32>
    %141 = arith.mulf %140, %140 : vector<2x8x32xf32>
    %cst_44 = arith.constant dense<0.000000e+00> : vector<2x8xf32>
    %142 = vector.multi_reduction <add>, %141, %cst_44 [2] : vector<2x8x32xf32> to vector<2x8xf32>
    %143 = vector.shape_cast %142 : vector<2x8xf32> to vector<2x8x1xf32>
    %cst_45 = arith.constant 3.200000e+01 : f32
    %144 = vector.broadcast %cst_45 : f32 to vector<2x8x1xf32>
    %145 = arith.divf %143, %144 : vector<2x8x1xf32>
    %146 = vector.broadcast %138 : vector<2x8x1xf32> to vector<2x8x32xf32>
    %147 = arith.subf %130, %146 : vector<2x8x32xf32>
    %cst_46 = arith.constant 9.99999974E-6 : f32
    %148 = vector.broadcast %cst_46 : f32 to vector<2x8x1xf32>
    %149 = arith.addf %145, %148 : vector<2x8x1xf32>
    %150 = math.rsqrt %149 : vector<2x8x1xf32>
    %151 = vector.broadcast %150 : vector<2x8x1xf32> to vector<2x8x32xf32>
    %152 = arith.mulf %147, %151 : vector<2x8x32xf32>
    %153 = vector.shape_cast %132 : vector<1x32xf32> to vector<1x1x32xf32>
    %154 = vector.broadcast %153 : vector<1x1x32xf32> to vector<2x8x32xf32>
    %155 = arith.mulf %152, %154 : vector<2x8x32xf32>
    %156 = vector.shape_cast %134 : vector<1x32xf32> to vector<1x1x32xf32>
    %157 = vector.broadcast %156 : vector<1x1x32xf32> to vector<2x8x32xf32>
    %158 = arith.addf %155, %157 : vector<2x8x32xf32>
    %c0_47 = arith.constant 0 : index
    %c0_48 = arith.constant 0 : index
    %c0_49 = arith.constant 0 : index
    %159 = vector.load %arg8[%c0_47, %c0_48, %c0_49] : memref<2x32x512xf32, #tpu.memory_space<vmem>>, vector<1x32x512xf32>
    %160 = vector.shape_cast %159 : vector<1x32x512xf32> to vector<32x512xf32>
    %c0_50 = arith.constant 0 : index
    %c0_51 = arith.constant 0 : index
    %c0_52 = arith.constant 0 : index
    %161 = vector.load %arg9[%c0_50, %c0_51, %c0_52] : memref<2x1x512xf32, #tpu.memory_space<vmem>>, vector<1x1x512xf32>
    %162 = vector.shape_cast %161 : vector<1x1x512xf32> to vector<1x512xf32>
    %c0_53 = arith.constant 0 : index
    %c0_54 = arith.constant 0 : index
    %c0_55 = arith.constant 0 : index
    %163 = vector.load %arg10[%c0_53, %c0_54, %c0_55] : memref<2x512x32xf32, #tpu.memory_space<vmem>>, vector<1x512x32xf32>
    %164 = vector.shape_cast %163 : vector<1x512x32xf32> to vector<512x32xf32>
    %c0_56 = arith.constant 0 : index
    %c0_57 = arith.constant 0 : index
    %c0_58 = arith.constant 0 : index
    %165 = vector.load %arg11[%c0_56, %c0_57, %c0_58] : memref<2x1x32xf32, #tpu.memory_space<vmem>>, vector<1x1x32xf32>
    %166 = vector.shape_cast %165 : vector<1x1x32xf32> to vector<1x32xf32>
    %167 = vector.shape_cast %158 : vector<2x8x32xf32> to vector<16x32xf32>
    %168 = arith.truncf %167 : vector<16x32xf32> to vector<16x32xbf16>
    %169 = arith.truncf %160 : vector<32x512xf32> to vector<32x512xbf16>
    %cst_59 = arith.constant dense<0.000000e+00> : vector<16x512xf32>
    %170 = tpu.matmul %168, %169, %cst_59 {dimension_numbers = #tpu.dot_dimension_numbers<[1], [0], [0], [1], [0, 0, 1, 1], [], []>} : vector<16x32xbf16>, vector<32x512xbf16>, vector<16x512xf32> -> vector<16x512xf32>
    %171 = vector.shape_cast %170 : vector<16x512xf32> to vector<2x8x512xf32>
    %172 = vector.shape_cast %162 : vector<1x512xf32> to vector<1x1x512xf32>
    %173 = vector.broadcast %172 : vector<1x1x512xf32> to vector<2x8x512xf32>
    %174 = arith.addf %171, %173 : vector<2x8x512xf32>
    %cst_60 = arith.constant 0.000000e+00 : f32
    %175 = vector.broadcast %cst_60 : f32 to vector<2x8x512xf32>
    %176 = arith.maximumf %174, %175 : vector<2x8x512xf32>
    %177 = vector.shape_cast %176 : vector<2x8x512xf32> to vector<16x512xf32>
    %178 = arith.truncf %177 : vector<16x512xf32> to vector<16x512xbf16>
    %179 = arith.truncf %164 : vector<512x32xf32> to vector<512x32xbf16>
    %cst_61 = arith.constant dense<0.000000e+00> : vector<16x32xf32>
    %180 = tpu.matmul %178, %179, %cst_61 {dimension_numbers = #tpu.dot_dimension_numbers<[1], [0], [0], [1], [0, 0, 1, 1], [], []>} : vector<16x512xbf16>, vector<512x32xbf16>, vector<16x32xf32> -> vector<16x32xf32>
    %181 = vector.shape_cast %180 : vector<16x32xf32> to vector<2x8x32xf32>
    %182 = vector.shape_cast %166 : vector<1x32xf32> to vector<1x1x32xf32>
    %183 = vector.broadcast %182 : vector<1x1x32xf32> to vector<2x8x32xf32>
    %184 = arith.addf %181, %183 : vector<2x8x32xf32>
    %185 = arith.addf %158, %184 : vector<2x8x32xf32>
    %c0_62 = arith.constant 0 : index
    %c0_63 = arith.constant 0 : index
    %c0_64 = arith.constant 0 : index
    %186 = vector.load %arg12[%c0_62, %c0_63, %c0_64] : memref<2x1x32xf32, #tpu.memory_space<vmem>>, vector<1x1x32xf32>
    %187 = vector.shape_cast %186 : vector<1x1x32xf32> to vector<1x32xf32>
    %c0_65 = arith.constant 0 : index
    %c0_66 = arith.constant 0 : index
    %c0_67 = arith.constant 0 : index
    %188 = vector.load %arg13[%c0_65, %c0_66, %c0_67] : memref<2x1x32xf32, #tpu.memory_space<vmem>>, vector<1x1x32xf32>
    %189 = vector.shape_cast %188 : vector<1x1x32xf32> to vector<1x32xf32>
    %cst_68 = arith.constant dense<0.000000e+00> : vector<2x8xf32>
    %190 = vector.multi_reduction <add>, %185, %cst_68 [2] : vector<2x8x32xf32> to vector<2x8xf32>
    %191 = vector.shape_cast %190 : vector<2x8xf32> to vector<2x8x1xf32>
    %cst_69 = arith.constant 3.200000e+01 : f32
    %192 = vector.broadcast %cst_69 : f32 to vector<2x8x1xf32>
    %193 = arith.divf %191, %192 : vector<2x8x1xf32>
    %194 = vector.broadcast %193 : vector<2x8x1xf32> to vector<2x8x32xf32>
    %195 = arith.subf %185, %194 : vector<2x8x32xf32>
    %196 = arith.mulf %195, %195 : vector<2x8x32xf32>
    %cst_70 = arith.constant dense<0.000000e+00> : vector<2x8xf32>
    %197 = vector.multi_reduction <add>, %196, %cst_70 [2] : vector<2x8x32xf32> to vector<2x8xf32>
    %198 = vector.shape_cast %197 : vector<2x8xf32> to vector<2x8x1xf32>
    %cst_71 = arith.constant 3.200000e+01 : f32
    %199 = vector.broadcast %cst_71 : f32 to vector<2x8x1xf32>
    %200 = arith.divf %198, %199 : vector<2x8x1xf32>
    %201 = vector.broadcast %193 : vector<2x8x1xf32> to vector<2x8x32xf32>
    %202 = arith.subf %185, %201 : vector<2x8x32xf32>
    %cst_72 = arith.constant 9.99999974E-6 : f32
    %203 = vector.broadcast %cst_72 : f32 to vector<2x8x1xf32>
    %204 = arith.addf %200, %203 : vector<2x8x1xf32>
    %205 = math.rsqrt %204 : vector<2x8x1xf32>
    %206 = vector.broadcast %205 : vector<2x8x1xf32> to vector<2x8x32xf32>
    %207 = arith.mulf %202, %206 : vector<2x8x32xf32>
    %208 = vector.shape_cast %187 : vector<1x32xf32> to vector<1x1x32xf32>
    %209 = vector.broadcast %208 : vector<1x1x32xf32> to vector<2x8x32xf32>
    %210 = arith.mulf %207, %209 : vector<2x8x32xf32>
    %211 = vector.shape_cast %189 : vector<1x32xf32> to vector<1x1x32xf32>
    %212 = vector.broadcast %211 : vector<1x1x32xf32> to vector<2x8x32xf32>
    %213 = arith.addf %210, %212 : vector<2x8x32xf32>
    %c1 = arith.constant 1 : index
    %c0_73 = arith.constant 0 : index
    %c0_74 = arith.constant 0 : index
    %214 = vector.load %arg2[%c1, %c0_73, %c0_74] : memref<2x32x96xf32, #tpu.memory_space<vmem>>, vector<1x32x96xf32>
    %215 = vector.shape_cast %214 : vector<1x32x96xf32> to vector<32x96xf32>
    %c1_75 = arith.constant 1 : index
    %c0_76 = arith.constant 0 : index
    %c0_77 = arith.constant 0 : index
    %216 = vector.load %arg3[%c1_75, %c0_76, %c0_77] : memref<2x1x96xf32, #tpu.memory_space<vmem>>, vector<1x1x96xf32>
    %217 = vector.shape_cast %216 : vector<1x1x96xf32> to vector<1x96xf32>
    %c1_78 = arith.constant 1 : index
    %c0_79 = arith.constant 0 : index
    %c0_80 = arith.constant 0 : index
    %218 = vector.load %arg4[%c1_78, %c0_79, %c0_80] : memref<2x32x32xf32, #tpu.memory_space<vmem>>, vector<1x32x32xf32>
    %219 = vector.shape_cast %218 : vector<1x32x32xf32> to vector<32x32xf32>
    %c1_81 = arith.constant 1 : index
    %c0_82 = arith.constant 0 : index
    %c0_83 = arith.constant 0 : index
    %220 = vector.load %arg5[%c1_81, %c0_82, %c0_83] : memref<2x1x32xf32, #tpu.memory_space<vmem>>, vector<1x1x32xf32>
    %221 = vector.shape_cast %220 : vector<1x1x32xf32> to vector<1x32xf32>
    %222 = vector.shape_cast %213 : vector<2x8x32xf32> to vector<16x32xf32>
    %223 = arith.truncf %222 : vector<16x32xf32> to vector<16x32xbf16>
    %224 = arith.truncf %215 : vector<32x96xf32> to vector<32x96xbf16>
    %cst_84 = arith.constant dense<0.000000e+00> : vector<16x96xf32>
    %225 = tpu.matmul %223, %224, %cst_84 {dimension_numbers = #tpu.dot_dimension_numbers<[1], [0], [0], [1], [0, 0, 1, 1], [], []>} : vector<16x32xbf16>, vector<32x96xbf16>, vector<16x96xf32> -> vector<16x96xf32>
    %226 = vector.shape_cast %225 : vector<16x96xf32> to vector<2x8x96xf32>
    %227 = vector.shape_cast %217 : vector<1x96xf32> to vector<1x1x96xf32>
    %228 = vector.broadcast %227 : vector<1x1x96xf32> to vector<2x8x96xf32>
    %229 = arith.addf %226, %228 : vector<2x8x96xf32>
    %230 = vector.extract_strided_slice %229 {offsets = [0, 0, 0], sizes = [2, 8, 32], strides = [1, 1, 1]} : vector<2x8x96xf32> to vector<2x8x32xf32>
    %231 = vector.extract_strided_slice %229 {offsets = [0, 0, 32], sizes = [2, 8, 32], strides = [1, 1, 1]} : vector<2x8x96xf32> to vector<2x8x32xf32>
    %232 = vector.extract_strided_slice %229 {offsets = [0, 0, 64], sizes = [2, 8, 32], strides = [1, 1, 1]} : vector<2x8x96xf32> to vector<2x8x32xf32>
    %cst_85 = arith.constant 0.353553385 : f32
    %233 = vector.broadcast %cst_85 : f32 to vector<2x8x32xf32>
    %234 = arith.mulf %230, %233 : vector<2x8x32xf32>
    %cst_86 = arith.constant 0.000000e+00 : f32
    %235 = vector.broadcast %cst_86 : f32 to vector<2x8x32xf32>
    %236 = vector.extract_strided_slice %234 {offsets = [0, 0, 0], sizes = [2, 8, 8], strides = [1, 1, 1]} : vector<2x8x32xf32> to vector<2x8x8xf32>
    %237 = arith.truncf %236 : vector<2x8x8xf32> to vector<2x8x8xbf16>
    %238 = vector.extract_strided_slice %231 {offsets = [0, 0, 0], sizes = [2, 8, 8], strides = [1, 1, 1]} : vector<2x8x32xf32> to vector<2x8x8xf32>
    %239 = arith.truncf %238 : vector<2x8x8xf32> to vector<2x8x8xbf16>
    "tpu.trace_start"() <{level = 10 : i32, message = "bqd,bkd->bqk"}> : () -> ()
    %cst_87 = arith.constant dense<0.000000e+00> : vector<2x8x8xf32>
    %240 = tpu.matmul %237, %239, %cst_87 {dimension_numbers = #tpu.dot_dimension_numbers<[2], [2], [1], [1], [0, 0, 0, 1, 1, 1], [0], [0]>} : vector<2x8x8xbf16>, vector<2x8x8xbf16>, vector<2x8x8xf32> -> vector<2x8x8xf32>
    "tpu.trace_stop"() : () -> ()
    %cst_88 = arith.constant dense<0xFF800000> : vector<2x8xf32>
    %241 = vector.multi_reduction <maximumf>, %240, %cst_88 [2] : vector<2x8x8xf32> to vector<2x8xf32>
    %242 = vector.shape_cast %241 : vector<2x8xf32> to vector<2x8x1xf32>
    %243 = vector.broadcast %242 : vector<2x8x1xf32> to vector<2x8x8xf32>
    %244 = arith.subf %240, %243 : vector<2x8x8xf32>
    %245 = math.exp %244 : vector<2x8x8xf32>
    %cst_89 = arith.constant dense<0.000000e+00> : vector<2x8xf32>
    %246 = vector.multi_reduction <add>, %245, %cst_89 [2] : vector<2x8x8xf32> to vector<2x8xf32>
    %247 = vector.shape_cast %246 : vector<2x8xf32> to vector<2x8x1xf32>
    %248 = tpu.reciprocal %247 {approx = true} : vector<2x8x1xf32> -> vector<2x8x1xf32>
    %249 = vector.broadcast %248 : vector<2x8x1xf32> to vector<2x8x8xf32>
    %250 = arith.mulf %245, %249 : vector<2x8x8xf32>
    %251 = arith.truncf %250 : vector<2x8x8xf32> to vector<2x8x8xbf16>
    %252 = vector.extract_strided_slice %232 {offsets = [0, 0, 0], sizes = [2, 8, 8], strides = [1, 1, 1]} : vector<2x8x32xf32> to vector<2x8x8xf32>
    %253 = arith.truncf %252 : vector<2x8x8xf32> to vector<2x8x8xbf16>
    "tpu.trace_start"() <{level = 10 : i32, message = "bqk,bkd->bqd"}> : () -> ()
    %cst_90 = arith.constant dense<0.000000e+00> : vector<2x8x8xf32>
    %254 = tpu.matmul %251, %253, %cst_90 {dimension_numbers = #tpu.dot_dimension_numbers<[2], [1], [1], [2], [0, 0, 0, 1, 1, 2], [0], [0]>} : vector<2x8x8xbf16>, vector<2x8x8xbf16>, vector<2x8x8xf32> -> vector<2x8x8xf32>
    "tpu.trace_stop"() : () -> ()
    %255 = vector.extract_strided_slice %219 {offsets = [0, 0], sizes = [8, 32], strides = [1, 1]} : vector<32x32xf32> to vector<8x32xf32>
    %256 = vector.shape_cast %254 : vector<2x8x8xf32> to vector<16x8xf32>
    %257 = arith.truncf %256 : vector<16x8xf32> to vector<16x8xbf16>
    %258 = arith.truncf %255 : vector<8x32xf32> to vector<8x32xbf16>
    %cst_91 = arith.constant dense<0.000000e+00> : vector<16x32xf32>
    %259 = tpu.matmul %257, %258, %cst_91 {dimension_numbers = #tpu.dot_dimension_numbers<[1], [0], [0], [1], [0, 0, 1, 1], [], []>} : vector<16x8xbf16>, vector<8x32xbf16>, vector<16x32xf32> -> vector<16x32xf32>
    %260 = vector.shape_cast %259 : vector<16x32xf32> to vector<2x8x32xf32>
    %261 = arith.addf %235, %260 : vector<2x8x32xf32>
    %262 = vector.extract_strided_slice %234 {offsets = [0, 0, 8], sizes = [2, 8, 8], strides = [1, 1, 1]} : vector<2x8x32xf32> to vector<2x8x8xf32>
    %263 = arith.truncf %262 : vector<2x8x8xf32> to vector<2x8x8xbf16>
    %264 = vector.extract_strided_slice %231 {offsets = [0, 0, 8], sizes = [2, 8, 8], strides = [1, 1, 1]} : vector<2x8x32xf32> to vector<2x8x8xf32>
    %265 = arith.truncf %264 : vector<2x8x8xf32> to vector<2x8x8xbf16>
    "tpu.trace_start"() <{level = 10 : i32, message = "bqd,bkd->bqk"}> : () -> ()
    %cst_92 = arith.constant dense<0.000000e+00> : vector<2x8x8xf32>
    %266 = tpu.matmul %263, %265, %cst_92 {dimension_numbers = #tpu.dot_dimension_numbers<[2], [2], [1], [1], [0, 0, 0, 1, 1, 1], [0], [0]>} : vector<2x8x8xbf16>, vector<2x8x8xbf16>, vector<2x8x8xf32> -> vector<2x8x8xf32>
    "tpu.trace_stop"() : () -> ()
    %cst_93 = arith.constant dense<0xFF800000> : vector<2x8xf32>
    %267 = vector.multi_reduction <maximumf>, %266, %cst_93 [2] : vector<2x8x8xf32> to vector<2x8xf32>
    %268 = vector.shape_cast %267 : vector<2x8xf32> to vector<2x8x1xf32>
    %269 = vector.broadcast %268 : vector<2x8x1xf32> to vector<2x8x8xf32>
    %270 = arith.subf %266, %269 : vector<2x8x8xf32>
    %271 = math.exp %270 : vector<2x8x8xf32>
    %cst_94 = arith.constant dense<0.000000e+00> : vector<2x8xf32>
    %272 = vector.multi_reduction <add>, %271, %cst_94 [2] : vector<2x8x8xf32> to vector<2x8xf32>
    %273 = vector.shape_cast %272 : vector<2x8xf32> to vector<2x8x1xf32>
    %274 = tpu.reciprocal %273 {approx = true} : vector<2x8x1xf32> -> vector<2x8x1xf32>
    %275 = vector.broadcast %274 : vector<2x8x1xf32> to vector<2x8x8xf32>
    %276 = arith.mulf %271, %275 : vector<2x8x8xf32>
    %277 = arith.truncf %276 : vector<2x8x8xf32> to vector<2x8x8xbf16>
    %278 = vector.extract_strided_slice %232 {offsets = [0, 0, 8], sizes = [2, 8, 8], strides = [1, 1, 1]} : vector<2x8x32xf32> to vector<2x8x8xf32>
    %279 = arith.truncf %278 : vector<2x8x8xf32> to vector<2x8x8xbf16>
    "tpu.trace_start"() <{level = 10 : i32, message = "bqk,bkd->bqd"}> : () -> ()
    %cst_95 = arith.constant dense<0.000000e+00> : vector<2x8x8xf32>
    %280 = tpu.matmul %277, %279, %cst_95 {dimension_numbers = #tpu.dot_dimension_numbers<[2], [1], [1], [2], [0, 0, 0, 1, 1, 2], [0], [0]>} : vector<2x8x8xbf16>, vector<2x8x8xbf16>, vector<2x8x8xf32> -> vector<2x8x8xf32>
    "tpu.trace_stop"() : () -> ()
    %281 = vector.extract_strided_slice %219 {offsets = [8, 0], sizes = [8, 32], strides = [1, 1]} : vector<32x32xf32> to vector<8x32xf32>
    %282 = vector.shape_cast %280 : vector<2x8x8xf32> to vector<16x8xf32>
    %283 = arith.truncf %282 : vector<16x8xf32> to vector<16x8xbf16>
    %284 = arith.truncf %281 : vector<8x32xf32> to vector<8x32xbf16>
    %cst_96 = arith.constant dense<0.000000e+00> : vector<16x32xf32>
    %285 = tpu.matmul %283, %284, %cst_96 {dimension_numbers = #tpu.dot_dimension_numbers<[1], [0], [0], [1], [0, 0, 1, 1], [], []>} : vector<16x8xbf16>, vector<8x32xbf16>, vector<16x32xf32> -> vector<16x32xf32>
    %286 = vector.shape_cast %285 : vector<16x32xf32> to vector<2x8x32xf32>
    %287 = arith.addf %261, %286 : vector<2x8x32xf32>
    %288 = vector.extract_strided_slice %234 {offsets = [0, 0, 16], sizes = [2, 8, 8], strides = [1, 1, 1]} : vector<2x8x32xf32> to vector<2x8x8xf32>
    %289 = arith.truncf %288 : vector<2x8x8xf32> to vector<2x8x8xbf16>
    %290 = vector.extract_strided_slice %231 {offsets = [0, 0, 16], sizes = [2, 8, 8], strides = [1, 1, 1]} : vector<2x8x32xf32> to vector<2x8x8xf32>
    %291 = arith.truncf %290 : vector<2x8x8xf32> to vector<2x8x8xbf16>
    "tpu.trace_start"() <{level = 10 : i32, message = "bqd,bkd->bqk"}> : () -> ()
    %cst_97 = arith.constant dense<0.000000e+00> : vector<2x8x8xf32>
    %292 = tpu.matmul %289, %291, %cst_97 {dimension_numbers = #tpu.dot_dimension_numbers<[2], [2], [1], [1], [0, 0, 0, 1, 1, 1], [0], [0]>} : vector<2x8x8xbf16>, vector<2x8x8xbf16>, vector<2x8x8xf32> -> vector<2x8x8xf32>
    "tpu.trace_stop"() : () -> ()
    %cst_98 = arith.constant dense<0xFF800000> : vector<2x8xf32>
    %293 = vector.multi_reduction <maximumf>, %292, %cst_98 [2] : vector<2x8x8xf32> to vector<2x8xf32>
    %294 = vector.shape_cast %293 : vector<2x8xf32> to vector<2x8x1xf32>
    %295 = vector.broadcast %294 : vector<2x8x1xf32> to vector<2x8x8xf32>
    %296 = arith.subf %292, %295 : vector<2x8x8xf32>
    %297 = math.exp %296 : vector<2x8x8xf32>
    %cst_99 = arith.constant dense<0.000000e+00> : vector<2x8xf32>
    %298 = vector.multi_reduction <add>, %297, %cst_99 [2] : vector<2x8x8xf32> to vector<2x8xf32>
    %299 = vector.shape_cast %298 : vector<2x8xf32> to vector<2x8x1xf32>
    %300 = tpu.reciprocal %299 {approx = true} : vector<2x8x1xf32> -> vector<2x8x1xf32>
    %301 = vector.broadcast %300 : vector<2x8x1xf32> to vector<2x8x8xf32>
    %302 = arith.mulf %297, %301 : vector<2x8x8xf32>
    %303 = arith.truncf %302 : vector<2x8x8xf32> to vector<2x8x8xbf16>
    %304 = vector.extract_strided_slice %232 {offsets = [0, 0, 16], sizes = [2, 8, 8], strides = [1, 1, 1]} : vector<2x8x32xf32> to vector<2x8x8xf32>
    %305 = arith.truncf %304 : vector<2x8x8xf32> to vector<2x8x8xbf16>
    "tpu.trace_start"() <{level = 10 : i32, message = "bqk,bkd->bqd"}> : () -> ()
    %cst_100 = arith.constant dense<0.000000e+00> : vector<2x8x8xf32>
    %306 = tpu.matmul %303, %305, %cst_100 {dimension_numbers = #tpu.dot_dimension_numbers<[2], [1], [1], [2], [0, 0, 0, 1, 1, 2], [0], [0]>} : vector<2x8x8xbf16>, vector<2x8x8xbf16>, vector<2x8x8xf32> -> vector<2x8x8xf32>
    "tpu.trace_stop"() : () -> ()
    %307 = vector.extract_strided_slice %219 {offsets = [16, 0], sizes = [8, 32], strides = [1, 1]} : vector<32x32xf32> to vector<8x32xf32>
    %308 = vector.shape_cast %306 : vector<2x8x8xf32> to vector<16x8xf32>
    %309 = arith.truncf %308 : vector<16x8xf32> to vector<16x8xbf16>
    %310 = arith.truncf %307 : vector<8x32xf32> to vector<8x32xbf16>
    %cst_101 = arith.constant dense<0.000000e+00> : vector<16x32xf32>
    %311 = tpu.matmul %309, %310, %cst_101 {dimension_numbers = #tpu.dot_dimension_numbers<[1], [0], [0], [1], [0, 0, 1, 1], [], []>} : vector<16x8xbf16>, vector<8x32xbf16>, vector<16x32xf32> -> vector<16x32xf32>
    %312 = vector.shape_cast %311 : vector<16x32xf32> to vector<2x8x32xf32>
    %313 = arith.addf %287, %312 : vector<2x8x32xf32>
    %314 = vector.extract_strided_slice %234 {offsets = [0, 0, 24], sizes = [2, 8, 8], strides = [1, 1, 1]} : vector<2x8x32xf32> to vector<2x8x8xf32>
    %315 = arith.truncf %314 : vector<2x8x8xf32> to vector<2x8x8xbf16>
    %316 = vector.extract_strided_slice %231 {offsets = [0, 0, 24], sizes = [2, 8, 8], strides = [1, 1, 1]} : vector<2x8x32xf32> to vector<2x8x8xf32>
    %317 = arith.truncf %316 : vector<2x8x8xf32> to vector<2x8x8xbf16>
    "tpu.trace_start"() <{level = 10 : i32, message = "bqd,bkd->bqk"}> : () -> ()
    %cst_102 = arith.constant dense<0.000000e+00> : vector<2x8x8xf32>
    %318 = tpu.matmul %315, %317, %cst_102 {dimension_numbers = #tpu.dot_dimension_numbers<[2], [2], [1], [1], [0, 0, 0, 1, 1, 1], [0], [0]>} : vector<2x8x8xbf16>, vector<2x8x8xbf16>, vector<2x8x8xf32> -> vector<2x8x8xf32>
    "tpu.trace_stop"() : () -> ()
    %cst_103 = arith.constant dense<0xFF800000> : vector<2x8xf32>
    %319 = vector.multi_reduction <maximumf>, %318, %cst_103 [2] : vector<2x8x8xf32> to vector<2x8xf32>
    %320 = vector.shape_cast %319 : vector<2x8xf32> to vector<2x8x1xf32>
    %321 = vector.broadcast %320 : vector<2x8x1xf32> to vector<2x8x8xf32>
    %322 = arith.subf %318, %321 : vector<2x8x8xf32>
    %323 = math.exp %322 : vector<2x8x8xf32>
    %cst_104 = arith.constant dense<0.000000e+00> : vector<2x8xf32>
    %324 = vector.multi_reduction <add>, %323, %cst_104 [2] : vector<2x8x8xf32> to vector<2x8xf32>
    %325 = vector.shape_cast %324 : vector<2x8xf32> to vector<2x8x1xf32>
    %326 = tpu.reciprocal %325 {approx = true} : vector<2x8x1xf32> -> vector<2x8x1xf32>
    %327 = vector.broadcast %326 : vector<2x8x1xf32> to vector<2x8x8xf32>
    %328 = arith.mulf %323, %327 : vector<2x8x8xf32>
    %329 = arith.truncf %328 : vector<2x8x8xf32> to vector<2x8x8xbf16>
    %330 = vector.extract_strided_slice %232 {offsets = [0, 0, 24], sizes = [2, 8, 8], strides = [1, 1, 1]} : vector<2x8x32xf32> to vector<2x8x8xf32>
    %331 = arith.truncf %330 : vector<2x8x8xf32> to vector<2x8x8xbf16>
    "tpu.trace_start"() <{level = 10 : i32, message = "bqk,bkd->bqd"}> : () -> ()
    %cst_105 = arith.constant dense<0.000000e+00> : vector<2x8x8xf32>
    %332 = tpu.matmul %329, %331, %cst_105 {dimension_numbers = #tpu.dot_dimension_numbers<[2], [1], [1], [2], [0, 0, 0, 1, 1, 2], [0], [0]>} : vector<2x8x8xbf16>, vector<2x8x8xbf16>, vector<2x8x8xf32> -> vector<2x8x8xf32>
    "tpu.trace_stop"() : () -> ()
    %333 = vector.extract_strided_slice %219 {offsets = [24, 0], sizes = [8, 32], strides = [1, 1]} : vector<32x32xf32> to vector<8x32xf32>
    %334 = vector.shape_cast %332 : vector<2x8x8xf32> to vector<16x8xf32>
    %335 = arith.truncf %334 : vector<16x8xf32> to vector<16x8xbf16>
    %336 = arith.truncf %333 : vector<8x32xf32> to vector<8x32xbf16>
    %cst_106 = arith.constant dense<0.000000e+00> : vector<16x32xf32>
    %337 = tpu.matmul %335, %336, %cst_106 {dimension_numbers = #tpu.dot_dimension_numbers<[1], [0], [0], [1], [0, 0, 1, 1], [], []>} : vector<16x8xbf16>, vector<8x32xbf16>, vector<16x32xf32> -> vector<16x32xf32>
    %338 = vector.shape_cast %337 : vector<16x32xf32> to vector<2x8x32xf32>
    %339 = arith.addf %313, %338 : vector<2x8x32xf32>
    %340 = vector.shape_cast %221 : vector<1x32xf32> to vector<1x1x32xf32>
    %341 = vector.broadcast %340 : vector<1x1x32xf32> to vector<2x8x32xf32>
    %342 = arith.addf %339, %341 : vector<2x8x32xf32>
    %343 = arith.addf %213, %342 : vector<2x8x32xf32>
    %c1_107 = arith.constant 1 : index
    %c0_108 = arith.constant 0 : index
    %c0_109 = arith.constant 0 : index
    %344 = vector.load %arg6[%c1_107, %c0_108, %c0_109] : memref<2x1x32xf32, #tpu.memory_space<vmem>>, vector<1x1x32xf32>
    %345 = vector.shape_cast %344 : vector<1x1x32xf32> to vector<1x32xf32>
    %c1_110 = arith.constant 1 : index
    %c0_111 = arith.constant 0 : index
    %c0_112 = arith.constant 0 : index
    %346 = vector.load %arg7[%c1_110, %c0_111, %c0_112] : memref<2x1x32xf32, #tpu.memory_space<vmem>>, vector<1x1x32xf32>
    %347 = vector.shape_cast %346 : vector<1x1x32xf32> to vector<1x32xf32>
    %cst_113 = arith.constant dense<0.000000e+00> : vector<2x8xf32>
    %348 = vector.multi_reduction <add>, %343, %cst_113 [2] : vector<2x8x32xf32> to vector<2x8xf32>
    %349 = vector.shape_cast %348 : vector<2x8xf32> to vector<2x8x1xf32>
    %cst_114 = arith.constant 3.200000e+01 : f32
    %350 = vector.broadcast %cst_114 : f32 to vector<2x8x1xf32>
    %351 = arith.divf %349, %350 : vector<2x8x1xf32>
    %352 = vector.broadcast %351 : vector<2x8x1xf32> to vector<2x8x32xf32>
    %353 = arith.subf %343, %352 : vector<2x8x32xf32>
    %354 = arith.mulf %353, %353 : vector<2x8x32xf32>
    %cst_115 = arith.constant dense<0.000000e+00> : vector<2x8xf32>
    %355 = vector.multi_reduction <add>, %354, %cst_115 [2] : vector<2x8x32xf32> to vector<2x8xf32>
    %356 = vector.shape_cast %355 : vector<2x8xf32> to vector<2x8x1xf32>
    %cst_116 = arith.constant 3.200000e+01 : f32
    %357 = vector.broadcast %cst_116 : f32 to vector<2x8x1xf32>
    %358 = arith.divf %356, %357 : vector<2x8x1xf32>
    %359 = vector.broadcast %351 : vector<2x8x1xf32> to vector<2x8x32xf32>
    %360 = arith.subf %343, %359 : vector<2x8x32xf32>
    %cst_117 = arith.constant 9.99999974E-6 : f32
    %361 = vector.broadcast %cst_117 : f32 to vector<2x8x1xf32>
    %362 = arith.addf %358, %361 : vector<2x8x1xf32>
    %363 = math.rsqrt %362 : vector<2x8x1xf32>
    %364 = vector.broadcast %363 : vector<2x8x1xf32> to vector<2x8x32xf32>
    %365 = arith.mulf %360, %364 : vector<2x8x32xf32>
    %366 = vector.shape_cast %345 : vector<1x32xf32> to vector<1x1x32xf32>
    %367 = vector.broadcast %366 : vector<1x1x32xf32> to vector<2x8x32xf32>
    %368 = arith.mulf %365, %367 : vector<2x8x32xf32>
    %369 = vector.shape_cast %347 : vector<1x32xf32> to vector<1x1x32xf32>
    %370 = vector.broadcast %369 : vector<1x1x32xf32> to vector<2x8x32xf32>
    %371 = arith.addf %368, %370 : vector<2x8x32xf32>
    %c1_118 = arith.constant 1 : index
    %c0_119 = arith.constant 0 : index
    %c0_120 = arith.constant 0 : index
    %372 = vector.load %arg8[%c1_118, %c0_119, %c0_120] : memref<2x32x512xf32, #tpu.memory_space<vmem>>, vector<1x32x512xf32>
    %373 = vector.shape_cast %372 : vector<1x32x512xf32> to vector<32x512xf32>
    %c1_121 = arith.constant 1 : index
    %c0_122 = arith.constant 0 : index
    %c0_123 = arith.constant 0 : index
    %374 = vector.load %arg9[%c1_121, %c0_122, %c0_123] : memref<2x1x512xf32, #tpu.memory_space<vmem>>, vector<1x1x512xf32>
    %375 = vector.shape_cast %374 : vector<1x1x512xf32> to vector<1x512xf32>
    %c1_124 = arith.constant 1 : index
    %c0_125 = arith.constant 0 : index
    %c0_126 = arith.constant 0 : index
    %376 = vector.load %arg10[%c1_124, %c0_125, %c0_126] : memref<2x512x32xf32, #tpu.memory_space<vmem>>, vector<1x512x32xf32>
    %377 = vector.shape_cast %376 : vector<1x512x32xf32> to vector<512x32xf32>
    %c1_127 = arith.constant 1 : index
    %c0_128 = arith.constant 0 : index
    %c0_129 = arith.constant 0 : index
    %378 = vector.load %arg11[%c1_127, %c0_128, %c0_129] : memref<2x1x32xf32, #tpu.memory_space<vmem>>, vector<1x1x32xf32>
    %379 = vector.shape_cast %378 : vector<1x1x32xf32> to vector<1x32xf32>
    %380 = vector.shape_cast %371 : vector<2x8x32xf32> to vector<16x32xf32>
    %381 = arith.truncf %380 : vector<16x32xf32> to vector<16x32xbf16>
    %382 = arith.truncf %373 : vector<32x512xf32> to vector<32x512xbf16>
    %cst_130 = arith.constant dense<0.000000e+00> : vector<16x512xf32>
    %383 = tpu.matmul %381, %382, %cst_130 {dimension_numbers = #tpu.dot_dimension_numbers<[1], [0], [0], [1], [0, 0, 1, 1], [], []>} : vector<16x32xbf16>, vector<32x512xbf16>, vector<16x512xf32> -> vector<16x512xf32>
    %384 = vector.shape_cast %383 : vector<16x512xf32> to vector<2x8x512xf32>
    %385 = vector.shape_cast %375 : vector<1x512xf32> to vector<1x1x512xf32>
    %386 = vector.broadcast %385 : vector<1x1x512xf32> to vector<2x8x512xf32>
    %387 = arith.addf %384, %386 : vector<2x8x512xf32>
    %cst_131 = arith.constant 0.000000e+00 : f32
    %388 = vector.broadcast %cst_131 : f32 to vector<2x8x512xf32>
    %389 = arith.maximumf %387, %388 : vector<2x8x512xf32>
    %390 = vector.shape_cast %389 : vector<2x8x512xf32> to vector<16x512xf32>
    %391 = arith.truncf %390 : vector<16x512xf32> to vector<16x512xbf16>
    %392 = arith.truncf %377 : vector<512x32xf32> to vector<512x32xbf16>
    %cst_132 = arith.constant dense<0.000000e+00> : vector<16x32xf32>
    %393 = tpu.matmul %391, %392, %cst_132 {dimension_numbers = #tpu.dot_dimension_numbers<[1], [0], [0], [1], [0, 0, 1, 1], [], []>} : vector<16x512xbf16>, vector<512x32xbf16>, vector<16x32xf32> -> vector<16x32xf32>
    %394 = vector.shape_cast %393 : vector<16x32xf32> to vector<2x8x32xf32>
    %395 = vector.shape_cast %379 : vector<1x32xf32> to vector<1x1x32xf32>
    %396 = vector.broadcast %395 : vector<1x1x32xf32> to vector<2x8x32xf32>
    %397 = arith.addf %394, %396 : vector<2x8x32xf32>
    %398 = arith.addf %371, %397 : vector<2x8x32xf32>
    %c1_133 = arith.constant 1 : index
    %c0_134 = arith.constant 0 : index
    %c0_135 = arith.constant 0 : index
    %399 = vector.load %arg12[%c1_133, %c0_134, %c0_135] : memref<2x1x32xf32, #tpu.memory_space<vmem>>, vector<1x1x32xf32>
    %400 = vector.shape_cast %399 : vector<1x1x32xf32> to vector<1x32xf32>
    %c1_136 = arith.constant 1 : index
    %c0_137 = arith.constant 0 : index
    %c0_138 = arith.constant 0 : index
    %401 = vector.load %arg13[%c1_136, %c0_137, %c0_138] : memref<2x1x32xf32, #tpu.memory_space<vmem>>, vector<1x1x32xf32>
    %402 = vector.shape_cast %401 : vector<1x1x32xf32> to vector<1x32xf32>
    %cst_139 = arith.constant dense<0.000000e+00> : vector<2x8xf32>
    %403 = vector.multi_reduction <add>, %398, %cst_139 [2] : vector<2x8x32xf32> to vector<2x8xf32>
    %404 = vector.shape_cast %403 : vector<2x8xf32> to vector<2x8x1xf32>
    %cst_140 = arith.constant 3.200000e+01 : f32
    %405 = vector.broadcast %cst_140 : f32 to vector<2x8x1xf32>
    %406 = arith.divf %404, %405 : vector<2x8x1xf32>
    %407 = vector.broadcast %406 : vector<2x8x1xf32> to vector<2x8x32xf32>
    %408 = arith.subf %398, %407 : vector<2x8x32xf32>
    %409 = arith.mulf %408, %408 : vector<2x8x32xf32>
    %cst_141 = arith.constant dense<0.000000e+00> : vector<2x8xf32>
    %410 = vector.multi_reduction <add>, %409, %cst_141 [2] : vector<2x8x32xf32> to vector<2x8xf32>
    %411 = vector.shape_cast %410 : vector<2x8xf32> to vector<2x8x1xf32>
    %cst_142 = arith.constant 3.200000e+01 : f32
    %412 = vector.broadcast %cst_142 : f32 to vector<2x8x1xf32>
    %413 = arith.divf %411, %412 : vector<2x8x1xf32>
    %414 = vector.broadcast %406 : vector<2x8x1xf32> to vector<2x8x32xf32>
    %415 = arith.subf %398, %414 : vector<2x8x32xf32>
    %cst_143 = arith.constant 9.99999974E-6 : f32
    %416 = vector.broadcast %cst_143 : f32 to vector<2x8x1xf32>
    %417 = arith.addf %413, %416 : vector<2x8x1xf32>
    %418 = math.rsqrt %417 : vector<2x8x1xf32>
    %419 = vector.broadcast %418 : vector<2x8x1xf32> to vector<2x8x32xf32>
    %420 = arith.mulf %415, %419 : vector<2x8x32xf32>
    %421 = vector.shape_cast %400 : vector<1x32xf32> to vector<1x1x32xf32>
    %422 = vector.broadcast %421 : vector<1x1x32xf32> to vector<2x8x32xf32>
    %423 = arith.mulf %420, %422 : vector<2x8x32xf32>
    %424 = vector.shape_cast %402 : vector<1x32xf32> to vector<1x1x32xf32>
    %425 = vector.broadcast %424 : vector<1x1x32xf32> to vector<2x8x32xf32>
    %426 = arith.addf %423, %425 : vector<2x8x32xf32>
    %c0_144 = arith.constant 0 : index
    %c0_145 = arith.constant 0 : index
    %427 = vector.load %arg14[%c0_144, %c0_145] : memref<1x32xf32, #tpu.memory_space<vmem>>, vector<1x32xf32>
    %c0_146 = arith.constant 0 : index
    %c0_147 = arith.constant 0 : index
    %428 = vector.load %arg15[%c0_146, %c0_147] : memref<1x32xf32, #tpu.memory_space<vmem>>, vector<1x32xf32>
    %cst_148 = arith.constant dense<0.000000e+00> : vector<2x8xf32>
    %429 = vector.multi_reduction <add>, %426, %cst_148 [2] : vector<2x8x32xf32> to vector<2x8xf32>
    %430 = vector.shape_cast %429 : vector<2x8xf32> to vector<2x8x1xf32>
    %cst_149 = arith.constant 3.200000e+01 : f32
    %431 = vector.broadcast %cst_149 : f32 to vector<2x8x1xf32>
    %432 = arith.divf %430, %431 : vector<2x8x1xf32>
    %433 = vector.broadcast %432 : vector<2x8x1xf32> to vector<2x8x32xf32>
    %434 = arith.subf %426, %433 : vector<2x8x32xf32>
    %435 = arith.mulf %434, %434 : vector<2x8x32xf32>
    %cst_150 = arith.constant dense<0.000000e+00> : vector<2x8xf32>
    %436 = vector.multi_reduction <add>, %435, %cst_150 [2] : vector<2x8x32xf32> to vector<2x8xf32>
    %437 = vector.shape_cast %436 : vector<2x8xf32> to vector<2x8x1xf32>
    %cst_151 = arith.constant 3.200000e+01 : f32
    %438 = vector.broadcast %cst_151 : f32 to vector<2x8x1xf32>
    %439 = arith.divf %437, %438 : vector<2x8x1xf32>
    %440 = vector.broadcast %432 : vector<2x8x1xf32> to vector<2x8x32xf32>
    %441 = arith.subf %426, %440 : vector<2x8x32xf32>
    %cst_152 = arith.constant 9.99999974E-6 : f32
    %442 = vector.broadcast %cst_152 : f32 to vector<2x8x1xf32>
    %443 = arith.addf %439, %442 : vector<2x8x1xf32>
    %444 = math.rsqrt %443 : vector<2x8x1xf32>
    %445 = vector.broadcast %444 : vector<2x8x1xf32> to vector<2x8x32xf32>
    %446 = arith.mulf %441, %445 : vector<2x8x32xf32>
    %447 = vector.shape_cast %427 : vector<1x32xf32> to vector<1x1x32xf32>
    %448 = vector.broadcast %447 : vector<1x1x32xf32> to vector<2x8x32xf32>
    %449 = arith.mulf %446, %448 : vector<2x8x32xf32>
    %450 = vector.shape_cast %428 : vector<1x32xf32> to vector<1x1x32xf32>
    %451 = vector.broadcast %450 : vector<1x1x32xf32> to vector<2x8x32xf32>
    %452 = arith.addf %449, %451 : vector<2x8x32xf32>
    %c0_153 = arith.constant 0 : index
    %c0_154 = arith.constant 0 : index
    %c0_155 = arith.constant 0 : index
    %453 = vector.load %arg1[%c0_153, %c0_154, %c0_155] : memref<2x8x32xf32, #tpu.memory_space<vmem>>, vector<2x8x32xf32>
    %c0_156 = arith.constant 0 : index
    %c0_157 = arith.constant 0 : index
    %c0_158 = arith.constant 0 : index
    %454 = vector.load %arg16[%c0_156, %c0_157, %c0_158] : memref<2x32x96xf32, #tpu.memory_space<vmem>>, vector<1x32x96xf32>
    %455 = vector.shape_cast %454 : vector<1x32x96xf32> to vector<32x96xf32>
    %c0_159 = arith.constant 0 : index
    %c0_160 = arith.constant 0 : index
    %c0_161 = arith.constant 0 : index
    %456 = vector.load %arg17[%c0_159, %c0_160, %c0_161] : memref<2x1x96xf32, #tpu.memory_space<vmem>>, vector<1x1x96xf32>
    %457 = vector.shape_cast %456 : vector<1x1x96xf32> to vector<1x96xf32>
    %c0_162 = arith.constant 0 : index
    %c0_163 = arith.constant 0 : index
    %c0_164 = arith.constant 0 : index
    %458 = vector.load %arg18[%c0_162, %c0_163, %c0_164] : memref<2x32x32xf32, #tpu.memory_space<vmem>>, vector<1x32x32xf32>
    %459 = vector.shape_cast %458 : vector<1x32x32xf32> to vector<32x32xf32>
    %c0_165 = arith.constant 0 : index
    %c0_166 = arith.constant 0 : index
    %c0_167 = arith.constant 0 : index
    %460 = vector.load %arg19[%c0_165, %c0_166, %c0_167] : memref<2x1x32xf32, #tpu.memory_space<vmem>>, vector<1x1x32xf32>
    %461 = vector.shape_cast %460 : vector<1x1x32xf32> to vector<1x32xf32>
    %462 = vector.shape_cast %453 : vector<2x8x32xf32> to vector<16x32xf32>
    %463 = arith.truncf %462 : vector<16x32xf32> to vector<16x32xbf16>
    %464 = arith.truncf %455 : vector<32x96xf32> to vector<32x96xbf16>
    %cst_168 = arith.constant dense<0.000000e+00> : vector<16x96xf32>
    %465 = tpu.matmul %463, %464, %cst_168 {dimension_numbers = #tpu.dot_dimension_numbers<[1], [0], [0], [1], [0, 0, 1, 1], [], []>} : vector<16x32xbf16>, vector<32x96xbf16>, vector<16x96xf32> -> vector<16x96xf32>
    %466 = vector.shape_cast %465 : vector<16x96xf32> to vector<2x8x96xf32>
    %467 = vector.shape_cast %457 : vector<1x96xf32> to vector<1x1x96xf32>
    %468 = vector.broadcast %467 : vector<1x1x96xf32> to vector<2x8x96xf32>
    %469 = arith.addf %466, %468 : vector<2x8x96xf32>
    %470 = vector.extract_strided_slice %469 {offsets = [0, 0, 0], sizes = [2, 8, 32], strides = [1, 1, 1]} : vector<2x8x96xf32> to vector<2x8x32xf32>
    %471 = vector.extract_strided_slice %469 {offsets = [0, 0, 32], sizes = [2, 8, 32], strides = [1, 1, 1]} : vector<2x8x96xf32> to vector<2x8x32xf32>
    %472 = vector.extract_strided_slice %469 {offsets = [0, 0, 64], sizes = [2, 8, 32], strides = [1, 1, 1]} : vector<2x8x96xf32> to vector<2x8x32xf32>
    %cst_169 = arith.constant 0.353553385 : f32
    %473 = vector.broadcast %cst_169 : f32 to vector<2x8x32xf32>
    %474 = arith.mulf %470, %473 : vector<2x8x32xf32>
    %cst_170 = arith.constant 0.000000e+00 : f32
    %475 = vector.broadcast %cst_170 : f32 to vector<2x8x32xf32>
    %476 = vector.extract_strided_slice %474 {offsets = [0, 0, 0], sizes = [2, 8, 8], strides = [1, 1, 1]} : vector<2x8x32xf32> to vector<2x8x8xf32>
    %477 = arith.truncf %476 : vector<2x8x8xf32> to vector<2x8x8xbf16>
    %478 = vector.extract_strided_slice %471 {offsets = [0, 0, 0], sizes = [2, 8, 8], strides = [1, 1, 1]} : vector<2x8x32xf32> to vector<2x8x8xf32>
    %479 = arith.truncf %478 : vector<2x8x8xf32> to vector<2x8x8xbf16>
    "tpu.trace_start"() <{level = 10 : i32, message = "bqd,bkd->bqk"}> : () -> ()
    %cst_171 = arith.constant dense<0.000000e+00> : vector<2x8x8xf32>
    %480 = tpu.matmul %477, %479, %cst_171 {dimension_numbers = #tpu.dot_dimension_numbers<[2], [2], [1], [1], [0, 0, 0, 1, 1, 1], [0], [0]>} : vector<2x8x8xbf16>, vector<2x8x8xbf16>, vector<2x8x8xf32> -> vector<2x8x8xf32>
    "tpu.trace_stop"() : () -> ()
    %cst_172 = arith.constant dense<0xFF800000> : vector<2x8xf32>
    %481 = vector.multi_reduction <maximumf>, %480, %cst_172 [2] : vector<2x8x8xf32> to vector<2x8xf32>
    %482 = vector.shape_cast %481 : vector<2x8xf32> to vector<2x8x1xf32>
    %483 = vector.broadcast %482 : vector<2x8x1xf32> to vector<2x8x8xf32>
    %484 = arith.subf %480, %483 : vector<2x8x8xf32>
    %485 = math.exp %484 : vector<2x8x8xf32>
    %cst_173 = arith.constant dense<0.000000e+00> : vector<2x8xf32>
    %486 = vector.multi_reduction <add>, %485, %cst_173 [2] : vector<2x8x8xf32> to vector<2x8xf32>
    %487 = vector.shape_cast %486 : vector<2x8xf32> to vector<2x8x1xf32>
    %488 = tpu.reciprocal %487 {approx = true} : vector<2x8x1xf32> -> vector<2x8x1xf32>
    %489 = vector.broadcast %488 : vector<2x8x1xf32> to vector<2x8x8xf32>
    %490 = arith.mulf %485, %489 : vector<2x8x8xf32>
    %491 = arith.truncf %490 : vector<2x8x8xf32> to vector<2x8x8xbf16>
    %492 = vector.extract_strided_slice %472 {offsets = [0, 0, 0], sizes = [2, 8, 8], strides = [1, 1, 1]} : vector<2x8x32xf32> to vector<2x8x8xf32>
    %493 = arith.truncf %492 : vector<2x8x8xf32> to vector<2x8x8xbf16>
    "tpu.trace_start"() <{level = 10 : i32, message = "bqk,bkd->bqd"}> : () -> ()
    %cst_174 = arith.constant dense<0.000000e+00> : vector<2x8x8xf32>
    %494 = tpu.matmul %491, %493, %cst_174 {dimension_numbers = #tpu.dot_dimension_numbers<[2], [1], [1], [2], [0, 0, 0, 1, 1, 2], [0], [0]>} : vector<2x8x8xbf16>, vector<2x8x8xbf16>, vector<2x8x8xf32> -> vector<2x8x8xf32>
    "tpu.trace_stop"() : () -> ()
    %495 = vector.extract_strided_slice %459 {offsets = [0, 0], sizes = [8, 32], strides = [1, 1]} : vector<32x32xf32> to vector<8x32xf32>
    %496 = vector.shape_cast %494 : vector<2x8x8xf32> to vector<16x8xf32>
    %497 = arith.truncf %496 : vector<16x8xf32> to vector<16x8xbf16>
    %498 = arith.truncf %495 : vector<8x32xf32> to vector<8x32xbf16>
    %cst_175 = arith.constant dense<0.000000e+00> : vector<16x32xf32>
    %499 = tpu.matmul %497, %498, %cst_175 {dimension_numbers = #tpu.dot_dimension_numbers<[1], [0], [0], [1], [0, 0, 1, 1], [], []>} : vector<16x8xbf16>, vector<8x32xbf16>, vector<16x32xf32> -> vector<16x32xf32>
    %500 = vector.shape_cast %499 : vector<16x32xf32> to vector<2x8x32xf32>
    %501 = arith.addf %475, %500 : vector<2x8x32xf32>
    %502 = vector.extract_strided_slice %474 {offsets = [0, 0, 8], sizes = [2, 8, 8], strides = [1, 1, 1]} : vector<2x8x32xf32> to vector<2x8x8xf32>
    %503 = arith.truncf %502 : vector<2x8x8xf32> to vector<2x8x8xbf16>
    %504 = vector.extract_strided_slice %471 {offsets = [0, 0, 8], sizes = [2, 8, 8], strides = [1, 1, 1]} : vector<2x8x32xf32> to vector<2x8x8xf32>
    %505 = arith.truncf %504 : vector<2x8x8xf32> to vector<2x8x8xbf16>
    "tpu.trace_start"() <{level = 10 : i32, message = "bqd,bkd->bqk"}> : () -> ()
    %cst_176 = arith.constant dense<0.000000e+00> : vector<2x8x8xf32>
    %506 = tpu.matmul %503, %505, %cst_176 {dimension_numbers = #tpu.dot_dimension_numbers<[2], [2], [1], [1], [0, 0, 0, 1, 1, 1], [0], [0]>} : vector<2x8x8xbf16>, vector<2x8x8xbf16>, vector<2x8x8xf32> -> vector<2x8x8xf32>
    "tpu.trace_stop"() : () -> ()
    %cst_177 = arith.constant dense<0xFF800000> : vector<2x8xf32>
    %507 = vector.multi_reduction <maximumf>, %506, %cst_177 [2] : vector<2x8x8xf32> to vector<2x8xf32>
    %508 = vector.shape_cast %507 : vector<2x8xf32> to vector<2x8x1xf32>
    %509 = vector.broadcast %508 : vector<2x8x1xf32> to vector<2x8x8xf32>
    %510 = arith.subf %506, %509 : vector<2x8x8xf32>
    %511 = math.exp %510 : vector<2x8x8xf32>
    %cst_178 = arith.constant dense<0.000000e+00> : vector<2x8xf32>
    %512 = vector.multi_reduction <add>, %511, %cst_178 [2] : vector<2x8x8xf32> to vector<2x8xf32>
    %513 = vector.shape_cast %512 : vector<2x8xf32> to vector<2x8x1xf32>
    %514 = tpu.reciprocal %513 {approx = true} : vector<2x8x1xf32> -> vector<2x8x1xf32>
    %515 = vector.broadcast %514 : vector<2x8x1xf32> to vector<2x8x8xf32>
    %516 = arith.mulf %511, %515 : vector<2x8x8xf32>
    %517 = arith.truncf %516 : vector<2x8x8xf32> to vector<2x8x8xbf16>
    %518 = vector.extract_strided_slice %472 {offsets = [0, 0, 8], sizes = [2, 8, 8], strides = [1, 1, 1]} : vector<2x8x32xf32> to vector<2x8x8xf32>
    %519 = arith.truncf %518 : vector<2x8x8xf32> to vector<2x8x8xbf16>
    "tpu.trace_start"() <{level = 10 : i32, message = "bqk,bkd->bqd"}> : () -> ()
    %cst_179 = arith.constant dense<0.000000e+00> : vector<2x8x8xf32>
    %520 = tpu.matmul %517, %519, %cst_179 {dimension_numbers = #tpu.dot_dimension_numbers<[2], [1], [1], [2], [0, 0, 0, 1, 1, 2], [0], [0]>} : vector<2x8x8xbf16>, vector<2x8x8xbf16>, vector<2x8x8xf32> -> vector<2x8x8xf32>
    "tpu.trace_stop"() : () -> ()
    %521 = vector.extract_strided_slice %459 {offsets = [8, 0], sizes = [8, 32], strides = [1, 1]} : vector<32x32xf32> to vector<8x32xf32>
    %522 = vector.shape_cast %520 : vector<2x8x8xf32> to vector<16x8xf32>
    %523 = arith.truncf %522 : vector<16x8xf32> to vector<16x8xbf16>
    %524 = arith.truncf %521 : vector<8x32xf32> to vector<8x32xbf16>
    %cst_180 = arith.constant dense<0.000000e+00> : vector<16x32xf32>
    %525 = tpu.matmul %523, %524, %cst_180 {dimension_numbers = #tpu.dot_dimension_numbers<[1], [0], [0], [1], [0, 0, 1, 1], [], []>} : vector<16x8xbf16>, vector<8x32xbf16>, vector<16x32xf32> -> vector<16x32xf32>
    %526 = vector.shape_cast %525 : vector<16x32xf32> to vector<2x8x32xf32>
    %527 = arith.addf %501, %526 : vector<2x8x32xf32>
    %528 = vector.extract_strided_slice %474 {offsets = [0, 0, 16], sizes = [2, 8, 8], strides = [1, 1, 1]} : vector<2x8x32xf32> to vector<2x8x8xf32>
    %529 = arith.truncf %528 : vector<2x8x8xf32> to vector<2x8x8xbf16>
    %530 = vector.extract_strided_slice %471 {offsets = [0, 0, 16], sizes = [2, 8, 8], strides = [1, 1, 1]} : vector<2x8x32xf32> to vector<2x8x8xf32>
    %531 = arith.truncf %530 : vector<2x8x8xf32> to vector<2x8x8xbf16>
    "tpu.trace_start"() <{level = 10 : i32, message = "bqd,bkd->bqk"}> : () -> ()
    %cst_181 = arith.constant dense<0.000000e+00> : vector<2x8x8xf32>
    %532 = tpu.matmul %529, %531, %cst_181 {dimension_numbers = #tpu.dot_dimension_numbers<[2], [2], [1], [1], [0, 0, 0, 1, 1, 1], [0], [0]>} : vector<2x8x8xbf16>, vector<2x8x8xbf16>, vector<2x8x8xf32> -> vector<2x8x8xf32>
    "tpu.trace_stop"() : () -> ()
    %cst_182 = arith.constant dense<0xFF800000> : vector<2x8xf32>
    %533 = vector.multi_reduction <maximumf>, %532, %cst_182 [2] : vector<2x8x8xf32> to vector<2x8xf32>
    %534 = vector.shape_cast %533 : vector<2x8xf32> to vector<2x8x1xf32>
    %535 = vector.broadcast %534 : vector<2x8x1xf32> to vector<2x8x8xf32>
    %536 = arith.subf %532, %535 : vector<2x8x8xf32>
    %537 = math.exp %536 : vector<2x8x8xf32>
    %cst_183 = arith.constant dense<0.000000e+00> : vector<2x8xf32>
    %538 = vector.multi_reduction <add>, %537, %cst_183 [2] : vector<2x8x8xf32> to vector<2x8xf32>
    %539 = vector.shape_cast %538 : vector<2x8xf32> to vector<2x8x1xf32>
    %540 = tpu.reciprocal %539 {approx = true} : vector<2x8x1xf32> -> vector<2x8x1xf32>
    %541 = vector.broadcast %540 : vector<2x8x1xf32> to vector<2x8x8xf32>
    %542 = arith.mulf %537, %541 : vector<2x8x8xf32>
    %543 = arith.truncf %542 : vector<2x8x8xf32> to vector<2x8x8xbf16>
    %544 = vector.extract_strided_slice %472 {offsets = [0, 0, 16], sizes = [2, 8, 8], strides = [1, 1, 1]} : vector<2x8x32xf32> to vector<2x8x8xf32>
    %545 = arith.truncf %544 : vector<2x8x8xf32> to vector<2x8x8xbf16>
    "tpu.trace_start"() <{level = 10 : i32, message = "bqk,bkd->bqd"}> : () -> ()
    %cst_184 = arith.constant dense<0.000000e+00> : vector<2x8x8xf32>
    %546 = tpu.matmul %543, %545, %cst_184 {dimension_numbers = #tpu.dot_dimension_numbers<[2], [1], [1], [2], [0, 0, 0, 1, 1, 2], [0], [0]>} : vector<2x8x8xbf16>, vector<2x8x8xbf16>, vector<2x8x8xf32> -> vector<2x8x8xf32>
    "tpu.trace_stop"() : () -> ()
    %547 = vector.extract_strided_slice %459 {offsets = [16, 0], sizes = [8, 32], strides = [1, 1]} : vector<32x32xf32> to vector<8x32xf32>
    %548 = vector.shape_cast %546 : vector<2x8x8xf32> to vector<16x8xf32>
    %549 = arith.truncf %548 : vector<16x8xf32> to vector<16x8xbf16>
    %550 = arith.truncf %547 : vector<8x32xf32> to vector<8x32xbf16>
    %cst_185 = arith.constant dense<0.000000e+00> : vector<16x32xf32>
    %551 = tpu.matmul %549, %550, %cst_185 {dimension_numbers = #tpu.dot_dimension_numbers<[1], [0], [0], [1], [0, 0, 1, 1], [], []>} : vector<16x8xbf16>, vector<8x32xbf16>, vector<16x32xf32> -> vector<16x32xf32>
    %552 = vector.shape_cast %551 : vector<16x32xf32> to vector<2x8x32xf32>
    %553 = arith.addf %527, %552 : vector<2x8x32xf32>
    %554 = vector.extract_strided_slice %474 {offsets = [0, 0, 24], sizes = [2, 8, 8], strides = [1, 1, 1]} : vector<2x8x32xf32> to vector<2x8x8xf32>
    %555 = arith.truncf %554 : vector<2x8x8xf32> to vector<2x8x8xbf16>
    %556 = vector.extract_strided_slice %471 {offsets = [0, 0, 24], sizes = [2, 8, 8], strides = [1, 1, 1]} : vector<2x8x32xf32> to vector<2x8x8xf32>
    %557 = arith.truncf %556 : vector<2x8x8xf32> to vector<2x8x8xbf16>
    "tpu.trace_start"() <{level = 10 : i32, message = "bqd,bkd->bqk"}> : () -> ()
    %cst_186 = arith.constant dense<0.000000e+00> : vector<2x8x8xf32>
    %558 = tpu.matmul %555, %557, %cst_186 {dimension_numbers = #tpu.dot_dimension_numbers<[2], [2], [1], [1], [0, 0, 0, 1, 1, 1], [0], [0]>} : vector<2x8x8xbf16>, vector<2x8x8xbf16>, vector<2x8x8xf32> -> vector<2x8x8xf32>
    "tpu.trace_stop"() : () -> ()
    %cst_187 = arith.constant dense<0xFF800000> : vector<2x8xf32>
    %559 = vector.multi_reduction <maximumf>, %558, %cst_187 [2] : vector<2x8x8xf32> to vector<2x8xf32>
    %560 = vector.shape_cast %559 : vector<2x8xf32> to vector<2x8x1xf32>
    %561 = vector.broadcast %560 : vector<2x8x1xf32> to vector<2x8x8xf32>
    %562 = arith.subf %558, %561 : vector<2x8x8xf32>
    %563 = math.exp %562 : vector<2x8x8xf32>
    %cst_188 = arith.constant dense<0.000000e+00> : vector<2x8xf32>
    %564 = vector.multi_reduction <add>, %563, %cst_188 [2] : vector<2x8x8xf32> to vector<2x8xf32>
    %565 = vector.shape_cast %564 : vector<2x8xf32> to vector<2x8x1xf32>
    %566 = tpu.reciprocal %565 {approx = true} : vector<2x8x1xf32> -> vector<2x8x1xf32>
    %567 = vector.broadcast %566 : vector<2x8x1xf32> to vector<2x8x8xf32>
    %568 = arith.mulf %563, %567 : vector<2x8x8xf32>
    %569 = arith.truncf %568 : vector<2x8x8xf32> to vector<2x8x8xbf16>
    %570 = vector.extract_strided_slice %472 {offsets = [0, 0, 24], sizes = [2, 8, 8], strides = [1, 1, 1]} : vector<2x8x32xf32> to vector<2x8x8xf32>
    %571 = arith.truncf %570 : vector<2x8x8xf32> to vector<2x8x8xbf16>
    "tpu.trace_start"() <{level = 10 : i32, message = "bqk,bkd->bqd"}> : () -> ()
    %cst_189 = arith.constant dense<0.000000e+00> : vector<2x8x8xf32>
    %572 = tpu.matmul %569, %571, %cst_189 {dimension_numbers = #tpu.dot_dimension_numbers<[2], [1], [1], [2], [0, 0, 0, 1, 1, 2], [0], [0]>} : vector<2x8x8xbf16>, vector<2x8x8xbf16>, vector<2x8x8xf32> -> vector<2x8x8xf32>
    "tpu.trace_stop"() : () -> ()
    %573 = vector.extract_strided_slice %459 {offsets = [24, 0], sizes = [8, 32], strides = [1, 1]} : vector<32x32xf32> to vector<8x32xf32>
    %574 = vector.shape_cast %572 : vector<2x8x8xf32> to vector<16x8xf32>
    %575 = arith.truncf %574 : vector<16x8xf32> to vector<16x8xbf16>
    %576 = arith.truncf %573 : vector<8x32xf32> to vector<8x32xbf16>
    %cst_190 = arith.constant dense<0.000000e+00> : vector<16x32xf32>
    %577 = tpu.matmul %575, %576, %cst_190 {dimension_numbers = #tpu.dot_dimension_numbers<[1], [0], [0], [1], [0, 0, 1, 1], [], []>} : vector<16x8xbf16>, vector<8x32xbf16>, vector<16x32xf32> -> vector<16x32xf32>
    %578 = vector.shape_cast %577 : vector<16x32xf32> to vector<2x8x32xf32>
    %579 = arith.addf %553, %578 : vector<2x8x32xf32>
    %580 = vector.shape_cast %461 : vector<1x32xf32> to vector<1x1x32xf32>
    %581 = vector.broadcast %580 : vector<1x1x32xf32> to vector<2x8x32xf32>
    %582 = arith.addf %579, %581 : vector<2x8x32xf32>
    %583 = arith.addf %453, %582 : vector<2x8x32xf32>
    %c0_191 = arith.constant 0 : index
    %c0_192 = arith.constant 0 : index
    %c0_193 = arith.constant 0 : index
    %584 = vector.load %arg20[%c0_191, %c0_192, %c0_193] : memref<2x1x32xf32, #tpu.memory_space<vmem>>, vector<1x1x32xf32>
    %585 = vector.shape_cast %584 : vector<1x1x32xf32> to vector<1x32xf32>
    %c0_194 = arith.constant 0 : index
    %c0_195 = arith.constant 0 : index
    %c0_196 = arith.constant 0 : index
    %586 = vector.load %arg21[%c0_194, %c0_195, %c0_196] : memref<2x1x32xf32, #tpu.memory_space<vmem>>, vector<1x1x32xf32>
    %587 = vector.shape_cast %586 : vector<1x1x32xf32> to vector<1x32xf32>
    %cst_197 = arith.constant dense<0.000000e+00> : vector<2x8xf32>
    %588 = vector.multi_reduction <add>, %583, %cst_197 [2] : vector<2x8x32xf32> to vector<2x8xf32>
    %589 = vector.shape_cast %588 : vector<2x8xf32> to vector<2x8x1xf32>
    %cst_198 = arith.constant 3.200000e+01 : f32
    %590 = vector.broadcast %cst_198 : f32 to vector<2x8x1xf32>
    %591 = arith.divf %589, %590 : vector<2x8x1xf32>
    %592 = vector.broadcast %591 : vector<2x8x1xf32> to vector<2x8x32xf32>
    %593 = arith.subf %583, %592 : vector<2x8x32xf32>
    %594 = arith.mulf %593, %593 : vector<2x8x32xf32>
    %cst_199 = arith.constant dense<0.000000e+00> : vector<2x8xf32>
    %595 = vector.multi_reduction <add>, %594, %cst_199 [2] : vector<2x8x32xf32> to vector<2x8xf32>
    %596 = vector.shape_cast %595 : vector<2x8xf32> to vector<2x8x1xf32>
    %cst_200 = arith.constant 3.200000e+01 : f32
    %597 = vector.broadcast %cst_200 : f32 to vector<2x8x1xf32>
    %598 = arith.divf %596, %597 : vector<2x8x1xf32>
    %599 = vector.broadcast %591 : vector<2x8x1xf32> to vector<2x8x32xf32>
    %600 = arith.subf %583, %599 : vector<2x8x32xf32>
    %cst_201 = arith.constant 9.99999974E-6 : f32
    %601 = vector.broadcast %cst_201 : f32 to vector<2x8x1xf32>
    %602 = arith.addf %598, %601 : vector<2x8x1xf32>
    %603 = math.rsqrt %602 : vector<2x8x1xf32>
    %604 = vector.broadcast %603 : vector<2x8x1xf32> to vector<2x8x32xf32>
    %605 = arith.mulf %600, %604 : vector<2x8x32xf32>
    %606 = vector.shape_cast %585 : vector<1x32xf32> to vector<1x1x32xf32>
    %607 = vector.broadcast %606 : vector<1x1x32xf32> to vector<2x8x32xf32>
    %608 = arith.mulf %605, %607 : vector<2x8x32xf32>
    %609 = vector.shape_cast %587 : vector<1x32xf32> to vector<1x1x32xf32>
    %610 = vector.broadcast %609 : vector<1x1x32xf32> to vector<2x8x32xf32>
    %611 = arith.addf %608, %610 : vector<2x8x32xf32>
    %c0_202 = arith.constant 0 : index
    %c0_203 = arith.constant 0 : index
    %c0_204 = arith.constant 0 : index
    %612 = vector.load %arg22[%c0_202, %c0_203, %c0_204] : memref<2x32x96xf32, #tpu.memory_space<vmem>>, vector<1x32x96xf32>
    %613 = vector.shape_cast %612 : vector<1x32x96xf32> to vector<32x96xf32>
    %c0_205 = arith.constant 0 : index
    %c0_206 = arith.constant 0 : index
    %c0_207 = arith.constant 0 : index
    %614 = vector.load %arg23[%c0_205, %c0_206, %c0_207] : memref<2x1x96xf32, #tpu.memory_space<vmem>>, vector<1x1x96xf32>
    %615 = vector.shape_cast %614 : vector<1x1x96xf32> to vector<1x96xf32>
    %c0_208 = arith.constant 0 : index
    %c0_209 = arith.constant 0 : index
    %c0_210 = arith.constant 0 : index
    %616 = vector.load %arg24[%c0_208, %c0_209, %c0_210] : memref<2x32x32xf32, #tpu.memory_space<vmem>>, vector<1x32x32xf32>
    %617 = vector.shape_cast %616 : vector<1x32x32xf32> to vector<32x32xf32>
    %c0_211 = arith.constant 0 : index
    %c0_212 = arith.constant 0 : index
    %c0_213 = arith.constant 0 : index
    %618 = vector.load %arg25[%c0_211, %c0_212, %c0_213] : memref<2x1x32xf32, #tpu.memory_space<vmem>>, vector<1x1x32xf32>
    %619 = vector.shape_cast %618 : vector<1x1x32xf32> to vector<1x32xf32>
    %620 = vector.extract_strided_slice %613 {offsets = [0, 0], sizes = [32, 32], strides = [1, 1]} : vector<32x96xf32> to vector<32x32xf32>
    %621 = vector.extract_strided_slice %615 {offsets = [0, 0], sizes = [1, 32], strides = [1, 1]} : vector<1x96xf32> to vector<1x32xf32>
    %622 = vector.shape_cast %611 : vector<2x8x32xf32> to vector<16x32xf32>
    %623 = arith.truncf %622 : vector<16x32xf32> to vector<16x32xbf16>
    %624 = arith.truncf %620 : vector<32x32xf32> to vector<32x32xbf16>
    %cst_214 = arith.constant dense<0.000000e+00> : vector<16x32xf32>
    %625 = tpu.matmul %623, %624, %cst_214 {dimension_numbers = #tpu.dot_dimension_numbers<[1], [0], [0], [1], [0, 0, 1, 1], [], []>} : vector<16x32xbf16>, vector<32x32xbf16>, vector<16x32xf32> -> vector<16x32xf32>
    %626 = vector.shape_cast %625 : vector<16x32xf32> to vector<2x8x32xf32>
    %627 = vector.shape_cast %621 : vector<1x32xf32> to vector<1x1x32xf32>
    %628 = vector.broadcast %627 : vector<1x1x32xf32> to vector<2x8x32xf32>
    %629 = arith.addf %626, %628 : vector<2x8x32xf32>
    %630 = vector.extract_strided_slice %613 {offsets = [0, 32], sizes = [32, 64], strides = [1, 1]} : vector<32x96xf32> to vector<32x64xf32>
    %631 = vector.extract_strided_slice %615 {offsets = [0, 32], sizes = [1, 64], strides = [1, 1]} : vector<1x96xf32> to vector<1x64xf32>
    %632 = vector.shape_cast %452 : vector<2x8x32xf32> to vector<16x32xf32>
    %633 = arith.truncf %632 : vector<16x32xf32> to vector<16x32xbf16>
    %634 = arith.truncf %630 : vector<32x64xf32> to vector<32x64xbf16>
    %cst_215 = arith.constant dense<0.000000e+00> : vector<16x64xf32>
    %635 = tpu.matmul %633, %634, %cst_215 {dimension_numbers = #tpu.dot_dimension_numbers<[1], [0], [0], [1], [0, 0, 1, 1], [], []>} : vector<16x32xbf16>, vector<32x64xbf16>, vector<16x64xf32> -> vector<16x64xf32>
    %636 = vector.shape_cast %635 : vector<16x64xf32> to vector<2x8x64xf32>
    %637 = vector.shape_cast %631 : vector<1x64xf32> to vector<1x1x64xf32>
    %638 = vector.broadcast %637 : vector<1x1x64xf32> to vector<2x8x64xf32>
    %639 = arith.addf %636, %638 : vector<2x8x64xf32>
    %640 = vector.extract_strided_slice %639 {offsets = [0, 0, 0], sizes = [2, 8, 32], strides = [1, 1, 1]} : vector<2x8x64xf32> to vector<2x8x32xf32>
    %641 = vector.extract_strided_slice %639 {offsets = [0, 0, 32], sizes = [2, 8, 32], strides = [1, 1, 1]} : vector<2x8x64xf32> to vector<2x8x32xf32>
    %cst_216 = arith.constant 0.353553385 : f32
    %642 = vector.broadcast %cst_216 : f32 to vector<2x8x32xf32>
    %643 = arith.mulf %629, %642 : vector<2x8x32xf32>
    %cst_217 = arith.constant 0.000000e+00 : f32
    %644 = vector.broadcast %cst_217 : f32 to vector<2x8x32xf32>
    %645 = vector.extract_strided_slice %643 {offsets = [0, 0, 0], sizes = [2, 8, 8], strides = [1, 1, 1]} : vector<2x8x32xf32> to vector<2x8x8xf32>
    %646 = arith.truncf %645 : vector<2x8x8xf32> to vector<2x8x8xbf16>
    %647 = vector.extract_strided_slice %640 {offsets = [0, 0, 0], sizes = [2, 8, 8], strides = [1, 1, 1]} : vector<2x8x32xf32> to vector<2x8x8xf32>
    %648 = arith.truncf %647 : vector<2x8x8xf32> to vector<2x8x8xbf16>
    "tpu.trace_start"() <{level = 10 : i32, message = "bqd,bkd->bqk"}> : () -> ()
    %cst_218 = arith.constant dense<0.000000e+00> : vector<2x8x8xf32>
    %649 = tpu.matmul %646, %648, %cst_218 {dimension_numbers = #tpu.dot_dimension_numbers<[2], [2], [1], [1], [0, 0, 0, 1, 1, 1], [0], [0]>} : vector<2x8x8xbf16>, vector<2x8x8xbf16>, vector<2x8x8xf32> -> vector<2x8x8xf32>
    "tpu.trace_stop"() : () -> ()
    %cst_219 = arith.constant dense<0xFF800000> : vector<2x8xf32>
    %650 = vector.multi_reduction <maximumf>, %649, %cst_219 [2] : vector<2x8x8xf32> to vector<2x8xf32>
    %651 = vector.shape_cast %650 : vector<2x8xf32> to vector<2x8x1xf32>
    %652 = vector.broadcast %651 : vector<2x8x1xf32> to vector<2x8x8xf32>
    %653 = arith.subf %649, %652 : vector<2x8x8xf32>
    %654 = math.exp %653 : vector<2x8x8xf32>
    %cst_220 = arith.constant dense<0.000000e+00> : vector<2x8xf32>
    %655 = vector.multi_reduction <add>, %654, %cst_220 [2] : vector<2x8x8xf32> to vector<2x8xf32>
    %656 = vector.shape_cast %655 : vector<2x8xf32> to vector<2x8x1xf32>
    %657 = tpu.reciprocal %656 {approx = true} : vector<2x8x1xf32> -> vector<2x8x1xf32>
    %658 = vector.broadcast %657 : vector<2x8x1xf32> to vector<2x8x8xf32>
    %659 = arith.mulf %654, %658 : vector<2x8x8xf32>
    %660 = arith.truncf %659 : vector<2x8x8xf32> to vector<2x8x8xbf16>
    %661 = vector.extract_strided_slice %641 {offsets = [0, 0, 0], sizes = [2, 8, 8], strides = [1, 1, 1]} : vector<2x8x32xf32> to vector<2x8x8xf32>
    %662 = arith.truncf %661 : vector<2x8x8xf32> to vector<2x8x8xbf16>
    "tpu.trace_start"() <{level = 10 : i32, message = "bqk,bkd->bqd"}> : () -> ()
    %cst_221 = arith.constant dense<0.000000e+00> : vector<2x8x8xf32>
    %663 = tpu.matmul %660, %662, %cst_221 {dimension_numbers = #tpu.dot_dimension_numbers<[2], [1], [1], [2], [0, 0, 0, 1, 1, 2], [0], [0]>} : vector<2x8x8xbf16>, vector<2x8x8xbf16>, vector<2x8x8xf32> -> vector<2x8x8xf32>
    "tpu.trace_stop"() : () -> ()
    %664 = vector.extract_strided_slice %617 {offsets = [0, 0], sizes = [8, 32], strides = [1, 1]} : vector<32x32xf32> to vector<8x32xf32>
    %665 = vector.shape_cast %663 : vector<2x8x8xf32> to vector<16x8xf32>
    %666 = arith.truncf %665 : vector<16x8xf32> to vector<16x8xbf16>
    %667 = arith.truncf %664 : vector<8x32xf32> to vector<8x32xbf16>
    %cst_222 = arith.constant dense<0.000000e+00> : vector<16x32xf32>
    %668 = tpu.matmul %666, %667, %cst_222 {dimension_numbers = #tpu.dot_dimension_numbers<[1], [0], [0], [1], [0, 0, 1, 1], [], []>} : vector<16x8xbf16>, vector<8x32xbf16>, vector<16x32xf32> -> vector<16x32xf32>
    %669 = vector.shape_cast %668 : vector<16x32xf32> to vector<2x8x32xf32>
    %670 = arith.addf %644, %669 : vector<2x8x32xf32>
    %671 = vector.extract_strided_slice %643 {offsets = [0, 0, 8], sizes = [2, 8, 8], strides = [1, 1, 1]} : vector<2x8x32xf32> to vector<2x8x8xf32>
    %672 = arith.truncf %671 : vector<2x8x8xf32> to vector<2x8x8xbf16>
    %673 = vector.extract_strided_slice %640 {offsets = [0, 0, 8], sizes = [2, 8, 8], strides = [1, 1, 1]} : vector<2x8x32xf32> to vector<2x8x8xf32>
    %674 = arith.truncf %673 : vector<2x8x8xf32> to vector<2x8x8xbf16>
    "tpu.trace_start"() <{level = 10 : i32, message = "bqd,bkd->bqk"}> : () -> ()
    %cst_223 = arith.constant dense<0.000000e+00> : vector<2x8x8xf32>
    %675 = tpu.matmul %672, %674, %cst_223 {dimension_numbers = #tpu.dot_dimension_numbers<[2], [2], [1], [1], [0, 0, 0, 1, 1, 1], [0], [0]>} : vector<2x8x8xbf16>, vector<2x8x8xbf16>, vector<2x8x8xf32> -> vector<2x8x8xf32>
    "tpu.trace_stop"() : () -> ()
    %cst_224 = arith.constant dense<0xFF800000> : vector<2x8xf32>
    %676 = vector.multi_reduction <maximumf>, %675, %cst_224 [2] : vector<2x8x8xf32> to vector<2x8xf32>
    %677 = vector.shape_cast %676 : vector<2x8xf32> to vector<2x8x1xf32>
    %678 = vector.broadcast %677 : vector<2x8x1xf32> to vector<2x8x8xf32>
    %679 = arith.subf %675, %678 : vector<2x8x8xf32>
    %680 = math.exp %679 : vector<2x8x8xf32>
    %cst_225 = arith.constant dense<0.000000e+00> : vector<2x8xf32>
    %681 = vector.multi_reduction <add>, %680, %cst_225 [2] : vector<2x8x8xf32> to vector<2x8xf32>
    %682 = vector.shape_cast %681 : vector<2x8xf32> to vector<2x8x1xf32>
    %683 = tpu.reciprocal %682 {approx = true} : vector<2x8x1xf32> -> vector<2x8x1xf32>
    %684 = vector.broadcast %683 : vector<2x8x1xf32> to vector<2x8x8xf32>
    %685 = arith.mulf %680, %684 : vector<2x8x8xf32>
    %686 = arith.truncf %685 : vector<2x8x8xf32> to vector<2x8x8xbf16>
    %687 = vector.extract_strided_slice %641 {offsets = [0, 0, 8], sizes = [2, 8, 8], strides = [1, 1, 1]} : vector<2x8x32xf32> to vector<2x8x8xf32>
    %688 = arith.truncf %687 : vector<2x8x8xf32> to vector<2x8x8xbf16>
    "tpu.trace_start"() <{level = 10 : i32, message = "bqk,bkd->bqd"}> : () -> ()
    %cst_226 = arith.constant dense<0.000000e+00> : vector<2x8x8xf32>
    %689 = tpu.matmul %686, %688, %cst_226 {dimension_numbers = #tpu.dot_dimension_numbers<[2], [1], [1], [2], [0, 0, 0, 1, 1, 2], [0], [0]>} : vector<2x8x8xbf16>, vector<2x8x8xbf16>, vector<2x8x8xf32> -> vector<2x8x8xf32>
    "tpu.trace_stop"() : () -> ()
    %690 = vector.extract_strided_slice %617 {offsets = [8, 0], sizes = [8, 32], strides = [1, 1]} : vector<32x32xf32> to vector<8x32xf32>
    %691 = vector.shape_cast %689 : vector<2x8x8xf32> to vector<16x8xf32>
    %692 = arith.truncf %691 : vector<16x8xf32> to vector<16x8xbf16>
    %693 = arith.truncf %690 : vector<8x32xf32> to vector<8x32xbf16>
    %cst_227 = arith.constant dense<0.000000e+00> : vector<16x32xf32>
    %694 = tpu.matmul %692, %693, %cst_227 {dimension_numbers = #tpu.dot_dimension_numbers<[1], [0], [0], [1], [0, 0, 1, 1], [], []>} : vector<16x8xbf16>, vector<8x32xbf16>, vector<16x32xf32> -> vector<16x32xf32>
    %695 = vector.shape_cast %694 : vector<16x32xf32> to vector<2x8x32xf32>
    %696 = arith.addf %670, %695 : vector<2x8x32xf32>
    %697 = vector.extract_strided_slice %643 {offsets = [0, 0, 16], sizes = [2, 8, 8], strides = [1, 1, 1]} : vector<2x8x32xf32> to vector<2x8x8xf32>
    %698 = arith.truncf %697 : vector<2x8x8xf32> to vector<2x8x8xbf16>
    %699 = vector.extract_strided_slice %640 {offsets = [0, 0, 16], sizes = [2, 8, 8], strides = [1, 1, 1]} : vector<2x8x32xf32> to vector<2x8x8xf32>
    %700 = arith.truncf %699 : vector<2x8x8xf32> to vector<2x8x8xbf16>
    "tpu.trace_start"() <{level = 10 : i32, message = "bqd,bkd->bqk"}> : () -> ()
    %cst_228 = arith.constant dense<0.000000e+00> : vector<2x8x8xf32>
    %701 = tpu.matmul %698, %700, %cst_228 {dimension_numbers = #tpu.dot_dimension_numbers<[2], [2], [1], [1], [0, 0, 0, 1, 1, 1], [0], [0]>} : vector<2x8x8xbf16>, vector<2x8x8xbf16>, vector<2x8x8xf32> -> vector<2x8x8xf32>
    "tpu.trace_stop"() : () -> ()
    %cst_229 = arith.constant dense<0xFF800000> : vector<2x8xf32>
    %702 = vector.multi_reduction <maximumf>, %701, %cst_229 [2] : vector<2x8x8xf32> to vector<2x8xf32>
    %703 = vector.shape_cast %702 : vector<2x8xf32> to vector<2x8x1xf32>
    %704 = vector.broadcast %703 : vector<2x8x1xf32> to vector<2x8x8xf32>
    %705 = arith.subf %701, %704 : vector<2x8x8xf32>
    %706 = math.exp %705 : vector<2x8x8xf32>
    %cst_230 = arith.constant dense<0.000000e+00> : vector<2x8xf32>
    %707 = vector.multi_reduction <add>, %706, %cst_230 [2] : vector<2x8x8xf32> to vector<2x8xf32>
    %708 = vector.shape_cast %707 : vector<2x8xf32> to vector<2x8x1xf32>
    %709 = tpu.reciprocal %708 {approx = true} : vector<2x8x1xf32> -> vector<2x8x1xf32>
    %710 = vector.broadcast %709 : vector<2x8x1xf32> to vector<2x8x8xf32>
    %711 = arith.mulf %706, %710 : vector<2x8x8xf32>
    %712 = arith.truncf %711 : vector<2x8x8xf32> to vector<2x8x8xbf16>
    %713 = vector.extract_strided_slice %641 {offsets = [0, 0, 16], sizes = [2, 8, 8], strides = [1, 1, 1]} : vector<2x8x32xf32> to vector<2x8x8xf32>
    %714 = arith.truncf %713 : vector<2x8x8xf32> to vector<2x8x8xbf16>
    "tpu.trace_start"() <{level = 10 : i32, message = "bqk,bkd->bqd"}> : () -> ()
    %cst_231 = arith.constant dense<0.000000e+00> : vector<2x8x8xf32>
    %715 = tpu.matmul %712, %714, %cst_231 {dimension_numbers = #tpu.dot_dimension_numbers<[2], [1], [1], [2], [0, 0, 0, 1, 1, 2], [0], [0]>} : vector<2x8x8xbf16>, vector<2x8x8xbf16>, vector<2x8x8xf32> -> vector<2x8x8xf32>
    "tpu.trace_stop"() : () -> ()
    %716 = vector.extract_strided_slice %617 {offsets = [16, 0], sizes = [8, 32], strides = [1, 1]} : vector<32x32xf32> to vector<8x32xf32>
    %717 = vector.shape_cast %715 : vector<2x8x8xf32> to vector<16x8xf32>
    %718 = arith.truncf %717 : vector<16x8xf32> to vector<16x8xbf16>
    %719 = arith.truncf %716 : vector<8x32xf32> to vector<8x32xbf16>
    %cst_232 = arith.constant dense<0.000000e+00> : vector<16x32xf32>
    %720 = tpu.matmul %718, %719, %cst_232 {dimension_numbers = #tpu.dot_dimension_numbers<[1], [0], [0], [1], [0, 0, 1, 1], [], []>} : vector<16x8xbf16>, vector<8x32xbf16>, vector<16x32xf32> -> vector<16x32xf32>
    %721 = vector.shape_cast %720 : vector<16x32xf32> to vector<2x8x32xf32>
    %722 = arith.addf %696, %721 : vector<2x8x32xf32>
    %723 = vector.extract_strided_slice %643 {offsets = [0, 0, 24], sizes = [2, 8, 8], strides = [1, 1, 1]} : vector<2x8x32xf32> to vector<2x8x8xf32>
    %724 = arith.truncf %723 : vector<2x8x8xf32> to vector<2x8x8xbf16>
    %725 = vector.extract_strided_slice %640 {offsets = [0, 0, 24], sizes = [2, 8, 8], strides = [1, 1, 1]} : vector<2x8x32xf32> to vector<2x8x8xf32>
    %726 = arith.truncf %725 : vector<2x8x8xf32> to vector<2x8x8xbf16>
    "tpu.trace_start"() <{level = 10 : i32, message = "bqd,bkd->bqk"}> : () -> ()
    %cst_233 = arith.constant dense<0.000000e+00> : vector<2x8x8xf32>
    %727 = tpu.matmul %724, %726, %cst_233 {dimension_numbers = #tpu.dot_dimension_numbers<[2], [2], [1], [1], [0, 0, 0, 1, 1, 1], [0], [0]>} : vector<2x8x8xbf16>, vector<2x8x8xbf16>, vector<2x8x8xf32> -> vector<2x8x8xf32>
    "tpu.trace_stop"() : () -> ()
    %cst_234 = arith.constant dense<0xFF800000> : vector<2x8xf32>
    %728 = vector.multi_reduction <maximumf>, %727, %cst_234 [2] : vector<2x8x8xf32> to vector<2x8xf32>
    %729 = vector.shape_cast %728 : vector<2x8xf32> to vector<2x8x1xf32>
    %730 = vector.broadcast %729 : vector<2x8x1xf32> to vector<2x8x8xf32>
    %731 = arith.subf %727, %730 : vector<2x8x8xf32>
    %732 = math.exp %731 : vector<2x8x8xf32>
    %cst_235 = arith.constant dense<0.000000e+00> : vector<2x8xf32>
    %733 = vector.multi_reduction <add>, %732, %cst_235 [2] : vector<2x8x8xf32> to vector<2x8xf32>
    %734 = vector.shape_cast %733 : vector<2x8xf32> to vector<2x8x1xf32>
    %735 = tpu.reciprocal %734 {approx = true} : vector<2x8x1xf32> -> vector<2x8x1xf32>
    %736 = vector.broadcast %735 : vector<2x8x1xf32> to vector<2x8x8xf32>
    %737 = arith.mulf %732, %736 : vector<2x8x8xf32>
    %738 = arith.truncf %737 : vector<2x8x8xf32> to vector<2x8x8xbf16>
    %739 = vector.extract_strided_slice %641 {offsets = [0, 0, 24], sizes = [2, 8, 8], strides = [1, 1, 1]} : vector<2x8x32xf32> to vector<2x8x8xf32>
    %740 = arith.truncf %739 : vector<2x8x8xf32> to vector<2x8x8xbf16>
    "tpu.trace_start"() <{level = 10 : i32, message = "bqk,bkd->bqd"}> : () -> ()
    %cst_236 = arith.constant dense<0.000000e+00> : vector<2x8x8xf32>
    %741 = tpu.matmul %738, %740, %cst_236 {dimension_numbers = #tpu.dot_dimension_numbers<[2], [1], [1], [2], [0, 0, 0, 1, 1, 2], [0], [0]>} : vector<2x8x8xbf16>, vector<2x8x8xbf16>, vector<2x8x8xf32> -> vector<2x8x8xf32>
    "tpu.trace_stop"() : () -> ()
    %742 = vector.extract_strided_slice %617 {offsets = [24, 0], sizes = [8, 32], strides = [1, 1]} : vector<32x32xf32> to vector<8x32xf32>
    %743 = vector.shape_cast %741 : vector<2x8x8xf32> to vector<16x8xf32>
    %744 = arith.truncf %743 : vector<16x8xf32> to vector<16x8xbf16>
    %745 = arith.truncf %742 : vector<8x32xf32> to vector<8x32xbf16>
    %cst_237 = arith.constant dense<0.000000e+00> : vector<16x32xf32>
    %746 = tpu.matmul %744, %745, %cst_237 {dimension_numbers = #tpu.dot_dimension_numbers<[1], [0], [0], [1], [0, 0, 1, 1], [], []>} : vector<16x8xbf16>, vector<8x32xbf16>, vector<16x32xf32> -> vector<16x32xf32>
    %747 = vector.shape_cast %746 : vector<16x32xf32> to vector<2x8x32xf32>
    %748 = arith.addf %722, %747 : vector<2x8x32xf32>
    %749 = vector.shape_cast %619 : vector<1x32xf32> to vector<1x1x32xf32>
    %750 = vector.broadcast %749 : vector<1x1x32xf32> to vector<2x8x32xf32>
    %751 = arith.addf %748, %750 : vector<2x8x32xf32>
    %752 = arith.addf %611, %751 : vector<2x8x32xf32>
    %c0_238 = arith.constant 0 : index
    %c0_239 = arith.constant 0 : index
    %c0_240 = arith.constant 0 : index
    %753 = vector.load %arg26[%c0_238, %c0_239, %c0_240] : memref<2x1x32xf32, #tpu.memory_space<vmem>>, vector<1x1x32xf32>
    %754 = vector.shape_cast %753 : vector<1x1x32xf32> to vector<1x32xf32>
    %c0_241 = arith.constant 0 : index
    %c0_242 = arith.constant 0 : index
    %c0_243 = arith.constant 0 : index
    %755 = vector.load %arg27[%c0_241, %c0_242, %c0_243] : memref<2x1x32xf32, #tpu.memory_space<vmem>>, vector<1x1x32xf32>
    %756 = vector.shape_cast %755 : vector<1x1x32xf32> to vector<1x32xf32>
    %cst_244 = arith.constant dense<0.000000e+00> : vector<2x8xf32>
    %757 = vector.multi_reduction <add>, %752, %cst_244 [2] : vector<2x8x32xf32> to vector<2x8xf32>
    %758 = vector.shape_cast %757 : vector<2x8xf32> to vector<2x8x1xf32>
    %cst_245 = arith.constant 3.200000e+01 : f32
    %759 = vector.broadcast %cst_245 : f32 to vector<2x8x1xf32>
    %760 = arith.divf %758, %759 : vector<2x8x1xf32>
    %761 = vector.broadcast %760 : vector<2x8x1xf32> to vector<2x8x32xf32>
    %762 = arith.subf %752, %761 : vector<2x8x32xf32>
    %763 = arith.mulf %762, %762 : vector<2x8x32xf32>
    %cst_246 = arith.constant dense<0.000000e+00> : vector<2x8xf32>
    %764 = vector.multi_reduction <add>, %763, %cst_246 [2] : vector<2x8x32xf32> to vector<2x8xf32>
    %765 = vector.shape_cast %764 : vector<2x8xf32> to vector<2x8x1xf32>
    %cst_247 = arith.constant 3.200000e+01 : f32
    %766 = vector.broadcast %cst_247 : f32 to vector<2x8x1xf32>
    %767 = arith.divf %765, %766 : vector<2x8x1xf32>
    %768 = vector.broadcast %760 : vector<2x8x1xf32> to vector<2x8x32xf32>
    %769 = arith.subf %752, %768 : vector<2x8x32xf32>
    %cst_248 = arith.constant 9.99999974E-6 : f32
    %770 = vector.broadcast %cst_248 : f32 to vector<2x8x1xf32>
    %771 = arith.addf %767, %770 : vector<2x8x1xf32>
    %772 = math.rsqrt %771 : vector<2x8x1xf32>
    %773 = vector.broadcast %772 : vector<2x8x1xf32> to vector<2x8x32xf32>
    %774 = arith.mulf %769, %773 : vector<2x8x32xf32>
    %775 = vector.shape_cast %754 : vector<1x32xf32> to vector<1x1x32xf32>
    %776 = vector.broadcast %775 : vector<1x1x32xf32> to vector<2x8x32xf32>
    %777 = arith.mulf %774, %776 : vector<2x8x32xf32>
    %778 = vector.shape_cast %756 : vector<1x32xf32> to vector<1x1x32xf32>
    %779 = vector.broadcast %778 : vector<1x1x32xf32> to vector<2x8x32xf32>
    %780 = arith.addf %777, %779 : vector<2x8x32xf32>
    %c0_249 = arith.constant 0 : index
    %c0_250 = arith.constant 0 : index
    %c0_251 = arith.constant 0 : index
    %781 = vector.load %arg28[%c0_249, %c0_250, %c0_251] : memref<2x32x512xf32, #tpu.memory_space<vmem>>, vector<1x32x512xf32>
    %782 = vector.shape_cast %781 : vector<1x32x512xf32> to vector<32x512xf32>
    %c0_252 = arith.constant 0 : index
    %c0_253 = arith.constant 0 : index
    %c0_254 = arith.constant 0 : index
    %783 = vector.load %arg29[%c0_252, %c0_253, %c0_254] : memref<2x1x512xf32, #tpu.memory_space<vmem>>, vector<1x1x512xf32>
    %784 = vector.shape_cast %783 : vector<1x1x512xf32> to vector<1x512xf32>
    %c0_255 = arith.constant 0 : index
    %c0_256 = arith.constant 0 : index
    %c0_257 = arith.constant 0 : index
    %785 = vector.load %arg30[%c0_255, %c0_256, %c0_257] : memref<2x512x32xf32, #tpu.memory_space<vmem>>, vector<1x512x32xf32>
    %786 = vector.shape_cast %785 : vector<1x512x32xf32> to vector<512x32xf32>
    %c0_258 = arith.constant 0 : index
    %c0_259 = arith.constant 0 : index
    %c0_260 = arith.constant 0 : index
    %787 = vector.load %arg31[%c0_258, %c0_259, %c0_260] : memref<2x1x32xf32, #tpu.memory_space<vmem>>, vector<1x1x32xf32>
    %788 = vector.shape_cast %787 : vector<1x1x32xf32> to vector<1x32xf32>
    %789 = vector.shape_cast %780 : vector<2x8x32xf32> to vector<16x32xf32>
    %790 = arith.truncf %789 : vector<16x32xf32> to vector<16x32xbf16>
    %791 = arith.truncf %782 : vector<32x512xf32> to vector<32x512xbf16>
    %cst_261 = arith.constant dense<0.000000e+00> : vector<16x512xf32>
    %792 = tpu.matmul %790, %791, %cst_261 {dimension_numbers = #tpu.dot_dimension_numbers<[1], [0], [0], [1], [0, 0, 1, 1], [], []>} : vector<16x32xbf16>, vector<32x512xbf16>, vector<16x512xf32> -> vector<16x512xf32>
    %793 = vector.shape_cast %792 : vector<16x512xf32> to vector<2x8x512xf32>
    %794 = vector.shape_cast %784 : vector<1x512xf32> to vector<1x1x512xf32>
    %795 = vector.broadcast %794 : vector<1x1x512xf32> to vector<2x8x512xf32>
    %796 = arith.addf %793, %795 : vector<2x8x512xf32>
    %cst_262 = arith.constant 0.000000e+00 : f32
    %797 = vector.broadcast %cst_262 : f32 to vector<2x8x512xf32>
    %798 = arith.maximumf %796, %797 : vector<2x8x512xf32>
    %799 = vector.shape_cast %798 : vector<2x8x512xf32> to vector<16x512xf32>
    %800 = arith.truncf %799 : vector<16x512xf32> to vector<16x512xbf16>
    %801 = arith.truncf %786 : vector<512x32xf32> to vector<512x32xbf16>
    %cst_263 = arith.constant dense<0.000000e+00> : vector<16x32xf32>
    %802 = tpu.matmul %800, %801, %cst_263 {dimension_numbers = #tpu.dot_dimension_numbers<[1], [0], [0], [1], [0, 0, 1, 1], [], []>} : vector<16x512xbf16>, vector<512x32xbf16>, vector<16x32xf32> -> vector<16x32xf32>
    %803 = vector.shape_cast %802 : vector<16x32xf32> to vector<2x8x32xf32>
    %804 = vector.shape_cast %788 : vector<1x32xf32> to vector<1x1x32xf32>
    %805 = vector.broadcast %804 : vector<1x1x32xf32> to vector<2x8x32xf32>
    %806 = arith.addf %803, %805 : vector<2x8x32xf32>
    %807 = arith.addf %780, %806 : vector<2x8x32xf32>
    %c0_264 = arith.constant 0 : index
    %c0_265 = arith.constant 0 : index
    %c0_266 = arith.constant 0 : index
    %808 = vector.load %arg32[%c0_264, %c0_265, %c0_266] : memref<2x1x32xf32, #tpu.memory_space<vmem>>, vector<1x1x32xf32>
    %809 = vector.shape_cast %808 : vector<1x1x32xf32> to vector<1x32xf32>
    %c0_267 = arith.constant 0 : index
    %c0_268 = arith.constant 0 : index
    %c0_269 = arith.constant 0 : index
    %810 = vector.load %arg33[%c0_267, %c0_268, %c0_269] : memref<2x1x32xf32, #tpu.memory_space<vmem>>, vector<1x1x32xf32>
    %811 = vector.shape_cast %810 : vector<1x1x32xf32> to vector<1x32xf32>
    %cst_270 = arith.constant dense<0.000000e+00> : vector<2x8xf32>
    %812 = vector.multi_reduction <add>, %807, %cst_270 [2] : vector<2x8x32xf32> to vector<2x8xf32>
    %813 = vector.shape_cast %812 : vector<2x8xf32> to vector<2x8x1xf32>
    %cst_271 = arith.constant 3.200000e+01 : f32
    %814 = vector.broadcast %cst_271 : f32 to vector<2x8x1xf32>
    %815 = arith.divf %813, %814 : vector<2x8x1xf32>
    %816 = vector.broadcast %815 : vector<2x8x1xf32> to vector<2x8x32xf32>
    %817 = arith.subf %807, %816 : vector<2x8x32xf32>
    %818 = arith.mulf %817, %817 : vector<2x8x32xf32>
    %cst_272 = arith.constant dense<0.000000e+00> : vector<2x8xf32>
    %819 = vector.multi_reduction <add>, %818, %cst_272 [2] : vector<2x8x32xf32> to vector<2x8xf32>
    %820 = vector.shape_cast %819 : vector<2x8xf32> to vector<2x8x1xf32>
    %cst_273 = arith.constant 3.200000e+01 : f32
    %821 = vector.broadcast %cst_273 : f32 to vector<2x8x1xf32>
    %822 = arith.divf %820, %821 : vector<2x8x1xf32>
    %823 = vector.broadcast %815 : vector<2x8x1xf32> to vector<2x8x32xf32>
    %824 = arith.subf %807, %823 : vector<2x8x32xf32>
    %cst_274 = arith.constant 9.99999974E-6 : f32
    %825 = vector.broadcast %cst_274 : f32 to vector<2x8x1xf32>
    %826 = arith.addf %822, %825 : vector<2x8x1xf32>
    %827 = math.rsqrt %826 : vector<2x8x1xf32>
    %828 = vector.broadcast %827 : vector<2x8x1xf32> to vector<2x8x32xf32>
    %829 = arith.mulf %824, %828 : vector<2x8x32xf32>
    %830 = vector.shape_cast %809 : vector<1x32xf32> to vector<1x1x32xf32>
    %831 = vector.broadcast %830 : vector<1x1x32xf32> to vector<2x8x32xf32>
    %832 = arith.mulf %829, %831 : vector<2x8x32xf32>
    %833 = vector.shape_cast %811 : vector<1x32xf32> to vector<1x1x32xf32>
    %834 = vector.broadcast %833 : vector<1x1x32xf32> to vector<2x8x32xf32>
    %835 = arith.addf %832, %834 : vector<2x8x32xf32>
    %c1_275 = arith.constant 1 : index
    %c0_276 = arith.constant 0 : index
    %c0_277 = arith.constant 0 : index
    %836 = vector.load %arg16[%c1_275, %c0_276, %c0_277] : memref<2x32x96xf32, #tpu.memory_space<vmem>>, vector<1x32x96xf32>
    %837 = vector.shape_cast %836 : vector<1x32x96xf32> to vector<32x96xf32>
    %c1_278 = arith.constant 1 : index
    %c0_279 = arith.constant 0 : index
    %c0_280 = arith.constant 0 : index
    %838 = vector.load %arg17[%c1_278, %c0_279, %c0_280] : memref<2x1x96xf32, #tpu.memory_space<vmem>>, vector<1x1x96xf32>
    %839 = vector.shape_cast %838 : vector<1x1x96xf32> to vector<1x96xf32>
    %c1_281 = arith.constant 1 : index
    %c0_282 = arith.constant 0 : index
    %c0_283 = arith.constant 0 : index
    %840 = vector.load %arg18[%c1_281, %c0_282, %c0_283] : memref<2x32x32xf32, #tpu.memory_space<vmem>>, vector<1x32x32xf32>
    %841 = vector.shape_cast %840 : vector<1x32x32xf32> to vector<32x32xf32>
    %c1_284 = arith.constant 1 : index
    %c0_285 = arith.constant 0 : index
    %c0_286 = arith.constant 0 : index
    %842 = vector.load %arg19[%c1_284, %c0_285, %c0_286] : memref<2x1x32xf32, #tpu.memory_space<vmem>>, vector<1x1x32xf32>
    %843 = vector.shape_cast %842 : vector<1x1x32xf32> to vector<1x32xf32>
    %844 = vector.shape_cast %835 : vector<2x8x32xf32> to vector<16x32xf32>
    %845 = arith.truncf %844 : vector<16x32xf32> to vector<16x32xbf16>
    %846 = arith.truncf %837 : vector<32x96xf32> to vector<32x96xbf16>
    %cst_287 = arith.constant dense<0.000000e+00> : vector<16x96xf32>
    %847 = tpu.matmul %845, %846, %cst_287 {dimension_numbers = #tpu.dot_dimension_numbers<[1], [0], [0], [1], [0, 0, 1, 1], [], []>} : vector<16x32xbf16>, vector<32x96xbf16>, vector<16x96xf32> -> vector<16x96xf32>
    %848 = vector.shape_cast %847 : vector<16x96xf32> to vector<2x8x96xf32>
    %849 = vector.shape_cast %839 : vector<1x96xf32> to vector<1x1x96xf32>
    %850 = vector.broadcast %849 : vector<1x1x96xf32> to vector<2x8x96xf32>
    %851 = arith.addf %848, %850 : vector<2x8x96xf32>
    %852 = vector.extract_strided_slice %851 {offsets = [0, 0, 0], sizes = [2, 8, 32], strides = [1, 1, 1]} : vector<2x8x96xf32> to vector<2x8x32xf32>
    %853 = vector.extract_strided_slice %851 {offsets = [0, 0, 32], sizes = [2, 8, 32], strides = [1, 1, 1]} : vector<2x8x96xf32> to vector<2x8x32xf32>
    %854 = vector.extract_strided_slice %851 {offsets = [0, 0, 64], sizes = [2, 8, 32], strides = [1, 1, 1]} : vector<2x8x96xf32> to vector<2x8x32xf32>
    %cst_288 = arith.constant 0.353553385 : f32
    %855 = vector.broadcast %cst_288 : f32 to vector<2x8x32xf32>
    %856 = arith.mulf %852, %855 : vector<2x8x32xf32>
    %cst_289 = arith.constant 0.000000e+00 : f32
    %857 = vector.broadcast %cst_289 : f32 to vector<2x8x32xf32>
    %858 = vector.extract_strided_slice %856 {offsets = [0, 0, 0], sizes = [2, 8, 8], strides = [1, 1, 1]} : vector<2x8x32xf32> to vector<2x8x8xf32>
    %859 = arith.truncf %858 : vector<2x8x8xf32> to vector<2x8x8xbf16>
    %860 = vector.extract_strided_slice %853 {offsets = [0, 0, 0], sizes = [2, 8, 8], strides = [1, 1, 1]} : vector<2x8x32xf32> to vector<2x8x8xf32>
    %861 = arith.truncf %860 : vector<2x8x8xf32> to vector<2x8x8xbf16>
    "tpu.trace_start"() <{level = 10 : i32, message = "bqd,bkd->bqk"}> : () -> ()
    %cst_290 = arith.constant dense<0.000000e+00> : vector<2x8x8xf32>
    %862 = tpu.matmul %859, %861, %cst_290 {dimension_numbers = #tpu.dot_dimension_numbers<[2], [2], [1], [1], [0, 0, 0, 1, 1, 1], [0], [0]>} : vector<2x8x8xbf16>, vector<2x8x8xbf16>, vector<2x8x8xf32> -> vector<2x8x8xf32>
    "tpu.trace_stop"() : () -> ()
    %cst_291 = arith.constant dense<0xFF800000> : vector<2x8xf32>
    %863 = vector.multi_reduction <maximumf>, %862, %cst_291 [2] : vector<2x8x8xf32> to vector<2x8xf32>
    %864 = vector.shape_cast %863 : vector<2x8xf32> to vector<2x8x1xf32>
    %865 = vector.broadcast %864 : vector<2x8x1xf32> to vector<2x8x8xf32>
    %866 = arith.subf %862, %865 : vector<2x8x8xf32>
    %867 = math.exp %866 : vector<2x8x8xf32>
    %cst_292 = arith.constant dense<0.000000e+00> : vector<2x8xf32>
    %868 = vector.multi_reduction <add>, %867, %cst_292 [2] : vector<2x8x8xf32> to vector<2x8xf32>
    %869 = vector.shape_cast %868 : vector<2x8xf32> to vector<2x8x1xf32>
    %870 = tpu.reciprocal %869 {approx = true} : vector<2x8x1xf32> -> vector<2x8x1xf32>
    %871 = vector.broadcast %870 : vector<2x8x1xf32> to vector<2x8x8xf32>
    %872 = arith.mulf %867, %871 : vector<2x8x8xf32>
    %873 = arith.truncf %872 : vector<2x8x8xf32> to vector<2x8x8xbf16>
    %874 = vector.extract_strided_slice %854 {offsets = [0, 0, 0], sizes = [2, 8, 8], strides = [1, 1, 1]} : vector<2x8x32xf32> to vector<2x8x8xf32>
    %875 = arith.truncf %874 : vector<2x8x8xf32> to vector<2x8x8xbf16>
    "tpu.trace_start"() <{level = 10 : i32, message = "bqk,bkd->bqd"}> : () -> ()
    %cst_293 = arith.constant dense<0.000000e+00> : vector<2x8x8xf32>
    %876 = tpu.matmul %873, %875, %cst_293 {dimension_numbers = #tpu.dot_dimension_numbers<[2], [1], [1], [2], [0, 0, 0, 1, 1, 2], [0], [0]>} : vector<2x8x8xbf16>, vector<2x8x8xbf16>, vector<2x8x8xf32> -> vector<2x8x8xf32>
    "tpu.trace_stop"() : () -> ()
    %877 = vector.extract_strided_slice %841 {offsets = [0, 0], sizes = [8, 32], strides = [1, 1]} : vector<32x32xf32> to vector<8x32xf32>
    %878 = vector.shape_cast %876 : vector<2x8x8xf32> to vector<16x8xf32>
    %879 = arith.truncf %878 : vector<16x8xf32> to vector<16x8xbf16>
    %880 = arith.truncf %877 : vector<8x32xf32> to vector<8x32xbf16>
    %cst_294 = arith.constant dense<0.000000e+00> : vector<16x32xf32>
    %881 = tpu.matmul %879, %880, %cst_294 {dimension_numbers = #tpu.dot_dimension_numbers<[1], [0], [0], [1], [0, 0, 1, 1], [], []>} : vector<16x8xbf16>, vector<8x32xbf16>, vector<16x32xf32> -> vector<16x32xf32>
    %882 = vector.shape_cast %881 : vector<16x32xf32> to vector<2x8x32xf32>
    %883 = arith.addf %857, %882 : vector<2x8x32xf32>
    %884 = vector.extract_strided_slice %856 {offsets = [0, 0, 8], sizes = [2, 8, 8], strides = [1, 1, 1]} : vector<2x8x32xf32> to vector<2x8x8xf32>
    %885 = arith.truncf %884 : vector<2x8x8xf32> to vector<2x8x8xbf16>
    %886 = vector.extract_strided_slice %853 {offsets = [0, 0, 8], sizes = [2, 8, 8], strides = [1, 1, 1]} : vector<2x8x32xf32> to vector<2x8x8xf32>
    %887 = arith.truncf %886 : vector<2x8x8xf32> to vector<2x8x8xbf16>
    "tpu.trace_start"() <{level = 10 : i32, message = "bqd,bkd->bqk"}> : () -> ()
    %cst_295 = arith.constant dense<0.000000e+00> : vector<2x8x8xf32>
    %888 = tpu.matmul %885, %887, %cst_295 {dimension_numbers = #tpu.dot_dimension_numbers<[2], [2], [1], [1], [0, 0, 0, 1, 1, 1], [0], [0]>} : vector<2x8x8xbf16>, vector<2x8x8xbf16>, vector<2x8x8xf32> -> vector<2x8x8xf32>
    "tpu.trace_stop"() : () -> ()
    %cst_296 = arith.constant dense<0xFF800000> : vector<2x8xf32>
    %889 = vector.multi_reduction <maximumf>, %888, %cst_296 [2] : vector<2x8x8xf32> to vector<2x8xf32>
    %890 = vector.shape_cast %889 : vector<2x8xf32> to vector<2x8x1xf32>
    %891 = vector.broadcast %890 : vector<2x8x1xf32> to vector<2x8x8xf32>
    %892 = arith.subf %888, %891 : vector<2x8x8xf32>
    %893 = math.exp %892 : vector<2x8x8xf32>
    %cst_297 = arith.constant dense<0.000000e+00> : vector<2x8xf32>
    %894 = vector.multi_reduction <add>, %893, %cst_297 [2] : vector<2x8x8xf32> to vector<2x8xf32>
    %895 = vector.shape_cast %894 : vector<2x8xf32> to vector<2x8x1xf32>
    %896 = tpu.reciprocal %895 {approx = true} : vector<2x8x1xf32> -> vector<2x8x1xf32>
    %897 = vector.broadcast %896 : vector<2x8x1xf32> to vector<2x8x8xf32>
    %898 = arith.mulf %893, %897 : vector<2x8x8xf32>
    %899 = arith.truncf %898 : vector<2x8x8xf32> to vector<2x8x8xbf16>
    %900 = vector.extract_strided_slice %854 {offsets = [0, 0, 8], sizes = [2, 8, 8], strides = [1, 1, 1]} : vector<2x8x32xf32> to vector<2x8x8xf32>
    %901 = arith.truncf %900 : vector<2x8x8xf32> to vector<2x8x8xbf16>
    "tpu.trace_start"() <{level = 10 : i32, message = "bqk,bkd->bqd"}> : () -> ()
    %cst_298 = arith.constant dense<0.000000e+00> : vector<2x8x8xf32>
    %902 = tpu.matmul %899, %901, %cst_298 {dimension_numbers = #tpu.dot_dimension_numbers<[2], [1], [1], [2], [0, 0, 0, 1, 1, 2], [0], [0]>} : vector<2x8x8xbf16>, vector<2x8x8xbf16>, vector<2x8x8xf32> -> vector<2x8x8xf32>
    "tpu.trace_stop"() : () -> ()
    %903 = vector.extract_strided_slice %841 {offsets = [8, 0], sizes = [8, 32], strides = [1, 1]} : vector<32x32xf32> to vector<8x32xf32>
    %904 = vector.shape_cast %902 : vector<2x8x8xf32> to vector<16x8xf32>
    %905 = arith.truncf %904 : vector<16x8xf32> to vector<16x8xbf16>
    %906 = arith.truncf %903 : vector<8x32xf32> to vector<8x32xbf16>
    %cst_299 = arith.constant dense<0.000000e+00> : vector<16x32xf32>
    %907 = tpu.matmul %905, %906, %cst_299 {dimension_numbers = #tpu.dot_dimension_numbers<[1], [0], [0], [1], [0, 0, 1, 1], [], []>} : vector<16x8xbf16>, vector<8x32xbf16>, vector<16x32xf32> -> vector<16x32xf32>
    %908 = vector.shape_cast %907 : vector<16x32xf32> to vector<2x8x32xf32>
    %909 = arith.addf %883, %908 : vector<2x8x32xf32>
    %910 = vector.extract_strided_slice %856 {offsets = [0, 0, 16], sizes = [2, 8, 8], strides = [1, 1, 1]} : vector<2x8x32xf32> to vector<2x8x8xf32>
    %911 = arith.truncf %910 : vector<2x8x8xf32> to vector<2x8x8xbf16>
    %912 = vector.extract_strided_slice %853 {offsets = [0, 0, 16], sizes = [2, 8, 8], strides = [1, 1, 1]} : vector<2x8x32xf32> to vector<2x8x8xf32>
    %913 = arith.truncf %912 : vector<2x8x8xf32> to vector<2x8x8xbf16>
    "tpu.trace_start"() <{level = 10 : i32, message = "bqd,bkd->bqk"}> : () -> ()
    %cst_300 = arith.constant dense<0.000000e+00> : vector<2x8x8xf32>
    %914 = tpu.matmul %911, %913, %cst_300 {dimension_numbers = #tpu.dot_dimension_numbers<[2], [2], [1], [1], [0, 0, 0, 1, 1, 1], [0], [0]>} : vector<2x8x8xbf16>, vector<2x8x8xbf16>, vector<2x8x8xf32> -> vector<2x8x8xf32>
    "tpu.trace_stop"() : () -> ()
    %cst_301 = arith.constant dense<0xFF800000> : vector<2x8xf32>
    %915 = vector.multi_reduction <maximumf>, %914, %cst_301 [2] : vector<2x8x8xf32> to vector<2x8xf32>
    %916 = vector.shape_cast %915 : vector<2x8xf32> to vector<2x8x1xf32>
    %917 = vector.broadcast %916 : vector<2x8x1xf32> to vector<2x8x8xf32>
    %918 = arith.subf %914, %917 : vector<2x8x8xf32>
    %919 = math.exp %918 : vector<2x8x8xf32>
    %cst_302 = arith.constant dense<0.000000e+00> : vector<2x8xf32>
    %920 = vector.multi_reduction <add>, %919, %cst_302 [2] : vector<2x8x8xf32> to vector<2x8xf32>
    %921 = vector.shape_cast %920 : vector<2x8xf32> to vector<2x8x1xf32>
    %922 = tpu.reciprocal %921 {approx = true} : vector<2x8x1xf32> -> vector<2x8x1xf32>
    %923 = vector.broadcast %922 : vector<2x8x1xf32> to vector<2x8x8xf32>
    %924 = arith.mulf %919, %923 : vector<2x8x8xf32>
    %925 = arith.truncf %924 : vector<2x8x8xf32> to vector<2x8x8xbf16>
    %926 = vector.extract_strided_slice %854 {offsets = [0, 0, 16], sizes = [2, 8, 8], strides = [1, 1, 1]} : vector<2x8x32xf32> to vector<2x8x8xf32>
    %927 = arith.truncf %926 : vector<2x8x8xf32> to vector<2x8x8xbf16>
    "tpu.trace_start"() <{level = 10 : i32, message = "bqk,bkd->bqd"}> : () -> ()
    %cst_303 = arith.constant dense<0.000000e+00> : vector<2x8x8xf32>
    %928 = tpu.matmul %925, %927, %cst_303 {dimension_numbers = #tpu.dot_dimension_numbers<[2], [1], [1], [2], [0, 0, 0, 1, 1, 2], [0], [0]>} : vector<2x8x8xbf16>, vector<2x8x8xbf16>, vector<2x8x8xf32> -> vector<2x8x8xf32>
    "tpu.trace_stop"() : () -> ()
    %929 = vector.extract_strided_slice %841 {offsets = [16, 0], sizes = [8, 32], strides = [1, 1]} : vector<32x32xf32> to vector<8x32xf32>
    %930 = vector.shape_cast %928 : vector<2x8x8xf32> to vector<16x8xf32>
    %931 = arith.truncf %930 : vector<16x8xf32> to vector<16x8xbf16>
    %932 = arith.truncf %929 : vector<8x32xf32> to vector<8x32xbf16>
    %cst_304 = arith.constant dense<0.000000e+00> : vector<16x32xf32>
    %933 = tpu.matmul %931, %932, %cst_304 {dimension_numbers = #tpu.dot_dimension_numbers<[1], [0], [0], [1], [0, 0, 1, 1], [], []>} : vector<16x8xbf16>, vector<8x32xbf16>, vector<16x32xf32> -> vector<16x32xf32>
    %934 = vector.shape_cast %933 : vector<16x32xf32> to vector<2x8x32xf32>
    %935 = arith.addf %909, %934 : vector<2x8x32xf32>
    %936 = vector.extract_strided_slice %856 {offsets = [0, 0, 24], sizes = [2, 8, 8], strides = [1, 1, 1]} : vector<2x8x32xf32> to vector<2x8x8xf32>
    %937 = arith.truncf %936 : vector<2x8x8xf32> to vector<2x8x8xbf16>
    %938 = vector.extract_strided_slice %853 {offsets = [0, 0, 24], sizes = [2, 8, 8], strides = [1, 1, 1]} : vector<2x8x32xf32> to vector<2x8x8xf32>
    %939 = arith.truncf %938 : vector<2x8x8xf32> to vector<2x8x8xbf16>
    "tpu.trace_start"() <{level = 10 : i32, message = "bqd,bkd->bqk"}> : () -> ()
    %cst_305 = arith.constant dense<0.000000e+00> : vector<2x8x8xf32>
    %940 = tpu.matmul %937, %939, %cst_305 {dimension_numbers = #tpu.dot_dimension_numbers<[2], [2], [1], [1], [0, 0, 0, 1, 1, 1], [0], [0]>} : vector<2x8x8xbf16>, vector<2x8x8xbf16>, vector<2x8x8xf32> -> vector<2x8x8xf32>
    "tpu.trace_stop"() : () -> ()
    %cst_306 = arith.constant dense<0xFF800000> : vector<2x8xf32>
    %941 = vector.multi_reduction <maximumf>, %940, %cst_306 [2] : vector<2x8x8xf32> to vector<2x8xf32>
    %942 = vector.shape_cast %941 : vector<2x8xf32> to vector<2x8x1xf32>
    %943 = vector.broadcast %942 : vector<2x8x1xf32> to vector<2x8x8xf32>
    %944 = arith.subf %940, %943 : vector<2x8x8xf32>
    %945 = math.exp %944 : vector<2x8x8xf32>
    %cst_307 = arith.constant dense<0.000000e+00> : vector<2x8xf32>
    %946 = vector.multi_reduction <add>, %945, %cst_307 [2] : vector<2x8x8xf32> to vector<2x8xf32>
    %947 = vector.shape_cast %946 : vector<2x8xf32> to vector<2x8x1xf32>
    %948 = tpu.reciprocal %947 {approx = true} : vector<2x8x1xf32> -> vector<2x8x1xf32>
    %949 = vector.broadcast %948 : vector<2x8x1xf32> to vector<2x8x8xf32>
    %950 = arith.mulf %945, %949 : vector<2x8x8xf32>
    %951 = arith.truncf %950 : vector<2x8x8xf32> to vector<2x8x8xbf16>
    %952 = vector.extract_strided_slice %854 {offsets = [0, 0, 24], sizes = [2, 8, 8], strides = [1, 1, 1]} : vector<2x8x32xf32> to vector<2x8x8xf32>
    %953 = arith.truncf %952 : vector<2x8x8xf32> to vector<2x8x8xbf16>
    "tpu.trace_start"() <{level = 10 : i32, message = "bqk,bkd->bqd"}> : () -> ()
    %cst_308 = arith.constant dense<0.000000e+00> : vector<2x8x8xf32>
    %954 = tpu.matmul %951, %953, %cst_308 {dimension_numbers = #tpu.dot_dimension_numbers<[2], [1], [1], [2], [0, 0, 0, 1, 1, 2], [0], [0]>} : vector<2x8x8xbf16>, vector<2x8x8xbf16>, vector<2x8x8xf32> -> vector<2x8x8xf32>
    "tpu.trace_stop"() : () -> ()
    %955 = vector.extract_strided_slice %841 {offsets = [24, 0], sizes = [8, 32], strides = [1, 1]} : vector<32x32xf32> to vector<8x32xf32>
    %956 = vector.shape_cast %954 : vector<2x8x8xf32> to vector<16x8xf32>
    %957 = arith.truncf %956 : vector<16x8xf32> to vector<16x8xbf16>
    %958 = arith.truncf %955 : vector<8x32xf32> to vector<8x32xbf16>
    %cst_309 = arith.constant dense<0.000000e+00> : vector<16x32xf32>
    %959 = tpu.matmul %957, %958, %cst_309 {dimension_numbers = #tpu.dot_dimension_numbers<[1], [0], [0], [1], [0, 0, 1, 1], [], []>} : vector<16x8xbf16>, vector<8x32xbf16>, vector<16x32xf32> -> vector<16x32xf32>
    %960 = vector.shape_cast %959 : vector<16x32xf32> to vector<2x8x32xf32>
    %961 = arith.addf %935, %960 : vector<2x8x32xf32>
    %962 = vector.shape_cast %843 : vector<1x32xf32> to vector<1x1x32xf32>
    %963 = vector.broadcast %962 : vector<1x1x32xf32> to vector<2x8x32xf32>
    %964 = arith.addf %961, %963 : vector<2x8x32xf32>
    %965 = arith.addf %835, %964 : vector<2x8x32xf32>
    %c1_310 = arith.constant 1 : index
    %c0_311 = arith.constant 0 : index
    %c0_312 = arith.constant 0 : index
    %966 = vector.load %arg20[%c1_310, %c0_311, %c0_312] : memref<2x1x32xf32, #tpu.memory_space<vmem>>, vector<1x1x32xf32>
    %967 = vector.shape_cast %966 : vector<1x1x32xf32> to vector<1x32xf32>
    %c1_313 = arith.constant 1 : index
    %c0_314 = arith.constant 0 : index
    %c0_315 = arith.constant 0 : index
    %968 = vector.load %arg21[%c1_313, %c0_314, %c0_315] : memref<2x1x32xf32, #tpu.memory_space<vmem>>, vector<1x1x32xf32>
    %969 = vector.shape_cast %968 : vector<1x1x32xf32> to vector<1x32xf32>
    %cst_316 = arith.constant dense<0.000000e+00> : vector<2x8xf32>
    %970 = vector.multi_reduction <add>, %965, %cst_316 [2] : vector<2x8x32xf32> to vector<2x8xf32>
    %971 = vector.shape_cast %970 : vector<2x8xf32> to vector<2x8x1xf32>
    %cst_317 = arith.constant 3.200000e+01 : f32
    %972 = vector.broadcast %cst_317 : f32 to vector<2x8x1xf32>
    %973 = arith.divf %971, %972 : vector<2x8x1xf32>
    %974 = vector.broadcast %973 : vector<2x8x1xf32> to vector<2x8x32xf32>
    %975 = arith.subf %965, %974 : vector<2x8x32xf32>
    %976 = arith.mulf %975, %975 : vector<2x8x32xf32>
    %cst_318 = arith.constant dense<0.000000e+00> : vector<2x8xf32>
    %977 = vector.multi_reduction <add>, %976, %cst_318 [2] : vector<2x8x32xf32> to vector<2x8xf32>
    %978 = vector.shape_cast %977 : vector<2x8xf32> to vector<2x8x1xf32>
    %cst_319 = arith.constant 3.200000e+01 : f32
    %979 = vector.broadcast %cst_319 : f32 to vector<2x8x1xf32>
    %980 = arith.divf %978, %979 : vector<2x8x1xf32>
    %981 = vector.broadcast %973 : vector<2x8x1xf32> to vector<2x8x32xf32>
    %982 = arith.subf %965, %981 : vector<2x8x32xf32>
    %cst_320 = arith.constant 9.99999974E-6 : f32
    %983 = vector.broadcast %cst_320 : f32 to vector<2x8x1xf32>
    %984 = arith.addf %980, %983 : vector<2x8x1xf32>
    %985 = math.rsqrt %984 : vector<2x8x1xf32>
    %986 = vector.broadcast %985 : vector<2x8x1xf32> to vector<2x8x32xf32>
    %987 = arith.mulf %982, %986 : vector<2x8x32xf32>
    %988 = vector.shape_cast %967 : vector<1x32xf32> to vector<1x1x32xf32>
    %989 = vector.broadcast %988 : vector<1x1x32xf32> to vector<2x8x32xf32>
    %990 = arith.mulf %987, %989 : vector<2x8x32xf32>
    %991 = vector.shape_cast %969 : vector<1x32xf32> to vector<1x1x32xf32>
    %992 = vector.broadcast %991 : vector<1x1x32xf32> to vector<2x8x32xf32>
    %993 = arith.addf %990, %992 : vector<2x8x32xf32>
    %c1_321 = arith.constant 1 : index
    %c0_322 = arith.constant 0 : index
    %c0_323 = arith.constant 0 : index
    %994 = vector.load %arg22[%c1_321, %c0_322, %c0_323] : memref<2x32x96xf32, #tpu.memory_space<vmem>>, vector<1x32x96xf32>
    %995 = vector.shape_cast %994 : vector<1x32x96xf32> to vector<32x96xf32>
    %c1_324 = arith.constant 1 : index
    %c0_325 = arith.constant 0 : index
    %c0_326 = arith.constant 0 : index
    %996 = vector.load %arg23[%c1_324, %c0_325, %c0_326] : memref<2x1x96xf32, #tpu.memory_space<vmem>>, vector<1x1x96xf32>
    %997 = vector.shape_cast %996 : vector<1x1x96xf32> to vector<1x96xf32>
    %c1_327 = arith.constant 1 : index
    %c0_328 = arith.constant 0 : index
    %c0_329 = arith.constant 0 : index
    %998 = vector.load %arg24[%c1_327, %c0_328, %c0_329] : memref<2x32x32xf32, #tpu.memory_space<vmem>>, vector<1x32x32xf32>
    %999 = vector.shape_cast %998 : vector<1x32x32xf32> to vector<32x32xf32>
    %c1_330 = arith.constant 1 : index
    %c0_331 = arith.constant 0 : index
    %c0_332 = arith.constant 0 : index
    %1000 = vector.load %arg25[%c1_330, %c0_331, %c0_332] : memref<2x1x32xf32, #tpu.memory_space<vmem>>, vector<1x1x32xf32>
    %1001 = vector.shape_cast %1000 : vector<1x1x32xf32> to vector<1x32xf32>
    %1002 = vector.extract_strided_slice %995 {offsets = [0, 0], sizes = [32, 32], strides = [1, 1]} : vector<32x96xf32> to vector<32x32xf32>
    %1003 = vector.extract_strided_slice %997 {offsets = [0, 0], sizes = [1, 32], strides = [1, 1]} : vector<1x96xf32> to vector<1x32xf32>
    %1004 = vector.shape_cast %993 : vector<2x8x32xf32> to vector<16x32xf32>
    %1005 = arith.truncf %1004 : vector<16x32xf32> to vector<16x32xbf16>
    %1006 = arith.truncf %1002 : vector<32x32xf32> to vector<32x32xbf16>
    %cst_333 = arith.constant dense<0.000000e+00> : vector<16x32xf32>
    %1007 = tpu.matmul %1005, %1006, %cst_333 {dimension_numbers = #tpu.dot_dimension_numbers<[1], [0], [0], [1], [0, 0, 1, 1], [], []>} : vector<16x32xbf16>, vector<32x32xbf16>, vector<16x32xf32> -> vector<16x32xf32>
    %1008 = vector.shape_cast %1007 : vector<16x32xf32> to vector<2x8x32xf32>
    %1009 = vector.shape_cast %1003 : vector<1x32xf32> to vector<1x1x32xf32>
    %1010 = vector.broadcast %1009 : vector<1x1x32xf32> to vector<2x8x32xf32>
    %1011 = arith.addf %1008, %1010 : vector<2x8x32xf32>
    %1012 = vector.extract_strided_slice %995 {offsets = [0, 32], sizes = [32, 64], strides = [1, 1]} : vector<32x96xf32> to vector<32x64xf32>
    %1013 = vector.extract_strided_slice %997 {offsets = [0, 32], sizes = [1, 64], strides = [1, 1]} : vector<1x96xf32> to vector<1x64xf32>
    %1014 = vector.shape_cast %452 : vector<2x8x32xf32> to vector<16x32xf32>
    %1015 = arith.truncf %1014 : vector<16x32xf32> to vector<16x32xbf16>
    %1016 = arith.truncf %1012 : vector<32x64xf32> to vector<32x64xbf16>
    %cst_334 = arith.constant dense<0.000000e+00> : vector<16x64xf32>
    %1017 = tpu.matmul %1015, %1016, %cst_334 {dimension_numbers = #tpu.dot_dimension_numbers<[1], [0], [0], [1], [0, 0, 1, 1], [], []>} : vector<16x32xbf16>, vector<32x64xbf16>, vector<16x64xf32> -> vector<16x64xf32>
    %1018 = vector.shape_cast %1017 : vector<16x64xf32> to vector<2x8x64xf32>
    %1019 = vector.shape_cast %1013 : vector<1x64xf32> to vector<1x1x64xf32>
    %1020 = vector.broadcast %1019 : vector<1x1x64xf32> to vector<2x8x64xf32>
    %1021 = arith.addf %1018, %1020 : vector<2x8x64xf32>
    %1022 = vector.extract_strided_slice %1021 {offsets = [0, 0, 0], sizes = [2, 8, 32], strides = [1, 1, 1]} : vector<2x8x64xf32> to vector<2x8x32xf32>
    %1023 = vector.extract_strided_slice %1021 {offsets = [0, 0, 32], sizes = [2, 8, 32], strides = [1, 1, 1]} : vector<2x8x64xf32> to vector<2x8x32xf32>
    %cst_335 = arith.constant 0.353553385 : f32
    %1024 = vector.broadcast %cst_335 : f32 to vector<2x8x32xf32>
    %1025 = arith.mulf %1011, %1024 : vector<2x8x32xf32>
    %cst_336 = arith.constant 0.000000e+00 : f32
    %1026 = vector.broadcast %cst_336 : f32 to vector<2x8x32xf32>
    %1027 = vector.extract_strided_slice %1025 {offsets = [0, 0, 0], sizes = [2, 8, 8], strides = [1, 1, 1]} : vector<2x8x32xf32> to vector<2x8x8xf32>
    %1028 = arith.truncf %1027 : vector<2x8x8xf32> to vector<2x8x8xbf16>
    %1029 = vector.extract_strided_slice %1022 {offsets = [0, 0, 0], sizes = [2, 8, 8], strides = [1, 1, 1]} : vector<2x8x32xf32> to vector<2x8x8xf32>
    %1030 = arith.truncf %1029 : vector<2x8x8xf32> to vector<2x8x8xbf16>
    "tpu.trace_start"() <{level = 10 : i32, message = "bqd,bkd->bqk"}> : () -> ()
    %cst_337 = arith.constant dense<0.000000e+00> : vector<2x8x8xf32>
    %1031 = tpu.matmul %1028, %1030, %cst_337 {dimension_numbers = #tpu.dot_dimension_numbers<[2], [2], [1], [1], [0, 0, 0, 1, 1, 1], [0], [0]>} : vector<2x8x8xbf16>, vector<2x8x8xbf16>, vector<2x8x8xf32> -> vector<2x8x8xf32>
    "tpu.trace_stop"() : () -> ()
    %cst_338 = arith.constant dense<0xFF800000> : vector<2x8xf32>
    %1032 = vector.multi_reduction <maximumf>, %1031, %cst_338 [2] : vector<2x8x8xf32> to vector<2x8xf32>
    %1033 = vector.shape_cast %1032 : vector<2x8xf32> to vector<2x8x1xf32>
    %1034 = vector.broadcast %1033 : vector<2x8x1xf32> to vector<2x8x8xf32>
    %1035 = arith.subf %1031, %1034 : vector<2x8x8xf32>
    %1036 = math.exp %1035 : vector<2x8x8xf32>
    %cst_339 = arith.constant dense<0.000000e+00> : vector<2x8xf32>
    %1037 = vector.multi_reduction <add>, %1036, %cst_339 [2] : vector<2x8x8xf32> to vector<2x8xf32>
    %1038 = vector.shape_cast %1037 : vector<2x8xf32> to vector<2x8x1xf32>
    %1039 = tpu.reciprocal %1038 {approx = true} : vector<2x8x1xf32> -> vector<2x8x1xf32>
    %1040 = vector.broadcast %1039 : vector<2x8x1xf32> to vector<2x8x8xf32>
    %1041 = arith.mulf %1036, %1040 : vector<2x8x8xf32>
    %1042 = arith.truncf %1041 : vector<2x8x8xf32> to vector<2x8x8xbf16>
    %1043 = vector.extract_strided_slice %1023 {offsets = [0, 0, 0], sizes = [2, 8, 8], strides = [1, 1, 1]} : vector<2x8x32xf32> to vector<2x8x8xf32>
    %1044 = arith.truncf %1043 : vector<2x8x8xf32> to vector<2x8x8xbf16>
    "tpu.trace_start"() <{level = 10 : i32, message = "bqk,bkd->bqd"}> : () -> ()
    %cst_340 = arith.constant dense<0.000000e+00> : vector<2x8x8xf32>
    %1045 = tpu.matmul %1042, %1044, %cst_340 {dimension_numbers = #tpu.dot_dimension_numbers<[2], [1], [1], [2], [0, 0, 0, 1, 1, 2], [0], [0]>} : vector<2x8x8xbf16>, vector<2x8x8xbf16>, vector<2x8x8xf32> -> vector<2x8x8xf32>
    "tpu.trace_stop"() : () -> ()
    %1046 = vector.extract_strided_slice %999 {offsets = [0, 0], sizes = [8, 32], strides = [1, 1]} : vector<32x32xf32> to vector<8x32xf32>
    %1047 = vector.shape_cast %1045 : vector<2x8x8xf32> to vector<16x8xf32>
    %1048 = arith.truncf %1047 : vector<16x8xf32> to vector<16x8xbf16>
    %1049 = arith.truncf %1046 : vector<8x32xf32> to vector<8x32xbf16>
    %cst_341 = arith.constant dense<0.000000e+00> : vector<16x32xf32>
    %1050 = tpu.matmul %1048, %1049, %cst_341 {dimension_numbers = #tpu.dot_dimension_numbers<[1], [0], [0], [1], [0, 0, 1, 1], [], []>} : vector<16x8xbf16>, vector<8x32xbf16>, vector<16x32xf32> -> vector<16x32xf32>
    %1051 = vector.shape_cast %1050 : vector<16x32xf32> to vector<2x8x32xf32>
    %1052 = arith.addf %1026, %1051 : vector<2x8x32xf32>
    %1053 = vector.extract_strided_slice %1025 {offsets = [0, 0, 8], sizes = [2, 8, 8], strides = [1, 1, 1]} : vector<2x8x32xf32> to vector<2x8x8xf32>
    %1054 = arith.truncf %1053 : vector<2x8x8xf32> to vector<2x8x8xbf16>
    %1055 = vector.extract_strided_slice %1022 {offsets = [0, 0, 8], sizes = [2, 8, 8], strides = [1, 1, 1]} : vector<2x8x32xf32> to vector<2x8x8xf32>
    %1056 = arith.truncf %1055 : vector<2x8x8xf32> to vector<2x8x8xbf16>
    "tpu.trace_start"() <{level = 10 : i32, message = "bqd,bkd->bqk"}> : () -> ()
    %cst_342 = arith.constant dense<0.000000e+00> : vector<2x8x8xf32>
    %1057 = tpu.matmul %1054, %1056, %cst_342 {dimension_numbers = #tpu.dot_dimension_numbers<[2], [2], [1], [1], [0, 0, 0, 1, 1, 1], [0], [0]>} : vector<2x8x8xbf16>, vector<2x8x8xbf16>, vector<2x8x8xf32> -> vector<2x8x8xf32>
    "tpu.trace_stop"() : () -> ()
    %cst_343 = arith.constant dense<0xFF800000> : vector<2x8xf32>
    %1058 = vector.multi_reduction <maximumf>, %1057, %cst_343 [2] : vector<2x8x8xf32> to vector<2x8xf32>
    %1059 = vector.shape_cast %1058 : vector<2x8xf32> to vector<2x8x1xf32>
    %1060 = vector.broadcast %1059 : vector<2x8x1xf32> to vector<2x8x8xf32>
    %1061 = arith.subf %1057, %1060 : vector<2x8x8xf32>
    %1062 = math.exp %1061 : vector<2x8x8xf32>
    %cst_344 = arith.constant dense<0.000000e+00> : vector<2x8xf32>
    %1063 = vector.multi_reduction <add>, %1062, %cst_344 [2] : vector<2x8x8xf32> to vector<2x8xf32>
    %1064 = vector.shape_cast %1063 : vector<2x8xf32> to vector<2x8x1xf32>
    %1065 = tpu.reciprocal %1064 {approx = true} : vector<2x8x1xf32> -> vector<2x8x1xf32>
    %1066 = vector.broadcast %1065 : vector<2x8x1xf32> to vector<2x8x8xf32>
    %1067 = arith.mulf %1062, %1066 : vector<2x8x8xf32>
    %1068 = arith.truncf %1067 : vector<2x8x8xf32> to vector<2x8x8xbf16>
    %1069 = vector.extract_strided_slice %1023 {offsets = [0, 0, 8], sizes = [2, 8, 8], strides = [1, 1, 1]} : vector<2x8x32xf32> to vector<2x8x8xf32>
    %1070 = arith.truncf %1069 : vector<2x8x8xf32> to vector<2x8x8xbf16>
    "tpu.trace_start"() <{level = 10 : i32, message = "bqk,bkd->bqd"}> : () -> ()
    %cst_345 = arith.constant dense<0.000000e+00> : vector<2x8x8xf32>
    %1071 = tpu.matmul %1068, %1070, %cst_345 {dimension_numbers = #tpu.dot_dimension_numbers<[2], [1], [1], [2], [0, 0, 0, 1, 1, 2], [0], [0]>} : vector<2x8x8xbf16>, vector<2x8x8xbf16>, vector<2x8x8xf32> -> vector<2x8x8xf32>
    "tpu.trace_stop"() : () -> ()
    %1072 = vector.extract_strided_slice %999 {offsets = [8, 0], sizes = [8, 32], strides = [1, 1]} : vector<32x32xf32> to vector<8x32xf32>
    %1073 = vector.shape_cast %1071 : vector<2x8x8xf32> to vector<16x8xf32>
    %1074 = arith.truncf %1073 : vector<16x8xf32> to vector<16x8xbf16>
    %1075 = arith.truncf %1072 : vector<8x32xf32> to vector<8x32xbf16>
    %cst_346 = arith.constant dense<0.000000e+00> : vector<16x32xf32>
    %1076 = tpu.matmul %1074, %1075, %cst_346 {dimension_numbers = #tpu.dot_dimension_numbers<[1], [0], [0], [1], [0, 0, 1, 1], [], []>} : vector<16x8xbf16>, vector<8x32xbf16>, vector<16x32xf32> -> vector<16x32xf32>
    %1077 = vector.shape_cast %1076 : vector<16x32xf32> to vector<2x8x32xf32>
    %1078 = arith.addf %1052, %1077 : vector<2x8x32xf32>
    %1079 = vector.extract_strided_slice %1025 {offsets = [0, 0, 16], sizes = [2, 8, 8], strides = [1, 1, 1]} : vector<2x8x32xf32> to vector<2x8x8xf32>
    %1080 = arith.truncf %1079 : vector<2x8x8xf32> to vector<2x8x8xbf16>
    %1081 = vector.extract_strided_slice %1022 {offsets = [0, 0, 16], sizes = [2, 8, 8], strides = [1, 1, 1]} : vector<2x8x32xf32> to vector<2x8x8xf32>
    %1082 = arith.truncf %1081 : vector<2x8x8xf32> to vector<2x8x8xbf16>
    "tpu.trace_start"() <{level = 10 : i32, message = "bqd,bkd->bqk"}> : () -> ()
    %cst_347 = arith.constant dense<0.000000e+00> : vector<2x8x8xf32>
    %1083 = tpu.matmul %1080, %1082, %cst_347 {dimension_numbers = #tpu.dot_dimension_numbers<[2], [2], [1], [1], [0, 0, 0, 1, 1, 1], [0], [0]>} : vector<2x8x8xbf16>, vector<2x8x8xbf16>, vector<2x8x8xf32> -> vector<2x8x8xf32>
    "tpu.trace_stop"() : () -> ()
    %cst_348 = arith.constant dense<0xFF800000> : vector<2x8xf32>
    %1084 = vector.multi_reduction <maximumf>, %1083, %cst_348 [2] : vector<2x8x8xf32> to vector<2x8xf32>
    %1085 = vector.shape_cast %1084 : vector<2x8xf32> to vector<2x8x1xf32>
    %1086 = vector.broadcast %1085 : vector<2x8x1xf32> to vector<2x8x8xf32>
    %1087 = arith.subf %1083, %1086 : vector<2x8x8xf32>
    %1088 = math.exp %1087 : vector<2x8x8xf32>
    %cst_349 = arith.constant dense<0.000000e+00> : vector<2x8xf32>
    %1089 = vector.multi_reduction <add>, %1088, %cst_349 [2] : vector<2x8x8xf32> to vector<2x8xf32>
    %1090 = vector.shape_cast %1089 : vector<2x8xf32> to vector<2x8x1xf32>
    %1091 = tpu.reciprocal %1090 {approx = true} : vector<2x8x1xf32> -> vector<2x8x1xf32>
    %1092 = vector.broadcast %1091 : vector<2x8x1xf32> to vector<2x8x8xf32>
    %1093 = arith.mulf %1088, %1092 : vector<2x8x8xf32>
    %1094 = arith.truncf %1093 : vector<2x8x8xf32> to vector<2x8x8xbf16>
    %1095 = vector.extract_strided_slice %1023 {offsets = [0, 0, 16], sizes = [2, 8, 8], strides = [1, 1, 1]} : vector<2x8x32xf32> to vector<2x8x8xf32>
    %1096 = arith.truncf %1095 : vector<2x8x8xf32> to vector<2x8x8xbf16>
    "tpu.trace_start"() <{level = 10 : i32, message = "bqk,bkd->bqd"}> : () -> ()
    %cst_350 = arith.constant dense<0.000000e+00> : vector<2x8x8xf32>
    %1097 = tpu.matmul %1094, %1096, %cst_350 {dimension_numbers = #tpu.dot_dimension_numbers<[2], [1], [1], [2], [0, 0, 0, 1, 1, 2], [0], [0]>} : vector<2x8x8xbf16>, vector<2x8x8xbf16>, vector<2x8x8xf32> -> vector<2x8x8xf32>
    "tpu.trace_stop"() : () -> ()
    %1098 = vector.extract_strided_slice %999 {offsets = [16, 0], sizes = [8, 32], strides = [1, 1]} : vector<32x32xf32> to vector<8x32xf32>
    %1099 = vector.shape_cast %1097 : vector<2x8x8xf32> to vector<16x8xf32>
    %1100 = arith.truncf %1099 : vector<16x8xf32> to vector<16x8xbf16>
    %1101 = arith.truncf %1098 : vector<8x32xf32> to vector<8x32xbf16>
    %cst_351 = arith.constant dense<0.000000e+00> : vector<16x32xf32>
    %1102 = tpu.matmul %1100, %1101, %cst_351 {dimension_numbers = #tpu.dot_dimension_numbers<[1], [0], [0], [1], [0, 0, 1, 1], [], []>} : vector<16x8xbf16>, vector<8x32xbf16>, vector<16x32xf32> -> vector<16x32xf32>
    %1103 = vector.shape_cast %1102 : vector<16x32xf32> to vector<2x8x32xf32>
    %1104 = arith.addf %1078, %1103 : vector<2x8x32xf32>
    %1105 = vector.extract_strided_slice %1025 {offsets = [0, 0, 24], sizes = [2, 8, 8], strides = [1, 1, 1]} : vector<2x8x32xf32> to vector<2x8x8xf32>
    %1106 = arith.truncf %1105 : vector<2x8x8xf32> to vector<2x8x8xbf16>
    %1107 = vector.extract_strided_slice %1022 {offsets = [0, 0, 24], sizes = [2, 8, 8], strides = [1, 1, 1]} : vector<2x8x32xf32> to vector<2x8x8xf32>
    %1108 = arith.truncf %1107 : vector<2x8x8xf32> to vector<2x8x8xbf16>
    "tpu.trace_start"() <{level = 10 : i32, message = "bqd,bkd->bqk"}> : () -> ()
    %cst_352 = arith.constant dense<0.000000e+00> : vector<2x8x8xf32>
    %1109 = tpu.matmul %1106, %1108, %cst_352 {dimension_numbers = #tpu.dot_dimension_numbers<[2], [2], [1], [1], [0, 0, 0, 1, 1, 1], [0], [0]>} : vector<2x8x8xbf16>, vector<2x8x8xbf16>, vector<2x8x8xf32> -> vector<2x8x8xf32>
    "tpu.trace_stop"() : () -> ()
    %cst_353 = arith.constant dense<0xFF800000> : vector<2x8xf32>
    %1110 = vector.multi_reduction <maximumf>, %1109, %cst_353 [2] : vector<2x8x8xf32> to vector<2x8xf32>
    %1111 = vector.shape_cast %1110 : vector<2x8xf32> to vector<2x8x1xf32>
    %1112 = vector.broadcast %1111 : vector<2x8x1xf32> to vector<2x8x8xf32>
    %1113 = arith.subf %1109, %1112 : vector<2x8x8xf32>
    %1114 = math.exp %1113 : vector<2x8x8xf32>
    %cst_354 = arith.constant dense<0.000000e+00> : vector<2x8xf32>
    %1115 = vector.multi_reduction <add>, %1114, %cst_354 [2] : vector<2x8x8xf32> to vector<2x8xf32>
    %1116 = vector.shape_cast %1115 : vector<2x8xf32> to vector<2x8x1xf32>
    %1117 = tpu.reciprocal %1116 {approx = true} : vector<2x8x1xf32> -> vector<2x8x1xf32>
    %1118 = vector.broadcast %1117 : vector<2x8x1xf32> to vector<2x8x8xf32>
    %1119 = arith.mulf %1114, %1118 : vector<2x8x8xf32>
    %1120 = arith.truncf %1119 : vector<2x8x8xf32> to vector<2x8x8xbf16>
    %1121 = vector.extract_strided_slice %1023 {offsets = [0, 0, 24], sizes = [2, 8, 8], strides = [1, 1, 1]} : vector<2x8x32xf32> to vector<2x8x8xf32>
    %1122 = arith.truncf %1121 : vector<2x8x8xf32> to vector<2x8x8xbf16>
    "tpu.trace_start"() <{level = 10 : i32, message = "bqk,bkd->bqd"}> : () -> ()
    %cst_355 = arith.constant dense<0.000000e+00> : vector<2x8x8xf32>
    %1123 = tpu.matmul %1120, %1122, %cst_355 {dimension_numbers = #tpu.dot_dimension_numbers<[2], [1], [1], [2], [0, 0, 0, 1, 1, 2], [0], [0]>} : vector<2x8x8xbf16>, vector<2x8x8xbf16>, vector<2x8x8xf32> -> vector<2x8x8xf32>
    "tpu.trace_stop"() : () -> ()
    %1124 = vector.extract_strided_slice %999 {offsets = [24, 0], sizes = [8, 32], strides = [1, 1]} : vector<32x32xf32> to vector<8x32xf32>
    %1125 = vector.shape_cast %1123 : vector<2x8x8xf32> to vector<16x8xf32>
    %1126 = arith.truncf %1125 : vector<16x8xf32> to vector<16x8xbf16>
    %1127 = arith.truncf %1124 : vector<8x32xf32> to vector<8x32xbf16>
    %cst_356 = arith.constant dense<0.000000e+00> : vector<16x32xf32>
    %1128 = tpu.matmul %1126, %1127, %cst_356 {dimension_numbers = #tpu.dot_dimension_numbers<[1], [0], [0], [1], [0, 0, 1, 1], [], []>} : vector<16x8xbf16>, vector<8x32xbf16>, vector<16x32xf32> -> vector<16x32xf32>
    %1129 = vector.shape_cast %1128 : vector<16x32xf32> to vector<2x8x32xf32>
    %1130 = arith.addf %1104, %1129 : vector<2x8x32xf32>
    %1131 = vector.shape_cast %1001 : vector<1x32xf32> to vector<1x1x32xf32>
    %1132 = vector.broadcast %1131 : vector<1x1x32xf32> to vector<2x8x32xf32>
    %1133 = arith.addf %1130, %1132 : vector<2x8x32xf32>
    %1134 = arith.addf %993, %1133 : vector<2x8x32xf32>
    %c1_357 = arith.constant 1 : index
    %c0_358 = arith.constant 0 : index
    %c0_359 = arith.constant 0 : index
    %1135 = vector.load %arg26[%c1_357, %c0_358, %c0_359] : memref<2x1x32xf32, #tpu.memory_space<vmem>>, vector<1x1x32xf32>
    %1136 = vector.shape_cast %1135 : vector<1x1x32xf32> to vector<1x32xf32>
    %c1_360 = arith.constant 1 : index
    %c0_361 = arith.constant 0 : index
    %c0_362 = arith.constant 0 : index
    %1137 = vector.load %arg27[%c1_360, %c0_361, %c0_362] : memref<2x1x32xf32, #tpu.memory_space<vmem>>, vector<1x1x32xf32>
    %1138 = vector.shape_cast %1137 : vector<1x1x32xf32> to vector<1x32xf32>
    %cst_363 = arith.constant dense<0.000000e+00> : vector<2x8xf32>
    %1139 = vector.multi_reduction <add>, %1134, %cst_363 [2] : vector<2x8x32xf32> to vector<2x8xf32>
    %1140 = vector.shape_cast %1139 : vector<2x8xf32> to vector<2x8x1xf32>
    %cst_364 = arith.constant 3.200000e+01 : f32
    %1141 = vector.broadcast %cst_364 : f32 to vector<2x8x1xf32>
    %1142 = arith.divf %1140, %1141 : vector<2x8x1xf32>
    %1143 = vector.broadcast %1142 : vector<2x8x1xf32> to vector<2x8x32xf32>
    %1144 = arith.subf %1134, %1143 : vector<2x8x32xf32>
    %1145 = arith.mulf %1144, %1144 : vector<2x8x32xf32>
    %cst_365 = arith.constant dense<0.000000e+00> : vector<2x8xf32>
    %1146 = vector.multi_reduction <add>, %1145, %cst_365 [2] : vector<2x8x32xf32> to vector<2x8xf32>
    %1147 = vector.shape_cast %1146 : vector<2x8xf32> to vector<2x8x1xf32>
    %cst_366 = arith.constant 3.200000e+01 : f32
    %1148 = vector.broadcast %cst_366 : f32 to vector<2x8x1xf32>
    %1149 = arith.divf %1147, %1148 : vector<2x8x1xf32>
    %1150 = vector.broadcast %1142 : vector<2x8x1xf32> to vector<2x8x32xf32>
    %1151 = arith.subf %1134, %1150 : vector<2x8x32xf32>
    %cst_367 = arith.constant 9.99999974E-6 : f32
    %1152 = vector.broadcast %cst_367 : f32 to vector<2x8x1xf32>
    %1153 = arith.addf %1149, %1152 : vector<2x8x1xf32>
    %1154 = math.rsqrt %1153 : vector<2x8x1xf32>
    %1155 = vector.broadcast %1154 : vector<2x8x1xf32> to vector<2x8x32xf32>
    %1156 = arith.mulf %1151, %1155 : vector<2x8x32xf32>
    %1157 = vector.shape_cast %1136 : vector<1x32xf32> to vector<1x1x32xf32>
    %1158 = vector.broadcast %1157 : vector<1x1x32xf32> to vector<2x8x32xf32>
    %1159 = arith.mulf %1156, %1158 : vector<2x8x32xf32>
    %1160 = vector.shape_cast %1138 : vector<1x32xf32> to vector<1x1x32xf32>
    %1161 = vector.broadcast %1160 : vector<1x1x32xf32> to vector<2x8x32xf32>
    %1162 = arith.addf %1159, %1161 : vector<2x8x32xf32>
    %c1_368 = arith.constant 1 : index
    %c0_369 = arith.constant 0 : index
    %c0_370 = arith.constant 0 : index
    %1163 = vector.load %arg28[%c1_368, %c0_369, %c0_370] : memref<2x32x512xf32, #tpu.memory_space<vmem>>, vector<1x32x512xf32>
    %1164 = vector.shape_cast %1163 : vector<1x32x512xf32> to vector<32x512xf32>
    %c1_371 = arith.constant 1 : index
    %c0_372 = arith.constant 0 : index
    %c0_373 = arith.constant 0 : index
    %1165 = vector.load %arg29[%c1_371, %c0_372, %c0_373] : memref<2x1x512xf32, #tpu.memory_space<vmem>>, vector<1x1x512xf32>
    %1166 = vector.shape_cast %1165 : vector<1x1x512xf32> to vector<1x512xf32>
    %c1_374 = arith.constant 1 : index
    %c0_375 = arith.constant 0 : index
    %c0_376 = arith.constant 0 : index
    %1167 = vector.load %arg30[%c1_374, %c0_375, %c0_376] : memref<2x512x32xf32, #tpu.memory_space<vmem>>, vector<1x512x32xf32>
    %1168 = vector.shape_cast %1167 : vector<1x512x32xf32> to vector<512x32xf32>
    %c1_377 = arith.constant 1 : index
    %c0_378 = arith.constant 0 : index
    %c0_379 = arith.constant 0 : index
    %1169 = vector.load %arg31[%c1_377, %c0_378, %c0_379] : memref<2x1x32xf32, #tpu.memory_space<vmem>>, vector<1x1x32xf32>
    %1170 = vector.shape_cast %1169 : vector<1x1x32xf32> to vector<1x32xf32>
    %1171 = vector.shape_cast %1162 : vector<2x8x32xf32> to vector<16x32xf32>
    %1172 = arith.truncf %1171 : vector<16x32xf32> to vector<16x32xbf16>
    %1173 = arith.truncf %1164 : vector<32x512xf32> to vector<32x512xbf16>
    %cst_380 = arith.constant dense<0.000000e+00> : vector<16x512xf32>
    %1174 = tpu.matmul %1172, %1173, %cst_380 {dimension_numbers = #tpu.dot_dimension_numbers<[1], [0], [0], [1], [0, 0, 1, 1], [], []>} : vector<16x32xbf16>, vector<32x512xbf16>, vector<16x512xf32> -> vector<16x512xf32>
    %1175 = vector.shape_cast %1174 : vector<16x512xf32> to vector<2x8x512xf32>
    %1176 = vector.shape_cast %1166 : vector<1x512xf32> to vector<1x1x512xf32>
    %1177 = vector.broadcast %1176 : vector<1x1x512xf32> to vector<2x8x512xf32>
    %1178 = arith.addf %1175, %1177 : vector<2x8x512xf32>
    %cst_381 = arith.constant 0.000000e+00 : f32
    %1179 = vector.broadcast %cst_381 : f32 to vector<2x8x512xf32>
    %1180 = arith.maximumf %1178, %1179 : vector<2x8x512xf32>
    %1181 = vector.shape_cast %1180 : vector<2x8x512xf32> to vector<16x512xf32>
    %1182 = arith.truncf %1181 : vector<16x512xf32> to vector<16x512xbf16>
    %1183 = arith.truncf %1168 : vector<512x32xf32> to vector<512x32xbf16>
    %cst_382 = arith.constant dense<0.000000e+00> : vector<16x32xf32>
    %1184 = tpu.matmul %1182, %1183, %cst_382 {dimension_numbers = #tpu.dot_dimension_numbers<[1], [0], [0], [1], [0, 0, 1, 1], [], []>} : vector<16x512xbf16>, vector<512x32xbf16>, vector<16x32xf32> -> vector<16x32xf32>
    %1185 = vector.shape_cast %1184 : vector<16x32xf32> to vector<2x8x32xf32>
    %1186 = vector.shape_cast %1170 : vector<1x32xf32> to vector<1x1x32xf32>
    %1187 = vector.broadcast %1186 : vector<1x1x32xf32> to vector<2x8x32xf32>
    %1188 = arith.addf %1185, %1187 : vector<2x8x32xf32>
    %1189 = arith.addf %1162, %1188 : vector<2x8x32xf32>
    %c1_383 = arith.constant 1 : index
    %c0_384 = arith.constant 0 : index
    %c0_385 = arith.constant 0 : index
    %1190 = vector.load %arg32[%c1_383, %c0_384, %c0_385] : memref<2x1x32xf32, #tpu.memory_space<vmem>>, vector<1x1x32xf32>
    %1191 = vector.shape_cast %1190 : vector<1x1x32xf32> to vector<1x32xf32>
    %c1_386 = arith.constant 1 : index
    %c0_387 = arith.constant 0 : index
    %c0_388 = arith.constant 0 : index
    %1192 = vector.load %arg33[%c1_386, %c0_387, %c0_388] : memref<2x1x32xf32, #tpu.memory_space<vmem>>, vector<1x1x32xf32>
    %1193 = vector.shape_cast %1192 : vector<1x1x32xf32> to vector<1x32xf32>
    %cst_389 = arith.constant dense<0.000000e+00> : vector<2x8xf32>
    %1194 = vector.multi_reduction <add>, %1189, %cst_389 [2] : vector<2x8x32xf32> to vector<2x8xf32>
    %1195 = vector.shape_cast %1194 : vector<2x8xf32> to vector<2x8x1xf32>
    %cst_390 = arith.constant 3.200000e+01 : f32
    %1196 = vector.broadcast %cst_390 : f32 to vector<2x8x1xf32>
    %1197 = arith.divf %1195, %1196 : vector<2x8x1xf32>
    %1198 = vector.broadcast %1197 : vector<2x8x1xf32> to vector<2x8x32xf32>
    %1199 = arith.subf %1189, %1198 : vector<2x8x32xf32>
    %1200 = arith.mulf %1199, %1199 : vector<2x8x32xf32>
    %cst_391 = arith.constant dense<0.000000e+00> : vector<2x8xf32>
    %1201 = vector.multi_reduction <add>, %1200, %cst_391 [2] : vector<2x8x32xf32> to vector<2x8xf32>
    %1202 = vector.shape_cast %1201 : vector<2x8xf32> to vector<2x8x1xf32>
    %cst_392 = arith.constant 3.200000e+01 : f32
    %1203 = vector.broadcast %cst_392 : f32 to vector<2x8x1xf32>
    %1204 = arith.divf %1202, %1203 : vector<2x8x1xf32>
    %1205 = vector.broadcast %1197 : vector<2x8x1xf32> to vector<2x8x32xf32>
    %1206 = arith.subf %1189, %1205 : vector<2x8x32xf32>
    %cst_393 = arith.constant 9.99999974E-6 : f32
    %1207 = vector.broadcast %cst_393 : f32 to vector<2x8x1xf32>
    %1208 = arith.addf %1204, %1207 : vector<2x8x1xf32>
    %1209 = math.rsqrt %1208 : vector<2x8x1xf32>
    %1210 = vector.broadcast %1209 : vector<2x8x1xf32> to vector<2x8x32xf32>
    %1211 = arith.mulf %1206, %1210 : vector<2x8x32xf32>
    %1212 = vector.shape_cast %1191 : vector<1x32xf32> to vector<1x1x32xf32>
    %1213 = vector.broadcast %1212 : vector<1x1x32xf32> to vector<2x8x32xf32>
    %1214 = arith.mulf %1211, %1213 : vector<2x8x32xf32>
    %1215 = vector.shape_cast %1193 : vector<1x32xf32> to vector<1x1x32xf32>
    %1216 = vector.broadcast %1215 : vector<1x1x32xf32> to vector<2x8x32xf32>
    %1217 = arith.addf %1214, %1216 : vector<2x8x32xf32>
    %c0_394 = arith.constant 0 : index
    %c0_395 = arith.constant 0 : index
    %1218 = vector.load %arg34[%c0_394, %c0_395] : memref<1x32xf32, #tpu.memory_space<vmem>>, vector<1x32xf32>
    %c0_396 = arith.constant 0 : index
    %c0_397 = arith.constant 0 : index
    %1219 = vector.load %arg35[%c0_396, %c0_397] : memref<1x32xf32, #tpu.memory_space<vmem>>, vector<1x32xf32>
    %cst_398 = arith.constant dense<0.000000e+00> : vector<2x8xf32>
    %1220 = vector.multi_reduction <add>, %1217, %cst_398 [2] : vector<2x8x32xf32> to vector<2x8xf32>
    %1221 = vector.shape_cast %1220 : vector<2x8xf32> to vector<2x8x1xf32>
    %cst_399 = arith.constant 3.200000e+01 : f32
    %1222 = vector.broadcast %cst_399 : f32 to vector<2x8x1xf32>
    %1223 = arith.divf %1221, %1222 : vector<2x8x1xf32>
    %1224 = vector.broadcast %1223 : vector<2x8x1xf32> to vector<2x8x32xf32>
    %1225 = arith.subf %1217, %1224 : vector<2x8x32xf32>
    %1226 = arith.mulf %1225, %1225 : vector<2x8x32xf32>
    %cst_400 = arith.constant dense<0.000000e+00> : vector<2x8xf32>
    %1227 = vector.multi_reduction <add>, %1226, %cst_400 [2] : vector<2x8x32xf32> to vector<2x8xf32>
    %1228 = vector.shape_cast %1227 : vector<2x8xf32> to vector<2x8x1xf32>
    %cst_401 = arith.constant 3.200000e+01 : f32
    %1229 = vector.broadcast %cst_401 : f32 to vector<2x8x1xf32>
    %1230 = arith.divf %1228, %1229 : vector<2x8x1xf32>
    %1231 = vector.broadcast %1223 : vector<2x8x1xf32> to vector<2x8x32xf32>
    %1232 = arith.subf %1217, %1231 : vector<2x8x32xf32>
    %cst_402 = arith.constant 9.99999974E-6 : f32
    %1233 = vector.broadcast %cst_402 : f32 to vector<2x8x1xf32>
    %1234 = arith.addf %1230, %1233 : vector<2x8x1xf32>
    %1235 = math.rsqrt %1234 : vector<2x8x1xf32>
    %1236 = vector.broadcast %1235 : vector<2x8x1xf32> to vector<2x8x32xf32>
    %1237 = arith.mulf %1232, %1236 : vector<2x8x32xf32>
    %1238 = vector.shape_cast %1218 : vector<1x32xf32> to vector<1x1x32xf32>
    %1239 = vector.broadcast %1238 : vector<1x1x32xf32> to vector<2x8x32xf32>
    %1240 = arith.mulf %1237, %1239 : vector<2x8x32xf32>
    %1241 = vector.shape_cast %1219 : vector<1x32xf32> to vector<1x1x32xf32>
    %1242 = vector.broadcast %1241 : vector<1x1x32xf32> to vector<2x8x32xf32>
    %1243 = arith.addf %1240, %1242 : vector<2x8x32xf32>
    %c0_403 = arith.constant 0 : index
    %c0_404 = arith.constant 0 : index
    %1244 = vector.load %arg36[%c0_403, %c0_404] : memref<32x128xf32, #tpu.memory_space<vmem>>, vector<32x128xf32>
    %c0_405 = arith.constant 0 : index
    %c0_406 = arith.constant 0 : index
    %1245 = vector.load %arg37[%c0_405, %c0_406] : memref<1x128xf32, #tpu.memory_space<vmem>>, vector<1x128xf32>
    %1246 = vector.shape_cast %1243 : vector<2x8x32xf32> to vector<16x32xf32>
    %1247 = arith.truncf %1246 : vector<16x32xf32> to vector<16x32xbf16>
    %1248 = arith.truncf %1244 : vector<32x128xf32> to vector<32x128xbf16>
    %cst_407 = arith.constant dense<0.000000e+00> : vector<16x128xf32>
    %1249 = tpu.matmul %1247, %1248, %cst_407 {dimension_numbers = #tpu.dot_dimension_numbers<[1], [0], [0], [1], [0, 0, 1, 1], [], []>} : vector<16x32xbf16>, vector<32x128xbf16>, vector<16x128xf32> -> vector<16x128xf32>
    %1250 = vector.shape_cast %1249 : vector<16x128xf32> to vector<2x8x128xf32>
    %1251 = vector.shape_cast %1245 : vector<1x128xf32> to vector<1x1x128xf32>
    %1252 = vector.broadcast %1251 : vector<1x1x128xf32> to vector<2x8x128xf32>
    %1253 = arith.addf %1250, %1252 : vector<2x8x128xf32>
    %c0_408 = arith.constant 0 : index
    %c0_409 = arith.constant 0 : index
    %c0_410 = arith.constant 0 : index
    %1254 = vector.load %arg38[%c0_408, %c0_409, %c0_410] : memref<2x8x128xf32, #tpu.memory_space<vmem>>, vector<2x8x128xf32>
    tpu.vector_store %arg38[%c0_408, %c0_409, %c0_410], %1253 {strides = array<i32>} : memref<2x8x128xf32, #tpu.memory_space<vmem>>, vector<2x8x128xf32>,
    return
  }
}

</mosaic_0001>

<bundles_post_ra>
// kernel: transformer_forward.1
= control target key start
LH: loop header
LB: loop body
LE: loop exit
PB: predicated region body
PF: predicated region fallthrough
CT: control target
= control target key end

     0   :  { %s11250_s6 = smov 1   ;;  %s11251_s10 = smov 2   ;;  %s13265_s0 = inlined_call_operand.smem [shape: u32[39], index: -1, kind: input, shape index: {}] }
   0x1   :  { %s11313_s5 = sld [smem:[%s13265_s0]]   ;;  %s11252_s14 = smov 3  }
   0x2   :  { %s11318_s9 = sld [smem:[%s13265_s0 + %s11250_s6]]   ;;  %s11253_s18 = smov 4  }
   0x3   :  { %s11323_s13 = sld [smem:[%s13265_s0 + %s11251_s10]]   ;;  %s11254_s22 = smov 5  }
   0x4   :  { %s11328_s17 = sld [smem:[%s13265_s0 + %s11252_s14]]   ;;  %s11255_s26 = smov 6  }
   0x5   :  { %s11333_s21 = sld [smem:[%s13265_s0 + %s11253_s18]]   ;;  %s11256_s30 = smov 7  }
   0x6   :  { %s11338_s25 = sld [smem:[%s13265_s0 + %s11254_s22]]   ;;  %s11257_s4 = smov 8  }
   0x7   :  { %s11343_s29 = sld [smem:[%s13265_s0 + %s11255_s26]]   ;;  %s11258_s10 = smov 9  }
   0x8   :  { %13288 = sst [smem:[#allocation5_spill]] %s11318_s9  ;;  %s11259_s15 = smov 10  }
   0x9   :  { %s11348_s3 = sld [smem:[%s13265_s0 + %s11256_s30]]   ;;  %s11260_s20 = smov 11  }
   0xa   :  { %s11353_s8 = sld [smem:[%s13265_s0 + %s11257_s4]]   ;;  %s11261_s26 = smov 12  }
   0xb   :  { %s11358_s14 = sld [smem:[%s13265_s0 + %s11258_s10]]   ;;  %s11262_s1 = smov 13  }
   0xc   :  { %s11363_s19 = sld [smem:[%s13265_s0 + %s11259_s15]]   ;;  %s11263_s7 = smov 14  }
   0xd   :  { %s11368_s24 = sld [smem:[%s13265_s0 + %s11260_s20]]   ;;  %s11264_s15 = smov 15  }
   0xe   :  { %s11373_s30 = sld [smem:[%s13265_s0 + %s11261_s26]]   ;;  %s11265_s22 = smov 16  }
   0xf   :  { %s11378_s6 = sld [smem:[%s13265_s0 + %s11262_s1]]   ;;  %s11266_s28 = smov 17  }
  0x10   :  { %s11383_s12 = sld [smem:[%s13265_s0 + %s11263_s7]]   ;;  %s11267_s7 = smov 18  }
  0x11   :  { %s11388_s20 = sld [smem:[%s13265_s0 + %s11264_s15]]   ;;  %s11268_s15 = smov 19  }
  0x12   :  { %s11393_s27 = sld [smem:[%s13265_s0 + %s11265_s22]]   ;;  %s11269_s22 = smov 20  }
  0x13   :  { %s11398_s4 = sld [smem:[%s13265_s0 + %s11266_s28]]   ;;  %s11270_s28 = smov 21  }
  0x14   :  { %s11413_s9 = sld [smem:[%s13265_s0 + %s11269_s22]]   ;;  %s11273_s22 = smov 24  }
  0x16   :  { %13289 = sst [smem:[#allocation6_spill]] %s11383_s12 }
  0x17   :  { %13290 = sst [smem:[#allocation7_spill]] %s11388_s20 }
  0x18   :  { %s11403_s12 = sld [smem:[%s13265_s0 + %s11267_s7]]   ;;  %s11271_s7 = smov 22  }
  0x19   :  { %13291 = sst [smem:[#allocation8_spill]] %s11398_s4 }
  0x1a   :  { %s11408_s20 = sld [smem:[%s13265_s0 + %s11268_s15]]   ;;  %s11272_s15 = smov 23  }
  0x1b   :  { %13294 = sst [smem:[#allocation11_spill]] %s11413_s9 }
  0x1c   :  { %s11418_s4 = sld [smem:[%s13265_s0 + %s11270_s28]]   ;;  %s11274_s28 = smov 25  }
  0x1d   :  { %s11433_s9 = sld [smem:[%s13265_s0 + %s11273_s22]]   ;;  %s11277_s22 = smov 28  }
  0x1e   :  { %13292 = sst [smem:[#allocation9_spill]] %s11403_s12 }
  0x1f   :  { %s11423_s12 = sld [smem:[%s13265_s0 + %s11271_s7]]   ;;  %s11275_s7 = smov 26  }
  0x20   :  { %13293 = sst [smem:[#allocation10_spill]] %s11408_s20 }
  0x21   :  { %s11428_s20 = sld [smem:[%s13265_s0 + %s11272_s15]]   ;;  %s11276_s15 = smov 27  }
  0x22   :  { %13295 = sst [smem:[#allocation12_spill]] %s11418_s4 }
  0x23   :  { %13298 = sst [smem:[#allocation15_spill]] %s11433_s9 }
  0x24   :  { %s11438_s4 = sld [smem:[%s13265_s0 + %s11274_s28]]   ;;  %s11278_s28 = smov 29  }
  0x25   :  { %13296 = sst [smem:[#allocation13_spill]] %s11423_s12 }
  0x26   :  { %s11443_s12 = sld [smem:[%s13265_s0 + %s11275_s7]]   ;;  %s11279_s7 = smov 30  }
  0x27   :  { %13297 = sst [smem:[#allocation14_spill]] %s11428_s20 }
  0x28   :  { %s11448_s20 = sld [smem:[%s13265_s0 + %s11276_s15]]   ;;  %s11280_s15 = smov 31  }
  0x29   :  { %s11453_s9 = sld [smem:[%s13265_s0 + %s11277_s22]]   ;;  %s11281_s22 = smov 32  }
  0x2a   :  { %13299 = sst [smem:[#allocation16_spill]] %s11438_s4 }
  0x2b   :  { %s11458_s4 = sld [smem:[%s13265_s0 + %s11278_s28]]   ;;  %s11282_s28 = smov 33  }
  0x2c   :  { %13300 = sst [smem:[#allocation17_spill]] %s11443_s12 }
  0x2d   :  { %s11463_s12 = sld [smem:[%s13265_s0 + %s11279_s7]]   ;;  %s11283_s7 = smov 34  }
  0x2e   :  { %13301 = sst [smem:[#allocation18_spill]] %s11448_s20 }
  0x2f   :  { %13302 = sst [smem:[#allocation19_spill]] %s11453_s9 }
  0x30   :  { %s11468_s20 = sld [smem:[%s13265_s0 + %s11280_s15]]   ;;  %s11284_s15 = smov 35  }
  0x31   :  { %13303 = sst [smem:[#allocation20_spill]] %s11458_s4 }
  0x32   :  { %s11473_s9 = sld [smem:[%s13265_s0 + %s11281_s22]]   ;;  %s11285_s22 = smov 36  }
  0x33   :  { %13304 = sst [smem:[#allocation21_spill]] %s11463_s12 }
  0x34   :  { %s11478_s4 = sld [smem:[%s13265_s0 + %s11282_s28]]   ;;  %s11286_s28 = smov 37  }
  0x35   :  { %s11483_s12 = sld [smem:[%s13265_s0 + %s11283_s7]]   ;;  %s11287_s7 = smov 38  }
  0x36   :  { %13305 = sst [smem:[#allocation22_spill]] %s11468_s20 }
  0x37   :  { %s11488_s20 = sld [smem:[%s13265_s0 + %s11284_s15]]  }
  0x38   :  { %13306 = sst [smem:[#allocation23_spill]] %s11473_s9 }
  0x39   :  { %s11493_s9 = sld [smem:[%s13265_s0 + %s11285_s22]]  }
  0x3a   :  { %13307 = sst [smem:[#allocation24_spill]] %s11478_s4 }
  0x3b   :  { %13308 = sst [smem:[#allocation25_spill]] %s11483_s12 }
  0x3c   :  { %s11498_s4 = sld [smem:[%s13265_s0 + %s11286_s28]]  }
  0x3d   :  { %s11503_s12 = sld [smem:[%s13265_s0 + %s11287_s7]]  }
  0x3e   :  { %v164_v0 = vld [vmem:[%s11323_s13 + $0x10] sm:$0xff]  ;;  %v165_v1 = vld [vmem:[%s11323_s13 + $0x18] sm:$0xff]  ;;  %v162_v2 = vld [vmem:[%s11323_s13] sm:$0xff]  ;;  %v11288_v3 = vmov 0.0   ;;  %vm11289_vm0 = vmmov 0  }
  0x3f   :  { %10141 = vmatprep.subr.bf16.mxu0 %v11288_v3  ;;  %v174_v4 = vpack.c.bf16 %v165_v1, %v164_v0  ;;  %v163_v5 = vld [vmem:[%s11323_s13 + $0x8] sm:$0xff]  ;;  %10145 = vmatprep.mubr.msk.bf16.mxu0 %vm11289_vm0, %v11288_v3 }
  0x40   :  { %10149 = vmatprep.subr.bf16.mxu1 %v11288_v3  ;;  %10151 = vmatprep.mubr.msk.bf16.mxu1 %vm11289_vm0, %v11288_v3 }
  0x41   :  { %82 = vsyncpa [#allocation3], 0  ;;  %10142 = vmatpush3.bf16.msra.mxu0 %v174_v4  ;;  %v173_v6 = vpack.c.bf16 %v163_v5, %v162_v2  ;;  %v11516_v7 = vld [vmem:[%s11313_s5] sm:$0xff]  ;;  %v11519_v8 = vld [vmem:[%s11313_s5 + $0x8] sm:$0xff]  ;;  %vm175_vm1 = vcmask 261120   ;;  %s11290_s0 = smov 96  }
  0x42   :  { %10143 = vmatprep.subr.bf16.mxu0 %v11288_v3  ;;  %v172_v9 = vpack.c.bf16 %v11519_v8, %v11516_v7  ;;  %v9317_v10 = vld [vmem:[%s11328_s17] ss:$0 sm:$0xff]  ;;  %vm237_vm2 = vcmask 64512   ;;  %s11291_s5 = smov 64   ;;  %vm362_vm3 = vcmask 1043456   ;;  %s11292_s15 = smov 120  }
  0x43   :  { %s11293_s16 = smov 88   ;;  %v167_v62 = vld [vmem:[%s11333_s21] sm:$0xff]  ;;  %s11294_s18 = smov 56  }
  0x44   :  { %v455_v63 = vpack.c.bf16 %v167_v62, %v167_v62  ;;  %s11295_s22 = smov 112   ;;  %s11296_s23 = smov 80  }
  0x45   :  { %10144 = vmatpush3.bf16.msra.mxu0 %v173_v6  ;;  %s11297_s26 = smov 48   ;;  %s11298_s28 = smov 72  }
  0x46   :  { %10155 = vmatprep.subr.bf16.mxu0 %v11288_v3  ;;  %v460_v0 = vsel %vm362_vm3, %v455_v63, 0  ;;  %s13286_s1 = smov 104   ;;  %s13284_s2 = smov 40  }
  0x47   :  { %s13321_s7 = sld [smem:[#allocation19_spill]] }
  0x48   :  { %10146 = vmatmul.mubr.msk.bf16.vlgmr.msra.gmra.mxu0 %vm175_vm1, %v172_v9  ;;  %s13322_s10 = sld [smem:[#allocation21_spill]] }
  0x49   :  { %10157 = vmatprep.mubr.msk.bf16.mxu0 %vm11289_vm0, %v11288_v3  ;;  %s13323_s11 = sld [smem:[#allocation17_spill]] }
 0x108   :  { %v213_v11 = vpop.f32.mrf.mxu0 }
 0x109   :  { %v226_v12 = vadd.f32 %v9317_v10, %v213_v11 }
 0x10a   :  { %v10147_v13 = vpop.f32.mrf.mxu0 }
 0x10b   :  { %v11529_v14 = vpack.c.bf16 %v226_v12, %v226_v12  ;;  %v228_v21 = vmul.f32 0.35355338, %v226_v12 }
 0x10c   :  { %v216_v15 = vpop.f32.mrf.mxu0 }
 0x10d   :  { %v227_v16 = vadd.f32 %v9317_v10, %v216_v15  ;;  %235 = vrot.lane.b32.xlu0 %v11529_v14, %s11290_s0  ;;  %v11540_v24 = vpack.c.bf16 %v228_v21, %v228_v21 }
 0x10e   :  { %v10148_v17 = vpop.f32.mrf.mxu0 }
 0x10f   :  { %v11533_v18 = vpack.c.bf16 %v227_v16, %v227_v16  ;;  %v229_v25 = vmul.f32 0.35355338, %v227_v16 }
 0x111   :  { %285 = vrot.lane.b32.xlu0 %v11533_v18, %s11290_s0  ;;  %v11547_v26 = vpack.c.bf16 %v229_v25, %v229_v25 }
 0x17f   :  { %v236_v19 = vpop.permute.xlu0 %235 }
 0x180   :  { %v242_v20 = vsel %vm237_vm2, %v236_v19, 0 }
 0x181   :  { %10150 = vmatpush3.bf16.xpose.msra.mxu1 %v242_v20 }
 0x182   :  { %10161 = vmatprep.subr.bf16.mxu1 %v11288_v3 }
 0x183   :  { %v286_v22 = vpop.permute.xlu0 %285 }
 0x184   :  { %v291_v23 = vsel %vm237_vm2, %v286_v22, 0 }
 0x185   :  { %10156 = vmatpush3.bf16.xpose.msra.mxu0 %v291_v23 }
 0x186   :  { %10167 = vmatprep.subr.bf16.mxu0 %v11288_v3 }
 0x188   :  { %10152 = vmatmul.mubr.msk.bf16.vlgmr.msra.gmra.mxu1 %vm237_vm2, %v11540_v24 }
 0x189   :  { %10163 = vmatprep.mubr.msk.bf16.mxu1 %vm11289_vm0, %v11288_v3 }
 0x18c   :  { %10158 = vmatmul.mubr.msk.bf16.vlgmr.msra.gmra.mxu0 %vm237_vm2, %v11547_v26 }
 0x18d   :  { %10169 = vmatprep.mubr.msk.bf16.mxu0 %vm11289_vm0, %v11288_v3 }
 0x248   :  { %v278_v27 = vpop.f32.mrf.mxu1 }
 0x249   :  { %v333_v28 = vsel %vm237_vm2, %v278_v27, -inf }
 0x24a   :  { %334 = vmax.xlane.f32.xlu1 %v333_v28  ;;  %v10153_v29 = vpop.f32.mrf.mxu1 }
 0x24c   :  { %v281_v30 = vpop.f32.mrf.mxu1  ;;  %v327_v31 = vpop.f32.mrf.mxu0 }
 0x24d   :  { %v336_v32 = vsel %vm237_vm2, %v327_v31, -inf }
 0x24e   :  { %v10154_v33 = vpop.f32.mrf.mxu1  ;;  %337 = vmax.xlane.f32.xlu1 %v336_v32  ;;  %v10159_v34 = vpop.f32.mrf.mxu0 }
 0x250   :  { %v330_v35 = vpop.f32.mrf.mxu0 }
 0x252   :  { %v10160_v36 = vpop.f32.mrf.mxu0 }
 0x25f   :  { %357 = vrot.lane.b32.xlu1 %v11529_v14, %s11291_s5 }
 0x2d3   :  { %v335_v37 = vpop.xlane.xlu1 %334 }
 0x2d4   :  { %v339_v38 = vsub.f32 %v278_v27, %v335_v37 }
 0x2d6   :  { %v341_v39 = vmul.f32 1.442695, %v339_v38 }
 0x2d7   :  { %v338_v40 = vpop.xlane.xlu1 %337 }
 0x2d8   :  { %10988 = vpow2.f32 %v341_v39  ;;  %v340_v41 = vsub.f32 %v327_v31, %v338_v40 }
 0x2da   :  { %v343_v42 = vmul.f32 1.442695, %v340_v41 }
 0x2db   :  { %v358_v43 = vpop.permute.xlu1 %357 }
 0x2dc   :  { %10990 = vpow2.f32 %v343_v42  ;;  %v364_v44 = vsel %vm362_vm3, %v358_v43, 0 }
 0x2dd   :  { %10162 = vmatpush3.bf16.msra.mxu1 %v364_v44 }
 0x2de   :  { %10173 = vmatprep.subr.bf16.mxu1 %v11288_v3 }
 0x2e5   :  { %v10989_v45 = vpop.eup %10988 }
 0x2e6   :  { %v345_v46 = vsel %vm237_vm2, %v10989_v45, 0.0 }
 0x2e7   :  { %346 = vadd.xlane.f32.xlu0 %v345_v46 }
 0x2e9   :  { %v10991_v47 = vpop.eup %10990 }
 0x2ea   :  { %v348_v48 = vsel %vm237_vm2, %v10991_v47, 0.0 }
 0x2eb   :  { %349 = vadd.xlane.f32.xlu1 %v348_v48 }
 0x2fc   :  { %406 = vrot.lane.b32.xlu1 %v11533_v18, %s11291_s5 }
 0x2fd   :  { %506 = vrot.lane.b32.xlu0 %v11540_v24, %s11292_s15 }
 0x300   :  { %508 = vrot.lane.b32.xlu1 %v11529_v14, %s11293_s16 }
 0x304   :  { %559 = vrot.lane.b32.xlu1 %v11533_v18, %s11293_s16 }
 0x308   :  { %557 = vrot.lane.b32.xlu1 %v11547_v26, %s11292_s15 }
 0x370   :  { %v347_v49 = vpop.xlane.xlu0 %346 }
 0x371   :  { %10992 = vrcp.f32 %v347_v49 }
 0x374   :  { %v350_v50 = vpop.xlane.xlu1 %349  ;;  %v507_v61 = vpop.permute.xlu0 %506 }
 0x375   :  { %10994 = vrcp.f32 %v350_v50 }
 0x378   :  { %v407_v51 = vpop.permute.xlu1 %406 }
 0x379   :  { %v412_v52 = vsel %vm362_vm3, %v407_v51, 0 }
 0x37a   :  { %10168 = vmatpush3.bf16.msra.mxu0 %v412_v52 }
 0x37b   :  { %10179 = vmatprep.subr.bf16.mxu0 %v11288_v3 }
 0x37c   :  { %v509_v58 = vpop.permute.xlu1 %508 }
 0x37d   :  { %v514_v60 = vsel %vm237_vm2, %v509_v58, 0 }
 0x37e   :  { %v10993_v53 = vpop.eup %10992 }
 0x37f   :  { %v353_v54 = vmul.f32 %v10993_v53, %v10989_v45 }
 0x380   :  { %v560_v4 = vpop.permute.xlu1 %559 }
 0x381   :  { %v355_v55 = vpack.c.bf16 %v353_v54, %v353_v54  ;;  %v565_v12 = vsel %vm237_vm2, %v560_v4, 0 }
 0x382   :  { %v10995_v56 = vpop.eup %10994 }
 0x383   :  { %10164 = vmatmul.mubr.msk.bf16.vlgmr.msra.gmra.mxu1 %vm237_vm2, %v355_v55  ;;  %v354_v57 = vmul.f32 %v10995_v56, %v10991_v47 }
 0x384   :  { %10175 = vmatprep.mubr.msk.bf16.mxu1 %vm11289_vm0, %v11288_v3  ;;  %10174 = vmatpush3.bf16.msra.mxu1 %v460_v0  ;;  %v558_v19 = vpop.permute.xlu1 %557 }
 0x385   :  { %v356_v59 = vpack.c.bf16 %v354_v57, %v354_v57  ;;  %10185 = vmatprep.subr.bf16.mxu1 %v11288_v3 }
 0x387   :  { %10170 = vmatmul.mubr.msk.bf16.vlgmr.msra.gmra.mxu0 %vm237_vm2, %v356_v59  ;;  %v168_v59 = vld [vmem:[%s11333_s21 + $0x8] sm:$0xff] }
 0x388   :  { %10180 = vmatpush3.bf16.xpose.msra.mxu0 %v514_v60  ;;  %10181 = vmatprep.mubr.msk.bf16.mxu0 %vm11289_vm0, %v11288_v3  ;;  %v728_v60 = vpack.c.bf16 %v168_v59, %v168_v59 }
 0x389   :  { %10191 = vmatprep.subr.bf16.mxu0 %v11288_v3 }
 0x38f   :  { %10182 = vmatmul.mubr.msk.bf16.vlgmr.msra.gmra.mxu0 %vm237_vm2, %v507_v61  ;;  %v733_v61 = vsel %vm362_vm3, %v728_v60, 0 }
 0x390   :  { %10193 = vmatprep.mubr.msk.bf16.mxu0 %vm11289_vm0, %v11288_v3 }
 0x443   :  { %v400_v1 = vpop.f32.mrf.mxu1 }
 0x445   :  { %v10165_v2 = vpop.f32.mrf.mxu1 }
 0x447   :  { %v403_v5 = vpop.f32.mrf.mxu1  ;;  %v448_v6 = vpop.f32.mrf.mxu0 }
 0x448   :  { %v454_v9 = vpack.c.bf16 %v448_v6, %v400_v1 }
 0x449   :  { %v10166_v10 = vpop.f32.mrf.mxu1  ;;  %v10171_v11 = vpop.f32.mrf.mxu0 }
 0x44a   :  { %10176 = vmatmul.mubr.msk.bf16.vlgmr.msra.gmra.mxu1 %vm237_vm2, %v454_v9 }
 0x44b   :  { %10186 = vmatpush3.bf16.xpose.msra.mxu1 %v565_v12  ;;  %v451_v13 = vpop.f32.mrf.mxu0  ;;  %10187 = vmatprep.mubr.msk.bf16.mxu1 %vm11289_vm0, %v11288_v3 }
 0x44c   :  { %10197 = vmatprep.subr.bf16.mxu1 %v11288_v3 }
 0x44d   :  { %v10172_v15 = vpop.f32.mrf.mxu0 }
 0x44f   :  { %v550_v16 = vpop.f32.mrf.mxu0 }
 0x450   :  { %v607_v17 = vsel %vm237_vm2, %v550_v16, -inf }
 0x451   :  { %608 = vmax.xlane.f32.xlu1 %v607_v17  ;;  %v10183_v20 = vpop.f32.mrf.mxu0 }
 0x452   :  { %10188 = vmatmul.mubr.msk.bf16.vlgmr.msra.gmra.mxu1 %vm237_vm2, %v558_v19 }
 0x453   :  { %v553_v21 = vpop.f32.mrf.mxu0  ;;  %10199 = vmatprep.mubr.msk.bf16.mxu1 %vm11289_vm0, %v11288_v3 }
 0x455   :  { %v10184_v22 = vpop.f32.mrf.mxu0 }
 0x4da   :  { %v609_v23 = vpop.xlane.xlu1 %608 }
 0x4db   :  { %v613_v25 = vsub.f32 %v550_v16, %v609_v23 }
 0x4dd   :  { %v615_v27 = vmul.f32 1.442695, %v613_v25 }
 0x4df   :  { %10996 = vpow2.f32 %v615_v27 }
 0x4ec   :  { %v10997_v28 = vpop.eup %10996 }
 0x4ed   :  { %v619_v29 = vsel %vm237_vm2, %v10997_v28, 0.0 }
 0x4ee   :  { %620 = vadd.xlane.f32.xlu1 %v619_v29 }
 0x50a   :  { %v11597_v30 = vpop.f32.mrf.mxu1 }
 0x50c   :  { %v10177_v31 = vpop.f32.mrf.mxu1 }
 0x50e   :  { %v11599_v32 = vpop.f32.mrf.mxu1 }
 0x510   :  { %v10178_v33 = vpop.f32.mrf.mxu1 }
 0x512   :  { %v601_v34 = vpop.f32.mrf.mxu1 }
 0x513   :  { %v610_v35 = vsel %vm237_vm2, %v601_v34, -inf }
 0x514   :  { %611 = vmax.xlane.f32.xlu0 %v610_v35  ;;  %v10189_v36 = vpop.f32.mrf.mxu1 }
 0x516   :  { %v604_v37 = vpop.f32.mrf.mxu1 }
 0x518   :  { %v10190_v38 = vpop.f32.mrf.mxu1 }
 0x52a   :  { %679 = vrot.lane.b32.xlu0 %v11533_v18, %s11294_s18 }
 0x52e   :  { %778 = vrot.lane.b32.xlu0 %v11540_v24, %s11295_s22 }
 0x577   :  { %v621_v46 = vpop.xlane.xlu1 %620 }
 0x59d   :  { %v612_v39 = vpop.xlane.xlu0 %611 }
 0x59e   :  { %v614_v40 = vsub.f32 %v601_v34, %v612_v39 }
 0x5a0   :  { %v617_v41 = vmul.f32 1.442695, %v614_v40 }
 0x5a1   :  { %v680_v42 = vpop.permute.xlu0 %679 }
 0x5a2   :  { %10998 = vpow2.f32 %v617_v41  ;;  %v685_v43 = vsel %vm362_vm3, %v680_v42, 0 }
 0x5a3   :  { %10198 = vmatpush3.bf16.msra.mxu1 %v685_v43  ;;  %11000 = vrcp.f32 %v621_v46 }
 0x5a4   :  { %10209 = vmatprep.subr.bf16.mxu1 %v11288_v3 }
 0x5a5   :  { %v779_v58 = vpop.permute.xlu0 %778 }
 0x5af   :  { %v10999_v44 = vpop.eup %10998 }
 0x5b0   :  { %v622_v45 = vsel %vm237_vm2, %v10999_v44, 0.0  ;;  %v11001_v47 = vpop.eup %11000 }
 0x5b1   :  { %623 = vadd.xlane.f32.xlu1 %v622_v45  ;;  %v627_v49 = vmul.f32 %v11001_v47, %v10997_v28 }
 0x5b3   :  { %v629_v52 = vpack.c.bf16 %v627_v49, %v627_v49 }
 0x5c2   :  { %631 = vrot.lane.b32.xlu1 %v11529_v14, %s11294_s18 }
 0x5c6   :  { %780 = vrot.lane.b32.xlu1 %v11529_v14, %s11296_s23 }
 0x5ca   :  { %830 = vrot.lane.b32.xlu1 %v11533_v18, %s11296_s23 }
 0x5ce   :  { %828 = vrot.lane.b32.xlu1 %v11547_v26, %s11295_s22 }
 0x63a   :  { %v624_v48 = vpop.xlane.xlu1 %623 }
 0x63b   :  { %11002 = vrcp.f32 %v624_v48  ;;  %v169_v48 = vld [vmem:[%s11333_s21 + $0x10] sm:$0xff] }
 0x63c   :  { %v999_v49 = vpack.c.bf16 %v169_v48, %v169_v48 }
 0x63e   :  { %v632_v50 = vpop.permute.xlu1 %631 }
 0x63f   :  { %v637_v51 = vsel %vm362_vm3, %v632_v50, 0  ;;  %v1004_v50 = vsel %vm362_vm3, %v999_v49, 0 }
 0x640   :  { %10192 = vmatpush3.bf16.msra.mxu0 %v637_v51 }
 0x641   :  { %10203 = vmatprep.subr.bf16.mxu0 %v11288_v3 }
 0x642   :  { %v781_v55 = vpop.permute.xlu1 %780 }
 0x643   :  { %10194 = vmatmul.mubr.msk.bf16.vlgmr.msra.gmra.mxu0 %vm237_vm2, %v629_v52  ;;  %v786_v57 = vsel %vm237_vm2, %v781_v55, 0 }
 0x644   :  { %10205 = vmatprep.mubr.msk.bf16.mxu0 %vm11289_vm0, %v11288_v3  ;;  %10204 = vmatpush3.bf16.msra.mxu0 %v733_v61 }
 0x645   :  { %10215 = vmatprep.subr.bf16.mxu0 %v11288_v3 }
 0x646   :  { %v831_v2 = vpop.permute.xlu1 %830 }
 0x647   :  { %v836_v9 = vsel %vm237_vm2, %v831_v2, 0 }
 0x648   :  { %v11003_v53 = vpop.eup %11002 }
 0x649   :  { %v628_v54 = vmul.f32 %v11003_v53, %v10999_v44 }
 0x64a   :  { %v829_v15 = vpop.permute.xlu1 %828 }
 0x64b   :  { %v630_v56 = vpack.c.bf16 %v628_v54, %v628_v54 }
 0x64d   :  { %10200 = vmatmul.mubr.msk.bf16.vlgmr.msra.gmra.mxu1 %vm237_vm2, %v630_v56 }
 0x64e   :  { %10210 = vmatpush3.bf16.xpose.msra.mxu1 %v786_v57  ;;  %10211 = vmatprep.mubr.msk.bf16.mxu1 %vm11289_vm0, %v11288_v3 }
 0x64f   :  { %10221 = vmatprep.subr.bf16.mxu1 %v11288_v3 }
 0x655   :  { %10212 = vmatmul.mubr.msk.bf16.vlgmr.msra.gmra.mxu1 %vm237_vm2, %v779_v58 }
 0x656   :  { %10223 = vmatprep.mubr.msk.bf16.mxu1 %vm11289_vm0, %v11288_v3 }
 0x703   :  { %v673_v62 = vpop.f32.mrf.mxu0 }
 0x705   :  { %v10195_v63 = vpop.f32.mrf.mxu0 }
 0x707   :  { %v676_v0 = vpop.f32.mrf.mxu0 }
 0x709   :  { %v10196_v1 = vpop.f32.mrf.mxu0 }
 0x70d   :  { %v721_v4 = vpop.f32.mrf.mxu1 }
 0x70e   :  { %v727_v5 = vpack.c.bf16 %v721_v4, %v673_v62 }
 0x70f   :  { %v10201_v6 = vpop.f32.mrf.mxu1 }
 0x710   :  { %10206 = vmatmul.mubr.msk.bf16.vlgmr.msra.gmra.mxu0 %vm237_vm2, %v727_v5 }
 0x711   :  { %10216 = vmatpush3.bf16.xpose.msra.mxu0 %v836_v9  ;;  %v724_v10 = vpop.f32.mrf.mxu1  ;;  %10217 = vmatprep.mubr.msk.bf16.mxu0 %vm11289_vm0, %v11288_v3 }
 0x712   :  { %10227 = vmatprep.subr.bf16.mxu0 %v11288_v3 }
 0x713   :  { %v10202_v11 = vpop.f32.mrf.mxu1 }
 0x715   :  { %v822_v12 = vpop.f32.mrf.mxu1 }
 0x716   :  { %v878_v13 = vsel %vm237_vm2, %v822_v12, -inf }
 0x717   :  { %879 = vmax.xlane.f32.xlu0 %v878_v13  ;;  %v10213_v16 = vpop.f32.mrf.mxu1 }
 0x718   :  { %10218 = vmatmul.mubr.msk.bf16.vlgmr.msra.gmra.mxu0 %vm237_vm2, %v829_v15 }
 0x719   :  { %v825_v17 = vpop.f32.mrf.mxu1  ;;  %10229 = vmatprep.mubr.msk.bf16.mxu0 %vm11289_vm0, %v11288_v3 }
 0x71b   :  { %v10214_v19 = vpop.f32.mrf.mxu1 }
 0x7a0   :  { %v880_v20 = vpop.xlane.xlu0 %879 }
 0x7a1   :  { %v884_v21 = vsub.f32 %v822_v12, %v880_v20 }
 0x7a3   :  { %v886_v22 = vmul.f32 1.442695, %v884_v21 }
 0x7a5   :  { %11004 = vpow2.f32 %v886_v22 }
 0x7b2   :  { %v11005_v23 = vpop.eup %11004 }
 0x7b3   :  { %v890_v25 = vsel %vm237_vm2, %v11005_v23, 0.0 }
 0x7b4   :  { %891 = vadd.xlane.f32.xlu0 %v890_v25 }
 0x7d0   :  { %v11643_v27 = vpop.f32.mrf.mxu0 }
 0x7d1   :  { %v776_v22 = vadd.f32 %v11643_v27, %v11597_v30 }
 0x7d2   :  { %v10207_v28 = vpop.f32.mrf.mxu0 }
 0x7d4   :  { %v11645_v29 = vpop.f32.mrf.mxu0 }
 0x7d6   :  { %v10208_v31 = vpop.f32.mrf.mxu0 }
 0x7d7   :  { %v777_v31 = vadd.f32 %v11645_v29, %v11599_v32 }
 0x7d8   :  { %v872_v33 = vpop.f32.mrf.mxu0 }
 0x7d9   :  { %v881_v34 = vsel %vm237_vm2, %v872_v33, -inf }
 0x7da   :  { %882 = vmax.xlane.f32.xlu1 %v881_v34  ;;  %v10219_v35 = vpop.f32.mrf.mxu0 }
 0x7dc   :  { %v875_v36 = vpop.f32.mrf.mxu0 }
 0x7de   :  { %v10220_v37 = vpop.f32.mrf.mxu0 }
 0x7eb   :  { %902 = vrot.lane.b32.xlu1 %v11529_v14, %s11297_s26 }
 0x7ef   :  { %1051 = vrot.lane.b32.xlu1 %v11529_v14, %s11298_s28 }
 0x7f3   :  { %1101 = vrot.lane.b32.xlu1 %v11533_v18, %s11298_s28 }
 0x7f7   :  { %1099 = vrot.lane.b32.xlu1 %v11547_v26, %s13286_s1 }
 0x83d   :  { %v892_v38 = vpop.xlane.xlu0 %891 }
 0x83e   :  { %11006 = vrcp.f32 %v892_v38 }
 0x84b   :  { %v11007_v39 = vpop.eup %11006 }
 0x84c   :  { %v898_v43 = vmul.f32 %v11007_v39, %v11005_v23 }
 0x84e   :  { %v900_v46 = vpack.c.bf16 %v898_v43, %v898_v43 }
 0x863   :  { %v883_v40 = vpop.xlane.xlu1 %882 }
 0x864   :  { %v885_v41 = vsub.f32 %v872_v33, %v883_v40 }
 0x866   :  { %v888_v42 = vmul.f32 1.442695, %v885_v41 }
 0x867   :  { %v903_v44 = vpop.permute.xlu1 %902 }
 0x868   :  { %11008 = vpow2.f32 %v888_v42  ;;  %v908_v45 = vsel %vm362_vm3, %v903_v44, 0 }
 0x869   :  { %10222 = vmatpush3.bf16.msra.mxu1 %v908_v45 }
 0x86a   :  { %10233 = vmatprep.subr.bf16.mxu1 %v11288_v3 }
 0x86b   :  { %v1052_v56 = vpop.permute.xlu1 %1051 }
 0x86c   :  { %10224 = vmatmul.mubr.msk.bf16.vlgmr.msra.gmra.mxu1 %vm237_vm2, %v900_v46 }
 0x86d   :  { %10235 = vmatprep.mubr.msk.bf16.mxu1 %vm11289_vm0, %v11288_v3  ;;  %10234 = vmatpush3.bf16.msra.mxu1 %v1004_v50 }
 0x86e   :  { %10245 = vmatprep.subr.bf16.mxu1 %v11288_v3 }
 0x86f   :  { %v1102_v63 = vpop.permute.xlu1 %1101 }
 0x870   :  { %v1107_v4 = vsel %vm237_vm2, %v1102_v63, 0 }
 0x873   :  { %v1100_v11 = vpop.permute.xlu1 %1099 }
 0x875   :  { %v11009_v26 = vpop.eup %11008 }
 0x876   :  { %v893_v47 = vsel %vm237_vm2, %v11009_v26, 0.0 }
 0x877   :  { %894 = vadd.xlane.f32.xlu0 %v893_v47 }
 0x88d   :  { %950 = vrot.lane.b32.xlu0 %v11533_v18, %s11297_s26 }
 0x891   :  { %1049 = vrot.lane.b32.xlu0 %v11540_v24, %s13286_s1  ;;  %v1057_v24 = vsel %vm237_vm2, %v1052_v56, 0 }
 0x900   :  { %v895_v51 = vpop.xlane.xlu0 %894 }
 0x901   :  { %11010 = vrcp.f32 %v895_v51 }
 0x904   :  { %v951_v52 = vpop.permute.xlu0 %950 }
 0x905   :  { %v956_v53 = vsel %vm362_vm3, %v951_v52, 0 }
 0x906   :  { %10228 = vmatpush3.bf16.msra.mxu0 %v956_v53 }
 0x907   :  { %10239 = vmatprep.subr.bf16.mxu0 %v11288_v3 }
 0x908   :  { %v1050_v58 = vpop.permute.xlu0 %1049 }
 0x90e   :  { %v11011_v54 = vpop.eup %11010 }
 0x90f   :  { %v899_v55 = vmul.f32 %v11011_v54, %v11009_v26  ;;  %v170_v26 = vld [vmem:[%s11333_s21 + $0x18] sm:$0xff] }
 0x910   :  { %v1270_v47 = vpack.c.bf16 %v170_v26, %v170_v26 }
 0x911   :  { %v901_v57 = vpack.c.bf16 %v899_v55, %v899_v55 }
 0x912   :  { %v1275_v48 = vsel %vm362_vm3, %v1270_v47, 0  ;;  %v1381_v47 = vld [vmem:[%s11353_s8 + $0x30] sm:$0xff] }
 0x913   :  { %10230 = vmatmul.mubr.msk.bf16.vlgmr.msra.gmra.mxu0 %vm237_vm2, %v901_v57 }
 0x914   :  { %10240 = vmatpush3.bf16.xpose.msra.mxu0 %v1057_v24  ;;  %10241 = vmatprep.mubr.msk.bf16.mxu0 %vm11289_vm0, %v11288_v3 }
 0x915   :  { %10251 = vmatprep.subr.bf16.mxu0 %v11288_v3 }
 0x91b   :  { %10242 = vmatmul.mubr.msk.bf16.vlgmr.msra.gmra.mxu0 %vm237_vm2, %v1050_v58 }
 0x91c   :  { %10253 = vmatprep.mubr.msk.bf16.mxu0 %vm11289_vm0, %v11288_v3 }
 0x92c   :  { %v944_v59 = vpop.f32.mrf.mxu1 }
 0x92e   :  { %v10225_v60 = vpop.f32.mrf.mxu1 }
 0x930   :  { %v947_v61 = vpop.f32.mrf.mxu1 }
 0x932   :  { %v10226_v62 = vpop.f32.mrf.mxu1 }
 0x933   :  { %v9338_v62 = vld [vmem:[%s11338_s25] ss:$0 sm:$0xff] }
 0x9d3   :  { %v992_v0 = vpop.f32.mrf.mxu0 }
 0x9d4   :  { %v998_v1 = vpack.c.bf16 %v992_v0, %v944_v59 }
 0x9d5   :  { %v10231_v2 = vpop.f32.mrf.mxu0 }
 0x9d6   :  { %10236 = vmatmul.mubr.msk.bf16.vlgmr.msra.gmra.mxu1 %vm237_vm2, %v998_v1 }
 0x9d7   :  { %10246 = vmatpush3.bf16.xpose.msra.mxu1 %v1107_v4  ;;  %v995_v5 = vpop.f32.mrf.mxu0  ;;  %10247 = vmatprep.mubr.msk.bf16.mxu1 %vm11289_vm0, %v11288_v3 }
 0x9d8   :  { %10257 = vmatprep.subr.bf16.mxu1 %v11288_v3 }
 0x9d9   :  { %v10232_v6 = vpop.f32.mrf.mxu0 }
 0x9db   :  { %v1093_v9 = vpop.f32.mrf.mxu0 }
 0x9dc   :  { %v1149_v10 = vsel %vm237_vm2, %v1093_v9, -inf }
 0x9dd   :  { %1150 = vmax.xlane.f32.xlu0 %v1149_v10  ;;  %v10243_v12 = vpop.f32.mrf.mxu0 }
 0x9de   :  { %10248 = vmatmul.mubr.msk.bf16.vlgmr.msra.gmra.mxu1 %vm237_vm2, %v1100_v11 }
 0x9df   :  { %v1096_v13 = vpop.f32.mrf.mxu0  ;;  %10259 = vmatprep.mubr.msk.bf16.mxu1 %vm11289_vm0, %v11288_v3 }
 0x9e1   :  { %v10244_v15 = vpop.f32.mrf.mxu0 }
 0xa66   :  { %v1151_v16 = vpop.xlane.xlu0 %1150 }
 0xa67   :  { %v1155_v17 = vsub.f32 %v1093_v9, %v1151_v16 }
 0xa69   :  { %v1157_v19 = vmul.f32 1.442695, %v1155_v17 }
 0xa6b   :  { %11012 = vpow2.f32 %v1157_v19 }
 0xa78   :  { %v11013_v20 = vpop.eup %11012 }
 0xa79   :  { %v1161_v21 = vsel %vm237_vm2, %v11013_v20, 0.0 }
 0xa7a   :  { %1162 = vadd.xlane.f32.xlu0 %v1161_v21 }
 0xa96   :  { %v1040_v23 = vpop.f32.mrf.mxu1 }
 0xa97   :  { %v1047_v25 = vadd.f32 %v1040_v23, %v776_v22 }
 0xa98   :  { %v10237_v28 = vpop.f32.mrf.mxu1 }
 0xa99   :  { %v1388_v28 = vld [vmem:[%s11353_s8 + $0x68] sm:$0xff] }
 0xa9a   :  { %v1043_v33 = vpop.f32.mrf.mxu1 }
 0xa9b   :  { %v1048_v34 = vadd.f32 %v1043_v33, %v777_v31  ;;  %v1386_v31 = vld [vmem:[%s11353_s8 + $0x58] sm:$0xff] }
 0xa9c   :  { %v10238_v35 = vpop.f32.mrf.mxu1 }
 0xa9d   :  { %v1383_v35 = vld [vmem:[%s11353_s8 + $0x40] sm:$0xff] }
 0xa9e   :  { %v1143_v36 = vpop.f32.mrf.mxu1 }
 0xa9f   :  { %v1152_v37 = vsel %vm237_vm2, %v1143_v36, -inf }
 0xaa0   :  { %1153 = vmax.xlane.f32.xlu1 %v1152_v37  ;;  %v10249_v38 = vpop.f32.mrf.mxu1 }
 0xaa2   :  { %v1146_v39 = vpop.f32.mrf.mxu1 }
 0xaa3   :  { %v1385_v39 = vld [vmem:[%s11353_s8 + $0x50] sm:$0xff] }
 0xaa4   :  { %v10250_v40 = vpop.f32.mrf.mxu1 }
 0xaa5   :  { %v1389_v40 = vld [vmem:[%s11353_s8 + $0x70] sm:$0xff] }
 0xab1   :  { %1173 = vrot.lane.b32.xlu1 %v11529_v14, %s13284_s2 }
 0xb03   :  { %v1163_v30 = vpop.xlane.xlu0 %1162 }
 0xb04   :  { %11014 = vrcp.f32 %v1163_v30  ;;  %v1376_v30 = vld [vmem:[%s11353_s8 + $0x8] sm:$0xff] }
 0xb11   :  { %v11015_v27 = vpop.eup %11014 }
 0xb12   :  { %v1169_v42 = vmul.f32 %v11015_v27, %v11013_v20  ;;  %v1464_v27 = vpack.c.bf16 %v1389_v40, %v1385_v39 }
 0xb14   :  { %v1171_v45 = vpack.c.bf16 %v1169_v42, %v1169_v42  ;;  %v11301_v42 = vmov 0  }
 0xb29   :  { %v1154_v41 = vpop.xlane.xlu1 %1153 }
 0xb2a   :  { %v1156_v32 = vsub.f32 %v1143_v36, %v1154_v41  ;;  %v1387_v36 = vld [vmem:[%s11353_s8 + $0x60] sm:$0xff]  ;;  %v1380_v41 = vld [vmem:[%s11353_s8 + $0x28] sm:$0xff] }
 0xb2b   :  { %v1462_v38 = vpack.c.bf16 %v1387_v36, %v1383_v35 }
 0xb2c   :  { %v1159_v29 = vmul.f32 1.442695, %v1156_v32  ;;  %v1378_v32 = vld [vmem:[%s11353_s8 + $0x18] sm:$0xff] }
 0xb2d   :  { %v1174_v43 = vpop.permute.xlu1 %1173 }
 0xb2e   :  { %11016 = vpow2.f32 %v1159_v29  ;;  %v1179_v44 = vsel %vm362_vm3, %v1174_v43, 0  ;;  %v1382_v29 = vld [vmem:[%s11353_s8 + $0x38] sm:$0xff]  ;;  %v1459_v43 = vpack.c.bf16 %v1380_v41, %v1376_v30  ;;  %v1434_v30 = vld [vmem:[%s11363_s19 + $0x150] sm:$0xff]  ;;  %v1416_v41 = vld [vmem:[%s11363_s19 + $0xc0] sm:$0xff] }
 0xb2f   :  { %10252 = vmatpush3.bf16.msra.mxu0 %v1179_v44  ;;  %v1461_v44 = vpack.c.bf16 %v1382_v29, %v1378_v32  ;;  %v1417_v32 = vld [vmem:[%s11363_s19 + $0xc8] sm:$0xff]  ;;  %v1448_v29 = vld [vmem:[%s11363_s19 + $0x1c0] sm:$0xff] }
 0xb30   :  { %10263 = vmatprep.subr.bf16.mxu0 %v11288_v3 }
 0xb32   :  { %10254 = vmatmul.mubr.msk.bf16.vlgmr.msra.gmra.mxu0 %vm237_vm2, %v1171_v45  ;;  %v1375_v45 = vld [vmem:[%s11353_s8] sm:$0xff] }
 0xb33   :  { %10265 = vmatprep.mubr.msk.bf16.mxu0 %vm11289_vm0, %v11288_v3  ;;  %10264 = vmatpush3.bf16.msra.mxu0 %v1275_v48 }
 0xb3b   :  { %v11017_v14 = vpop.eup %11016 }
 0xb3c   :  { %v1164_v46 = vsel %vm237_vm2, %v11017_v14, 0.0 }
 0xb3d   :  { %1165 = vadd.xlane.f32.xlu0 %v1164_v46  ;;  %v1377_v46 = vld [vmem:[%s11353_s8 + $0x10] sm:$0xff] }
 0xb3e   :  { %v1460_v48 = vpack.c.bf16 %v1381_v47, %v1377_v46  ;;  %v1401_v46 = vld [vmem:[%s11363_s19 + $0x48] sm:$0xff] }
 0xb53   :  { %1221 = vrot.lane.b32.xlu0 %v11533_v18, %s13284_s2 }
 0xbc6   :  { %v1166_v49 = vpop.xlane.xlu0 %1165 }
 0xbc7   :  { %11018 = vrcp.f32 %v1166_v49  ;;  %v1422_v49 = vld [vmem:[%s11363_s19 + $0xf0] sm:$0xff] }
 0xbca   :  { %v1222_v50 = vpop.permute.xlu0 %1221 }
 0xbcb   :  { %v1227_v51 = vsel %vm362_vm3, %v1222_v50, 0  ;;  %v1423_v50 = vld [vmem:[%s11363_s19 + $0xf8] sm:$0xff] }
 0xbcc   :  { %10258 = vmatpush3.bf16.msra.mxu1 %v1227_v51  ;;  %v1454_v51 = vld [vmem:[%s11363_s19 + $0x1f0] sm:$0xff] }
 0xbd4   :  { %v11019_v52 = vpop.eup %11018 }
 0xbd5   :  { %v1170_v53 = vmul.f32 %v11019_v52, %v11017_v14  ;;  %v1379_v14 = vld [vmem:[%s11353_s8 + $0x20] sm:$0xff]  ;;  %v1611_v52 = vpack.c.bf16 %v1423_v50, %v1422_v49  ;;  %v1433_v49 = vld [vmem:[%s11363_s19 + $0x148] sm:$0xff]  ;;  %v1414_v50 = vld [vmem:[%s11363_s19 + $0xb0] sm:$0xff] }
 0xbd6   :  { %v1458_v26 = vpack.c.bf16 %v1379_v14, %v1375_v45  ;;  %v1400_v14 = vld [vmem:[%s11363_s19 + $0x40] sm:$0xff] }
 0xbd7   :  { %v1172_v54 = vpack.c.bf16 %v1170_v53, %v1170_v53  ;;  %v1455_v53 = vld [vmem:[%s11363_s19 + $0x1f8] sm:$0xff] }
 0xbd9   :  { %10260 = vmatmul.mubr.msk.bf16.vlgmr.msra.gmra.mxu1 %vm237_vm2, %v1172_v54  ;;  %v1627_v54 = vpack.c.bf16 %v1455_v53, %v1454_v51  ;;  %v1415_v51 = vld [vmem:[%s11363_s19 + $0xb8] sm:$0xff] }
 0xbda   :  { %1501 = vmatprep.mubr.bf16.mxu1 %v11301_v42  ;;  %v1447_v53 = vld [vmem:[%s11363_s19 + $0x1b8] sm:$0xff] }
 0xbf2   :  { %v1215_v55 = vpop.f32.mrf.mxu0 }
 0xbf4   :  { %v10255_v56 = vpop.f32.mrf.mxu0 }
 0xbf6   :  { %v1218_v18 = vpop.f32.mrf.mxu0 }
 0xbf8   :  { %v10256_v57 = vpop.f32.mrf.mxu0 }
 0xc99   :  { %v1263_v24 = vpop.f32.mrf.mxu1 }
 0xc9a   :  { %v1269_v58 = vpack.c.bf16 %v1263_v24, %v1215_v55 }
 0xc9b   :  { %v10261_v59 = vpop.f32.mrf.mxu1 }
 0xc9c   :  { %10266 = vmatmul.mubr.msk.bf16.vlgmr.msra.gmra.mxu0 %vm237_vm2, %v1269_v58 }
 0xc9d   :  { %v1266_v60 = vpop.f32.mrf.mxu1  ;;  %1544 = vmatprep.mubr.bf16.mxu0 %v11301_v42 }
 0xc9f   :  { %v10262_v61 = vpop.f32.mrf.mxu1 }
 0xca0   :  { %v9339_v61 = vld [vmem:[%s11343_s29] ss:$0 sm:$0xff] }
 0xd5c   :  { %v1311_v63 = vpop.f32.mrf.mxu0 }
 0xd5d   :  { %v1318_v0 = vadd.f32 %v1311_v63, %v1047_v25  ;;  %v1384_v25 = vld [vmem:[%s11353_s8 + $0x48] sm:$0xff] }
 0xd5e   :  { %v10267_v1 = vpop.f32.mrf.mxu0  ;;  %v1463_v33 = vpack.c.bf16 %v1388_v28, %v1384_v25  ;;  %v1437_v25 = vld [vmem:[%s11363_s19 + $0x168] sm:$0xff]  ;;  %v1418_v28 = vld [vmem:[%s11363_s19 + $0xd0] sm:$0xff] }
 0xd5f   :  { %v1326_v2 = vadd.f32 %v9338_v62, %v1318_v0  ;;  %v9340_v1 = vld [vmem:[%s11348_s3] ss:$0 sm:$0xff] }
 0xd60   :  { %v1314_v4 = vpop.f32.mrf.mxu0  ;;  %1481 = vmatprep.subr.bf16.mxu1 %v1463_v33  ;;  %v1450_v33 = vld [vmem:[%s11363_s19 + $0x1d0] sm:$0xff] }
 0xd61   :  { %v1319_v5 = vadd.f32 %v1314_v4, %v1048_v34  ;;  %v1328_v6 = vadd.f32 %v1326_v2, %v11516_v7  ;;  %v1390_v34 = vld [vmem:[%s11353_s8 + $0x78] sm:$0xff]  ;;  %1482 = vmatpush1.bf16.msra.mxu1 %v1462_v38  ;;  %v1406_v2 = vld [vmem:[%s11363_s19 + $0x70] sm:$0xff] }
 0xd62   :  { %v10268_v9 = vpop.f32.mrf.mxu0  ;;  %v1465_v37 = vpack.c.bf16 %v1390_v34, %v1386_v31  ;;  %1483 = vmatprep.subr.bf16.mxu1 %v1459_v43  ;;  %v1407_v4 = vld [vmem:[%s11363_s19 + $0x78] sm:$0xff]  ;;  %v1449_v43 = vld [vmem:[%s11363_s19 + $0x1c8] sm:$0xff] }
 0xd63   :  { %v1327_v10 = vadd.f32 %v9338_v62, %v1319_v5  ;;  %v1332_v11 = vsel %vm175_vm1, %v1328_v6, 0.0  ;;  %v1439_v9 = vld [vmem:[%s11363_s19 + $0x178] sm:$0xff]  ;;  %v1624_v47 = vpack.c.bf16 %v1449_v43, %v1448_v29  ;;  %v1556_v29 = vlaneseq }
 0xd64   :  { %1333 = vadd.xlane.f32.xlu1 %v1332_v11  ;;  %1524 = vmatprep.subr.bf16.mxu0 %v1465_v37  ;;  %v1421_v11 = vld [vmem:[%s11363_s19 + $0xe8] sm:$0xff]  ;;  %v1419_v31 = vld [vmem:[%s11363_s19 + $0xd8] sm:$0xff]  ;;  %v1402_v37 = vld [vmem:[%s11363_s19 + $0x50] sm:$0xff] }
 0xd65   :  { %v1329_v12 = vadd.f32 %v1327_v10, %v11519_v8  ;;  %1525 = vmatpush1.bf16.msra.mxu0 %v1464_v27  ;;  %1484 = vmatpush1.bf16.msra.mxu1 %v1458_v26  ;;  %v1420_v10 = vld [vmem:[%s11363_s19 + $0xe0] sm:$0xff]  ;;  %v1451_v34 = vld [vmem:[%s11363_s19 + $0x1d8] sm:$0xff]  ;;  %v1609_v39 = vpack.c.bf16 %v1419_v31, %v1418_v28  ;;  %v1608_v26 = vpack.c.bf16 %v1417_v32, %v1416_v41  ;;  %v1425_v41 = vld [vmem:[%s11363_s19 + $0x108] sm:$0xff]  ;;  %v1557_v43 = vshrl.u32 %v1556_v29, 7 }
 0xd66   :  { %1526 = vmatprep.subr.bf16.mxu0 %v1461_v44  ;;  %9741 = vmatprep.subr.bf16.mxu1 %v1611_v52  ;;  %v1403_v38 = vld [vmem:[%s11363_s19 + $0x58] sm:$0xff]  ;;  %v1625_v40 = vpack.c.bf16 %v1451_v34, %v1450_v33  ;;  %v1446_v52 = vld [vmem:[%s11363_s19 + $0x1b0] sm:$0xff]  ;;  %v1408_v33 = vld [vmem:[%s11363_s19 + $0x80] sm:$0xff] }
 0xd67   :  { %v1335_v13 = vsel %vm175_vm1, %v1329_v12, 0.0  ;;  %v1435_v27 = vld [vmem:[%s11363_s19 + $0x158] sm:$0xff]  ;;  %v1601_v44 = vpack.c.bf16 %v1403_v38, %v1402_v37  ;;  %v1409_v34 = vld [vmem:[%s11363_s19 + $0x88] sm:$0xff]  ;;  %v1392_v38 = vld [vmem:[%s11363_s19] sm:$0xff] }
 0xd68   :  { %1336 = vadd.xlane.f32.xlu0 %v1335_v13  ;;  %v1453_v13 = vld [vmem:[%s11363_s19 + $0x1e8] sm:$0xff]  ;;  %v1617_v45 = vpack.c.bf16 %v1435_v27, %v1434_v30  ;;  %v1427_v28 = vld [vmem:[%s11363_s19 + $0x118] sm:$0xff]  ;;  %v1424_v27 = vld [vmem:[%s11363_s19 + $0x100] sm:$0xff] }
 0xd69   :  { %1527 = vmatpush1.bf16.msra.mxu0 %v1460_v48  ;;  %v1432_v48 = vld [vmem:[%s11363_s19 + $0x140] sm:$0xff]  ;;  %v1441_v37 = vld [vmem:[%s11363_s19 + $0x188] sm:$0xff]  ;;  %v1612_v32 = vpack.c.bf16 %v1425_v41, %v1424_v27 }
 0xd6a   :  { %9763 = vmatprep.subr.bf16.mxu0 %v1627_v54  ;;  %v1600_v54 = vpack.c.bf16 %v1401_v46, %v1400_v14  ;;  %v11814_v14 = vsub.s32 0, %v1557_v43  ;;  %v11816_v46 = vsub.s32 2, %v1557_v43 }
 0xded   :  { %v1334_v15 = vpop.xlane.xlu1 %1333 }
 0xdee   :  { %v1339_v16 = vmul.f32 0.03125, %v1334_v15 }
 0xdf0   :  { %v1341_v17 = vsub.f32 %v1328_v6, %v1339_v16  ;;  %v1438_v6 = vld [vmem:[%s11363_s19 + $0x170] sm:$0xff] }
 0xdf1   :  { %v1337_v7 = vpop.xlane.xlu0 %1336 }
 0xdf2   :  { %v1340_v19 = vmul.f32 0.03125, %v1337_v7  ;;  %v1343_v20 = vmul.f32 %v1341_v17, %v1341_v17  ;;  %v1619_v7 = vpack.c.bf16 %v1439_v9, %v1438_v6 }
 0xdf4   :  { %v1342_v21 = vsub.f32 %v1329_v12, %v1340_v19  ;;  %v1345_v22 = vsel %vm175_vm1, %v1343_v20, 0.0  ;;  %v1452_v12 = vld [vmem:[%s11363_s19 + $0x1e0] sm:$0xff]  ;;  %v1405_v20 = vld [vmem:[%s11363_s19 + $0x68] sm:$0xff] }
 0xdf5   :  { %1346 = vadd.xlane.f32.xlu1 %v1345_v22  ;;  %v1404_v19 = vld [vmem:[%s11363_s19 + $0x60] sm:$0xff]  ;;  %v1610_v22 = vpack.c.bf16 %v1421_v11, %v1420_v10  ;;  %v1429_v11 = vld [vmem:[%s11363_s19 + $0x128] sm:$0xff] }
 0xdf6   :  { %v1344_v8 = vmul.f32 %v1342_v21, %v1342_v21  ;;  %v1602_v35 = vpack.c.bf16 %v1405_v20, %v1404_v19  ;;  %v1428_v10 = vld [vmem:[%s11363_s19 + $0x120] sm:$0xff]  ;;  %v1443_v20 = vld [vmem:[%s11363_s19 + $0x198] sm:$0xff] }
 0xdf8   :  { %v1348_v23 = vsel %vm175_vm1, %v1344_v8, 0.0  ;;  %v1626_v8 = vpack.c.bf16 %v1453_v13, %v1452_v12  ;;  %v1614_v12 = vpack.c.bf16 %v1429_v11, %v1428_v10  ;;  %v1410_v13 = vld [vmem:[%s11363_s19 + $0x90] sm:$0xff] }
 0xdf9   :  { %1349 = vadd.xlane.f32.xlu0 %v1348_v23  ;;  %v1436_v23 = vld [vmem:[%s11363_s19 + $0x160] sm:$0xff] }
 0xdfa   :  { %v1618_v36 = vpack.c.bf16 %v1437_v25, %v1436_v23  ;;  %v1426_v25 = vld [vmem:[%s11363_s19 + $0x110] sm:$0xff] }
 0xdfb   :  { %v1613_v31 = vpack.c.bf16 %v1427_v28, %v1426_v25 }
 0xe7e   :  { %v1347_v55 = vpop.xlane.xlu1 %1346 }
 0xe7f   :  { %v1351_v56 = vmul.f32 0.03125, %v1347_v55  ;;  %v1616_v55 = vpack.c.bf16 %v1433_v49, %v1432_v48 }
 0xe81   :  { %v1353_v18 = vadd.f32 1e-05, %v1351_v56  ;;  %v1398_v56 = vld [vmem:[%s11363_s19 + $0x30] sm:$0xff] }
 0xe82   :  { %v1350_v57 = vpop.xlane.xlu0 %1349 }
 0xe83   :  { %11020 = vrsqrt.f32 %v1353_v18  ;;  %v1352_v24 = vmul.f32 0.03125, %v1350_v57  ;;  %v1607_v18 = vpack.c.bf16 %v1415_v51, %v1414_v50  ;;  %v1623_v57 = vpack.c.bf16 %v1447_v53, %v1446_v52 }
 0xe85   :  { %v1354_v58 = vadd.f32 1e-05, %v1352_v24  ;;  %v1399_v24 = vld [vmem:[%s11363_s19 + $0x38] sm:$0xff] }
 0xe87   :  { %11022 = vrsqrt.f32 %v1354_v58  ;;  %v1430_v58 = vld [vmem:[%s11363_s19 + $0x130] sm:$0xff] }
 0xe90   :  { %v11021_v59 = vpop.eup %11020 }
 0xe91   :  { %v1357_v60 = vmul.f32 %v11021_v59, %v1341_v17  ;;  %v1603_v17 = vpack.c.bf16 %v1407_v4, %v1406_v2  ;;  %v1431_v59 = vld [vmem:[%s11363_s19 + $0x138] sm:$0xff]  ;;  %v1445_v2 = vld [vmem:[%s11363_s19 + $0x1a8] sm:$0xff]  ;;  %v1396_v4 = vld [vmem:[%s11363_s19 + $0x20] sm:$0xff] }
 0xe93   :  { %v1365_v0 = vmul.f32 %v9339_v61, %v1357_v60  ;;  %v1599_v60 = vpack.c.bf16 %v1399_v24, %v1398_v56 }
 0xe94   :  { %v11023_v62 = vpop.eup %11022 }
 0xe95   :  { %v1358_v63 = vmul.f32 %v11023_v62, %v1342_v21  ;;  %v11748_v15 = vadd.f32 %v9340_v1, %v1365_v0  ;;  %v1412_v62 = vld [vmem:[%s11363_s19 + $0xa0] sm:$0xff] }
 0xe96   :  { %v1444_v0 = vld [vmem:[%s11363_s19 + $0x1a0] sm:$0xff] }
 0xe97   :  { %v1366_v5 = vmul.f32 %v9339_v61, %v1358_v63  ;;  %v1615_v61 = vpack.c.bf16 %v1431_v59, %v1430_v58  ;;  %v1413_v63 = vld [vmem:[%s11363_s19 + $0xa8] sm:$0xff]  ;;  %v1622_v6 = vpack.c.bf16 %v1445_v2, %v1444_v0 }
 0xe99   :  { %v11750_v16 = vadd.f32 %v9340_v1, %v1366_v5  ;;  %v1606_v1 = vpack.c.bf16 %v1413_v63, %v1412_v62  ;;  %v1397_v5 = vld [vmem:[%s11363_s19 + $0x28] sm:$0xff] }
 0xe9a   :  { %v1598_v9 = vpack.c.bf16 %v1397_v5, %v1396_v4 }
 0xe9b   :  { %v1457_v21 = vpack.c.bf16 %v11750_v16, %v11748_v15 }
 0xe9d   :  { %9341 = vmatmul.mubr.msk.bf16.vlgmr.msra.gmra.mxu1 %vm175_vm1, %v1457_v21  ;;  %9342 = vmatmul.mubr.msk.bf16.vlgmr.msra.gmra.mxu0 %vm175_vm1, %v1457_v21  ;;  %v1394_v21 = vld [vmem:[%s11363_s19 + $0x10] sm:$0xff] }
 0xe9e   :  { %9742 = vmatpush3.bf16.msra.mxu1 %v1603_v17  ;;  %9764 = vmatpush3.bf16.msra.mxu0 %v1619_v7  ;;  %v1411_v17 = vld [vmem:[%s11363_s19 + $0x98] sm:$0xff]  ;;  %v1442_v7 = vld [vmem:[%s11363_s19 + $0x190] sm:$0xff] }
 0xe9f   :  { %9743 = vmatprep.subr.bf16.mxu1 %v1610_v22  ;;  %9765 = vmatprep.subr.bf16.mxu0 %v1626_v8  ;;  %v1605_v19 = vpack.c.bf16 %v1411_v17, %v1410_v13  ;;  %v1395_v22 = vld [vmem:[%s11363_s19 + $0x18] sm:$0xff]  ;;  %v1621_v8 = vpack.c.bf16 %v1443_v20, %v1442_v7 }
 0xea0   :  { %v1597_v23 = vpack.c.bf16 %v1395_v22, %v1394_v21 }
 0xea2   :  { %9744 = vmatpush3.bf16.msra.mxu1 %v1602_v35  ;;  %9766 = vmatpush3.bf16.msra.mxu0 %v1618_v36  ;;  %v1440_v35 = vld [vmem:[%s11363_s19 + $0x180] sm:$0xff]  ;;  %v1604_v36 = vpack.c.bf16 %v1409_v34, %v1408_v33 }
 0xea3   :  { %9745 = vmatprep.subr.bf16.mxu1 %v1609_v39  ;;  %9767 = vmatprep.subr.bf16.mxu0 %v1625_v40  ;;  %v1393_v39 = vld [vmem:[%s11363_s19 + $0x8] sm:$0xff]  ;;  %v1620_v40 = vpack.c.bf16 %v1441_v37, %v1440_v35 }
 0xea4   :  { %v1596_v30 = vpack.c.bf16 %v1393_v39, %v1392_v38 }
 0xea6   :  { %9746 = vmatpush3.bf16.msra.mxu1 %v1601_v44  ;;  %9768 = vmatpush3.bf16.msra.mxu0 %v1617_v45  ;;  %v11810_v44 = vsub.s32 1, %v1557_v43  ;;  %v11812_v45 = vsub.s32 3, %v1557_v43 }
 0xea7   :  { %9747 = vmatprep.subr.bf16.mxu1 %v1608_v26  ;;  %9769 = vmatprep.subr.bf16.mxu0 %v1624_v47  ;;  %v1391_v26 = vld [vmem:[%s11358_s14] sm:$0xf] }
 0xea8   :  { %v1563_v49 = vrot.slane %v1391_v26, %v11810_v44  ;;  %v1571_v50 = vrot.slane %v1391_v26, %v11812_v45  ;;  %v1559_v51 = vrot.slane %v1391_v26, %v11814_v14  ;;  %v1567_v52 = vrot.slane %v1391_v26, %v11816_v46 }
 0xeaa   :  { %9748 = vmatpush3.bf16.msra.mxu1 %v1600_v54  ;;  %9770 = vmatpush3.bf16.msra.mxu0 %v1616_v55 }
 0xeab   :  { %9749 = vmatprep.subr.bf16.mxu1 %v1607_v18  ;;  %9771 = vmatprep.subr.bf16.mxu0 %v1623_v57 }
 0xeae   :  { %9750 = vmatpush3.bf16.msra.mxu1 %v1599_v60  ;;  %9772 = vmatpush3.bf16.msra.mxu0 %v1615_v61 }
 0xeaf   :  { %9751 = vmatprep.subr.bf16.mxu1 %v1606_v1  ;;  %9773 = vmatprep.subr.bf16.mxu0 %v1622_v6 }
 0xeb2   :  { %9752 = vmatpush3.bf16.msra.mxu1 %v1598_v9  ;;  %9774 = vmatpush3.bf16.msra.mxu0 %v1614_v12 }
 0xeb3   :  { %9753 = vmatprep.subr.bf16.mxu1 %v1605_v19  ;;  %9775 = vmatprep.subr.bf16.mxu0 %v1621_v8 }
 0xeb6   :  { %9754 = vmatpush3.bf16.msra.mxu1 %v1597_v23  ;;  %9776 = vmatpush3.bf16.msra.mxu0 %v1613_v31  ;;  %v9343_v31 = vld [vmem:[%s11368_s24] ss:$0 sm:$0xff] }
 0xeb7   :  { %9755 = vmatprep.subr.bf16.mxu1 %v1604_v36  ;;  %9777 = vmatprep.subr.bf16.mxu0 %v1620_v40 }
 0xeba   :  { %9756 = vmatpush3.bf16.msra.mxu1 %v1596_v30  ;;  %9778 = vmatpush3.bf16.msra.mxu0 %v1612_v32 }
 0xebb   :  { %10269 = vmatprep.subr.bf16.mxu1 %v11288_v3  ;;  %10277 = vmatprep.subr.bf16.mxu0 %v11288_v3 }
 0xf5d   :  { %v1503_v47 = vpop.f32.mrf.mxu1  ;;  %v1546_v48 = vpop.f32.mrf.mxu0 }
 0xf5e   :  { %v1576_v59 = vadd.f32 %v1559_v51, %v1503_v47  ;;  %v1578_v60 = vadd.f32 %v1567_v52, %v1546_v48 }
 0xf5f   :  { %v1505_v53 = vpop.f32.mrf.mxu1  ;;  %v1548_v54 = vpop.f32.mrf.mxu0 }
 0xf60   :  { %v1577_v18 = vadd.f32 %v1563_v49, %v1505_v53  ;;  %v1579_v57 = vadd.f32 %v1571_v50, %v1548_v54  ;;  %v1584_v10 = vmax.f32 %v1576_v59, 0.0  ;;  %v1586_v11 = vmax.f32 %v1578_v60, 0.0  ;;  %v9349_v53 = vld [vmem:[%s11323_s13 + $0x38] sm:$0xff] }
 0xf61   :  { %v1507_v55 = vpop.f32.mrf.mxu1  ;;  %v1550_v56 = vpop.f32.mrf.mxu0 }
 0xf62   :  { %v1580_v24 = vadd.f32 %v1559_v51, %v1507_v55  ;;  %v1582_v58 = vadd.f32 %v1567_v52, %v1550_v56  ;;  %v1585_v4 = vmax.f32 %v1577_v18, 0.0  ;;  %v1587_v5 = vmax.f32 %v1579_v57, 0.0  ;;  %v9346_v55 = vld [vmem:[%s11323_s13 + $0x20] sm:$0xff]  ;;  %v9347_v56 = vld [vmem:[%s11323_s13 + $0x28] sm:$0xff] }
 0xf63   :  { %v1509_v61 = vpop.f32.mrf.mxu1  ;;  %v1552_v62 = vpop.f32.mrf.mxu0  ;;  %v1779_v18 = vpack.c.bf16 %v9347_v56, %v9346_v55 }
 0xf64   :  { %v1581_v63 = vadd.f32 %v1563_v49, %v1509_v61  ;;  %v1583_v0 = vadd.f32 %v1571_v50, %v1552_v62  ;;  %v1588_v1 = vmax.f32 %v1580_v24, 0.0  ;;  %v1590_v2 = vmax.f32 %v1582_v58, 0.0 }
 0xf66   :  { %v1589_v6 = vmax.f32 %v1581_v63, 0.0  ;;  %v1591_v9 = vmax.f32 %v1583_v0, 0.0  ;;  %v1592_v17 = vpack.c.bf16 %v1588_v1, %v1584_v10  ;;  %v1594_v7 = vpack.c.bf16 %v1590_v2, %v1586_v11  ;;  %v9344_v0 = vld [vmem:[%s11373_s30] ss:$0 sm:$0xff] }
 0xf68   :  { %v1593_v12 = vpack.c.bf16 %v1589_v6, %v1585_v4  ;;  %v1595_v13 = vpack.c.bf16 %v1591_v9, %v1587_v5  ;;  %v9345_v5 = vld [vmem:[%s11378_s6] ss:$0 sm:$0xff] }
 0xf6a   :  { %1660 = vmatprep.mubr.bf16.mxu1 %v1593_v12  ;;  %1701 = vmatprep.mubr.bf16.mxu0 %v1595_v13  ;;  %v9357_v12 = vld [vmem:[%s11328_s17 + $0x1] ss:$0 sm:$0xff]  ;;  %s13310_s17 = sld [smem:[#allocation8_spill]] }
 0xf6b   :  { %1661 = vmatmul.mubr.bf16.vlgmr.msra.gmra.mxu1 %v1592_v17  ;;  %1702 = vmatmul.mubr.bf16.vlgmr.msra.gmra.mxu0 %v1594_v7 }
 0xf6c   :  { %10273 = vmatprep.mubr.msk.bf16.mxu1 %vm11289_vm0, %v11288_v3  ;;  %10279 = vmatprep.mubr.msk.bf16.mxu0 %vm11289_vm0, %v11288_v3 }
0x102b   :  { %v9757_v19 = vpop.f32.mrf.mxu1  ;;  %v9779_v20 = vpop.f32.mrf.mxu0 }
0x102d   :  { %v9758_v21 = vpop.f32.mrf.mxu1  ;;  %v9780_v22 = vpop.f32.mrf.mxu0 }
0x102e   :  { %v9759_v8 = vadd.f32 %v9758_v21, %v9757_v19  ;;  %v9781_v23 = vadd.f32 %v9780_v22, %v9779_v20 }
0x102f   :  { %v9760_v25 = vpop.f32.mrf.mxu1  ;;  %v9782_v28 = vpop.f32.mrf.mxu0 }
0x1030   :  { %v1704_v33 = vadd.f32 %v9781_v23, %v9759_v8 }
0x1031   :  { %v9761_v34 = vpop.f32.mrf.mxu1  ;;  %v9783_v35 = vpop.f32.mrf.mxu0 }
0x1032   :  { %v9762_v36 = vadd.f32 %v9761_v34, %v9760_v25  ;;  %v9784_v37 = vadd.f32 %v9783_v35, %v9782_v28  ;;  %v1716_v38 = vadd.f32 %v9343_v31, %v1704_v33 }
0x1034   :  { %v1707_v39 = vadd.f32 %v9784_v37, %v9762_v36  ;;  %v1718_v40 = vadd.f32 %v1716_v38, %v11748_v15 }
0x1036   :  { %v1722_v30 = vsel %vm175_vm1, %v1718_v40, 0.0  ;;  %v1717_v27 = vadd.f32 %v9343_v31, %v1707_v39 }
0x1037   :  { %1723 = vadd.xlane.f32.xlu1 %v1722_v30 }
0x1038   :  { %v1719_v41 = vadd.f32 %v1717_v27, %v11750_v16  ;;  %v9348_v16 = vld [vmem:[%s11323_s13 + $0x30] sm:$0xff]  ;;  %s13309_s13 = sld [smem:[#allocation5_spill]] }
0x1039   :  { %v1780_v54 = vpack.c.bf16 %v9349_v53, %v9348_v16 }
0x103a   :  { %v1725_v32 = vsel %vm175_vm1, %v1719_v41, 0.0 }
0x103b   :  { %1726 = vadd.xlane.f32.xlu0 %v1725_v32  ;;  %10270 = vmatpush3.bf16.msra.mxu1 %v1780_v54 }
0x103c   :  { %10271 = vmatprep.subr.bf16.mxu1 %v11288_v3 }
0x103f   :  { %10272 = vmatpush3.bf16.msra.mxu1 %v1779_v18 }
0x1040   :  { %10283 = vmatprep.subr.bf16.mxu1 %v11288_v3 }
0x10c0   :  { %v1724_v29 = vpop.xlane.xlu1 %1723 }
0x10c1   :  { %v1728_v43 = vmul.f32 0.03125, %v1724_v29 }
0x10c3   :  { %v1730_v26 = vsub.f32 %v1718_v40, %v1728_v43 }
0x10c4   :  { %v1727_v47 = vpop.xlane.xlu0 %1726 }
0x10c5   :  { %v1729_v48 = vmul.f32 0.03125, %v1727_v47  ;;  %v1732_v49 = vmul.f32 %v1730_v26, %v1730_v26 }
0x10c7   :  { %v1731_v15 = vsub.f32 %v1719_v41, %v1729_v48  ;;  %v1734_v50 = vsel %vm175_vm1, %v1732_v49, 0.0 }
0x10c8   :  { %1735 = vadd.xlane.f32.xlu1 %v1734_v50 }
0x10c9   :  { %v1733_v51 = vmul.f32 %v1731_v15, %v1731_v15 }
0x10cb   :  { %v1737_v52 = vsel %vm175_vm1, %v1733_v51, 0.0 }
0x10cc   :  { %1738 = vadd.xlane.f32.xlu0 %v1737_v52 }
0x1151   :  { %v1736_v57 = vpop.xlane.xlu1 %1735 }
0x1152   :  { %v1740_v24 = vmul.f32 0.03125, %v1736_v57 }
0x1154   :  { %v1742_v58 = vadd.f32 1e-05, %v1740_v24 }
0x1155   :  { %v1739_v59 = vpop.xlane.xlu0 %1738 }
0x1156   :  { %11024 = vrsqrt.f32 %v1742_v58  ;;  %v1741_v60 = vmul.f32 0.03125, %v1739_v59 }
0x1158   :  { %v1743_v61 = vadd.f32 1e-05, %v1741_v60 }
0x115a   :  { %11026 = vrsqrt.f32 %v1743_v61 }
0x1163   :  { %v11025_v62 = vpop.eup %11024 }
0x1164   :  { %v1746_v63 = vmul.f32 %v11025_v62, %v1730_v26 }
0x1166   :  { %v1754_v4 = vmul.f32 %v9344_v0, %v1746_v63 }
0x1167   :  { %v11027_v1 = vpop.eup %11026 }
0x1168   :  { %v1747_v2 = vmul.f32 %v11027_v1, %v1731_v15  ;;  %v11842_v9 = vadd.f32 %v9345_v5, %v1754_v4  ;;  %v9351_v4 = vld [vmem:[%s11333_s21 + $0x20] sm:$0xff] }
0x116a   :  { %v1755_v6 = vmul.f32 %v9344_v0, %v1747_v2 }
0x116c   :  { %v11844_v10 = vadd.f32 %v9345_v5, %v1755_v6  ;;  %v2058_v5 = vpack.c.bf16 %v9351_v4, %v9351_v4 }
0x116e   :  { %v1778_v11 = vpack.c.bf16 %v11844_v10, %v11842_v9  ;;  %v2063_v6 = vsel %vm362_vm3, %v2058_v5, 0 }
0x1170   :  { %10274 = vmatmul.mubr.msk.bf16.vlgmr.msra.gmra.mxu1 %vm175_vm1, %v1778_v11 }
0x1171   :  { %10285 = vmatprep.mubr.msk.bf16.mxu1 %vm11289_vm0, %v11288_v3 }
0x1230   :  { %v1818_v13 = vpop.f32.mrf.mxu1 }
0x1231   :  { %v1831_v17 = vadd.f32 %v9357_v12, %v1818_v13 }
0x1232   :  { %v10275_v7 = vpop.f32.mrf.mxu1 }
0x1233   :  { %v11852_v19 = vpack.c.bf16 %v1831_v17, %v1831_v17  ;;  %v1833_v28 = vmul.f32 0.35355338, %v1831_v17 }
0x1234   :  { %v1821_v20 = vpop.f32.mrf.mxu1 }
0x1235   :  { %v1832_v21 = vadd.f32 %v9357_v12, %v1821_v20  ;;  %1840 = vrot.lane.b32.xlu1 %v11852_v19, %s11290_s0  ;;  %v11863_v34 = vpack.c.bf16 %v1833_v28, %v1833_v28 }
0x1236   :  { %v10276_v22 = vpop.f32.mrf.mxu1 }
0x1237   :  { %v11856_v8 = vpack.c.bf16 %v1832_v21, %v1832_v21  ;;  %v1834_v35 = vmul.f32 0.35355338, %v1832_v21 }
0x1239   :  { %1889 = vrot.lane.b32.xlu0 %v11856_v8, %s11290_s0  ;;  %v11870_v36 = vpack.c.bf16 %v1834_v35, %v1834_v35 }
0x12a7   :  { %v1841_v23 = vpop.permute.xlu1 %1840 }
0x12a8   :  { %v1846_v25 = vsel %vm237_vm2, %v1841_v23, 0 }
0x12a9   :  { %10278 = vmatpush3.bf16.xpose.msra.mxu0 %v1846_v25 }
0x12aa   :  { %10289 = vmatprep.subr.bf16.mxu0 %v11288_v3 }
0x12ab   :  { %v1890_v31 = vpop.permute.xlu0 %1889 }
0x12ac   :  { %v1895_v33 = vsel %vm237_vm2, %v1890_v31, 0 }
0x12ad   :  { %10284 = vmatpush3.bf16.xpose.msra.mxu1 %v1895_v33 }
0x12ae   :  { %10295 = vmatprep.subr.bf16.mxu1 %v11288_v3 }
0x12b0   :  { %10280 = vmatmul.mubr.msk.bf16.vlgmr.msra.gmra.mxu0 %vm237_vm2, %v11863_v34 }
0x12b1   :  { %10291 = vmatprep.mubr.msk.bf16.mxu0 %vm11289_vm0, %v11288_v3 }
0x12b4   :  { %10286 = vmatmul.mubr.msk.bf16.vlgmr.msra.gmra.mxu1 %vm237_vm2, %v11870_v36 }
0x12b5   :  { %10297 = vmatprep.mubr.msk.bf16.mxu1 %vm11289_vm0, %v11288_v3 }
0x1370   :  { %v1882_v37 = vpop.f32.mrf.mxu0 }
0x1371   :  { %v1937_v38 = vsel %vm237_vm2, %v1882_v37, -inf }
0x1372   :  { %1938 = vmax.xlane.f32.xlu1 %v1937_v38  ;;  %v10281_v39 = vpop.f32.mrf.mxu0 }
0x1374   :  { %v1885_v40 = vpop.f32.mrf.mxu0  ;;  %v1931_v30 = vpop.f32.mrf.mxu1 }
0x1375   :  { %v1940_v27 = vsel %vm237_vm2, %v1931_v30, -inf }
0x1376   :  { %v10282_v41 = vpop.f32.mrf.mxu0  ;;  %1941 = vmax.xlane.f32.xlu0 %v1940_v27  ;;  %v10287_v32 = vpop.f32.mrf.mxu1 }
0x1378   :  { %v1934_v29 = vpop.f32.mrf.mxu1 }
0x137a   :  { %v10288_v43 = vpop.f32.mrf.mxu1 }
0x13fb   :  { %v1939_v26 = vpop.xlane.xlu1 %1938 }
0x13fc   :  { %v1943_v47 = vsub.f32 %v1882_v37, %v1939_v26 }
0x13fe   :  { %v1945_v48 = vmul.f32 1.442695, %v1943_v47 }
0x13ff   :  { %v1942_v49 = vpop.xlane.xlu0 %1941 }
0x1400   :  { %11028 = vpow2.f32 %v1945_v48  ;;  %v1944_v15 = vsub.f32 %v1931_v30, %v1942_v49 }
0x1402   :  { %v1947_v50 = vmul.f32 1.442695, %v1944_v15 }
0x1404   :  { %11030 = vpow2.f32 %v1947_v50 }
0x140d   :  { %v11029_v51 = vpop.eup %11028 }
0x140e   :  { %v1949_v52 = vsel %vm237_vm2, %v11029_v51, 0.0 }
0x140f   :  { %1950 = vadd.xlane.f32.xlu1 %v1949_v52 }
0x1411   :  { %v11031_v16 = vpop.eup %11030 }
0x1412   :  { %v1952_v53 = vsel %vm237_vm2, %v11031_v16, 0.0 }
0x1413   :  { %1953 = vadd.xlane.f32.xlu0 %v1952_v53 }
0x1420   :  { %1961 = vrot.lane.b32.xlu1 %v11852_v19, %s11291_s5 }
0x1424   :  { %2111 = vrot.lane.b32.xlu1 %v11852_v19, %s11293_s16 }
0x1428   :  { %2162 = vrot.lane.b32.xlu1 %v11856_v8, %s11293_s16 }
0x1429   :  { %2009 = vrot.lane.b32.xlu0 %v11856_v8, %s11291_s5 }
0x142c   :  { %2160 = vrot.lane.b32.xlu1 %v11870_v36, %s11292_s15 }
0x142d   :  { %2109 = vrot.lane.b32.xlu0 %v11863_v34, %s11292_s15 }
0x1498   :  { %v1951_v54 = vpop.xlane.xlu1 %1950 }
0x1499   :  { %11032 = vrcp.f32 %v1951_v54 }
0x149c   :  { %v1962_v55 = vpop.permute.xlu1 %1961  ;;  %v1954_v56 = vpop.xlane.xlu0 %1953 }
0x149d   :  { %v1967_v18 = vsel %vm362_vm3, %v1962_v55, 0  ;;  %11034 = vrcp.f32 %v1954_v56 }
0x149e   :  { %10290 = vmatpush3.bf16.msra.mxu0 %v1967_v18 }
0x149f   :  { %10301 = vmatprep.subr.bf16.mxu0 %v11288_v3 }
0x14a0   :  { %v2010_v57 = vpop.permute.xlu0 %2009  ;;  %v2112_v63 = vpop.permute.xlu1 %2111 }
0x14a1   :  { %v2015_v24 = vsel %vm362_vm3, %v2010_v57, 0  ;;  %v2117_v1 = vsel %vm237_vm2, %v2112_v63, 0 }
0x14a2   :  { %10296 = vmatpush3.bf16.msra.mxu1 %v2015_v24 }
0x14a3   :  { %10307 = vmatprep.subr.bf16.mxu1 %v11288_v3 }
0x14a4   :  { %v2110_v2 = vpop.permute.xlu0 %2109  ;;  %v2163_v13 = vpop.permute.xlu1 %2162 }
0x14a5   :  { %v2168_v23 = vsel %vm237_vm2, %v2163_v13, 0 }
0x14a6   :  { %v11033_v58 = vpop.eup %11032 }
0x14a7   :  { %v1957_v59 = vmul.f32 %v11033_v58, %v11029_v51 }
0x14a8   :  { %v2161_v35 = vpop.permute.xlu1 %2160 }
0x14a9   :  { %v1959_v60 = vpack.c.bf16 %v1957_v59, %v1957_v59 }
0x14aa   :  { %v11035_v61 = vpop.eup %11034 }
0x14ab   :  { %10292 = vmatmul.mubr.msk.bf16.vlgmr.msra.gmra.mxu0 %vm237_vm2, %v1959_v60  ;;  %v1958_v62 = vmul.f32 %v11035_v61, %v11031_v16  ;;  %v9352_v60 = vld [vmem:[%s11333_s21 + $0x28] sm:$0xff] }
0x14ac   :  { %10303 = vmatprep.mubr.msk.bf16.mxu0 %vm11289_vm0, %v11288_v3  ;;  %10302 = vmatpush3.bf16.msra.mxu0 %v2063_v6  ;;  %v2331_v61 = vpack.c.bf16 %v9352_v60, %v9352_v60 }
0x14ad   :  { %v1960_v0 = vpack.c.bf16 %v1958_v62, %v1958_v62  ;;  %10313 = vmatprep.subr.bf16.mxu0 %v11288_v3 }
0x14ae   :  { %v2336_v62 = vsel %vm362_vm3, %v2331_v61, 0 }
0x14af   :  { %10298 = vmatmul.mubr.msk.bf16.vlgmr.msra.gmra.mxu1 %vm237_vm2, %v1960_v0 }
0x14b0   :  { %10308 = vmatpush3.bf16.xpose.msra.mxu1 %v2117_v1  ;;  %10309 = vmatprep.mubr.msk.bf16.mxu1 %vm11289_vm0, %v11288_v3 }
0x14b1   :  { %10319 = vmatprep.subr.bf16.mxu1 %v11288_v3 }
0x14b7   :  { %10310 = vmatmul.mubr.msk.bf16.vlgmr.msra.gmra.mxu1 %vm237_vm2, %v2110_v2 }
0x14b8   :  { %10321 = vmatprep.mubr.msk.bf16.mxu1 %vm11289_vm0, %v11288_v3 }
0x156b   :  { %v2003_v11 = vpop.f32.mrf.mxu0 }
0x156d   :  { %v10293_v12 = vpop.f32.mrf.mxu0 }
0x156f   :  { %v2006_v17 = vpop.f32.mrf.mxu0  ;;  %v2051_v7 = vpop.f32.mrf.mxu1 }
0x1570   :  { %v2057_v20 = vpack.c.bf16 %v2051_v7, %v2003_v11 }
0x1571   :  { %v10294_v21 = vpop.f32.mrf.mxu0  ;;  %v10299_v22 = vpop.f32.mrf.mxu1 }
0x1572   :  { %10304 = vmatmul.mubr.msk.bf16.vlgmr.msra.gmra.mxu0 %vm237_vm2, %v2057_v20 }
0x1573   :  { %10314 = vmatpush3.bf16.xpose.msra.mxu0 %v2168_v23  ;;  %v2054_v25 = vpop.f32.mrf.mxu1  ;;  %10315 = vmatprep.mubr.msk.bf16.mxu0 %vm11289_vm0, %v11288_v3 }
0x1574   :  { %10325 = vmatprep.subr.bf16.mxu0 %v11288_v3 }
0x1575   :  { %v10300_v28 = vpop.f32.mrf.mxu1 }
0x1577   :  { %v2153_v31 = vpop.f32.mrf.mxu1 }
0x1578   :  { %v2210_v33 = vsel %vm237_vm2, %v2153_v31, -inf }
0x1579   :  { %2211 = vmax.xlane.f32.xlu0 %v2210_v33  ;;  %v10311_v37 = vpop.f32.mrf.mxu1 }
0x157a   :  { %10316 = vmatmul.mubr.msk.bf16.vlgmr.msra.gmra.mxu0 %vm237_vm2, %v2161_v35 }
0x157b   :  { %v2156_v38 = vpop.f32.mrf.mxu1  ;;  %10327 = vmatprep.mubr.msk.bf16.mxu0 %vm11289_vm0, %v11288_v3 }
0x157d   :  { %v10312_v39 = vpop.f32.mrf.mxu1 }
0x1602   :  { %v2212_v40 = vpop.xlane.xlu0 %2211 }
0x1603   :  { %v2216_v30 = vsub.f32 %v2153_v31, %v2212_v40 }
0x1605   :  { %v2218_v27 = vmul.f32 1.442695, %v2216_v30 }
0x1607   :  { %11036 = vpow2.f32 %v2218_v27 }
0x1614   :  { %v11037_v41 = vpop.eup %11036 }
0x1615   :  { %v2222_v32 = vsel %vm237_vm2, %v11037_v41, 0.0 }
0x1616   :  { %2223 = vadd.xlane.f32.xlu0 %v2222_v32 }
0x1632   :  { %v11920_v29 = vpop.f32.mrf.mxu0 }
0x1634   :  { %v10305_v43 = vpop.f32.mrf.mxu0 }
0x1636   :  { %v11922_v26 = vpop.f32.mrf.mxu0 }
0x1638   :  { %v10306_v47 = vpop.f32.mrf.mxu0 }
0x163a   :  { %v2204_v48 = vpop.f32.mrf.mxu0 }
0x163b   :  { %v2213_v49 = vsel %vm237_vm2, %v2204_v48, -inf }
0x163c   :  { %2214 = vmax.xlane.f32.xlu1 %v2213_v49  ;;  %v10317_v15 = vpop.f32.mrf.mxu0 }
0x163e   :  { %v2207_v50 = vpop.f32.mrf.mxu0 }
0x1640   :  { %v10318_v51 = vpop.f32.mrf.mxu0 }
0x164d   :  { %2234 = vrot.lane.b32.xlu1 %v11852_v19, %s11294_s18 }
0x1651   :  { %2383 = vrot.lane.b32.xlu1 %v11852_v19, %s11296_s23 }
0x1655   :  { %2433 = vrot.lane.b32.xlu1 %v11856_v8, %s11296_s23 }
0x1659   :  { %2431 = vrot.lane.b32.xlu1 %v11870_v36, %s11295_s22 }
0x169f   :  { %v2224_v52 = vpop.xlane.xlu0 %2223 }
0x16a0   :  { %11038 = vrcp.f32 %v2224_v52 }
0x16ad   :  { %v11039_v16 = vpop.eup %11038 }
0x16ae   :  { %v2230_v56 = vmul.f32 %v11039_v16, %v11037_v41 }
0x16b0   :  { %v2232_v24 = vpack.c.bf16 %v2230_v56, %v2230_v56 }
0x16c5   :  { %v2215_v53 = vpop.xlane.xlu1 %2214 }
0x16c6   :  { %v2217_v54 = vsub.f32 %v2204_v48, %v2215_v53 }
0x16c8   :  { %v2220_v55 = vmul.f32 1.442695, %v2217_v54 }
0x16c9   :  { %v2235_v18 = vpop.permute.xlu1 %2234 }
0x16ca   :  { %11040 = vpow2.f32 %v2220_v55  ;;  %v2240_v57 = vsel %vm362_vm3, %v2235_v18, 0 }
0x16cb   :  { %10320 = vmatpush3.bf16.msra.mxu1 %v2240_v57 }
0x16cc   :  { %10331 = vmatprep.subr.bf16.mxu1 %v11288_v3 }
0x16cd   :  { %v2384_v5 = vpop.permute.xlu1 %2383 }
0x16ce   :  { %10322 = vmatmul.mubr.msk.bf16.vlgmr.msra.gmra.mxu1 %vm237_vm2, %v2232_v24  ;;  %v2389_v11 = vsel %vm237_vm2, %v2384_v5, 0 }
0x16cf   :  { %10333 = vmatprep.mubr.msk.bf16.mxu1 %vm11289_vm0, %v11288_v3  ;;  %10332 = vmatpush3.bf16.msra.mxu1 %v2336_v62 }
0x16d0   :  { %10343 = vmatprep.subr.bf16.mxu1 %v11288_v3 }
0x16d1   :  { %v2434_v21 = vpop.permute.xlu1 %2433 }
0x16d2   :  { %v2439_v28 = vsel %vm237_vm2, %v2434_v21, 0 }
0x16d5   :  { %v2432_v38 = vpop.permute.xlu1 %2431 }
0x16d7   :  { %v11041_v58 = vpop.eup %11040 }
0x16d8   :  { %v2225_v59 = vsel %vm237_vm2, %v11041_v58, 0.0 }
0x16d9   :  { %2226 = vadd.xlane.f32.xlu0 %v2225_v59 }
0x16ef   :  { %2282 = vrot.lane.b32.xlu0 %v11856_v8, %s11294_s18 }
0x16f3   :  { %2381 = vrot.lane.b32.xlu0 %v11863_v34, %s11295_s22 }
0x1762   :  { %v2227_v63 = vpop.xlane.xlu0 %2226 }
0x1763   :  { %11042 = vrcp.f32 %v2227_v63  ;;  %v9353_v63 = vld [vmem:[%s11333_s21 + $0x30] sm:$0xff] }
0x1766   :  { %v2283_v0 = vpop.permute.xlu0 %2282 }
0x1767   :  { %v2288_v1 = vsel %vm362_vm3, %v2283_v0, 0  ;;  %v2602_v0 = vpack.c.bf16 %v9353_v63, %v9353_v63 }
0x1768   :  { %10326 = vmatpush3.bf16.msra.mxu0 %v2288_v1 }
0x1769   :  { %10337 = vmatprep.subr.bf16.mxu0 %v11288_v3  ;;  %v2607_v1 = vsel %vm362_vm3, %v2602_v0, 0 }
0x176a   :  { %v2382_v12 = vpop.permute.xlu0 %2381 }
0x1770   :  { %v11043_v2 = vpop.eup %11042 }
0x1771   :  { %v2231_v4 = vmul.f32 %v11043_v2, %v11041_v58 }
0x1773   :  { %v2233_v6 = vpack.c.bf16 %v2231_v4, %v2231_v4 }
0x1775   :  { %10328 = vmatmul.mubr.msk.bf16.vlgmr.msra.gmra.mxu0 %vm237_vm2, %v2233_v6 }
0x1776   :  { %10338 = vmatpush3.bf16.xpose.msra.mxu0 %v2389_v11  ;;  %10339 = vmatprep.mubr.msk.bf16.mxu0 %vm11289_vm0, %v11288_v3 }
0x1777   :  { %10349 = vmatprep.subr.bf16.mxu0 %v11288_v3 }
0x177d   :  { %10340 = vmatmul.mubr.msk.bf16.vlgmr.msra.gmra.mxu0 %vm237_vm2, %v2382_v12 }
0x177e   :  { %10351 = vmatprep.mubr.msk.bf16.mxu0 %vm11289_vm0, %v11288_v3 }
0x178e   :  { %v2276_v13 = vpop.f32.mrf.mxu1 }
0x1790   :  { %v10323_v17 = vpop.f32.mrf.mxu1 }
0x1792   :  { %v2279_v7 = vpop.f32.mrf.mxu1 }
0x1794   :  { %v10324_v20 = vpop.f32.mrf.mxu1 }
0x1835   :  { %v2324_v22 = vpop.f32.mrf.mxu0 }
0x1836   :  { %v2330_v23 = vpack.c.bf16 %v2324_v22, %v2276_v13 }
0x1837   :  { %v10329_v25 = vpop.f32.mrf.mxu0 }
0x1838   :  { %10334 = vmatmul.mubr.msk.bf16.vlgmr.msra.gmra.mxu1 %vm237_vm2, %v2330_v23 }
0x1839   :  { %10344 = vmatpush3.bf16.xpose.msra.mxu1 %v2439_v28  ;;  %v2327_v31 = vpop.f32.mrf.mxu0  ;;  %10345 = vmatprep.mubr.msk.bf16.mxu1 %vm11289_vm0, %v11288_v3 }
0x183a   :  { %10355 = vmatprep.subr.bf16.mxu1 %v11288_v3 }
0x183b   :  { %v10330_v33 = vpop.f32.mrf.mxu0 }
0x183d   :  { %v2425_v35 = vpop.f32.mrf.mxu0 }
0x183e   :  { %v2481_v37 = vsel %vm237_vm2, %v2425_v35, -inf }
0x183f   :  { %2482 = vmax.xlane.f32.xlu0 %v2481_v37  ;;  %v10341_v39 = vpop.f32.mrf.mxu0 }
0x1840   :  { %10346 = vmatmul.mubr.msk.bf16.vlgmr.msra.gmra.mxu1 %vm237_vm2, %v2432_v38 }
0x1841   :  { %v2428_v40 = vpop.f32.mrf.mxu0  ;;  %10357 = vmatprep.mubr.msk.bf16.mxu1 %vm11289_vm0, %v11288_v3 }
0x1843   :  { %v10342_v30 = vpop.f32.mrf.mxu0 }
0x18c8   :  { %v2483_v27 = vpop.xlane.xlu0 %2482 }
0x18c9   :  { %v2487_v41 = vsub.f32 %v2425_v35, %v2483_v27 }
0x18cb   :  { %v2489_v32 = vmul.f32 1.442695, %v2487_v41 }
0x18cd   :  { %11044 = vpow2.f32 %v2489_v32 }
0x18da   :  { %v11045_v43 = vpop.eup %11044 }
0x18db   :  { %v2493_v47 = vsel %vm237_vm2, %v11045_v43, 0.0 }
0x18dc   :  { %2494 = vadd.xlane.f32.xlu0 %v2493_v47 }
0x18f8   :  { %v11966_v48 = vpop.f32.mrf.mxu1 }
0x18fa   :  { %v10335_v49 = vpop.f32.mrf.mxu1 }
0x18fc   :  { %v11968_v15 = vpop.f32.mrf.mxu1 }
0x18fe   :  { %v10336_v50 = vpop.f32.mrf.mxu1 }
0x1900   :  { %v2475_v51 = vpop.f32.mrf.mxu1 }
0x1901   :  { %v2484_v52 = vsel %vm237_vm2, %v2475_v51, -inf }
0x1902   :  { %2485 = vmax.xlane.f32.xlu1 %v2484_v52  ;;  %v10347_v16 = vpop.f32.mrf.mxu1 }
0x1904   :  { %v2478_v53 = vpop.f32.mrf.mxu1 }
0x1906   :  { %v10348_v54 = vpop.f32.mrf.mxu1 }
0x1907   :  { %v2380_v54 = vadd.f32 %v11968_v15, %v11922_v26 }
0x1913   :  { %2505 = vrot.lane.b32.xlu1 %v11852_v19, %s11297_s26 }
0x1917   :  { %2654 = vrot.lane.b32.xlu1 %v11852_v19, %s11298_s28 }
0x191b   :  { %2704 = vrot.lane.b32.xlu1 %v11856_v8, %s11298_s28 }
0x191f   :  { %2702 = vrot.lane.b32.xlu1 %v11870_v36, %s13286_s1 }
0x1965   :  { %v2495_v55 = vpop.xlane.xlu0 %2494 }
0x1966   :  { %11046 = vrcp.f32 %v2495_v55 }
0x1973   :  { %v11047_v56 = vpop.eup %11046 }
0x1974   :  { %v2501_v58 = vmul.f32 %v11047_v56, %v11045_v43 }
0x1976   :  { %v2503_v61 = vpack.c.bf16 %v2501_v58, %v2501_v58 }
0x198b   :  { %v2486_v18 = vpop.xlane.xlu1 %2485 }
0x198c   :  { %v2488_v57 = vsub.f32 %v2475_v51, %v2486_v18  ;;  %v2379_v51 = vadd.f32 %v11966_v48, %v11920_v29 }
0x198e   :  { %v2491_v24 = vmul.f32 1.442695, %v2488_v57 }
0x198f   :  { %v2506_v59 = vpop.permute.xlu1 %2505 }
0x1990   :  { %11048 = vpow2.f32 %v2491_v24  ;;  %v2511_v60 = vsel %vm362_vm3, %v2506_v59, 0 }
0x1991   :  { %10350 = vmatpush3.bf16.msra.mxu0 %v2511_v60 }
0x1992   :  { %10361 = vmatprep.subr.bf16.mxu0 %v11288_v3 }
0x1993   :  { %v2655_v12 = vpop.permute.xlu1 %2654 }
0x1994   :  { %10352 = vmatmul.mubr.msk.bf16.vlgmr.msra.gmra.mxu0 %vm237_vm2, %v2503_v61 }
0x1995   :  { %10363 = vmatprep.mubr.msk.bf16.mxu0 %vm11289_vm0, %v11288_v3  ;;  %10362 = vmatpush3.bf16.msra.mxu0 %v2607_v1 }
0x1996   :  { %10373 = vmatprep.subr.bf16.mxu0 %v11288_v3 }
0x1997   :  { %v2705_v23 = vpop.permute.xlu1 %2704 }
0x1998   :  { %v2710_v33 = vsel %vm237_vm2, %v2705_v23, 0 }
0x199b   :  { %v2703_v40 = vpop.permute.xlu1 %2702 }
0x199d   :  { %v11049_v36 = vpop.eup %11048 }
0x199e   :  { %v2496_v62 = vsel %vm237_vm2, %v11049_v36, 0.0 }
0x199f   :  { %2497 = vadd.xlane.f32.xlu0 %v2496_v62 }
0x19b5   :  { %2553 = vrot.lane.b32.xlu0 %v11856_v8, %s11297_s26 }
0x19b9   :  { %2652 = vrot.lane.b32.xlu0 %v11863_v34, %s13286_s1  ;;  %v2660_v34 = vsel %vm237_vm2, %v2655_v12, 0 }
0x1a28   :  { %v2498_v2 = vpop.xlane.xlu0 %2497 }
0x1a29   :  { %11050 = vrcp.f32 %v2498_v2  ;;  %v9354_v2 = vld [vmem:[%s11333_s21 + $0x38] sm:$0xff]  ;;  %s13311_s21 = sld [smem:[#allocation9_spill]] }
0x1a2c   :  { %v2554_v4 = vpop.permute.xlu0 %2553 }
0x1a2d   :  { %v2559_v5 = vsel %vm362_vm3, %v2554_v4, 0  ;;  %v2873_v4 = vpack.c.bf16 %v9354_v2, %v9354_v2 }
0x1a2e   :  { %10356 = vmatpush3.bf16.msra.mxu1 %v2559_v5 }
0x1a2f   :  { %10367 = vmatprep.subr.bf16.mxu1 %v11288_v3  ;;  %v2878_v5 = vsel %vm362_vm3, %v2873_v4, 0  ;;  %v9383_v4 = vld [vmem:[%s11353_s8 + $0x80] sm:$0xff] }
0x1a30   :  { %v2653_v17 = vpop.permute.xlu0 %2652 }
0x1a36   :  { %v11051_v6 = vpop.eup %11050 }
0x1a37   :  { %v2502_v11 = vmul.f32 %v11051_v6, %v11049_v36 }
0x1a39   :  { %v2504_v13 = vpack.c.bf16 %v2502_v11, %v2502_v11 }
0x1a3b   :  { %10358 = vmatmul.mubr.msk.bf16.vlgmr.msra.gmra.mxu1 %vm237_vm2, %v2504_v13 }
0x1a3c   :  { %10368 = vmatpush3.bf16.xpose.msra.mxu1 %v2660_v34  ;;  %10369 = vmatprep.mubr.msk.bf16.mxu1 %vm11289_vm0, %v11288_v3 }
0x1a3d   :  { %10379 = vmatprep.subr.bf16.mxu1 %v11288_v3 }
0x1a43   :  { %10370 = vmatmul.mubr.msk.bf16.vlgmr.msra.gmra.mxu1 %vm237_vm2, %v2653_v17 }
0x1a44   :  { %10381 = vmatprep.mubr.msk.bf16.mxu1 %vm11289_vm0, %v11288_v3 }
0x1a54   :  { %v2547_v7 = vpop.f32.mrf.mxu0 }
0x1a56   :  { %v10353_v20 = vpop.f32.mrf.mxu0 }
0x1a58   :  { %v2550_v21 = vpop.f32.mrf.mxu0 }
0x1a5a   :  { %v10354_v22 = vpop.f32.mrf.mxu0 }
0x1afb   :  { %v2595_v25 = vpop.f32.mrf.mxu1 }
0x1afc   :  { %v2601_v28 = vpack.c.bf16 %v2595_v25, %v2547_v7 }
0x1afd   :  { %v10359_v31 = vpop.f32.mrf.mxu1 }
0x1afe   :  { %10364 = vmatmul.mubr.msk.bf16.vlgmr.msra.gmra.mxu0 %vm237_vm2, %v2601_v28 }
0x1aff   :  { %10374 = vmatpush3.bf16.xpose.msra.mxu0 %v2710_v33  ;;  %v2598_v35 = vpop.f32.mrf.mxu1  ;;  %10375 = vmatprep.mubr.msk.bf16.mxu0 %vm11289_vm0, %v11288_v3  ;;  %v9378_v33 = vld [vmem:[%s11338_s25 + $0x1] ss:$0 sm:$0xff]  ;;  %s13312_s25 = sld [smem:[#allocation10_spill]] }
0x1b00   :  { %10385 = vmatprep.subr.bf16.mxu0 %v11288_v3 }
0x1b01   :  { %v10360_v37 = vpop.f32.mrf.mxu1 }
0x1b03   :  { %v2696_v38 = vpop.f32.mrf.mxu1 }
0x1b04   :  { %v2752_v39 = vsel %vm237_vm2, %v2696_v38, -inf }
0x1b05   :  { %2753 = vmax.xlane.f32.xlu0 %v2752_v39  ;;  %v10371_v30 = vpop.f32.mrf.mxu1 }
0x1b06   :  { %10376 = vmatmul.mubr.msk.bf16.vlgmr.msra.gmra.mxu0 %vm237_vm2, %v2703_v40 }
0x1b07   :  { %v2699_v27 = vpop.f32.mrf.mxu1  ;;  %10387 = vmatprep.mubr.msk.bf16.mxu0 %vm11289_vm0, %v11288_v3 }
0x1b09   :  { %v10372_v41 = vpop.f32.mrf.mxu1 }
0x1b8e   :  { %v2754_v32 = vpop.xlane.xlu0 %2753 }
0x1b8f   :  { %v2758_v43 = vsub.f32 %v2696_v38, %v2754_v32 }
0x1b91   :  { %v2760_v47 = vmul.f32 1.442695, %v2758_v43 }
0x1b93   :  { %11052 = vpow2.f32 %v2760_v47 }
0x1ba0   :  { %v11053_v49 = vpop.eup %11052 }
0x1ba1   :  { %v2764_v50 = vsel %vm237_vm2, %v11053_v49, 0.0 }
0x1ba2   :  { %2765 = vadd.xlane.f32.xlu0 %v2764_v50 }
0x1bbe   :  { %v2643_v52 = vpop.f32.mrf.mxu0 }
0x1bbf   :  { %v2650_v16 = vadd.f32 %v2643_v52, %v2379_v51 }
0x1bc0   :  { %v10365_v53 = vpop.f32.mrf.mxu0 }
0x1bc2   :  { %v2646_v55 = vpop.f32.mrf.mxu0 }
0x1bc3   :  { %v2651_v56 = vadd.f32 %v2646_v55, %v2380_v54 }
0x1bc4   :  { %v10366_v18 = vpop.f32.mrf.mxu0 }
0x1bc5   :  { %v9392_v18 = vld [vmem:[%s11353_s8 + $0xc8] sm:$0xff] }
0x1bc6   :  { %v2746_v57 = vpop.f32.mrf.mxu0 }
0x1bc7   :  { %v2755_v24 = vsel %vm237_vm2, %v2746_v57, -inf }
0x1bc8   :  { %2756 = vmax.xlane.f32.xlu1 %v2755_v24  ;;  %v10377_v58 = vpop.f32.mrf.mxu0  ;;  %v9394_v24 = vld [vmem:[%s11353_s8 + $0xd8] sm:$0xff] }
0x1bca   :  { %v2749_v59 = vpop.f32.mrf.mxu0 }
0x1bcb   :  { %v9398_v59 = vld [vmem:[%s11353_s8 + $0xf8] sm:$0xff] }
0x1bcc   :  { %v10378_v60 = vpop.f32.mrf.mxu0 }
0x1bcd   :  { %v9391_v60 = vld [vmem:[%s11353_s8 + $0xc0] sm:$0xff] }
0x1bd9   :  { %2776 = vrot.lane.b32.xlu1 %v11852_v19, %s13284_s2 }
0x1c2b   :  { %v2766_v29 = vpop.xlane.xlu0 %2765 }
0x1c2c   :  { %11054 = vrcp.f32 %v2766_v29  ;;  %v9395_v29 = vld [vmem:[%s11353_s8 + $0xe0] sm:$0xff] }
0x1c39   :  { %v11055_v48 = vpop.eup %11054 }
0x1c3a   :  { %v2772_v15 = vmul.f32 %v11055_v48, %v11053_v49  ;;  %v3073_v48 = vpack.c.bf16 %v9398_v59, %v9394_v24  ;;  %v9445_v59 = vld [vmem:[%s11363_s19 + $0x368] sm:$0xff] }
0x1c3c   :  { %v2774_v0 = vpack.c.bf16 %v2772_v15, %v2772_v15  ;;  %v9384_v15 = vld [vmem:[%s11353_s8 + $0x88] sm:$0xff] }
0x1c51   :  { %v2757_v61 = vpop.xlane.xlu1 %2756 }
0x1c52   :  { %v2759_v36 = vsub.f32 %v2746_v57, %v2757_v61  ;;  %v9396_v57 = vld [vmem:[%s11353_s8 + $0xe8] sm:$0xff]  ;;  %v3070_v61 = vpack.c.bf16 %v9395_v29, %v9391_v60  ;;  %v9426_v60 = vld [vmem:[%s11363_s19 + $0x2d0] sm:$0xff]  ;;  %v9427_v29 = vld [vmem:[%s11363_s19 + $0x2d8] sm:$0xff] }
0x1c53   :  { %v3071_v58 = vpack.c.bf16 %v9396_v57, %v9392_v18 }
0x1c54   :  { %v2762_v26 = vmul.f32 1.442695, %v2759_v36  ;;  %v9393_v36 = vld [vmem:[%s11353_s8 + $0xd0] sm:$0xff] }
0x1c55   :  { %v2777_v62 = vpop.permute.xlu1 %2776 }
0x1c56   :  { %11056 = vpow2.f32 %v2762_v26  ;;  %v2782_v63 = vsel %vm362_vm3, %v2777_v62, 0  ;;  %v9397_v26 = vld [vmem:[%s11353_s8 + $0xf0] sm:$0xff] }
0x1c57   :  { %10380 = vmatpush3.bf16.msra.mxu1 %v2782_v63  ;;  %v3072_v62 = vpack.c.bf16 %v9397_v26, %v9393_v36  ;;  %v9388_v63 = vld [vmem:[%s11353_s8 + $0xa8] sm:$0xff] }
0x1c58   :  { %10391 = vmatprep.subr.bf16.mxu1 %v11288_v3 }
0x1c5a   :  { %10382 = vmatmul.mubr.msk.bf16.vlgmr.msra.gmra.mxu1 %vm237_vm2, %v2774_v0  ;;  %v9386_v0 = vld [vmem:[%s11353_s8 + $0x98] sm:$0xff] }
0x1c5b   :  { %10393 = vmatprep.mubr.msk.bf16.mxu1 %vm11289_vm0, %v11288_v3  ;;  %10392 = vmatpush3.bf16.msra.mxu1 %v2878_v5  ;;  %v9387_v5 = vld [vmem:[%s11353_s8 + $0xa0] sm:$0xff] }
0x1c5c   :  { %3132 = vmatprep.subr.bf16.mxu1 %v3073_v48  ;;  %v9458_v48 = vld [vmem:[%s11363_s19 + $0x3d0] sm:$0xff] }
0x1c63   :  { %v11057_v19 = vpop.eup %11056 }
0x1c64   :  { %v2767_v1 = vsel %vm237_vm2, %v11057_v19, 0.0 }
0x1c65   :  { %2768 = vadd.xlane.f32.xlu0 %v2767_v1  ;;  %v3067_v1 = vpack.c.bf16 %v9388_v63, %v9384_v15  ;;  %v9410_v15 = vld [vmem:[%s11363_s19 + $0x250] sm:$0xff]  ;;  %v3217_v63 = vpack.c.bf16 %v9427_v29, %v9426_v60  ;;  %v9403_v60 = vld [vmem:[%s11363_s19 + $0x218] sm:$0xff] }
0x1c7b   :  { %2824 = vrot.lane.b32.xlu0 %v11856_v8, %s13284_s2 }
0x1cee   :  { %v2769_v6 = vpop.xlane.xlu0 %2768 }
0x1cef   :  { %11058 = vrcp.f32 %v2769_v6  ;;  %v9385_v6 = vld [vmem:[%s11353_s8 + $0x90] sm:$0xff] }
0x1cf2   :  { %v2825_v11 = vpop.permute.xlu0 %2824 }
0x1cf3   :  { %v2830_v12 = vsel %vm362_vm3, %v2825_v11, 0  ;;  %v3066_v11 = vpack.c.bf16 %v9387_v5, %v9383_v4  ;;  %v9425_v4 = vld [vmem:[%s11363_s19 + $0x2c8] sm:$0xff]  ;;  %v9456_v5 = vld [vmem:[%s11363_s19 + $0x3c0] sm:$0xff] }
0x1cf4   :  { %10386 = vmatpush3.bf16.msra.mxu0 %v2830_v12  ;;  %v9389_v12 = vld [vmem:[%s11353_s8 + $0xb0] sm:$0xff] }
0x1cf5   :  { %3089 = vmatprep.subr.bf16.mxu0 %v3071_v58  ;;  %v9444_v58 = vld [vmem:[%s11363_s19 + $0x360] sm:$0xff] }
0x1cf6   :  { %v3226_v26 = vpack.c.bf16 %v9445_v59, %v9444_v58  ;;  %v9451_v58 = vld [vmem:[%s11363_s19 + $0x398] sm:$0xff]  ;;  %v9402_v59 = vld [vmem:[%s11363_s19 + $0x210] sm:$0xff] }
0x1cfc   :  { %v11059_v13 = vpop.eup %11058 }
0x1cfd   :  { %v2773_v34 = vmul.f32 %v11059_v13, %v11057_v19  ;;  %v9390_v19 = vld [vmem:[%s11353_s8 + $0xb8] sm:$0xff]  ;;  %v3068_v13 = vpack.c.bf16 %v9389_v12, %v9385_v6  ;;  %v9457_v6 = vld [vmem:[%s11363_s19 + $0x3c8] sm:$0xff]  ;;  %s13315_s8 = sld [smem:[#allocation6_spill]] }
0x1cfe   :  { %v3069_v2 = vpack.c.bf16 %v9390_v19, %v9386_v0  ;;  %v9442_v19 = vld [vmem:[%s11363_s19 + $0x350] sm:$0xff] }
0x1cff   :  { %v2775_v17 = vpack.c.bf16 %v2773_v34, %v2773_v34  ;;  %v9430_v34 = vld [vmem:[%s11363_s19 + $0x2f0] sm:$0xff] }
0x1d01   :  { %10388 = vmatmul.mubr.msk.bf16.vlgmr.msra.gmra.mxu0 %vm237_vm2, %v2775_v17  ;;  %v9431_v17 = vld [vmem:[%s11363_s19 + $0x2f8] sm:$0xff] }
0x1d02   :  { %3109 = vmatprep.mubr.bf16.mxu0 %v11301_v42  ;;  %3090 = vmatpush1.bf16.msra.mxu0 %v3070_v61  ;;  %v9459_v61 = vld [vmem:[%s11363_s19 + $0x3d8] sm:$0xff] }
0x1d03   :  { %3091 = vmatprep.subr.bf16.mxu0 %v3067_v1  ;;  %v3233_v0 = vpack.c.bf16 %v9459_v61, %v9458_v48  ;;  %v9443_v1 = vld [vmem:[%s11363_s19 + $0x358] sm:$0xff]  ;;  %v3205_v48 = vpack.c.bf16 %v9403_v60, %v9402_v59  ;;  %v9434_v61 = vld [vmem:[%s11363_s19 + $0x310] sm:$0xff]  ;;  %v3421_v59 = vld [vmem:[%s11393_s27 + $0x8] sm:$0xff] }
0x1d04   :  { %v3225_v12 = vpack.c.bf16 %v9443_v1, %v9442_v19  ;;  %v9449_v19 = vld [vmem:[%s11363_s19 + $0x388] sm:$0xff]  ;;  %v9400_v1 = vld [vmem:[%s11363_s19 + $0x200] sm:$0xff] }
0x1d06   :  { %3092 = vmatpush1.bf16.msra.mxu0 %v3066_v11 }
0x1d1a   :  { %v2818_v8 = vpop.f32.mrf.mxu1 }
0x1d1c   :  { %v10383_v7 = vpop.f32.mrf.mxu1 }
0x1d1d   :  { %v3219_v7 = vpack.c.bf16 %v9431_v17, %v9430_v34  ;;  %v9409_v34 = vld [vmem:[%s11363_s19 + $0x248] sm:$0xff] }
0x1d1e   :  { %v2821_v20 = vpop.f32.mrf.mxu1 }
0x1d1f   :  { %v9463_v20 = vld [vmem:[%s11363_s19 + $0x3f8] sm:$0xff]  ;;  %9828 = vmatprep.subr.bf16.mxu0 %v3219_v7  ;;  %v9440_v7 = vld [vmem:[%s11363_s19 + $0x340] sm:$0xff] }
0x1d20   :  { %v10384_v21 = vpop.f32.mrf.mxu1 }
0x1dc1   :  { %v2866_v22 = vpop.f32.mrf.mxu0 }
0x1dc2   :  { %v2872_v23 = vpack.c.bf16 %v2866_v22, %v2818_v8  ;;  %v9462_v8 = vld [vmem:[%s11363_s19 + $0x3f0] sm:$0xff] }
0x1dc3   :  { %v10389_v25 = vpop.f32.mrf.mxu0  ;;  %v3235_v21 = vpack.c.bf16 %v9463_v20, %v9462_v8  ;;  %v3232_v8 = vpack.c.bf16 %v9457_v6, %v9456_v5  ;;  %v9441_v20 = vld [vmem:[%s11363_s19 + $0x348] sm:$0xff]  ;;  %v9432_v6 = vld [vmem:[%s11363_s19 + $0x300] sm:$0xff] }
0x1dc4   :  { %10394 = vmatmul.mubr.msk.bf16.vlgmr.msra.gmra.mxu1 %vm237_vm2, %v2872_v23 }
0x1dc5   :  { %v2869_v28 = vpop.f32.mrf.mxu0  ;;  %3152 = vmatprep.mubr.bf16.mxu1 %v11301_v42  ;;  %3133 = vmatpush1.bf16.msra.mxu1 %v3072_v62  ;;  %v9411_v62 = vld [vmem:[%s11363_s19 + $0x258] sm:$0xff] }
0x1dc6   :  { %3134 = vmatprep.subr.bf16.mxu1 %v3069_v2  ;;  %v9424_v2 = vld [vmem:[%s11363_s19 + $0x2c0] sm:$0xff]  ;;  %v3209_v11 = vpack.c.bf16 %v9411_v62, %v9410_v15  ;;  %v9417_v62 = vld [vmem:[%s11363_s19 + $0x288] sm:$0xff] }
0x1dc7   :  { %v10390_v31 = vpop.f32.mrf.mxu0  ;;  %v3216_v17 = vpack.c.bf16 %v9425_v4, %v9424_v2  ;;  %v9416_v15 = vld [vmem:[%s11363_s19 + $0x280] sm:$0xff]  ;;  %v9401_v2 = vld [vmem:[%s11363_s19 + $0x208] sm:$0xff] }
0x1dc8   :  { %v3204_v5 = vpack.c.bf16 %v9401_v2, %v9400_v1 }
0x1dc9   :  { %3135 = vmatpush1.bf16.msra.mxu1 %v3068_v13  ;;  %v9408_v13 = vld [vmem:[%s11363_s19 + $0x240] sm:$0xff] }
0x1dca   :  { %9850 = vmatprep.subr.bf16.mxu1 %v3235_v21  ;;  %v9422_v21 = vld [vmem:[%s11363_s19 + $0x2b0] sm:$0xff] }
0x1e84   :  { %v2914_v35 = vpop.f32.mrf.mxu1 }
0x1e85   :  { %v2921_v37 = vadd.f32 %v2914_v35, %v2650_v16 }
0x1e86   :  { %v10395_v38 = vpop.f32.mrf.mxu1 }
0x1e87   :  { %v2929_v39 = vadd.f32 %v9378_v33, %v2921_v37  ;;  %v9381_v38 = vld [vmem:[%s11343_s29 + $0x1] ss:$0 sm:$0xff]  ;;  %s13313_s29 = sld [smem:[#allocation13_spill]] }
0x1e88   :  { %v2917_v40 = vpop.f32.mrf.mxu1 }
0x1e89   :  { %v2922_v30 = vadd.f32 %v2917_v40, %v2651_v56  ;;  %v2931_v27 = vadd.f32 %v2929_v39, %v11842_v9 }
0x1e8a   :  { %v10396_v41 = vpop.f32.mrf.mxu1 }
0x1e8b   :  { %v2930_v32 = vadd.f32 %v9378_v33, %v2922_v30  ;;  %v2937_v43 = vsel %vm175_vm1, %v2931_v27, 0.0  ;;  %v9414_v41 = vld [vmem:[%s11363_s19 + $0x270] sm:$0xff] }
0x1e8c   :  { %2938 = vadd.xlane.f32.xlu1 %v2937_v43 }
0x1e8d   :  { %v2932_v47 = vadd.f32 %v2930_v32, %v11844_v10  ;;  %v9415_v32 = vld [vmem:[%s11363_s19 + $0x278] sm:$0xff] }
0x1e8f   :  { %v2940_v49 = vsel %vm175_vm1, %v2932_v47, 0.0 }
0x1e90   :  { %2941 = vadd.xlane.f32.xlu0 %v2940_v49  ;;  %v9447_v49 = vld [vmem:[%s11363_s19 + $0x378] sm:$0xff] }
0x1f15   :  { %v2939_v50 = vpop.xlane.xlu1 %2938 }
0x1f16   :  { %v2943_v51 = vmul.f32 0.03125, %v2939_v50  ;;  %v9428_v50 = vld [vmem:[%s11363_s19 + $0x2e0] sm:$0xff] }
0x1f18   :  { %v2945_v52 = vsub.f32 %v2931_v27, %v2943_v51  ;;  %v9382_v27 = vld [vmem:[%s11348_s3 + $0x1] ss:$0 sm:$0xff]  ;;  %v9429_v51 = vld [vmem:[%s11363_s19 + $0x2e8] sm:$0xff]  ;;  %s13314_s3 = sld [smem:[#allocation14_spill]] }
0x1f19   :  { %v2942_v9 = vpop.xlane.xlu0 %2941  ;;  %v3218_v57 = vpack.c.bf16 %v9429_v51, %v9428_v50  ;;  %v9404_v50 = vld [vmem:[%s11363_s19 + $0x220] sm:$0xff]  ;;  %v9405_v51 = vld [vmem:[%s11363_s19 + $0x228] sm:$0xff] }
0x1f1a   :  { %v2944_v16 = vmul.f32 0.03125, %v2942_v9  ;;  %v2947_v53 = vmul.f32 %v2945_v52, %v2945_v52  ;;  %v9461_v9 = vld [vmem:[%s11363_s19 + $0x3e8] sm:$0xff] }
0x1f1c   :  { %v2946_v54 = vsub.f32 %v2932_v47, %v2944_v16  ;;  %v2949_v55 = vsel %vm175_vm1, %v2947_v53, 0.0  ;;  %v9446_v47 = vld [vmem:[%s11363_s19 + $0x370] sm:$0xff] }
0x1f1d   :  { %2950 = vadd.xlane.f32.xlu1 %v2949_v55  ;;  %v3227_v55 = vpack.c.bf16 %v9447_v49, %v9446_v47  ;;  %v9453_v49 = vld [vmem:[%s11363_s19 + $0x3a8] sm:$0xff] }
0x1f1e   :  { %v2948_v10 = vmul.f32 %v2946_v54, %v2946_v54 }
0x1f20   :  { %v2952_v56 = vsel %vm175_vm1, %v2948_v10, 0.0  ;;  %v9412_v10 = vld [vmem:[%s11363_s19 + $0x260] sm:$0xff] }
0x1f21   :  { %2953 = vadd.xlane.f32.xlu0 %v2952_v56  ;;  %v9413_v56 = vld [vmem:[%s11363_s19 + $0x268] sm:$0xff] }
0x1f22   :  { %v3210_v36 = vpack.c.bf16 %v9413_v56, %v9412_v10  ;;  %v9418_v56 = vld [vmem:[%s11363_s19 + $0x290] sm:$0xff] }
0x1fa6   :  { %v2951_v22 = vpop.xlane.xlu1 %2950 }
0x1fa7   :  { %v2955_v23 = vmul.f32 0.03125, %v2951_v22  ;;  %v9423_v22 = vld [vmem:[%s11363_s19 + $0x2b8] sm:$0xff] }
0x1fa9   :  { %v2957_v25 = vadd.f32 1e-05, %v2955_v23  ;;  %v9454_v23 = vld [vmem:[%s11363_s19 + $0x3b0] sm:$0xff] }
0x1faa   :  { %v2954_v28 = vpop.xlane.xlu0 %2953 }
0x1fab   :  { %11060 = vrsqrt.f32 %v2957_v25  ;;  %v2956_v31 = vmul.f32 0.03125, %v2954_v28  ;;  %v9455_v25 = vld [vmem:[%s11363_s19 + $0x3b8] sm:$0xff]  ;;  %v3208_v28 = vpack.c.bf16 %v9409_v34, %v9408_v13  ;;  %v9399_v13 = vld [vmem:[%s11358_s14 + $0x4] sm:$0xf]  ;;  %s13316_s14 = sld [smem:[#allocation7_spill]] }
0x1fad   :  { %v2958_v33 = vadd.f32 1e-05, %v2956_v31  ;;  %v3224_v31 = vpack.c.bf16 %v9441_v20, %v9440_v7  ;;  %v3179_v7 = vrot.slane %v9399_v13, %v11812_v45  ;;  %v3167_v20 = vrot.slane %v9399_v13, %v11814_v14 }
0x1faf   :  { %11062 = vrsqrt.f32 %v2958_v33  ;;  %v9406_v33 = vld [vmem:[%s11363_s19 + $0x230] sm:$0xff] }
0x1fb8   :  { %v11061_v35 = vpop.eup %11060 }
0x1fb9   :  { %v2961_v37 = vmul.f32 %v11061_v35, %v2945_v52  ;;  %v9460_v52 = vld [vmem:[%s11363_s19 + $0x3e0] sm:$0xff]  ;;  %v3215_v35 = vpack.c.bf16 %v9423_v22, %v9422_v21  ;;  %v3175_v21 = vrot.slane %v9399_v13, %v11816_v46 }
0x1fba   :  { %v3234_v24 = vpack.c.bf16 %v9461_v9, %v9460_v52  ;;  %v3206_v9 = vpack.c.bf16 %v9405_v51, %v9404_v50 }
0x1fbb   :  { %v2969_v30 = vmul.f32 %v9381_v38, %v2961_v37  ;;  %v3231_v37 = vpack.c.bf16 %v9455_v25, %v9454_v23 }
0x1fbc   :  { %v11063_v39 = vpop.eup %11062 }
0x1fbd   :  { %v2962_v40 = vmul.f32 %v11063_v39, %v2946_v54  ;;  %v12071_v16 = vadd.f32 %v9382_v27, %v2969_v30  ;;  %v3211_v54 = vpack.c.bf16 %v9415_v32, %v9414_v41  ;;  %v9438_v39 = vld [vmem:[%s11363_s19 + $0x330] sm:$0xff]  ;;  %v9420_v41 = vld [vmem:[%s11363_s19 + $0x2a0] sm:$0xff]  ;;  %v9421_v32 = vld [vmem:[%s11363_s19 + $0x2a8] sm:$0xff] }
0x1fbe   :  { %v3214_v47 = vpack.c.bf16 %v9421_v32, %v9420_v41 }
0x1fbf   :  { %v2970_v43 = vmul.f32 %v9381_v38, %v2962_v40  ;;  %v9407_v38 = vld [vmem:[%s11363_s19 + $0x238] sm:$0xff] }
0x1fc0   :  { %v9439_v40 = vld [vmem:[%s11363_s19 + $0x338] sm:$0xff]  ;;  %v3207_v30 = vpack.c.bf16 %v9407_v38, %v9406_v33 }
0x1fc1   :  { %v12073_v53 = vadd.f32 %v9382_v27, %v2970_v43  ;;  %v3223_v27 = vpack.c.bf16 %v9439_v40, %v9438_v39  ;;  %v9452_v43 = vld [vmem:[%s11363_s19 + $0x3a0] sm:$0xff] }
0x1fc2   :  { %v3230_v52 = vpack.c.bf16 %v9453_v49, %v9452_v43  ;;  %v3423_v49 = vld [vmem:[%s11393_s27 + $0x18] sm:$0xff] }
0x1fc3   :  { %v3065_v18 = vpack.c.bf16 %v12073_v53, %v12071_v16 }
0x1fc5   :  { %9465 = vmatmul.mubr.msk.bf16.vlgmr.msra.gmra.mxu0 %vm175_vm1, %v3065_v18  ;;  %9466 = vmatmul.mubr.msk.bf16.vlgmr.msra.gmra.mxu1 %vm175_vm1, %v3065_v18  ;;  %v9419_v18 = vld [vmem:[%s11363_s19 + $0x298] sm:$0xff] }
0x1fc6   :  { %9829 = vmatpush3.bf16.msra.mxu0 %v3211_v54  ;;  %9851 = vmatpush3.bf16.msra.mxu1 %v3227_v55  ;;  %v9436_v54 = vld [vmem:[%s11363_s19 + $0x320] sm:$0xff]  ;;  %v9437_v55 = vld [vmem:[%s11363_s19 + $0x328] sm:$0xff] }
0x1fc7   :  { %9830 = vmatprep.subr.bf16.mxu0 %v3218_v57  ;;  %9852 = vmatprep.subr.bf16.mxu1 %v3234_v24  ;;  %v3222_v10 = vpack.c.bf16 %v9437_v55, %v9436_v54  ;;  %v9450_v57 = vld [vmem:[%s11363_s19 + $0x390] sm:$0xff]  ;;  %v3213_v24 = vpack.c.bf16 %v9419_v18, %v9418_v56 }
0x1fc8   :  { %v3229_v29 = vpack.c.bf16 %v9451_v58, %v9450_v57  ;;  %v3420_v58 = vld [vmem:[%s11393_s27] sm:$0xff] }
0x1fc9   :  { %v3431_v60 = vpack.c.bf16 %v3421_v59, %v3420_v58 }
0x1fca   :  { %9831 = vmatpush3.bf16.msra.mxu0 %v3210_v36  ;;  %9853 = vmatpush3.bf16.msra.mxu1 %v3226_v26  ;;  %v9435_v36 = vld [vmem:[%s11363_s19 + $0x318] sm:$0xff] }
0x1fcb   :  { %9832 = vmatprep.subr.bf16.mxu0 %v3217_v63  ;;  %9854 = vmatprep.subr.bf16.mxu1 %v3233_v0  ;;  %v3221_v26 = vpack.c.bf16 %v9435_v36, %v9434_v61  ;;  %v9448_v63 = vld [vmem:[%s11363_s19 + $0x380] sm:$0xff]  ;;  %v3212_v0 = vpack.c.bf16 %v9417_v62, %v9416_v15 }
0x1fcc   :  { %v3228_v4 = vpack.c.bf16 %v9449_v19, %v9448_v63 }
0x1fce   :  { %9833 = vmatpush3.bf16.msra.mxu0 %v3209_v11  ;;  %9855 = vmatpush3.bf16.msra.mxu1 %v3225_v12  ;;  %v9433_v11 = vld [vmem:[%s11363_s19 + $0x308] sm:$0xff]  ;;  %s13317_s19 = sld [smem:[#allocation11_spill]] }
0x1fcf   :  { %9834 = vmatprep.subr.bf16.mxu0 %v3216_v17  ;;  %9856 = vmatprep.subr.bf16.mxu1 %v3232_v8  ;;  %v3220_v12 = vpack.c.bf16 %v9433_v11, %v9432_v6  ;;  %v3171_v8 = vrot.slane %v9399_v13, %v11810_v44  ;;  %v9475_v6 = vld [vmem:[%s13310_s17] ss:$0 sm:$0xff] }
0x1fd2   :  { %9835 = vmatpush3.bf16.msra.mxu0 %v3208_v28  ;;  %9857 = vmatpush3.bf16.msra.mxu1 %v3224_v31 }
0x1fd3   :  { %9836 = vmatprep.subr.bf16.mxu0 %v3215_v35  ;;  %9858 = vmatprep.subr.bf16.mxu1 %v3231_v37 }
0x1fd6   :  { %9837 = vmatpush3.bf16.msra.mxu0 %v3207_v30  ;;  %9859 = vmatpush3.bf16.msra.mxu1 %v3223_v27 }
0x1fd7   :  { %9838 = vmatprep.subr.bf16.mxu0 %v3214_v47  ;;  %9860 = vmatprep.subr.bf16.mxu1 %v3230_v52  ;;  %v3422_v47 = vld [vmem:[%s11393_s27 + $0x10] sm:$0xff] }
0x1fd8   :  { %v3432_v18 = vpack.c.bf16 %v3423_v49, %v3422_v47 }
0x1fda   :  { %9839 = vmatpush3.bf16.msra.mxu0 %v3206_v9  ;;  %9861 = vmatpush3.bf16.msra.mxu1 %v3222_v10 }
0x1fdb   :  { %9840 = vmatprep.subr.bf16.mxu0 %v3213_v24  ;;  %9862 = vmatprep.subr.bf16.mxu1 %v3229_v29  ;;  %v12145_v29 = vld [vmem:[%s13309_s13] sm:$0xff] }
0x1fde   :  { %9841 = vmatpush3.bf16.msra.mxu0 %v3205_v48  ;;  %9863 = vmatpush3.bf16.msra.mxu1 %v3221_v26  ;;  %v12148_v48 = vld [vmem:[%s13309_s13 + $0x8] sm:$0xff]  ;;  %s13324_s13 = sld [smem:[#allocation18_spill]] }
0x1fdf   :  { %9842 = vmatprep.subr.bf16.mxu0 %v3212_v0  ;;  %9864 = vmatprep.subr.bf16.mxu1 %v3228_v4  ;;  %v3430_v61 = vpack.c.bf16 %v12148_v48, %v12145_v29 }
0x1fe2   :  { %9843 = vmatpush3.bf16.msra.mxu0 %v3204_v5  ;;  %9865 = vmatpush3.bf16.msra.mxu1 %v3220_v12 }
0x1fe3   :  { %10397 = vmatprep.subr.bf16.mxu0 %v11288_v3  ;;  %10405 = vmatprep.subr.bf16.mxu1 %v11288_v3 }
0x2085   :  { %v3111_v34 = vpop.f32.mrf.mxu0  ;;  %v3154_v17 = vpop.f32.mrf.mxu1 }
0x2086   :  { %v3184_v38 = vadd.f32 %v3167_v20, %v3111_v34  ;;  %v3186_v39 = vadd.f32 %v3175_v21, %v3154_v17 }
0x2087   :  { %v3113_v22 = vpop.f32.mrf.mxu0  ;;  %v3156_v23 = vpop.f32.mrf.mxu1 }
0x2088   :  { %v3185_v31 = vadd.f32 %v3171_v8, %v3113_v22  ;;  %v3187_v33 = vadd.f32 %v3179_v7, %v3156_v23  ;;  %v3192_v54 = vmax.f32 %v3184_v38, 0.0  ;;  %v3194_v55 = vmax.f32 %v3186_v39, 0.0 }
0x2089   :  { %v3115_v25 = vpop.f32.mrf.mxu0  ;;  %v3158_v28 = vpop.f32.mrf.mxu1 }
0x208a   :  { %v3188_v35 = vadd.f32 %v3167_v20, %v3115_v25  ;;  %v3190_v37 = vadd.f32 %v3175_v21, %v3158_v28  ;;  %v3193_v50 = vmax.f32 %v3185_v31, 0.0  ;;  %v3195_v51 = vmax.f32 %v3187_v33, 0.0 }
0x208b   :  { %v3117_v40 = vpop.f32.mrf.mxu0  ;;  %v3160_v30 = vpop.f32.mrf.mxu1 }
0x208c   :  { %v3189_v27 = vadd.f32 %v3171_v8, %v3117_v40  ;;  %v3191_v41 = vadd.f32 %v3179_v7, %v3160_v30  ;;  %v3196_v32 = vmax.f32 %v3188_v35, 0.0  ;;  %v3198_v43 = vmax.f32 %v3190_v37, 0.0  ;;  %v12163_v8 = vld [vmem:[%s11368_s24 + $0x1] ss:$0 sm:$0xff]  ;;  %s13318_s24 = sld [smem:[#allocation12_spill]] }
0x208e   :  { %v3197_v52 = vmax.f32 %v3189_v27, 0.0  ;;  %v3199_v9 = vmax.f32 %v3191_v41, 0.0  ;;  %v3200_v57 = vpack.c.bf16 %v3196_v32, %v3192_v54  ;;  %v3202_v24 = vpack.c.bf16 %v3198_v43, %v3194_v55 }
0x2090   :  { %v3201_v10 = vpack.c.bf16 %v3197_v52, %v3193_v50  ;;  %v3203_v56 = vpack.c.bf16 %v3199_v9, %v3195_v51 }
0x2092   :  { %3268 = vmatprep.mubr.bf16.mxu0 %v3201_v10  ;;  %3309 = vmatprep.mubr.bf16.mxu1 %v3203_v56 }
0x2093   :  { %3269 = vmatmul.mubr.bf16.vlgmr.msra.gmra.mxu0 %v3200_v57  ;;  %3310 = vmatmul.mubr.bf16.vlgmr.msra.gmra.mxu1 %v3202_v24 }
0x2094   :  { %10398 = vmatpush3.bf16.msra.mxu0 %v3432_v18  ;;  %10401 = vmatprep.mubr.msk.bf16.mxu0 %vm11289_vm0, %v11288_v3 }
0x2095   :  { %10399 = vmatprep.subr.bf16.mxu0 %v11288_v3  ;;  %10407 = vmatprep.mubr.msk.bf16.mxu1 %vm11289_vm0, %v11288_v3 }
0x2098   :  { %10400 = vmatpush3.bf16.msra.mxu0 %v3431_v60 }
0x2099   :  { %10411 = vmatprep.subr.bf16.mxu0 %v11288_v3 }
0x209b   :  { %10402 = vmatmul.mubr.msk.bf16.vlgmr.msra.gmra.mxu0 %vm175_vm1, %v3430_v61 }
0x209c   :  { %10413 = vmatprep.mubr.msk.bf16.mxu0 %vm11289_vm0, %v11288_v3 }
0x2153   :  { %v9844_v36 = vpop.f32.mrf.mxu0  ;;  %v9866_v26 = vpop.f32.mrf.mxu1 }
0x2155   :  { %v9845_v15 = vpop.f32.mrf.mxu0  ;;  %v9867_v62 = vpop.f32.mrf.mxu1 }
0x2156   :  { %v9846_v63 = vadd.f32 %v9845_v15, %v9844_v36  ;;  %v9868_v0 = vadd.f32 %v9867_v62, %v9866_v26 }
0x2157   :  { %v9847_v19 = vpop.f32.mrf.mxu0  ;;  %v9869_v1 = vpop.f32.mrf.mxu1 }
0x2158   :  { %v12159_v2 = vadd.f32 %v9868_v0, %v9846_v63 }
0x2159   :  { %v9848_v4 = vpop.f32.mrf.mxu0  ;;  %v9870_v5 = vpop.f32.mrf.mxu1 }
0x215a   :  { %v9849_v11 = vadd.f32 %v9848_v4, %v9847_v19  ;;  %v9871_v12 = vadd.f32 %v9870_v5, %v9869_v1 }
0x215b   :  { %v3470_v13 = vpop.f32.mrf.mxu0 }
0x215c   :  { %v3315_v34 = vadd.f32 %v9871_v12, %v9849_v11  ;;  %v3483_v17 = vadd.f32 %v9475_v6, %v3470_v13 }
0x215d   :  { %v10403_v7 = vpop.f32.mrf.mxu0 }
0x215e   :  { %v12165_v20 = vpack.c.bf16 %v3483_v17, %v3483_v17  ;;  %v12168_v21 = vadd.f32 %v12163_v8, %v3315_v34  ;;  %v3485_v35 = vmul.f32 0.35355338, %v3483_v17  ;;  %v3425_v34 = vld [vmem:[%s13311_s21] sm:$0xff] }
0x215f   :  { %v3473_v22 = vpop.f32.mrf.mxu0  ;;  %v3710_v17 = vpack.c.bf16 %v3425_v34, %v3425_v34 }
0x2160   :  { %v3484_v23 = vadd.f32 %v9475_v6, %v3473_v22  ;;  %3492 = vrot.lane.b32.xlu1 %v12165_v20, %s11290_s0  ;;  %v12179_v39 = vpack.c.bf16 %v3485_v35, %v3485_v35 }
0x2161   :  { %v10404_v25 = vpop.f32.mrf.mxu0  ;;  %v3715_v7 = vsel %vm362_vm3, %v3710_v17, 0 }
0x2162   :  { %v12172_v28 = vpack.c.bf16 %v3484_v23, %v3484_v23  ;;  %v3486_v40 = vmul.f32 0.35355338, %v3484_v23 }
0x2164   :  { %3541 = vrot.lane.b32.xlu0 %v12172_v28, %s11290_s0  ;;  %v12186_v30 = vpack.c.bf16 %v3486_v40, %v3486_v40 }
0x21d2   :  { %v3493_v31 = vpop.permute.xlu1 %3492 }
0x21d3   :  { %v3498_v33 = vsel %vm237_vm2, %v3493_v31, 0 }
0x21d4   :  { %10406 = vmatpush3.bf16.xpose.msra.mxu1 %v3498_v33 }
0x21d5   :  { %10417 = vmatprep.subr.bf16.mxu1 %v11288_v3 }
0x21d6   :  { %v3542_v37 = vpop.permute.xlu0 %3541 }
0x21d7   :  { %v3547_v38 = vsel %vm237_vm2, %v3542_v37, 0 }
0x21d8   :  { %10412 = vmatpush3.bf16.xpose.msra.mxu0 %v3547_v38 }
0x21d9   :  { %10423 = vmatprep.subr.bf16.mxu0 %v11288_v3 }
0x21db   :  { %10408 = vmatmul.mubr.msk.bf16.vlgmr.msra.gmra.mxu1 %vm237_vm2, %v12179_v39 }
0x21dc   :  { %10419 = vmatprep.mubr.msk.bf16.mxu1 %vm11289_vm0, %v11288_v3 }
0x21df   :  { %10414 = vmatmul.mubr.msk.bf16.vlgmr.msra.gmra.mxu0 %vm237_vm2, %v12186_v30 }
0x21e0   :  { %10425 = vmatprep.mubr.msk.bf16.mxu0 %vm11289_vm0, %v11288_v3 }
0x229b   :  { %v3534_v27 = vpop.f32.mrf.mxu1 }
0x229c   :  { %v3589_v41 = vsel %vm237_vm2, %v3534_v27, -inf }
0x229d   :  { %3590 = vmax.xlane.f32.xlu1 %v3589_v41  ;;  %v10409_v32 = vpop.f32.mrf.mxu1 }
0x229f   :  { %v3537_v43 = vpop.f32.mrf.mxu1  ;;  %v3583_v47 = vpop.f32.mrf.mxu0 }
0x22a0   :  { %v3592_v49 = vsel %vm237_vm2, %v3583_v47, -inf }
0x22a1   :  { %3593 = vmax.xlane.f32.xlu0 %v3592_v49  ;;  %v10410_v50 = vpop.f32.mrf.mxu1  ;;  %v10415_v51 = vpop.f32.mrf.mxu0 }
0x22a3   :  { %v3586_v52 = vpop.f32.mrf.mxu0 }
0x22a5   :  { %v10416_v9 = vpop.f32.mrf.mxu0 }
0x2326   :  { %v3591_v54 = vpop.xlane.xlu1 %3590 }
0x2327   :  { %v3595_v55 = vsub.f32 %v3534_v27, %v3591_v54 }
0x2329   :  { %v3597_v10 = vmul.f32 1.442695, %v3595_v55 }
0x232a   :  { %v3594_v56 = vpop.xlane.xlu0 %3593 }
0x232b   :  { %11064 = vpow2.f32 %v3597_v10  ;;  %v3596_v18 = vsub.f32 %v3583_v47, %v3594_v56 }
0x232d   :  { %v3599_v57 = vmul.f32 1.442695, %v3596_v18 }
0x232f   :  { %11066 = vpow2.f32 %v3599_v57 }
0x2338   :  { %v11065_v24 = vpop.eup %11064 }
0x2339   :  { %v3601_v58 = vsel %vm237_vm2, %v11065_v24, 0.0 }
0x233a   :  { %3602 = vadd.xlane.f32.xlu1 %v3601_v58 }
0x233c   :  { %v11067_v59 = vpop.eup %11066 }
0x233d   :  { %v3604_v60 = vsel %vm237_vm2, %v11067_v59, 0.0 }
0x233e   :  { %3605 = vadd.xlane.f32.xlu0 %v3604_v60 }
0x234b   :  { %3613 = vrot.lane.b32.xlu1 %v12165_v20, %s11291_s5 }
0x234f   :  { %3763 = vrot.lane.b32.xlu1 %v12165_v20, %s11293_s16 }
0x2353   :  { %3814 = vrot.lane.b32.xlu1 %v12172_v28, %s11293_s16 }
0x2354   :  { %3661 = vrot.lane.b32.xlu0 %v12172_v28, %s11291_s5 }
0x2357   :  { %3812 = vrot.lane.b32.xlu1 %v12186_v30, %s11292_s15 }
0x2358   :  { %3761 = vrot.lane.b32.xlu0 %v12179_v39, %s11292_s15 }
0x23c3   :  { %v3603_v61 = vpop.xlane.xlu1 %3602 }
0x23c4   :  { %11068 = vrcp.f32 %v3603_v61 }
0x23c7   :  { %v3606_v36 = vpop.xlane.xlu0 %3605  ;;  %v3614_v26 = vpop.permute.xlu1 %3613 }
0x23c8   :  { %11070 = vrcp.f32 %v3606_v36  ;;  %v3619_v15 = vsel %vm362_vm3, %v3614_v26, 0 }
0x23c9   :  { %10418 = vmatpush3.bf16.msra.mxu1 %v3619_v15 }
0x23ca   :  { %10429 = vmatprep.subr.bf16.mxu1 %v11288_v3 }
0x23cb   :  { %v3662_v62 = vpop.permute.xlu0 %3661  ;;  %v3764_v6 = vpop.permute.xlu1 %3763 }
0x23cc   :  { %v3667_v63 = vsel %vm362_vm3, %v3662_v62, 0  ;;  %v3769_v12 = vsel %vm237_vm2, %v3764_v6, 0 }
0x23cd   :  { %10424 = vmatpush3.bf16.msra.mxu0 %v3667_v63 }
0x23ce   :  { %10435 = vmatprep.subr.bf16.mxu0 %v11288_v3 }
0x23cf   :  { %v3762_v13 = vpop.permute.xlu0 %3761  ;;  %v3815_v25 = vpop.permute.xlu1 %3814 }
0x23d0   :  { %v3820_v40 = vsel %vm237_vm2, %v3815_v25, 0 }
0x23d1   :  { %v11069_v0 = vpop.eup %11068 }
0x23d2   :  { %v3609_v19 = vmul.f32 %v11069_v0, %v11065_v24 }
0x23d3   :  { %v3813_v47 = vpop.permute.xlu1 %3812 }
0x23d4   :  { %v3611_v1 = vpack.c.bf16 %v3609_v19, %v3609_v19 }
0x23d5   :  { %v11071_v4 = vpop.eup %11070 }
0x23d6   :  { %10420 = vmatmul.mubr.msk.bf16.vlgmr.msra.gmra.mxu1 %vm237_vm2, %v3611_v1  ;;  %v3610_v5 = vmul.f32 %v11071_v4, %v11067_v59 }
0x23d7   :  { %10431 = vmatprep.mubr.msk.bf16.mxu1 %vm11289_vm0, %v11288_v3  ;;  %10430 = vmatpush3.bf16.msra.mxu1 %v3715_v7 }
0x23d8   :  { %v3612_v11 = vpack.c.bf16 %v3610_v5, %v3610_v5  ;;  %10441 = vmatprep.subr.bf16.mxu1 %v11288_v3 }
0x23da   :  { %10426 = vmatmul.mubr.msk.bf16.vlgmr.msra.gmra.mxu0 %vm237_vm2, %v3612_v11 }
0x23db   :  { %10436 = vmatpush3.bf16.xpose.msra.mxu0 %v3769_v12  ;;  %10437 = vmatprep.mubr.msk.bf16.mxu0 %vm11289_vm0, %v11288_v3  ;;  %v3426_v12 = vld [vmem:[%s13311_s21 + $0x8] sm:$0xff] }
0x23dc   :  { %10447 = vmatprep.subr.bf16.mxu0 %v11288_v3 }
0x23e2   :  { %10438 = vmatmul.mubr.msk.bf16.vlgmr.msra.gmra.mxu0 %vm237_vm2, %v3762_v13  ;;  %v3983_v13 = vpack.c.bf16 %v3426_v12, %v3426_v12 }
0x23e3   :  { %10449 = vmatprep.mubr.msk.bf16.mxu0 %vm11289_vm0, %v11288_v3 }
0x23e4   :  { %v3988_v34 = vsel %vm362_vm3, %v3983_v13, 0 }
0x2496   :  { %v3655_v22 = vpop.f32.mrf.mxu1 }
0x2498   :  { %v10421_v23 = vpop.f32.mrf.mxu1 }
0x249a   :  { %v3658_v31 = vpop.f32.mrf.mxu1  ;;  %v3703_v33 = vpop.f32.mrf.mxu0 }
0x249b   :  { %v3709_v35 = vpack.c.bf16 %v3703_v33, %v3655_v22 }
0x249c   :  { %v10422_v37 = vpop.f32.mrf.mxu1  ;;  %v10427_v38 = vpop.f32.mrf.mxu0 }
0x249d   :  { %10432 = vmatmul.mubr.msk.bf16.vlgmr.msra.gmra.mxu1 %vm237_vm2, %v3709_v35 }
0x249e   :  { %10442 = vmatpush3.bf16.xpose.msra.mxu1 %v3820_v40  ;;  %v3706_v27 = vpop.f32.mrf.mxu0  ;;  %10443 = vmatprep.mubr.msk.bf16.mxu1 %vm11289_vm0, %v11288_v3 }
0x249f   :  { %10453 = vmatprep.subr.bf16.mxu1 %v11288_v3 }
0x24a0   :  { %v10428_v41 = vpop.f32.mrf.mxu0 }
0x24a2   :  { %v3805_v32 = vpop.f32.mrf.mxu0 }
0x24a3   :  { %v3862_v43 = vsel %vm237_vm2, %v3805_v32, -inf }
0x24a4   :  { %3863 = vmax.xlane.f32.xlu0 %v3862_v43  ;;  %v10439_v49 = vpop.f32.mrf.mxu0 }
0x24a5   :  { %10444 = vmatmul.mubr.msk.bf16.vlgmr.msra.gmra.mxu1 %vm237_vm2, %v3813_v47 }
0x24a6   :  { %v3808_v50 = vpop.f32.mrf.mxu0  ;;  %10455 = vmatprep.mubr.msk.bf16.mxu1 %vm11289_vm0, %v11288_v3 }
0x24a8   :  { %v10440_v51 = vpop.f32.mrf.mxu0 }
0x252d   :  { %v3864_v52 = vpop.xlane.xlu0 %3863 }
0x252e   :  { %v3868_v9 = vsub.f32 %v3805_v32, %v3864_v52 }
0x2530   :  { %v3870_v54 = vmul.f32 1.442695, %v3868_v9 }
0x2532   :  { %11072 = vpow2.f32 %v3870_v54 }
0x253f   :  { %v11073_v55 = vpop.eup %11072 }
0x2540   :  { %v3874_v10 = vsel %vm237_vm2, %v11073_v55, 0.0 }
0x2541   :  { %3875 = vadd.xlane.f32.xlu0 %v3874_v10 }
0x255d   :  { %v12236_v56 = vpop.f32.mrf.mxu1 }
0x255f   :  { %v10433_v18 = vpop.f32.mrf.mxu1 }
0x2561   :  { %v12238_v57 = vpop.f32.mrf.mxu1 }
0x2563   :  { %v10434_v24 = vpop.f32.mrf.mxu1 }
0x2565   :  { %v3856_v58 = vpop.f32.mrf.mxu1 }
0x2566   :  { %v3865_v59 = vsel %vm237_vm2, %v3856_v58, -inf }
0x2567   :  { %3866 = vmax.xlane.f32.xlu1 %v3865_v59  ;;  %v10445_v60 = vpop.f32.mrf.mxu1 }
0x2569   :  { %v3859_v61 = vpop.f32.mrf.mxu1 }
0x256b   :  { %v10446_v36 = vpop.f32.mrf.mxu1 }
0x2578   :  { %3886 = vrot.lane.b32.xlu1 %v12165_v20, %s11294_s18 }
0x257c   :  { %4035 = vrot.lane.b32.xlu1 %v12165_v20, %s11296_s23 }
0x2580   :  { %4085 = vrot.lane.b32.xlu1 %v12172_v28, %s11296_s23 }
0x2584   :  { %4083 = vrot.lane.b32.xlu1 %v12186_v30, %s11295_s22 }
0x25ca   :  { %v3876_v26 = vpop.xlane.xlu0 %3875 }
0x25cb   :  { %11074 = vrcp.f32 %v3876_v26 }
0x25d8   :  { %v11075_v15 = vpop.eup %11074 }
0x25d9   :  { %v3882_v0 = vmul.f32 %v11075_v15, %v11073_v55 }
0x25db   :  { %v3884_v5 = vpack.c.bf16 %v3882_v0, %v3882_v0 }
0x25f0   :  { %v3867_v62 = vpop.xlane.xlu1 %3866 }
0x25f1   :  { %v3869_v63 = vsub.f32 %v3856_v58, %v3867_v62 }
0x25f3   :  { %v3872_v19 = vmul.f32 1.442695, %v3869_v63 }
0x25f4   :  { %v3887_v1 = vpop.permute.xlu1 %3886 }
0x25f5   :  { %11076 = vpow2.f32 %v3872_v19  ;;  %v3892_v4 = vsel %vm362_vm3, %v3887_v1, 0 }
0x25f6   :  { %10448 = vmatpush3.bf16.msra.mxu0 %v3892_v4 }
0x25f7   :  { %10459 = vmatprep.subr.bf16.mxu0 %v11288_v3 }
0x25f8   :  { %v4036_v31 = vpop.permute.xlu1 %4035 }
0x25f9   :  { %10450 = vmatmul.mubr.msk.bf16.vlgmr.msra.gmra.mxu0 %vm237_vm2, %v3884_v5  ;;  %v4041_v35 = vsel %vm237_vm2, %v4036_v31, 0  ;;  %v3427_v31 = vld [vmem:[%s13311_s21 + $0x10] sm:$0xff] }
0x25fa   :  { %10461 = vmatprep.mubr.msk.bf16.mxu0 %vm11289_vm0, %v11288_v3  ;;  %10460 = vmatpush3.bf16.msra.mxu0 %v3988_v34 }
0x25fb   :  { %10471 = vmatprep.subr.bf16.mxu0 %v11288_v3 }
0x25fc   :  { %v4086_v32 = vpop.permute.xlu1 %4085 }
0x25fd   :  { %v4091_v50 = vsel %vm237_vm2, %v4086_v32, 0 }
0x2600   :  { %v4084_v55 = vpop.permute.xlu1 %4083 }
0x2602   :  { %v11077_v6 = vpop.eup %11076 }
0x2603   :  { %v3877_v11 = vsel %vm237_vm2, %v11077_v6, 0.0 }
0x2604   :  { %3878 = vadd.xlane.f32.xlu0 %v3877_v11 }
0x261a   :  { %3934 = vrot.lane.b32.xlu0 %v12172_v28, %s11294_s18 }
0x261e   :  { %4033 = vrot.lane.b32.xlu0 %v12179_v39, %s11295_s22 }
0x268d   :  { %v3879_v17 = vpop.xlane.xlu0 %3878 }
0x268e   :  { %11078 = vrcp.f32 %v3879_v17 }
0x2691   :  { %v3935_v7 = vpop.permute.xlu0 %3934 }
0x2692   :  { %v3940_v22 = vsel %vm362_vm3, %v3935_v7, 0 }
0x2693   :  { %10454 = vmatpush3.bf16.msra.mxu1 %v3940_v22 }
0x2694   :  { %10465 = vmatprep.subr.bf16.mxu1 %v11288_v3 }
0x2695   :  { %v4034_v37 = vpop.permute.xlu0 %4033 }
0x269b   :  { %v11079_v23 = vpop.eup %11078 }
0x269c   :  { %v3883_v25 = vmul.f32 %v11079_v23, %v11077_v6 }
0x269e   :  { %v3885_v33 = vpack.c.bf16 %v3883_v25, %v3883_v25 }
0x26a0   :  { %10456 = vmatmul.mubr.msk.bf16.vlgmr.msra.gmra.mxu1 %vm237_vm2, %v3885_v33  ;;  %v4254_v33 = vpack.c.bf16 %v3427_v31, %v3427_v31 }
0x26a1   :  { %10466 = vmatpush3.bf16.xpose.msra.mxu1 %v4041_v35  ;;  %10467 = vmatprep.mubr.msk.bf16.mxu1 %vm11289_vm0, %v11288_v3 }
0x26a2   :  { %10477 = vmatprep.subr.bf16.mxu1 %v11288_v3  ;;  %v4259_v35 = vsel %vm362_vm3, %v4254_v33, 0 }
0x26a8   :  { %10468 = vmatmul.mubr.msk.bf16.vlgmr.msra.gmra.mxu1 %vm237_vm2, %v4034_v37 }
0x26a9   :  { %10479 = vmatprep.mubr.msk.bf16.mxu1 %vm11289_vm0, %v11288_v3 }
0x26b9   :  { %v3928_v38 = vpop.f32.mrf.mxu0 }
0x26bb   :  { %v10451_v40 = vpop.f32.mrf.mxu0 }
0x26bd   :  { %v3931_v27 = vpop.f32.mrf.mxu0 }
0x26bf   :  { %v10452_v41 = vpop.f32.mrf.mxu0 }
0x2760   :  { %v3976_v43 = vpop.f32.mrf.mxu1 }
0x2761   :  { %v3982_v47 = vpack.c.bf16 %v3976_v43, %v3928_v38 }
0x2762   :  { %v10457_v49 = vpop.f32.mrf.mxu1 }
0x2763   :  { %10462 = vmatmul.mubr.msk.bf16.vlgmr.msra.gmra.mxu0 %vm237_vm2, %v3982_v47 }
0x2764   :  { %10472 = vmatpush3.bf16.xpose.msra.mxu0 %v4091_v50  ;;  %v3979_v51 = vpop.f32.mrf.mxu1  ;;  %10473 = vmatprep.mubr.msk.bf16.mxu0 %vm11289_vm0, %v11288_v3 }
0x2765   :  { %10483 = vmatprep.subr.bf16.mxu0 %v11288_v3 }
0x2766   :  { %v10458_v52 = vpop.f32.mrf.mxu1 }
0x2768   :  { %v4077_v9 = vpop.f32.mrf.mxu1 }
0x2769   :  { %v4133_v54 = vsel %vm237_vm2, %v4077_v9, -inf }
0x276a   :  { %4134 = vmax.xlane.f32.xlu0 %v4133_v54  ;;  %v10469_v10 = vpop.f32.mrf.mxu1 }
0x276b   :  { %10474 = vmatmul.mubr.msk.bf16.vlgmr.msra.gmra.mxu0 %vm237_vm2, %v4084_v55 }
0x276c   :  { %v4080_v18 = vpop.f32.mrf.mxu1  ;;  %10485 = vmatprep.mubr.msk.bf16.mxu0 %vm11289_vm0, %v11288_v3 }
0x276e   :  { %v10470_v24 = vpop.f32.mrf.mxu1 }
0x27f3   :  { %v4135_v58 = vpop.xlane.xlu0 %4134 }
0x27f4   :  { %v4139_v59 = vsub.f32 %v4077_v9, %v4135_v58 }
0x27f6   :  { %v4141_v60 = vmul.f32 1.442695, %v4139_v59 }
0x27f8   :  { %11080 = vpow2.f32 %v4141_v60 }
0x2805   :  { %v11081_v61 = vpop.eup %11080 }
0x2806   :  { %v4145_v36 = vsel %vm237_vm2, %v11081_v61, 0.0 }
0x2807   :  { %4146 = vadd.xlane.f32.xlu0 %v4145_v36 }
0x2823   :  { %v12282_v26 = vpop.f32.mrf.mxu0 }
0x2825   :  { %v10463_v15 = vpop.f32.mrf.mxu0 }
0x2827   :  { %v12284_v62 = vpop.f32.mrf.mxu0 }
0x2829   :  { %v10464_v63 = vpop.f32.mrf.mxu0 }
0x282b   :  { %v4127_v0 = vpop.f32.mrf.mxu0 }
0x282c   :  { %v4136_v19 = vsel %vm237_vm2, %v4127_v0, -inf }
0x282d   :  { %4137 = vmax.xlane.f32.xlu1 %v4136_v19  ;;  %v10475_v1 = vpop.f32.mrf.mxu0 }
0x282f   :  { %v4130_v4 = vpop.f32.mrf.mxu0 }
0x2831   :  { %v10476_v5 = vpop.f32.mrf.mxu0 }
0x283e   :  { %4157 = vrot.lane.b32.xlu1 %v12165_v20, %s11297_s26 }
0x2842   :  { %4306 = vrot.lane.b32.xlu1 %v12165_v20, %s11298_s28 }
0x2846   :  { %4356 = vrot.lane.b32.xlu1 %v12172_v28, %s11298_s28 }
0x284a   :  { %4354 = vrot.lane.b32.xlu1 %v12186_v30, %s13286_s1 }
0x2890   :  { %v4147_v6 = vpop.xlane.xlu0 %4146 }
0x2891   :  { %11082 = vrcp.f32 %v4147_v6  ;;  %v4031_v6 = vadd.f32 %v12282_v26, %v12236_v56  ;;  %v3324_v56 = vadd.f32 %v12163_v8, %v12159_v2 }
0x2893   :  { %v3326_v26 = vadd.f32 %v3324_v56, %v12071_v16 }
0x289e   :  { %v11083_v11 = vpop.eup %11082 }
0x289f   :  { %v4153_v34 = vmul.f32 %v11083_v11, %v11081_v61 }
0x28a1   :  { %v4155_v23 = vpack.c.bf16 %v4153_v34, %v4153_v34  ;;  %v4032_v34 = vadd.f32 %v12284_v62, %v12238_v57  ;;  %v3332_v57 = vsel %vm175_vm1, %v3326_v26, 0.0 }
0x28b6   :  { %v4138_v12 = vpop.xlane.xlu1 %4137 }
0x28b7   :  { %v4140_v13 = vsub.f32 %v4127_v0, %v4138_v12 }
0x28b9   :  { %v4143_v17 = vmul.f32 1.442695, %v4140_v13 }
0x28ba   :  { %v4158_v7 = vpop.permute.xlu1 %4157 }
0x28bb   :  { %11084 = vpow2.f32 %v4143_v17  ;;  %v4163_v22 = vsel %vm362_vm3, %v4158_v7, 0 }
0x28bc   :  { %10478 = vmatpush3.bf16.msra.mxu1 %v4163_v22 }
0x28bd   :  { %10489 = vmatprep.subr.bf16.mxu1 %v11288_v3 }
0x28be   :  { %v4307_v32 = vpop.permute.xlu1 %4306 }
0x28bf   :  { %10480 = vmatmul.mubr.msk.bf16.vlgmr.msra.gmra.mxu1 %vm237_vm2, %v4155_v23 }
0x28c0   :  { %10491 = vmatprep.mubr.msk.bf16.mxu1 %vm11289_vm0, %v11288_v3  ;;  %10490 = vmatpush3.bf16.msra.mxu1 %v4259_v35 }
0x28c1   :  { %10501 = vmatprep.subr.bf16.mxu1 %v11288_v3 }
0x28c2   :  { %v4357_v9 = vpop.permute.xlu1 %4356 }
0x28c3   :  { %v4362_v18 = vsel %vm237_vm2, %v4357_v9, 0 }
0x28c6   :  { %v4355_v61 = vpop.permute.xlu1 %4354 }
0x28c8   :  { %v11085_v30 = vpop.eup %11084 }
0x28c9   :  { %v4148_v25 = vsel %vm237_vm2, %v11085_v30, 0.0 }
0x28ca   :  { %4149 = vadd.xlane.f32.xlu0 %v4148_v25 }
0x28e0   :  { %4205 = vrot.lane.b32.xlu0 %v12172_v28, %s11297_s26 }
0x28e4   :  { %4304 = vrot.lane.b32.xlu0 %v12179_v39, %s13286_s1  ;;  %v4312_v39 = vsel %vm237_vm2, %v4307_v32, 0 }
0x2953   :  { %v4150_v37 = vpop.xlane.xlu0 %4149 }
0x2954   :  { %11086 = vrcp.f32 %v4150_v37 }
0x2957   :  { %v4206_v38 = vpop.permute.xlu0 %4205 }
0x2958   :  { %v4211_v40 = vsel %vm362_vm3, %v4206_v38, 0 }
0x2959   :  { %10484 = vmatpush3.bf16.msra.mxu0 %v4211_v40 }
0x295a   :  { %10495 = vmatprep.subr.bf16.mxu0 %v11288_v3 }
0x295b   :  { %v4305_v47 = vpop.permute.xlu0 %4304 }
0x2961   :  { %v11087_v27 = vpop.eup %11086 }
0x2962   :  { %v4154_v41 = vmul.f32 %v11087_v27, %v11085_v30 }
0x2964   :  { %v4156_v43 = vpack.c.bf16 %v4154_v41, %v4154_v41 }
0x2966   :  { %10486 = vmatmul.mubr.msk.bf16.vlgmr.msra.gmra.mxu0 %vm237_vm2, %v4156_v43 }
0x2967   :  { %10496 = vmatpush3.bf16.xpose.msra.mxu0 %v4312_v39  ;;  %10497 = vmatprep.mubr.msk.bf16.mxu0 %vm11289_vm0, %v11288_v3 }
0x2968   :  { %10507 = vmatprep.subr.bf16.mxu0 %v11288_v3 }
0x296e   :  { %10498 = vmatmul.mubr.msk.bf16.vlgmr.msra.gmra.mxu0 %vm237_vm2, %v4305_v47 }
0x296f   :  { %10509 = vmatprep.mubr.msk.bf16.mxu0 %vm11289_vm0, %v11288_v3 }
0x297f   :  { %v4199_v49 = vpop.f32.mrf.mxu1 }
0x2981   :  { %v10481_v50 = vpop.f32.mrf.mxu1 }
0x2982   :  { %v3327_v50 = vadd.f32 %v12168_v21, %v12073_v53 }
0x2983   :  { %v4202_v51 = vpop.f32.mrf.mxu1 }
0x2984   :  { %v3335_v51 = vsel %vm175_vm1, %v3327_v50, 0.0 }
0x2985   :  { %v10482_v52 = vpop.f32.mrf.mxu1 }
0x2a26   :  { %v4247_v54 = vpop.f32.mrf.mxu0 }
0x2a27   :  { %v4253_v55 = vpack.c.bf16 %v4247_v54, %v4199_v49 }
0x2a28   :  { %v10487_v10 = vpop.f32.mrf.mxu0 }
0x2a29   :  { %10492 = vmatmul.mubr.msk.bf16.vlgmr.msra.gmra.mxu1 %vm237_vm2, %v4253_v55 }
0x2a2a   :  { %10502 = vmatpush3.bf16.xpose.msra.mxu1 %v4362_v18  ;;  %v4250_v24 = vpop.f32.mrf.mxu0  ;;  %10503 = vmatprep.mubr.msk.bf16.mxu1 %vm11289_vm0, %v11288_v3 }
0x2a2b   :  { %10513 = vmatprep.subr.bf16.mxu1 %v11288_v3 }
0x2a2c   :  { %v10488_v58 = vpop.f32.mrf.mxu0 }
0x2a2e   :  { %v4348_v59 = vpop.f32.mrf.mxu0 }
0x2a2f   :  { %v4404_v60 = vsel %vm237_vm2, %v4348_v59, -inf }
0x2a30   :  { %4405 = vmax.xlane.f32.xlu0 %v4404_v60  ;;  %v10499_v36 = vpop.f32.mrf.mxu0 }
0x2a31   :  { %10504 = vmatmul.mubr.msk.bf16.vlgmr.msra.gmra.mxu1 %vm237_vm2, %v4355_v61 }
0x2a32   :  { %v4351_v15 = vpop.f32.mrf.mxu0  ;;  %10515 = vmatprep.mubr.msk.bf16.mxu1 %vm11289_vm0, %v11288_v3 }
0x2a34   :  { %v10500_v63 = vpop.f32.mrf.mxu0 }
0x2ab9   :  { %v4406_v0 = vpop.xlane.xlu0 %4405 }
0x2aba   :  { %v4410_v19 = vsub.f32 %v4348_v59, %v4406_v0 }
0x2abc   :  { %v4412_v1 = vmul.f32 1.442695, %v4410_v19  ;;  %v9470_v19 = vld [vmem:[%s11373_s30 + $0x1] ss:$0 sm:$0xff]  ;;  %s13319_s30 = sld [smem:[#allocation15_spill]] }
0x2abe   :  { %11088 = vpow2.f32 %v4412_v1 }
0x2acb   :  { %v11089_v4 = vpop.eup %11088 }
0x2acc   :  { %v4416_v5 = vsel %vm237_vm2, %v11089_v4, 0.0 }
0x2acd   :  { %4417 = vadd.xlane.f32.xlu0 %v4416_v5  ;;  %v9471_v5 = vld [vmem:[%s11378_s6 + $0x1] ss:$0 sm:$0xff]  ;;  %s13320_s6 = sld [smem:[#allocation16_spill]] }
0x2ae9   :  { %v4295_v11 = vpop.f32.mrf.mxu1 }
0x2aea   :  { %v12330_v12 = vadd.f32 %v4295_v11, %v4031_v6 }
0x2aeb   :  { %v10493_v13 = vpop.f32.mrf.mxu1 }
0x2aed   :  { %v4298_v17 = vpop.f32.mrf.mxu1 }
0x2aee   :  { %v12334_v7 = vadd.f32 %v4298_v17, %v4032_v34  ;;  %v3428_v34 = vld [vmem:[%s13311_s21 + $0x18] sm:$0xff] }
0x2aef   :  { %v10494_v22 = vpop.f32.mrf.mxu1  ;;  %v4525_v17 = vpack.c.bf16 %v3428_v34, %v3428_v34 }
0x2af1   :  { %v4398_v23 = vpop.f32.mrf.mxu1  ;;  %v4530_v22 = vsel %vm362_vm3, %v4525_v17, 0 }
0x2af2   :  { %v4407_v30 = vsel %vm237_vm2, %v4398_v23, -inf }
0x2af3   :  { %4408 = vmax.xlane.f32.xlu1 %v4407_v30  ;;  %v10505_v25 = vpop.f32.mrf.mxu1 }
0x2af5   :  { %v4401_v31 = vpop.f32.mrf.mxu1 }
0x2af7   :  { %v10506_v33 = vpop.f32.mrf.mxu1 }
0x2b04   :  { %4428 = vrot.lane.b32.xlu1 %v12165_v20, %s13284_s2 }
0x2b28   :  { %3333 = vadd.xlane.f32.xlu1 %v3332_v57 }
0x2b56   :  { %v4418_v62 = vpop.xlane.xlu0 %4417 }
0x2b57   :  { %11090 = vrcp.f32 %v4418_v62 }
0x2b64   :  { %v11091_v35 = vpop.eup %11090 }
0x2b65   :  { %v4424_v40 = vmul.f32 %v11091_v35, %v11089_v4 }
0x2b67   :  { %v4426_v20 = vpack.c.bf16 %v4424_v40, %v4424_v40 }
0x2b7c   :  { %v4409_v37 = vpop.xlane.xlu1 %4408 }
0x2b7d   :  { %v4411_v38 = vsub.f32 %v4398_v23, %v4409_v37 }
0x2b7f   :  { %v4414_v27 = vmul.f32 1.442695, %v4411_v38 }
0x2b80   :  { %v4429_v41 = vpop.permute.xlu1 %4428 }
0x2b81   :  { %11092 = vpow2.f32 %v4414_v27  ;;  %v4434_v32 = vsel %vm362_vm3, %v4429_v41, 0 }
0x2b82   :  { %10508 = vmatpush3.bf16.msra.mxu0 %v4434_v32 }
0x2b83   :  { %10519 = vmatprep.subr.bf16.mxu0 %v11288_v3 }
0x2b85   :  { %10510 = vmatmul.mubr.msk.bf16.vlgmr.msra.gmra.mxu0 %vm237_vm2, %v4426_v20  ;;  %v9496_v20 = vld [vmem:[%s13312_s25] ss:$0 sm:$0xff] }
0x2b86   :  { %10521 = vmatprep.mubr.msk.bf16.mxu0 %vm11289_vm0, %v11288_v3  ;;  %10520 = vmatpush3.bf16.msra.mxu0 %v4530_v22 }
0x2b87   :  { %10533 = vmatprep.subr.bf16.mxu0 %v11288_v3 }
0x2b8e   :  { %v11093_v16 = vpop.eup %11092 }
0x2b8f   :  { %v4419_v2 = vsel %vm237_vm2, %v11093_v16, 0.0 }
0x2b90   :  { %4420 = vadd.xlane.f32.xlu0 %v4419_v2 }
0x2ba6   :  { %4476 = vrot.lane.b32.xlu0 %v12172_v28, %s13284_s2  ;;  %s13327_s2 = sld [smem:[#allocation23_spill]] }
0x2bb1   :  { %v3334_v8 = vpop.xlane.xlu1 %3333 }
0x2bb2   :  { %v3338_v43 = vmul.f32 0.03125, %v3334_v8 }
0x2bb4   :  { %v3340_v39 = vsub.f32 %v3326_v26, %v3338_v43 }
0x2bb6   :  { %v3342_v47 = vmul.f32 %v3340_v39, %v3340_v39 }
0x2bb8   :  { %v3344_v49 = vsel %vm175_vm1, %v3342_v47, 0.0 }
0x2bb9   :  { %3345 = vadd.xlane.f32.xlu1 %v3344_v49 }
0x2bc5   :  { %3336 = vadd.xlane.f32.xlu0 %v3335_v51 }
0x2c19   :  { %v4421_v52 = vpop.xlane.xlu0 %4420 }
0x2c1a   :  { %11094 = vrcp.f32 %v4421_v52 }
0x2c1d   :  { %v4477_v9 = vpop.permute.xlu0 %4476 }
0x2c1e   :  { %v4482_v54 = vsel %vm362_vm3, %v4477_v9, 0 }
0x2c1f   :  { %10514 = vmatpush3.bf16.msra.mxu1 %v4482_v54 }
0x2c20   :  { %10525 = vmatprep.subr.bf16.mxu1 %v11288_v3 }
0x2c27   :  { %v11095_v28 = vpop.eup %11094 }
0x2c28   :  { %v4425_v55 = vmul.f32 %v11095_v28, %v11093_v16 }
0x2c2a   :  { %v4427_v10 = vpack.c.bf16 %v4425_v55, %v4425_v55 }
0x2c2c   :  { %10516 = vmatmul.mubr.msk.bf16.vlgmr.msra.gmra.mxu1 %vm237_vm2, %v4427_v10 }
0x2c2d   :  { %10529 = vmatprep.mubr.msk.bf16.mxu1 %vm11289_vm0, %v11288_v3 }
0x2c42   :  { %v3346_v53 = vpop.xlane.xlu1 %3345 }
0x2c43   :  { %v3350_v21 = vmul.f32 0.03125, %v3346_v53 }
0x2c45   :  { %v3352_v18 = vadd.f32 1e-05, %v3350_v21  ;;  %v4470_v24 = vpop.f32.mrf.mxu0  ;;  %v4631_v21 = vld [vmem:[%s13313_s29 + $0x10] sm:$0xff] }
0x2c47   :  { %11096 = vrsqrt.f32 %v3352_v18  ;;  %v10511_v58 = vpop.f32.mrf.mxu0  ;;  %v4632_v18 = vld [vmem:[%s13313_s29 + $0x18] sm:$0xff] }
0x2c48   :  { %v4629_v58 = vld [vmem:[%s13313_s29] sm:$0xff] }
0x2c49   :  { %v4473_v59 = vpop.f32.mrf.mxu0 }
0x2c4a   :  { %v4630_v59 = vld [vmem:[%s13313_s29 + $0x8] sm:$0xff] }
0x2c4b   :  { %v10512_v60 = vpop.f32.mrf.mxu0 }
0x2c4c   :  { %v4640_v60 = vpack.c.bf16 %v4630_v59, %v4629_v58 }
0x2c4e   :  { %v3337_v61 = vpop.xlane.xlu0 %3336 }
0x2c4f   :  { %v3339_v36 = vmul.f32 0.03125, %v3337_v61 }
0x2c51   :  { %v3341_v15 = vsub.f32 %v3327_v50, %v3339_v36 }
0x2c53   :  { %v3343_v63 = vmul.f32 %v3341_v15, %v3341_v15 }
0x2c54   :  { %v11097_v0 = vpop.eup %11096 }
0x2c55   :  { %v3347_v1 = vsel %vm175_vm1, %v3343_v63, 0.0  ;;  %v3356_v4 = vmul.f32 %v11097_v0, %v3340_v39 }
0x2c56   :  { %3348 = vadd.xlane.f32.xlu0 %v3347_v1 }
0x2c57   :  { %v3364_v6 = vmul.f32 %v9470_v19, %v3356_v4 }
0x2c59   :  { %v3372_v11 = vadd.f32 %v9471_v5, %v3364_v6  ;;  %v12391_v6 = vld [vmem:[%s13314_s3] ss:$0 sm:$0xff] }
0x2c5b   :  { %v3376_v13 = vsel %vm175_vm1, %v3372_v11, 0.0 }
0x2c5c   :  { %3377 = vadd.xlane.f32.xlu1 %v3376_v13 }
0x2cdf   :  { %v3349_v23 = vpop.xlane.xlu0 %3348 }
0x2ce0   :  { %v3351_v30 = vmul.f32 0.03125, %v3349_v23 }
0x2ce2   :  { %v3353_v25 = vadd.f32 1e-05, %v3351_v30 }
0x2ce4   :  { %11098 = vrsqrt.f32 %v3353_v25 }
0x2ce5   :  { %v3378_v27 = vpop.xlane.xlu1 %3377 }
0x2ce6   :  { %v3382_v41 = vmul.f32 0.03125, %v3378_v27 }
0x2ce8   :  { %v3384_v43 = vsub.f32 %v3372_v11, %v3382_v41  ;;  %v9473_v41 = vld [vmem:[%s13316_s14] ss:$0 sm:$0xff]  ;;  %s13326_s14 = sld [smem:[#allocation22_spill]] }
0x2cea   :  { %v3386_v55 = vmul.f32 %v3384_v43, %v3384_v43 }
0x2cec   :  { %v4518_v31 = vpop.f32.mrf.mxu1  ;;  %v3388_v53 = vsel %vm175_vm1, %v3386_v55, 0.0 }
0x2ced   :  { %v4524_v33 = vpack.c.bf16 %v4518_v31, %v4470_v24  ;;  %v4641_v24 = vpack.c.bf16 %v4632_v18, %v4631_v21 }
0x2cee   :  { %v10517_v56 = vpop.f32.mrf.mxu1 }
0x2cef   :  { %10522 = vmatmul.mubr.msk.bf16.vlgmr.msra.gmra.mxu0 %vm237_vm2, %v4524_v33  ;;  %10526 = vmatpush3.bf16.msra.mxu1 %v4641_v24 }
0x2cf0   :  { %v4521_v26 = vpop.f32.mrf.mxu1  ;;  %10537 = vmatprep.mubr.msk.bf16.mxu0 %vm11289_vm0, %v11288_v3  ;;  %10527 = vmatprep.subr.bf16.mxu1 %v11288_v3 }
0x2cf1   :  { %v11099_v57 = vpop.eup %11098  ;;  %v9472_v26 = vld [vmem:[%s13315_s8] ss:$0 sm:$0xff]  ;;  %s13325_s8 = sld [smem:[#allocation20_spill]] }
0x2cf2   :  { %v10518_v62 = vpop.f32.mrf.mxu1  ;;  %v3357_v35 = vmul.f32 %v11099_v57, %v3341_v15 }
0x2cf3   :  { %10528 = vmatpush3.bf16.msra.mxu1 %v4640_v60 }
0x2cf4   :  { %v3365_v37 = vmul.f32 %v9470_v19, %v3357_v35  ;;  %10541 = vmatprep.subr.bf16.mxu1 %v11288_v3 }
0x2cf6   :  { %v3373_v38 = vadd.f32 %v9471_v5, %v3365_v37 }
0x2cf8   :  { %v3379_v40 = vsel %vm175_vm1, %v3373_v38, 0.0 }
0x2cf9   :  { %3380 = vadd.xlane.f32.xlu0 %v3379_v40 }
0x2d82   :  { %v3381_v32 = vpop.xlane.xlu0 %3380 }
0x2d83   :  { %v3383_v39 = vmul.f32 0.03125, %v3381_v32 }
0x2d85   :  { %v3385_v9 = vsub.f32 %v3373_v38, %v3383_v39 }
0x2daf   :  { %v4566_v16 = vpop.f32.mrf.mxu0 }
0x2db0   :  { %v4573_v2 = vadd.f32 %v4566_v16, %v12330_v12 }
0x2db1   :  { %v10523_v8 = vpop.f32.mrf.mxu0 }
0x2db2   :  { %v4581_v47 = vadd.f32 %v9496_v20, %v4573_v2 }
0x2db3   :  { %v4569_v49 = vpop.f32.mrf.mxu0 }
0x2db4   :  { %v4574_v50 = vadd.f32 %v4569_v49, %v12334_v7  ;;  %v4583_v51 = vadd.f32 %v4581_v47, %v12145_v29  ;;  %v3387_v7 = vmul.f32 %v3385_v9, %v3385_v9  ;;  %v9497_v47 = vld [vmem:[%s13317_s19] ss:$0 sm:$0xff] }
0x2db5   :  { %v10524_v52 = vpop.f32.mrf.mxu0 }
0x2db6   :  { %v4582_v54 = vadd.f32 %v9496_v20, %v4574_v50  ;;  %v4587_v28 = vsel %vm175_vm1, %v4583_v51, 0.0  ;;  %v3391_v29 = vsel %vm175_vm1, %v3387_v7, 0.0  ;;  %v9498_v52 = vld [vmem:[%s13318_s24] ss:$0 sm:$0xff] }
0x2db7   :  { %4588 = vadd.xlane.f32.xlu1 %v4587_v28 }
0x2db8   :  { %v4584_v12 = vadd.f32 %v4582_v54, %v12148_v48 }
0x2dba   :  { %v4590_v10 = vsel %vm175_vm1, %v4584_v12, 0.0 }
0x2dbb   :  { %4591 = vadd.xlane.f32.xlu0 %v4590_v10  ;;  %3389 = vadd.xlane.f32.xlu1 %v3388_v53 }
0x2dbf   :  { %3392 = vadd.xlane.f32.xlu0 %v3391_v29 }
0x2e40   :  { %v4589_v48 = vpop.xlane.xlu1 %4588 }
0x2e41   :  { %v4593_v61 = vmul.f32 0.03125, %v4589_v48 }
0x2e43   :  { %v4595_v36 = vsub.f32 %v4583_v51, %v4593_v61 }
0x2e44   :  { %v4592_v15 = vpop.xlane.xlu0 %4591  ;;  %v3390_v13 = vpop.xlane.xlu1 %3389 }
0x2e45   :  { %v4594_v63 = vmul.f32 0.03125, %v4592_v15  ;;  %v4597_v0 = vmul.f32 %v4595_v36, %v4595_v36  ;;  %v3394_v17 = vmul.f32 0.03125, %v3390_v13 }
0x2e47   :  { %v4596_v19 = vsub.f32 %v4584_v12, %v4594_v63  ;;  %v4599_v1 = vsel %vm175_vm1, %v4597_v0, 0.0  ;;  %v3396_v23 = vadd.f32 1e-05, %v3394_v17 }
0x2e48   :  { %4600 = vadd.xlane.f32.xlu1 %v4599_v1  ;;  %v3393_v11 = vpop.xlane.xlu0 %3392 }
0x2e49   :  { %v4598_v4 = vmul.f32 %v4596_v19, %v4596_v19  ;;  %v3395_v34 = vmul.f32 0.03125, %v3393_v11 }
0x2e4b   :  { %v4602_v5 = vsel %vm175_vm1, %v4598_v4, 0.0  ;;  %v3397_v22 = vadd.f32 1e-05, %v3395_v34 }
0x2e4c   :  { %4603 = vadd.xlane.f32.xlu0 %v4602_v5 }
0x2e4d   :  { %11100 = vrsqrt.f32 %v3397_v22 }
0x2e4e   :  { %11102 = vrsqrt.f32 %v3396_v23 }
0x2e59   :  { %4699 = vrot.lane.b32.xlu1 %v4641_v24, %s11290_s0 }
0x2e5a   :  { %v11101_v30 = vpop.eup %11100 }
0x2e5b   :  { %v11103_v25 = vpop.eup %11102  ;;  %v3401_v31 = vmul.f32 %v11101_v30, %v3385_v9 }
0x2e5c   :  { %v3400_v33 = vmul.f32 %v11103_v25, %v3384_v43 }
0x2e5d   :  { %4747 = vrot.lane.b32.xlu1 %v12391_v6, %s11290_s0  ;;  %v3409_v62 = vmul.f32 %v9472_v26, %v3401_v31 }
0x2e5e   :  { %v3408_v37 = vmul.f32 %v9472_v26, %v3400_v33 }
0x2e5f   :  { %v3417_v32 = vadd.f32 %v9473_v41, %v3409_v62 }
0x2e60   :  { %v3416_v2 = vadd.f32 %v9473_v41, %v3408_v37 }
0x2e62   :  { %4697 = vrot.lane.b32.xlu0 %v4640_v60, %s11290_s0  ;;  %v12398_v8 = vpack.c.bf16 %v3417_v32, %v3416_v2 }
0x2ed1   :  { %v4601_v56 = vpop.xlane.xlu1 %4600 }
0x2ed2   :  { %v4605_v57 = vmul.f32 0.03125, %v4601_v56 }
0x2ed4   :  { %v4607_v35 = vadd.f32 1e-05, %v4605_v57 }
0x2ed5   :  { %v4604_v38 = vpop.xlane.xlu0 %4603  ;;  %v4700_v40 = vpop.permute.xlu1 %4699 }
0x2ed6   :  { %11104 = vrsqrt.f32 %v4607_v35  ;;  %v4606_v27 = vmul.f32 0.03125, %v4604_v38  ;;  %10534 = vmatpush3.bf16.msra.mxu0 %v4700_v40 }
0x2ed7   :  { %10535 = vmatprep.subr.bf16.mxu0 %v11288_v3 }
0x2ed8   :  { %v4608_v20 = vadd.f32 1e-05, %v4606_v27 }
0x2ed9   :  { %v4698_v16 = vpop.permute.xlu0 %4697  ;;  %v4748_v12 = vpop.permute.xlu1 %4747 }
0x2eda   :  { %11106 = vrsqrt.f32 %v4608_v20  ;;  %10536 = vmatpush3.bf16.msra.mxu0 %v4698_v16 }
0x2edb   :  { %10547 = vmatprep.subr.bf16.mxu0 %v11288_v3 }
0x2edd   :  { %10538 = vmatmul.mubr.msk.bf16.vlgmr.msra.gmra.mxu0 %vm175_vm1, %v12398_v8 }
0x2ede   :  { %10549 = vmatprep.mubr.msk.bf16.mxu0 %vm11289_vm0, %v11288_v3 }
0x2ee3   :  { %v11105_v43 = vpop.eup %11104 }
0x2ee4   :  { %v4611_v39 = vmul.f32 %v11105_v43, %v4595_v36 }
0x2ee6   :  { %v4619_v50 = vmul.f32 %v9497_v47, %v4611_v39 }
0x2ee7   :  { %v11107_v49 = vpop.eup %11106 }
0x2ee8   :  { %v4612_v51 = vmul.f32 %v11107_v49, %v4596_v19  ;;  %v12407_v54 = vadd.f32 %v9498_v52, %v4619_v50 }
0x2eea   :  { %v4620_v9 = vmul.f32 %v9497_v47, %v4612_v51 }
0x2eec   :  { %v12409_v28 = vadd.f32 %v9498_v52, %v4620_v9 }
0x2eee   :  { %v4639_v55 = vpack.c.bf16 %v12409_v28, %v12407_v54 }
0x2ef0   :  { %10530 = vmatmul.mubr.msk.bf16.vlgmr.msra.gmra.mxu1 %vm175_vm1, %v4639_v55 }
0x2ef1   :  { %10543 = vmatprep.mubr.msk.bf16.mxu1 %vm11289_vm0, %v11288_v3 }
0x2f9d   :  { %v4740_v10 = vpop.f32.mrf.mxu0 }
0x2f9e   :  { %v4750_v53 = vadd.f32 %v4748_v12, %v4740_v10  ;;  %v4634_v10 = vld [vmem:[%s13319_s30] sm:$0xff] }
0x2f9f   :  { %v10539_v7 = vpop.f32.mrf.mxu0 }
0x2fa0   :  { %v12416_v29 = vpack.c.bf16 %v4750_v53, %v4750_v53  ;;  %v4973_v53 = vpack.c.bf16 %v4634_v10, %v4634_v10 }
0x2fa1   :  { %v4743_v21 = vpop.f32.mrf.mxu0 }
0x2fa2   :  { %v4751_v18 = vadd.f32 %v4748_v12, %v4743_v21  ;;  %v4762_v24 = vsel %vm237_vm2, %v12416_v29, 0  ;;  %v4978_v7 = vsel %vm362_vm3, %v4973_v53, 0 }
0x2fa3   :  { %v10540_v58 = vpop.f32.mrf.mxu0  ;;  %10542 = vmatpush3.bf16.xpose.msra.mxu1 %v4762_v24 }
0x2fa4   :  { %v12420_v59 = vpack.c.bf16 %v4751_v18, %v4751_v18  ;;  %10553 = vmatprep.subr.bf16.mxu1 %v11288_v3 }
0x2fa6   :  { %v4808_v60 = vsel %vm237_vm2, %v12420_v59, 0 }
0x2fa7   :  { %10548 = vmatpush3.bf16.xpose.msra.mxu0 %v4808_v60 }
0x2fa8   :  { %10559 = vmatprep.subr.bf16.mxu0 %v11288_v3 }
0x2fb0   :  { %v4679_v48 = vpop.f32.mrf.mxu1 }
0x2fb1   :  { %v4692_v61 = vadd.f32 %v12391_v6, %v4679_v48 }
0x2fb2   :  { %v10531_v36 = vpop.f32.mrf.mxu1 }
0x2fb3   :  { %v4752_v15 = vmul.f32 0.35355338, %v4692_v61 }
0x2fb4   :  { %v4682_v63 = vpop.f32.mrf.mxu1 }
0x2fb5   :  { %v12427_v0 = vpack.c.bf16 %v4752_v15, %v4752_v15  ;;  %v4693_v19 = vadd.f32 %v12391_v6, %v4682_v63 }
0x2fb6   :  { %v10532_v1 = vpop.f32.mrf.mxu1 }
0x2fb7   :  { %v4753_v4 = vmul.f32 0.35355338, %v4693_v19  ;;  %10544 = vmatmul.mubr.msk.bf16.vlgmr.msra.gmra.mxu1 %vm237_vm2, %v12427_v0 }
0x2fb8   :  { %10555 = vmatprep.mubr.msk.bf16.mxu1 %vm11289_vm0, %v11288_v3 }
0x2fb9   :  { %v12434_v5 = vpack.c.bf16 %v4753_v4, %v4753_v4 }
0x2fbb   :  { %10550 = vmatmul.mubr.msk.bf16.vlgmr.msra.gmra.mxu0 %vm237_vm2, %v12434_v5 }
0x2fbc   :  { %10561 = vmatprep.mubr.msk.bf16.mxu0 %vm11289_vm0, %v11288_v3 }
0x3077   :  { %v4798_v11 = vpop.f32.mrf.mxu1 }
0x3078   :  { %v4850_v13 = vsel %vm237_vm2, %v4798_v11, -inf }
0x3079   :  { %4851 = vmax.xlane.f32.xlu1 %v4850_v13  ;;  %v10545_v6 = vpop.f32.mrf.mxu1 }
0x307b   :  { %v4801_v34 = vpop.f32.mrf.mxu1  ;;  %v4844_v17 = vpop.f32.mrf.mxu0 }
0x307c   :  { %v4853_v22 = vsel %vm237_vm2, %v4844_v17, -inf }
0x307d   :  { %4854 = vmax.xlane.f32.xlu0 %v4853_v22  ;;  %v10546_v23 = vpop.f32.mrf.mxu1  ;;  %v10551_v30 = vpop.f32.mrf.mxu0 }
0x307f   :  { %v4847_v25 = vpop.f32.mrf.mxu0 }
0x3081   :  { %v10552_v31 = vpop.f32.mrf.mxu0 }
0x3102   :  { %v4852_v33 = vpop.xlane.xlu1 %4851 }
0x3103   :  { %v4856_v56 = vsub.f32 %v4798_v11, %v4852_v33 }
0x3105   :  { %v4858_v26 = vmul.f32 1.442695, %v4856_v56 }
0x3106   :  { %v4855_v57 = vpop.xlane.xlu0 %4854 }
0x3107   :  { %11108 = vpow2.f32 %v4858_v26  ;;  %v4857_v62 = vsub.f32 %v4844_v17, %v4855_v57 }
0x3109   :  { %v4860_v35 = vmul.f32 1.442695, %v4857_v62 }
0x310b   :  { %11110 = vpow2.f32 %v4860_v35 }
0x3114   :  { %v11109_v37 = vpop.eup %11108 }
0x3115   :  { %v4862_v38 = vsel %vm237_vm2, %v11109_v37, 0.0 }
0x3116   :  { %4863 = vadd.xlane.f32.xlu0 %v4862_v38 }
0x3118   :  { %v11111_v40 = vpop.eup %11110 }
0x3119   :  { %v4865_v27 = vsel %vm237_vm2, %v11111_v40, 0.0 }
0x311a   :  { %4866 = vadd.xlane.f32.xlu1 %v4865_v27 }
0x312b   :  { %4924 = vrot.lane.b32.xlu1 %v12420_v59, %s11290_s0 }
0x312c   :  { %4875 = vrot.lane.b32.xlu0 %v12416_v29, %s11290_s0 }
0x312f   :  { %5026 = vrot.lane.b32.xlu1 %v12416_v29, %s11292_s15 }
0x3130   :  { %5077 = vrot.lane.b32.xlu0 %v12420_v59, %s11292_s15 }
0x3133   :  { %5024 = vrot.lane.b32.xlu1 %v12427_v0, %s11292_s15 }
0x3134   :  { %5075 = vrot.lane.b32.xlu0 %v12434_v5, %s11292_s15 }
0x319f   :  { %v4864_v41 = vpop.xlane.xlu0 %4863 }
0x31a0   :  { %11112 = vrcp.f32 %v4864_v41 }
0x31a3   :  { %v4876_v32 = vpop.permute.xlu0 %4875  ;;  %v4867_v20 = vpop.xlane.xlu1 %4866 }
0x31a4   :  { %v4881_v16 = vsel %vm362_vm3, %v4876_v32, 0  ;;  %11114 = vrcp.f32 %v4867_v20 }
0x31a5   :  { %10554 = vmatpush3.bf16.msra.mxu1 %v4881_v16 }
0x31a6   :  { %10565 = vmatprep.subr.bf16.mxu1 %v11288_v3 }
0x31a7   :  { %v4925_v2 = vpop.permute.xlu1 %4924  ;;  %v5078_v24 = vpop.permute.xlu0 %5077 }
0x31a8   :  { %v4930_v43 = vsel %vm362_vm3, %v4925_v2, 0  ;;  %v5083_v15 = vsel %vm237_vm2, %v5078_v24, 0 }
0x31a9   :  { %10560 = vmatpush3.bf16.msra.mxu0 %v4930_v43 }
0x31aa   :  { %10571 = vmatprep.subr.bf16.mxu0 %v11288_v3 }
0x31ab   :  { %v5027_v52 = vpop.permute.xlu1 %5026  ;;  %v5076_v11 = vpop.permute.xlu0 %5075 }
0x31ac   :  { %v5032_v55 = vsel %vm237_vm2, %v5027_v52, 0 }
0x31ad   :  { %v11113_v39 = vpop.eup %11112 }
0x31ae   :  { %v4870_v47 = vmul.f32 %v11113_v39, %v11109_v37 }
0x31af   :  { %v5025_v12 = vpop.permute.xlu1 %5024 }
0x31b0   :  { %v4872_v49 = vpack.c.bf16 %v4870_v47, %v4870_v47 }
0x31b1   :  { %v11115_v50 = vpop.eup %11114 }
0x31b2   :  { %v4871_v51 = vmul.f32 %v11115_v50, %v11111_v40  ;;  %10556 = vmatmul.mubr.msk.bf16.vlgmr.msra.gmra.mxu1 %vm237_vm2, %v4872_v49  ;;  %v4635_v50 = vld [vmem:[%s13319_s30 + $0x8] sm:$0xff] }
0x31b3   :  { %10567 = vmatprep.mubr.msk.bf16.mxu1 %vm11289_vm0, %v11288_v3  ;;  %10566 = vmatpush3.bf16.msra.mxu1 %v4978_v7 }
0x31b4   :  { %v4873_v9 = vpack.c.bf16 %v4871_v51, %v4871_v51  ;;  %10577 = vmatprep.subr.bf16.mxu1 %v11288_v3  ;;  %v5246_v51 = vpack.c.bf16 %v4635_v50, %v4635_v50 }
0x31b6   :  { %10562 = vmatmul.mubr.msk.bf16.vlgmr.msra.gmra.mxu0 %vm237_vm2, %v4873_v9  ;;  %v5251_v52 = vsel %vm362_vm3, %v5246_v51, 0 }
0x31b7   :  { %10572 = vmatpush3.bf16.xpose.msra.mxu0 %v5032_v55  ;;  %10573 = vmatprep.mubr.msk.bf16.mxu0 %vm11289_vm0, %v11288_v3 }
0x31b8   :  { %10583 = vmatprep.subr.bf16.mxu0 %v11288_v3 }
0x31be   :  { %10574 = vmatmul.mubr.msk.bf16.vlgmr.msra.gmra.mxu0 %vm237_vm2, %v5025_v12 }
0x31bf   :  { %10585 = vmatprep.mubr.msk.bf16.mxu0 %vm11289_vm0, %v11288_v3 }
0x3272   :  { %v4917_v21 = vpop.f32.mrf.mxu1 }
0x3274   :  { %v10557_v18 = vpop.f32.mrf.mxu1 }
0x3276   :  { %v4920_v58 = vpop.f32.mrf.mxu1  ;;  %v4966_v60 = vpop.f32.mrf.mxu0 }
0x3277   :  { %v4972_v48 = vpack.c.bf16 %v4966_v60, %v4917_v21 }
0x3278   :  { %v10558_v61 = vpop.f32.mrf.mxu1  ;;  %v10563_v36 = vpop.f32.mrf.mxu0 }
0x3279   :  { %10568 = vmatmul.mubr.msk.bf16.vlgmr.msra.gmra.mxu1 %vm237_vm2, %v4972_v48 }
0x327a   :  { %10578 = vmatpush3.bf16.xpose.msra.mxu1 %v5083_v15  ;;  %v4969_v63 = vpop.f32.mrf.mxu0  ;;  %10579 = vmatprep.mubr.msk.bf16.mxu1 %vm11289_vm0, %v11288_v3 }
0x327b   :  { %10589 = vmatprep.subr.bf16.mxu1 %v11288_v3 }
0x327c   :  { %v10564_v19 = vpop.f32.mrf.mxu0 }
0x327e   :  { %v5068_v1 = vpop.f32.mrf.mxu0 }
0x327f   :  { %v5125_v4 = vsel %vm237_vm2, %v5068_v1, -inf }
0x3280   :  { %5126 = vmax.xlane.f32.xlu1 %v5125_v4  ;;  %v10575_v13 = vpop.f32.mrf.mxu0 }
0x3281   :  { %10580 = vmatmul.mubr.msk.bf16.vlgmr.msra.gmra.mxu1 %vm237_vm2, %v5076_v11 }
0x3282   :  { %v5071_v6 = vpop.f32.mrf.mxu0  ;;  %10591 = vmatprep.mubr.msk.bf16.mxu1 %vm11289_vm0, %v11288_v3 }
0x3284   :  { %v10576_v34 = vpop.f32.mrf.mxu0 }
0x3309   :  { %v5127_v17 = vpop.xlane.xlu1 %5126 }
0x330a   :  { %v5131_v22 = vsub.f32 %v5068_v1, %v5127_v17 }
0x330c   :  { %v5133_v23 = vmul.f32 1.442695, %v5131_v22 }
0x330e   :  { %11116 = vpow2.f32 %v5133_v23 }
0x331b   :  { %v11117_v57 = vpop.eup %11116 }
0x331c   :  { %v5137_v37 = vsel %vm237_vm2, %v11117_v57, 0.0 }
0x3339   :  { %v12483_v30 = vpop.f32.mrf.mxu1 }
0x333b   :  { %v10569_v25 = vpop.f32.mrf.mxu1 }
0x333d   :  { %v12485_v31 = vpop.f32.mrf.mxu1 }
0x333f   :  { %v10570_v33 = vpop.f32.mrf.mxu1 }
0x3341   :  { %v5119_v56 = vpop.f32.mrf.mxu1 }
0x3342   :  { %v5128_v26 = vsel %vm237_vm2, %v5119_v56, -inf }
0x3343   :  { %5129 = vmax.xlane.f32.xlu0 %v5128_v26  ;;  %v10581_v62 = vpop.f32.mrf.mxu1 }
0x3345   :  { %v5122_v35 = vpop.f32.mrf.mxu1 }
0x3347   :  { %5138 = vadd.xlane.f32.xlu0 %v5137_v37  ;;  %v10582_v38 = vpop.f32.mrf.mxu1 }
0x335d   :  { %5149 = vrot.lane.b32.xlu0 %v12416_v29, %s11293_s16 }
0x3361   :  { %5348 = vrot.lane.b32.xlu0 %v12420_v59, %s11295_s22 }
0x3365   :  { %5346 = vrot.lane.b32.xlu0 %v12434_v5, %s11295_s22 }
0x33cc   :  { %v5130_v40 = vpop.xlane.xlu0 %5129 }
0x33cd   :  { %v5132_v27 = vsub.f32 %v5119_v56, %v5130_v40 }
0x33cf   :  { %v5135_v41 = vmul.f32 1.442695, %v5132_v27 }
0x33d0   :  { %v5139_v32 = vpop.xlane.xlu0 %5138 }
0x33d1   :  { %11118 = vpow2.f32 %v5135_v41 }
0x33d2   :  { %11120 = vrcp.f32 %v5139_v32 }
0x33d4   :  { %v5150_v20 = vpop.permute.xlu0 %5149 }
0x33d5   :  { %v5155_v16 = vsel %vm362_vm3, %v5150_v20, 0 }
0x33d6   :  { %10584 = vmatpush3.bf16.msra.mxu0 %v5155_v16 }
0x33d7   :  { %10595 = vmatprep.subr.bf16.mxu0 %v11288_v3 }
0x33d8   :  { %v5349_v36 = vpop.permute.xlu0 %5348 }
0x33d9   :  { %v5354_v1 = vsel %vm237_vm2, %v5349_v36, 0 }
0x33dc   :  { %v5347_v34 = vpop.permute.xlu0 %5346 }
0x33de   :  { %v11119_v2 = vpop.eup %11118 }
0x33df   :  { %v11121_v43 = vpop.eup %11120  ;;  %v5140_v39 = vsel %vm237_vm2, %v11119_v2, 0.0 }
0x33e0   :  { %v5145_v47 = vmul.f32 %v11121_v43, %v11117_v57  ;;  %5141 = vadd.xlane.f32.xlu1 %v5140_v39 }
0x33e2   :  { %v5147_v49 = vpack.c.bf16 %v5145_v47, %v5145_v47 }
0x33e4   :  { %10586 = vmatmul.mubr.msk.bf16.vlgmr.msra.gmra.mxu0 %vm237_vm2, %v5147_v49 }
0x33e5   :  { %10597 = vmatprep.mubr.msk.bf16.mxu0 %vm11289_vm0, %v11288_v3  ;;  %10596 = vmatpush3.bf16.msra.mxu0 %v5251_v52 }
0x33e6   :  { %10607 = vmatprep.subr.bf16.mxu0 %v11288_v3 }
0x33f1   :  { %5197 = vrot.lane.b32.xlu1 %v12420_v59, %s11293_s16 }
0x33f5   :  { %5298 = vrot.lane.b32.xlu1 %v12416_v29, %s11295_s22 }
0x33f9   :  { %5296 = vrot.lane.b32.xlu1 %v12427_v0, %s11295_s22 }
0x3469   :  { %v5142_v9 = vpop.xlane.xlu1 %5141 }
0x346a   :  { %11122 = vrcp.f32 %v5142_v9 }
0x346d   :  { %v5198_v55 = vpop.permute.xlu1 %5197 }
0x346e   :  { %v5203_v12 = vsel %vm362_vm3, %v5198_v55, 0  ;;  %v4636_v55 = vld [vmem:[%s13319_s30 + $0x10] sm:$0xff] }
0x346f   :  { %10590 = vmatpush3.bf16.msra.mxu1 %v5203_v12  ;;  %v5517_v12 = vpack.c.bf16 %v4636_v55, %v4636_v55 }
0x3470   :  { %10601 = vmatprep.subr.bf16.mxu1 %v11288_v3 }
0x3471   :  { %v5299_v7 = vpop.permute.xlu1 %5298 }
0x3472   :  { %v5304_v18 = vsel %vm237_vm2, %v5299_v7, 0 }
0x3475   :  { %v5297_v24 = vpop.permute.xlu1 %5296 }
0x3477   :  { %v11123_v10 = vpop.eup %11122 }
0x3478   :  { %v5146_v53 = vmul.f32 %v11123_v10, %v11119_v2  ;;  %v5522_v10 = vsel %vm362_vm3, %v5517_v12, 0 }
0x347a   :  { %v5148_v21 = vpack.c.bf16 %v5146_v53, %v5146_v53 }
0x347c   :  { %10592 = vmatmul.mubr.msk.bf16.vlgmr.msra.gmra.mxu1 %vm237_vm2, %v5148_v21 }
0x347d   :  { %10602 = vmatpush3.bf16.xpose.msra.mxu1 %v5304_v18  ;;  %10603 = vmatprep.mubr.msk.bf16.mxu1 %vm11289_vm0, %v11288_v3 }
0x347e   :  { %10613 = vmatprep.subr.bf16.mxu1 %v11288_v3 }
0x3484   :  { %10604 = vmatmul.mubr.msk.bf16.vlgmr.msra.gmra.mxu1 %vm237_vm2, %v5297_v24 }
0x3485   :  { %10615 = vmatprep.mubr.msk.bf16.mxu1 %vm11289_vm0, %v11288_v3 }
0x34a4   :  { %v5191_v58 = vpop.f32.mrf.mxu0 }
0x34a6   :  { %v10587_v60 = vpop.f32.mrf.mxu0 }
0x34a8   :  { %v5194_v48 = vpop.f32.mrf.mxu0 }
0x34aa   :  { %v10588_v61 = vpop.f32.mrf.mxu0 }
0x353c   :  { %v5239_v15 = vpop.f32.mrf.mxu1 }
0x353d   :  { %v5245_v63 = vpack.c.bf16 %v5239_v15, %v5191_v58 }
0x353e   :  { %v10593_v19 = vpop.f32.mrf.mxu1 }
0x353f   :  { %10598 = vmatmul.mubr.msk.bf16.vlgmr.msra.gmra.mxu0 %vm237_vm2, %v5245_v63 }
0x3540   :  { %10608 = vmatpush3.bf16.xpose.msra.mxu0 %v5354_v1  ;;  %v5242_v4 = vpop.f32.mrf.mxu1  ;;  %10609 = vmatprep.mubr.msk.bf16.mxu0 %vm11289_vm0, %v11288_v3 }
0x3541   :  { %10619 = vmatprep.subr.bf16.mxu0 %v11288_v3 }
0x3542   :  { %v10594_v11 = vpop.f32.mrf.mxu1 }
0x3544   :  { %v5340_v13 = vpop.f32.mrf.mxu1 }
0x3545   :  { %v5396_v6 = vsel %vm237_vm2, %v5340_v13, -inf }
0x3546   :  { %5397 = vmax.xlane.f32.xlu1 %v5396_v6  ;;  %v10605_v17 = vpop.f32.mrf.mxu1 }
0x3547   :  { %10610 = vmatmul.mubr.msk.bf16.vlgmr.msra.gmra.mxu0 %vm237_vm2, %v5347_v34 }
0x3548   :  { %v5343_v22 = vpop.f32.mrf.mxu1  ;;  %10621 = vmatprep.mubr.msk.bf16.mxu0 %vm11289_vm0, %v11288_v3 }
0x354a   :  { %v10606_v23 = vpop.f32.mrf.mxu1 }
0x35cf   :  { %v5398_v25 = vpop.xlane.xlu1 %5397 }
0x35d0   :  { %v5402_v33 = vsub.f32 %v5340_v13, %v5398_v25 }
0x35d2   :  { %v5404_v56 = vmul.f32 1.442695, %v5402_v33 }
0x35d4   :  { %11124 = vpow2.f32 %v5404_v56 }
0x35e1   :  { %v11125_v40 = vpop.eup %11124 }
0x35e2   :  { %v5408_v32 = vsel %vm237_vm2, %v11125_v40, 0.0 }
0x35ff   :  { %v12529_v26 = vpop.f32.mrf.mxu0 }
0x3601   :  { %v10599_v57 = vpop.f32.mrf.mxu0 }
0x3603   :  { %v12531_v62 = vpop.f32.mrf.mxu0 }
0x3605   :  { %v10600_v35 = vpop.f32.mrf.mxu0 }
0x3607   :  { %v5390_v37 = vpop.f32.mrf.mxu0 }
0x3608   :  { %v5399_v38 = vsel %vm237_vm2, %v5390_v37, -inf }
0x3609   :  { %5400 = vmax.xlane.f32.xlu0 %v5399_v38  ;;  %v10611_v27 = vpop.f32.mrf.mxu0  ;;  %v5294_v38 = vadd.f32 %v12529_v26, %v12483_v30 }
0x360b   :  { %v5393_v41 = vpop.f32.mrf.mxu0 }
0x360d   :  { %v10612_v20 = vpop.f32.mrf.mxu0  ;;  %5409 = vadd.xlane.f32.xlu0 %v5408_v32  ;;  %v5295_v32 = vadd.f32 %v12531_v62, %v12485_v31 }
0x3623   :  { %5420 = vrot.lane.b32.xlu0 %v12416_v29, %s11296_s23 }
0x3627   :  { %5619 = vrot.lane.b32.xlu0 %v12420_v59, %s13286_s1 }
0x362b   :  { %5617 = vrot.lane.b32.xlu0 %v12434_v5, %s13286_s1 }
0x3692   :  { %v5401_v16 = vpop.xlane.xlu0 %5400 }
0x3693   :  { %v5403_v2 = vsub.f32 %v5390_v37, %v5401_v16 }
0x3695   :  { %v5406_v43 = vmul.f32 1.442695, %v5403_v2 }
0x3696   :  { %v5410_v39 = vpop.xlane.xlu0 %5409 }
0x3697   :  { %11126 = vpow2.f32 %v5406_v43 }
0x3698   :  { %11128 = vrcp.f32 %v5410_v39 }
0x369a   :  { %v5421_v47 = vpop.permute.xlu0 %5420 }
0x369b   :  { %v5426_v49 = vsel %vm362_vm3, %v5421_v47, 0 }
0x369c   :  { %10614 = vmatpush3.bf16.msra.mxu1 %v5426_v49 }
0x369d   :  { %10625 = vmatprep.subr.bf16.mxu1 %v11288_v3 }
0x369e   :  { %v5620_v19 = vpop.permute.xlu0 %5619 }
0x369f   :  { %v5625_v13 = vsel %vm237_vm2, %v5620_v19, 0 }
0x36a2   :  { %v5618_v23 = vpop.permute.xlu0 %5617 }
0x36a4   :  { %v11127_v50 = vpop.eup %11126 }
0x36a5   :  { %v11129_v51 = vpop.eup %11128  ;;  %v5411_v52 = vsel %vm237_vm2, %v11127_v50, 0.0 }
0x36a6   :  { %v5416_v9 = vmul.f32 %v11129_v51, %v11125_v40  ;;  %5412 = vadd.xlane.f32.xlu1 %v5411_v52 }
0x36a8   :  { %v5418_v5 = vpack.c.bf16 %v5416_v9, %v5416_v9 }
0x36aa   :  { %10616 = vmatmul.mubr.msk.bf16.vlgmr.msra.gmra.mxu1 %vm237_vm2, %v5418_v5 }
0x36ab   :  { %10627 = vmatprep.mubr.msk.bf16.mxu1 %vm11289_vm0, %v11288_v3  ;;  %10626 = vmatpush3.bf16.msra.mxu1 %v5522_v10 }
0x36ac   :  { %10637 = vmatprep.subr.bf16.mxu1 %v11288_v3 }
0x36b7   :  { %5468 = vrot.lane.b32.xlu1 %v12420_v59, %s11296_s23 }
0x36bb   :  { %5569 = vrot.lane.b32.xlu1 %v12416_v29, %s13286_s1 }
0x36bf   :  { %5567 = vrot.lane.b32.xlu1 %v12427_v0, %s13286_s1  ;;  %s13328_s1 = sld [smem:[#allocation24_spill]] }
0x372f   :  { %v5413_v53 = vpop.xlane.xlu1 %5412 }
0x3730   :  { %11130 = vrcp.f32 %v5413_v53 }
0x3733   :  { %v5469_v7 = vpop.permute.xlu1 %5468 }
0x3734   :  { %v5474_v21 = vsel %vm362_vm3, %v5469_v7, 0  ;;  %v4637_v7 = vld [vmem:[%s13319_s30 + $0x18] sm:$0xff] }
0x3735   :  { %10620 = vmatpush3.bf16.msra.mxu0 %v5474_v21  ;;  %v5788_v21 = vpack.c.bf16 %v4637_v7, %v4637_v7  ;;  %v5899_v7 = vld [vmem:[%s13321_s7 + $0x38] sm:$0xff] }
0x3736   :  { %10631 = vmatprep.subr.bf16.mxu0 %v11288_v3 }
0x3737   :  { %v5570_v58 = vpop.permute.xlu1 %5569 }
0x3738   :  { %v5575_v0 = vsel %vm237_vm2, %v5570_v58, 0 }
0x373b   :  { %v5568_v48 = vpop.permute.xlu1 %5567 }
0x373d   :  { %v11131_v18 = vpop.eup %11130 }
0x373e   :  { %v5417_v24 = vmul.f32 %v11131_v18, %v11127_v50  ;;  %v5793_v18 = vsel %vm362_vm3, %v5788_v21, 0  ;;  %v5892_v21 = vld [vmem:[%s13321_s7] sm:$0xff] }
0x3740   :  { %v5419_v60 = vpack.c.bf16 %v5417_v24, %v5417_v24 }
0x3742   :  { %10622 = vmatmul.mubr.msk.bf16.vlgmr.msra.gmra.mxu0 %vm237_vm2, %v5419_v60 }
0x3743   :  { %10632 = vmatpush3.bf16.xpose.msra.mxu0 %v5575_v0  ;;  %10633 = vmatprep.mubr.msk.bf16.mxu0 %vm11289_vm0, %v11288_v3 }
0x3744   :  { %10643 = vmatprep.subr.bf16.mxu0 %v11288_v3 }
0x374a   :  { %10634 = vmatmul.mubr.msk.bf16.vlgmr.msra.gmra.mxu0 %vm237_vm2, %v5568_v48 }
0x374b   :  { %10645 = vmatprep.mubr.msk.bf16.mxu0 %vm11289_vm0, %v11288_v3 }
0x376a   :  { %v5462_v61 = vpop.f32.mrf.mxu1 }
0x376c   :  { %v10617_v36 = vpop.f32.mrf.mxu1 }
0x376e   :  { %v5465_v15 = vpop.f32.mrf.mxu1 }
0x3770   :  { %v10618_v63 = vpop.f32.mrf.mxu1 }
0x3802   :  { %v5510_v1 = vpop.f32.mrf.mxu0 }
0x3803   :  { %v5516_v4 = vpack.c.bf16 %v5510_v1, %v5462_v61 }
0x3804   :  { %v10623_v11 = vpop.f32.mrf.mxu0 }
0x3805   :  { %10628 = vmatmul.mubr.msk.bf16.vlgmr.msra.gmra.mxu1 %vm237_vm2, %v5516_v4 }
0x3806   :  { %10638 = vmatpush3.bf16.xpose.msra.mxu1 %v5625_v13  ;;  %v5513_v6 = vpop.f32.mrf.mxu0  ;;  %10639 = vmatprep.mubr.msk.bf16.mxu1 %vm11289_vm0, %v11288_v3 }
0x3807   :  { %10649 = vmatprep.subr.bf16.mxu1 %v11288_v3  ;;  %v9522_v6 = vld [vmem:[%s13320_s6] ss:$0 sm:$0xff] }
0x3808   :  { %v10624_v34 = vpop.f32.mrf.mxu0 }
0x380a   :  { %v5611_v17 = vpop.f32.mrf.mxu0 }
0x380b   :  { %v5667_v22 = vsel %vm237_vm2, %v5611_v17, -inf }
0x380c   :  { %5668 = vmax.xlane.f32.xlu1 %v5667_v22  ;;  %v10635_v25 = vpop.f32.mrf.mxu0 }
0x380d   :  { %10640 = vmatmul.mubr.msk.bf16.vlgmr.msra.gmra.mxu1 %vm237_vm2, %v5618_v23 }
0x380e   :  { %v5614_v33 = vpop.f32.mrf.mxu0  ;;  %10651 = vmatprep.mubr.msk.bf16.mxu1 %vm11289_vm0, %v11288_v3 }
0x3810   :  { %v10636_v56 = vpop.f32.mrf.mxu0 }
0x3895   :  { %v5669_v57 = vpop.xlane.xlu1 %5668 }
0x3896   :  { %v5673_v35 = vsub.f32 %v5611_v17, %v5669_v57 }
0x3898   :  { %v5675_v37 = vmul.f32 1.442695, %v5673_v35 }
0x389a   :  { %11132 = vpow2.f32 %v5675_v37 }
0x38a7   :  { %v11133_v47 = vpop.eup %11132 }
0x38a8   :  { %v5679_v51 = vsel %vm237_vm2, %v11133_v47, 0.0 }
0x38c5   :  { %v5558_v40 = vpop.f32.mrf.mxu1 }
0x38c6   :  { %v5565_v27 = vadd.f32 %v5558_v40, %v5294_v38 }
0x38c7   :  { %v10629_v41 = vpop.f32.mrf.mxu1 }
0x38c9   :  { %v5561_v20 = vpop.f32.mrf.mxu1 }
0x38ca   :  { %v5566_v16 = vadd.f32 %v5561_v20, %v5295_v32 }
0x38cb   :  { %v10630_v2 = vpop.f32.mrf.mxu1 }
0x38cd   :  { %v5661_v43 = vpop.f32.mrf.mxu1 }
0x38ce   :  { %v5670_v39 = vsel %vm237_vm2, %v5661_v43, -inf }
0x38cf   :  { %5671 = vmax.xlane.f32.xlu0 %v5670_v39  ;;  %v10641_v49 = vpop.f32.mrf.mxu1 }
0x38d0   :  { %v5905_v49 = vld [vmem:[%s13321_s7 + $0x68] sm:$0xff] }
0x38d1   :  { %v5664_v50 = vpop.f32.mrf.mxu1 }
0x38d2   :  { %v5903_v50 = vld [vmem:[%s13321_s7 + $0x58] sm:$0xff] }
0x38d3   :  { %5680 = vadd.xlane.f32.xlu0 %v5679_v51  ;;  %v10642_v30 = vpop.f32.mrf.mxu1 }
0x38d4   :  { %v5907_v30 = vld [vmem:[%s13321_s7 + $0x78] sm:$0xff] }
0x38e9   :  { %5691 = vrot.lane.b32.xlu0 %v12416_v29, %s11298_s28 }
0x3958   :  { %v5672_v26 = vpop.xlane.xlu0 %5671 }
0x3959   :  { %v5674_v52 = vsub.f32 %v5661_v43, %v5672_v26  ;;  %v5900_v26 = vld [vmem:[%s13321_s7 + $0x40] sm:$0xff] }
0x395b   :  { %v5677_v31 = vmul.f32 1.442695, %v5674_v52  ;;  %v5904_v52 = vld [vmem:[%s13321_s7 + $0x60] sm:$0xff] }
0x395c   :  { %v5681_v62 = vpop.xlane.xlu0 %5680 }
0x395d   :  { %11134 = vpow2.f32 %v5677_v31  ;;  %v5982_v31 = vpack.c.bf16 %v5907_v30, %v5903_v50  ;;  %v5953_v30 = vld [vmem:[%s13322_s10 + $0x160] sm:$0xff] }
0x395e   :  { %11136 = vrcp.f32 %v5681_v62  ;;  %v5979_v62 = vpack.c.bf16 %v5904_v52, %v5900_v26  ;;  %v5954_v26 = vld [vmem:[%s13322_s10 + $0x168] sm:$0xff]  ;;  %v5935_v52 = vld [vmem:[%s13322_s10 + $0xd0] sm:$0xff] }
0x3960   :  { %v5692_v9 = vpop.permute.xlu0 %5691 }
0x3961   :  { %v5697_v5 = vsel %vm362_vm3, %v5692_v9, 0  ;;  %v5902_v9 = vld [vmem:[%s13321_s7 + $0x50] sm:$0xff] }
0x3962   :  { %10644 = vmatpush3.bf16.msra.mxu0 %v5697_v5  ;;  %v5906_v5 = vld [vmem:[%s13321_s7 + $0x70] sm:$0xff] }
0x3963   :  { %10655 = vmatprep.subr.bf16.mxu0 %v11288_v3 }
0x396a   :  { %v11135_v55 = vpop.eup %11134 }
0x396b   :  { %v11137_v12 = vpop.eup %11136  ;;  %v5682_v10 = vsel %vm237_vm2, %v11135_v55, 0.0 }
0x396c   :  { %v5687_v53 = vmul.f32 %v11137_v12, %v11133_v47  ;;  %5683 = vadd.xlane.f32.xlu1 %v5682_v10  ;;  %v5901_v47 = vld [vmem:[%s13321_s7 + $0x48] sm:$0xff] }
0x396d   :  { %v5980_v51 = vpack.c.bf16 %v5905_v49, %v5901_v47  ;;  %v5893_v12 = vld [vmem:[%s13321_s7 + $0x8] sm:$0xff] }
0x396e   :  { %v5689_v29 = vpack.c.bf16 %v5687_v53, %v5687_v53  ;;  %v5897_v10 = vld [vmem:[%s13321_s7 + $0x28] sm:$0xff]  ;;  %v5895_v53 = vld [vmem:[%s13321_s7 + $0x18] sm:$0xff] }
0x396f   :  { %v5922_v47 = vld [vmem:[%s13322_s10 + $0x68] sm:$0xff] }
0x3970   :  { %10646 = vmatmul.mubr.msk.bf16.vlgmr.msra.gmra.mxu0 %vm237_vm2, %v5689_v29  ;;  %v5976_v29 = vpack.c.bf16 %v5897_v10, %v5893_v12  ;;  %v5919_v12 = vld [vmem:[%s13322_s10 + $0x50] sm:$0xff]  ;;  %v5920_v10 = vld [vmem:[%s13322_s10 + $0x58] sm:$0xff] }
0x3971   :  { %10657 = vmatprep.mubr.msk.bf16.mxu0 %vm11289_vm0, %v11288_v3  ;;  %10656 = vmatpush3.bf16.msra.mxu0 %v5793_v18  ;;  %v5896_v18 = vld [vmem:[%s13321_s7 + $0x20] sm:$0xff] }
0x3972   :  { %6041 = vmatprep.subr.bf16.mxu0 %v5982_v31  ;;  %v5936_v31 = vld [vmem:[%s13322_s10 + $0xd8] sm:$0xff] }
0x397d   :  { %5739 = vrot.lane.b32.xlu1 %v12420_v59, %s11298_s28 }
0x39f5   :  { %v5684_v24 = vpop.xlane.xlu1 %5683 }
0x39f6   :  { %11138 = vrcp.f32 %v5684_v24  ;;  %v5978_v24 = vpack.c.bf16 %v5899_v7, %v5895_v53  ;;  %v6126_v53 = vpack.c.bf16 %v5936_v31, %v5935_v52  ;;  %v5951_v7 = vld [vmem:[%s13322_s10 + $0x150] sm:$0xff]  ;;  %v5912_v31 = vld [vmem:[%s13322_s10 + $0x18] sm:$0xff] }
0x39f7   :  { %v5911_v52 = vld [vmem:[%s13322_s10 + $0x10] sm:$0xff] }
0x39f9   :  { %v5740_v58 = vpop.permute.xlu1 %5739 }
0x39fa   :  { %v5745_v60 = vsel %vm362_vm3, %v5740_v58, 0  ;;  %v5975_v58 = vpack.c.bf16 %v5896_v18, %v5892_v21  ;;  %v5952_v21 = vld [vmem:[%s13322_s10 + $0x158] sm:$0xff]  ;;  %v5933_v18 = vld [vmem:[%s13322_s10 + $0xc0] sm:$0xff] }
0x39fb   :  { %10650 = vmatpush3.bf16.msra.mxu1 %v5745_v60  ;;  %v5894_v60 = vld [vmem:[%s13321_s7 + $0x10] sm:$0xff] }
0x39fc   :  { %5998 = vmatprep.subr.bf16.mxu1 %v5980_v51 }
0x3a03   :  { %v11139_v0 = vpop.eup %11138 }
0x3a04   :  { %v5688_v48 = vmul.f32 %v11139_v0, %v11135_v55  ;;  %v5981_v55 = vpack.c.bf16 %v5906_v5, %v5902_v9  ;;  %v5898_v0 = vld [vmem:[%s13321_s7 + $0x30] sm:$0xff]  ;;  %v5968_v9 = vld [vmem:[%s13322_s10 + $0x1d8] sm:$0xff] }
0x3a06   :  { %v5690_v61 = vpack.c.bf16 %v5688_v48, %v5688_v48  ;;  %v5977_v48 = vpack.c.bf16 %v5898_v0, %v5894_v60  ;;  %v5966_v60 = vld [vmem:[%s13322_s10 + $0x1c8] sm:$0xff]  ;;  %v6118_v0 = vpack.c.bf16 %v5920_v10, %v5919_v12  ;;  %v5925_v10 = vld [vmem:[%s13322_s10 + $0x80] sm:$0xff] }
0x3a08   :  { %10652 = vmatmul.mubr.msk.bf16.vlgmr.msra.gmra.mxu1 %vm237_vm2, %v5690_v61  ;;  %v5939_v61 = vld [vmem:[%s13322_s10 + $0xf0] sm:$0xff] }
0x3a09   :  { %6018 = vmatprep.mubr.bf16.mxu1 %v11301_v42  ;;  %5999 = vmatpush1.bf16.msra.mxu1 %v5979_v62  ;;  %v5967_v62 = vld [vmem:[%s13322_s10 + $0x1d0] sm:$0xff] }
0x3a0a   :  { %6000 = vmatprep.subr.bf16.mxu1 %v5976_v29  ;;  %v6142_v29 = vpack.c.bf16 %v5968_v9, %v5967_v62  ;;  %v6114_v9 = vpack.c.bf16 %v5912_v31, %v5911_v52 }
0x3a0d   :  { %6001 = vmatpush1.bf16.msra.mxu1 %v5975_v58  ;;  %v5965_v58 = vld [vmem:[%s13322_s10 + $0x1c0] sm:$0xff] }
0x3a30   :  { %v5733_v59 = vpop.f32.mrf.mxu0 }
0x3a32   :  { %v10647_v36 = vpop.f32.mrf.mxu0 }
0x3a33   :  { %v5971_v36 = vld [vmem:[%s13322_s10 + $0x1f0] sm:$0xff] }
0x3a34   :  { %v5736_v15 = vpop.f32.mrf.mxu0 }
0x3a36   :  { %v10648_v63 = vpop.f32.mrf.mxu0 }
0x3a37   :  { %v5972_v63 = vld [vmem:[%s13322_s10 + $0x1f8] sm:$0xff] }
0x3ac8   :  { %v5781_v19 = vpop.f32.mrf.mxu1 }
0x3ac9   :  { %v5787_v1 = vpack.c.bf16 %v5781_v19, %v5733_v59  ;;  %v5940_v59 = vld [vmem:[%s13322_s10 + $0xf8] sm:$0xff]  ;;  %v6144_v19 = vpack.c.bf16 %v5972_v63, %v5971_v36  ;;  %v5949_v63 = vld [vmem:[%s13322_s10 + $0x140] sm:$0xff] }
0x3aca   :  { %v10653_v4 = vpop.f32.mrf.mxu1  ;;  %v6128_v15 = vpack.c.bf16 %v5940_v59, %v5939_v61  ;;  %v5917_v61 = vld [vmem:[%s13322_s10 + $0x40] sm:$0xff]  ;;  %v5918_v59 = vld [vmem:[%s13322_s10 + $0x48] sm:$0xff] }
0x3acb   :  { %10658 = vmatmul.mubr.msk.bf16.vlgmr.msra.gmra.mxu0 %vm237_vm2, %v5787_v1 }
0x3acc   :  { %v5784_v11 = vpop.f32.mrf.mxu1  ;;  %6061 = vmatprep.mubr.bf16.mxu0 %v11301_v42  ;;  %6042 = vmatpush1.bf16.msra.mxu0 %v5981_v55  ;;  %v6135_v55 = vpack.c.bf16 %v5954_v26, %v5953_v30  ;;  %v5960_v26 = vld [vmem:[%s13322_s10 + $0x198] sm:$0xff] }
0x3acd   :  { %6043 = vmatprep.subr.bf16.mxu0 %v5978_v24  ;;  %9961 = vmatprep.subr.bf16.mxu1 %v6128_v15  ;;  %v5934_v24 = vld [vmem:[%s13322_s10 + $0xc8] sm:$0xff]  ;;  %v6141_v15 = vpack.c.bf16 %v5966_v60, %v5965_v58 }
0x3ace   :  { %v10654_v13 = vpop.f32.mrf.mxu1  ;;  %v6125_v36 = vpack.c.bf16 %v5934_v24, %v5933_v18  ;;  %v5909_v18 = vld [vmem:[%s13322_s10] sm:$0xff]  ;;  %v5910_v24 = vld [vmem:[%s13322_s10 + $0x8] sm:$0xff] }
0x3acf   :  { %v6113_v60 = vpack.c.bf16 %v5910_v24, %v5909_v18 }
0x3ad0   :  { %6044 = vmatpush1.bf16.msra.mxu0 %v5977_v48  ;;  %v6134_v48 = vpack.c.bf16 %v5952_v21, %v5951_v7  ;;  %v5958_v21 = vld [vmem:[%s13322_s10 + $0x188] sm:$0xff] }
0x3ad1   :  { %9983 = vmatprep.subr.bf16.mxu0 %v6144_v19  ;;  %v5950_v19 = vld [vmem:[%s13322_s10 + $0x148] sm:$0xff] }
0x3b8b   :  { %v5829_v34 = vpop.f32.mrf.mxu0 }
0x3b8c   :  { %v5836_v17 = vadd.f32 %v5829_v34, %v5565_v27 }
0x3b8d   :  { %v10659_v22 = vpop.f32.mrf.mxu0 }
0x3b8e   :  { %v5844_v23 = vadd.f32 %v9522_v6, %v5836_v17 }
0x3b8f   :  { %v5832_v25 = vpop.f32.mrf.mxu0 }
0x3b90   :  { %v5837_v33 = vadd.f32 %v5832_v25, %v5566_v16  ;;  %v5846_v56 = vadd.f32 %v5844_v23, %v12407_v54  ;;  %v9523_v23 = vld [vmem:[%s13323_s11] ss:$0 sm:$0xff] }
0x3b91   :  { %v10660_v57 = vpop.f32.mrf.mxu0 }
0x3b92   :  { %v5845_v35 = vadd.f32 %v9522_v6, %v5837_v33  ;;  %v5850_v37 = vsel %vm175_vm1, %v5846_v56, 0.0  ;;  %v9524_v57 = vld [vmem:[%s13324_s13] ss:$0 sm:$0xff] }
0x3b93   :  { %5851 = vadd.xlane.f32.xlu1 %v5850_v37  ;;  %v5924_v37 = vld [vmem:[%s13322_s10 + $0x78] sm:$0xff] }
0x3b94   :  { %v5847_v38 = vadd.f32 %v5845_v35, %v12409_v28  ;;  %v5923_v35 = vld [vmem:[%s13322_s10 + $0x70] sm:$0xff] }
0x3b96   :  { %v5853_v40 = vsel %vm175_vm1, %v5847_v38, 0.0 }
0x3b97   :  { %5854 = vadd.xlane.f32.xlu0 %v5853_v40  ;;  %v5955_v40 = vld [vmem:[%s13322_s10 + $0x170] sm:$0xff] }
0x3c1c   :  { %v5852_v27 = vpop.xlane.xlu1 %5851 }
0x3c1d   :  { %v5856_v41 = vmul.f32 0.03125, %v5852_v27  ;;  %v5956_v27 = vld [vmem:[%s13322_s10 + $0x178] sm:$0xff] }
0x3c1f   :  { %v5858_v32 = vsub.f32 %v5846_v56, %v5856_v41  ;;  %v5937_v41 = vld [vmem:[%s13322_s10 + $0xe0] sm:$0xff] }
0x3c20   :  { %v5855_v54 = vpop.xlane.xlu0 %5854 }
0x3c21   :  { %v5857_v20 = vmul.f32 0.03125, %v5855_v54  ;;  %v5860_v16 = vmul.f32 %v5858_v32, %v5858_v32  ;;  %v5938_v54 = vld [vmem:[%s13322_s10 + $0xe8] sm:$0xff] }
0x3c22   :  { %v6127_v50 = vpack.c.bf16 %v5938_v54, %v5937_v41  ;;  %v5962_v41 = vld [vmem:[%s13322_s10 + $0x1a8] sm:$0xff]  ;;  %v5913_v54 = vld [vmem:[%s13322_s10 + $0x20] sm:$0xff] }
0x3c23   :  { %v5859_v2 = vsub.f32 %v5847_v38, %v5857_v20  ;;  %v5862_v43 = vsel %vm175_vm1, %v5860_v16, 0.0  ;;  %v5970_v20 = vld [vmem:[%s13322_s10 + $0x1e8] sm:$0xff] }
0x3c24   :  { %5863 = vadd.xlane.f32.xlu0 %v5862_v43  ;;  %v6120_v43 = vpack.c.bf16 %v5924_v37, %v5923_v35  ;;  %v5929_v37 = vld [vmem:[%s13322_s10 + $0xa0] sm:$0xff] }
0x3c25   :  { %v5861_v28 = vmul.f32 %v5859_v2, %v5859_v2 }
0x3c27   :  { %v5865_v39 = vsel %vm175_vm1, %v5861_v28, 0.0  ;;  %v6136_v28 = vpack.c.bf16 %v5956_v27, %v5955_v40  ;;  %v5961_v40 = vld [vmem:[%s13322_s10 + $0x1a0] sm:$0xff] }
0x3c28   :  { %5866 = vadd.xlane.f32.xlu1 %v5865_v39  ;;  %v5921_v39 = vld [vmem:[%s13322_s10 + $0x60] sm:$0xff] }
0x3c29   :  { %v6119_v5 = vpack.c.bf16 %v5922_v47, %v5921_v39  ;;  %v5946_v39 = vld [vmem:[%s13322_s10 + $0x128] sm:$0xff] }
0x3cad   :  { %v5864_v1 = vpop.xlane.xlu0 %5863 }
0x3cae   :  { %v5868_v4 = vmul.f32 0.03125, %v5864_v1  ;;  %v5931_v1 = vld [vmem:[%s13322_s10 + $0xb0] sm:$0xff] }
0x3cb0   :  { %v5870_v11 = vadd.f32 1e-05, %v5868_v4  ;;  %v5932_v4 = vld [vmem:[%s13322_s10 + $0xb8] sm:$0xff] }
0x3cb1   :  { %v5867_v13 = vpop.xlane.xlu1 %5866 }
0x3cb2   :  { %11140 = vrsqrt.f32 %v5870_v11  ;;  %v5869_v6 = vmul.f32 0.03125, %v5867_v13  ;;  %v5963_v11 = vld [vmem:[%s13322_s10 + $0x1b0] sm:$0xff]  ;;  %v5964_v13 = vld [vmem:[%s13322_s10 + $0x1b8] sm:$0xff] }
0x3cb4   :  { %v5871_v34 = vadd.f32 1e-05, %v5869_v6  ;;  %v6117_v6 = vpack.c.bf16 %v5918_v59, %v5917_v61  ;;  %v5908_v59 = vld [vmem:[%s13325_s8] sm:$0xf] }
0x3cb6   :  { %11142 = vrsqrt.f32 %v5871_v34  ;;  %v6133_v34 = vpack.c.bf16 %v5950_v19, %v5949_v63  ;;  %v6080_v63 = vrot.slane %v5908_v59, %v11810_v44  ;;  %v6088_v19 = vrot.slane %v5908_v59, %v11812_v45 }
0x3cbf   :  { %v11141_v17 = vpop.eup %11140 }
0x3cc0   :  { %v5874_v22 = vmul.f32 %v11141_v17, %v5858_v32  ;;  %v5969_v32 = vld [vmem:[%s13322_s10 + $0x1e0] sm:$0xff]  ;;  %v5915_v17 = vld [vmem:[%s13322_s10 + $0x30] sm:$0xff] }
0x3cc1   :  { %v6143_v51 = vpack.c.bf16 %v5970_v20, %v5969_v32  ;;  %v5914_v32 = vld [vmem:[%s13322_s10 + $0x28] sm:$0xff]  ;;  %v6139_v20 = vpack.c.bf16 %v5962_v41, %v5961_v40 }
0x3cc2   :  { %v5882_v56 = vmul.f32 %v9523_v23, %v5874_v22  ;;  %v6124_v22 = vpack.c.bf16 %v5932_v4, %v5931_v1  ;;  %v6076_v1 = vrot.slane %v5908_v59, %v11814_v14  ;;  %v6084_v4 = vrot.slane %v5908_v59, %v11816_v46 }
0x3cc3   :  { %v11143_v25 = vpop.eup %11142 }
0x3cc4   :  { %v5875_v33 = vmul.f32 %v11143_v25, %v5859_v2  ;;  %v12635_v16 = vadd.f32 %v9524_v57, %v5882_v56  ;;  %v5916_v25 = vld [vmem:[%s13322_s10 + $0x38] sm:$0xff] }
0x3cc5   :  { %v5948_v56 = vld [vmem:[%s13322_s10 + $0x138] sm:$0xff] }
0x3cc6   :  { %v5883_v38 = vmul.f32 %v9523_v23, %v5875_v33  ;;  %v6140_v23 = vpack.c.bf16 %v5964_v13, %v5963_v11  ;;  %v5947_v33 = vld [vmem:[%s13322_s10 + $0x130] sm:$0xff] }
0x3cc7   :  { %v6132_v35 = vpack.c.bf16 %v5948_v56, %v5947_v33 }
0x3cc8   :  { %v12637_v2 = vadd.f32 %v9524_v57, %v5883_v38  ;;  %v6116_v57 = vpack.c.bf16 %v5916_v25, %v5915_v17  ;;  %v5930_v38 = vld [vmem:[%s13322_s10 + $0xa8] sm:$0xff] }
0x3cc9   :  { %v6123_v27 = vpack.c.bf16 %v5930_v38, %v5929_v37 }
0x3cca   :  { %v5974_v49 = vpack.c.bf16 %v12637_v2, %v12635_v16 }
0x3ccc   :  { %9525 = vmatmul.mubr.msk.bf16.vlgmr.msra.gmra.mxu1 %vm175_vm1, %v5974_v49  ;;  %9526 = vmatmul.mubr.msk.bf16.vlgmr.msra.gmra.mxu0 %vm175_vm1, %v5974_v49  ;;  %v5927_v49 = vld [vmem:[%s13322_s10 + $0x90] sm:$0xff] }
0x3ccd   :  { %9962 = vmatpush3.bf16.msra.mxu1 %v6120_v43  ;;  %9984 = vmatpush3.bf16.msra.mxu0 %v6136_v28  ;;  %v6115_v43 = vpack.c.bf16 %v5914_v32, %v5913_v54  ;;  %v5945_v28 = vld [vmem:[%s13322_s10 + $0x120] sm:$0xff] }
0x3cce   :  { %9963 = vmatprep.subr.bf16.mxu1 %v6127_v50  ;;  %9985 = vmatprep.subr.bf16.mxu0 %v6143_v51  ;;  %v6131_v47 = vpack.c.bf16 %v5946_v39, %v5945_v28  ;;  %v5928_v50 = vld [vmem:[%s13322_s10 + $0x98] sm:$0xff]  ;;  %v5959_v51 = vld [vmem:[%s13322_s10 + $0x190] sm:$0xff] }
0x3ccf   :  { %v6122_v30 = vpack.c.bf16 %v5928_v50, %v5927_v49  ;;  %v6138_v62 = vpack.c.bf16 %v5960_v26, %v5959_v51 }
0x3cd1   :  { %9964 = vmatpush3.bf16.msra.mxu1 %v6119_v5  ;;  %9986 = vmatpush3.bf16.msra.mxu0 %v6135_v55  ;;  %v5943_v5 = vld [vmem:[%s13322_s10 + $0x110] sm:$0xff]  ;;  %v5944_v55 = vld [vmem:[%s13322_s10 + $0x118] sm:$0xff] }
0x3cd2   :  { %9965 = vmatprep.subr.bf16.mxu1 %v6126_v53  ;;  %9987 = vmatprep.subr.bf16.mxu0 %v6142_v29  ;;  %v6130_v12 = vpack.c.bf16 %v5944_v55, %v5943_v5  ;;  %v5926_v53 = vld [vmem:[%s13322_s10 + $0x88] sm:$0xff]  ;;  %v5957_v29 = vld [vmem:[%s13322_s10 + $0x180] sm:$0xff] }
0x3cd3   :  { %v6121_v7 = vpack.c.bf16 %v5926_v53, %v5925_v10  ;;  %v6137_v58 = vpack.c.bf16 %v5958_v21, %v5957_v29 }
0x3cd5   :  { %9966 = vmatpush3.bf16.msra.mxu1 %v6118_v0  ;;  %9988 = vmatpush3.bf16.msra.mxu0 %v6134_v48  ;;  %v5941_v0 = vld [vmem:[%s13322_s10 + $0x100] sm:$0xff]  ;;  %v5942_v48 = vld [vmem:[%s13322_s10 + $0x108] sm:$0xff] }
0x3cd6   :  { %9967 = vmatprep.subr.bf16.mxu1 %v6125_v36  ;;  %9989 = vmatprep.subr.bf16.mxu0 %v6141_v15  ;;  %v6129_v61 = vpack.c.bf16 %v5942_v48, %v5941_v0 }
0x3cd9   :  { %9968 = vmatpush3.bf16.msra.mxu1 %v6117_v6  ;;  %9990 = vmatpush3.bf16.msra.mxu0 %v6133_v34 }
0x3cda   :  { %9969 = vmatprep.subr.bf16.mxu1 %v6124_v22  ;;  %9991 = vmatprep.subr.bf16.mxu0 %v6140_v23 }
0x3cdd   :  { %9970 = vmatpush3.bf16.msra.mxu1 %v6116_v57  ;;  %9992 = vmatpush3.bf16.msra.mxu0 %v6132_v35 }
0x3cde   :  { %9971 = vmatprep.subr.bf16.mxu1 %v6123_v27  ;;  %9993 = vmatprep.subr.bf16.mxu0 %v6139_v20 }
0x3ce1   :  { %9972 = vmatpush3.bf16.msra.mxu1 %v6115_v43  ;;  %9994 = vmatpush3.bf16.msra.mxu0 %v6131_v47 }
0x3ce2   :  { %9973 = vmatprep.subr.bf16.mxu1 %v6122_v30  ;;  %9995 = vmatprep.subr.bf16.mxu0 %v6138_v62 }
0x3ce5   :  { %9974 = vmatpush3.bf16.msra.mxu1 %v6114_v9  ;;  %9996 = vmatpush3.bf16.msra.mxu0 %v6130_v12  ;;  %v9527_v9 = vld [vmem:[%s13326_s14] ss:$0 sm:$0xff] }
0x3ce6   :  { %9975 = vmatprep.subr.bf16.mxu1 %v6121_v7  ;;  %9997 = vmatprep.subr.bf16.mxu0 %v6137_v58 }
0x3ce9   :  { %9976 = vmatpush3.bf16.msra.mxu1 %v6113_v60  ;;  %9998 = vmatpush3.bf16.msra.mxu0 %v6129_v61 }
0x3cea   :  { %10661 = vmatprep.subr.bf16.mxu1 %v11288_v3  ;;  %10669 = vmatprep.subr.bf16.mxu0 %v11288_v3 }
0x3d8c   :  { %v6020_v36 = vpop.f32.mrf.mxu1  ;;  %v6063_v15 = vpop.f32.mrf.mxu0 }
0x3d8d   :  { %v6093_v33 = vadd.f32 %v6076_v1, %v6020_v36  ;;  %v6095_v56 = vadd.f32 %v6084_v4, %v6063_v15 }
0x3d8e   :  { %v6022_v11 = vpop.f32.mrf.mxu1  ;;  %v6065_v13 = vpop.f32.mrf.mxu0 }
0x3d8f   :  { %v6094_v17 = vadd.f32 %v6080_v63, %v6022_v11  ;;  %v6096_v22 = vadd.f32 %v6088_v19, %v6065_v13  ;;  %v6101_v43 = vmax.f32 %v6093_v33, 0.0  ;;  %v6103_v28 = vmax.f32 %v6095_v56, 0.0  ;;  %v9533_v13 = vld [vmem:[%s11393_s27 + $0x38] sm:$0xff] }
0x3d90   :  { %v6024_v6 = vpop.f32.mrf.mxu1  ;;  %v6067_v34 = vpop.f32.mrf.mxu0 }
0x3d91   :  { %v6097_v23 = vadd.f32 %v6076_v1, %v6024_v6  ;;  %v6099_v25 = vadd.f32 %v6084_v4, %v6067_v34  ;;  %v6102_v41 = vmax.f32 %v6094_v17, 0.0  ;;  %v6104_v54 = vmax.f32 %v6096_v22, 0.0  ;;  %v9530_v34 = vld [vmem:[%s11393_s27 + $0x20] sm:$0xff]  ;;  %v9531_v17 = vld [vmem:[%s11393_s27 + $0x28] sm:$0xff] }
0x3d92   :  { %v6026_v57 = vpop.f32.mrf.mxu1  ;;  %v6069_v35 = vpop.f32.mrf.mxu0  ;;  %v6296_v22 = vpack.c.bf16 %v9531_v17, %v9530_v34 }
0x3d93   :  { %v6098_v37 = vadd.f32 %v6080_v63, %v6026_v57  ;;  %v6100_v38 = vadd.f32 %v6088_v19, %v6069_v35  ;;  %v6105_v40 = vmax.f32 %v6097_v23, 0.0  ;;  %v6107_v27 = vmax.f32 %v6099_v25, 0.0 }
0x3d95   :  { %v6106_v32 = vmax.f32 %v6098_v37, 0.0  ;;  %v6108_v20 = vmax.f32 %v6100_v38, 0.0  ;;  %v6109_v49 = vpack.c.bf16 %v6105_v40, %v6101_v43  ;;  %v6111_v50 = vpack.c.bf16 %v6107_v27, %v6103_v28  ;;  %v9528_v40 = vld [vmem:[%s13327_s2] ss:$0 sm:$0xff] }
0x3d97   :  { %v6110_v39 = vpack.c.bf16 %v6106_v32, %v6102_v41  ;;  %v6112_v47 = vpack.c.bf16 %v6108_v20, %v6104_v54  ;;  %v9529_v32 = vld [vmem:[%s13328_s1] ss:$0 sm:$0xff] }
0x3d99   :  { %6177 = vmatprep.mubr.bf16.mxu1 %v6110_v39  ;;  %6218 = vmatprep.mubr.bf16.mxu0 %v6112_v47  ;;  %v9541_v47 = vld [vmem:[%s13310_s17 + $0x1] ss:$0 sm:$0xff] }
0x3d9a   :  { %6178 = vmatmul.mubr.bf16.vlgmr.msra.gmra.mxu1 %v6109_v49  ;;  %6219 = vmatmul.mubr.bf16.vlgmr.msra.gmra.mxu0 %v6111_v50 }
0x3d9b   :  { %10665 = vmatprep.mubr.msk.bf16.mxu1 %vm11289_vm0, %v11288_v3  ;;  %10671 = vmatprep.mubr.msk.bf16.mxu0 %vm11289_vm0, %v11288_v3 }
0x3e5a   :  { %v9977_v51 = vpop.f32.mrf.mxu1  ;;  %v9999_v30 = vpop.f32.mrf.mxu0 }
0x3e5c   :  { %v9978_v26 = vpop.f32.mrf.mxu1  ;;  %v10000_v52 = vpop.f32.mrf.mxu0 }
0x3e5d   :  { %v9979_v31 = vadd.f32 %v9978_v26, %v9977_v51  ;;  %v10001_v62 = vadd.f32 %v10000_v52, %v9999_v30 }
0x3e5e   :  { %v9980_v5 = vpop.f32.mrf.mxu1  ;;  %v10002_v55 = vpop.f32.mrf.mxu0 }
0x3e5f   :  { %v6221_v12 = vadd.f32 %v10001_v62, %v9979_v31 }
0x3e60   :  { %v9981_v10 = vpop.f32.mrf.mxu1  ;;  %v10003_v53 = vpop.f32.mrf.mxu0 }
0x3e61   :  { %v6233_v29 = vadd.f32 %v9527_v9, %v6221_v12  ;;  %v9982_v7 = vadd.f32 %v9981_v10, %v9980_v5  ;;  %v10004_v21 = vadd.f32 %v10003_v53, %v10002_v55 }
0x3e63   :  { %v6224_v18 = vadd.f32 %v10004_v21, %v9982_v7  ;;  %v6235_v24 = vadd.f32 %v6233_v29, %v12635_v16 }
0x3e65   :  { %v6234_v58 = vadd.f32 %v9527_v9, %v6224_v18  ;;  %v6239_v60 = vsel %vm175_vm1, %v6235_v24, 0.0 }
0x3e66   :  { %6240 = vadd.xlane.f32.xlu0 %v6239_v60 }
0x3e67   :  { %v6236_v0 = vadd.f32 %v6234_v58, %v12637_v2  ;;  %v9532_v2 = vld [vmem:[%s11393_s27 + $0x30] sm:$0xff]  ;;  %s13329_s27 = smov 104  }
0x3e68   :  { %v6297_v6 = vpack.c.bf16 %v9533_v13, %v9532_v2 }
0x3e69   :  { %v6242_v48 = vsel %vm175_vm1, %v6236_v0, 0.0 }
0x3e6a   :  { %6243 = vadd.xlane.f32.xlu1 %v6242_v48  ;;  %10662 = vmatpush3.bf16.msra.mxu1 %v6297_v6 }
0x3e6b   :  { %10663 = vmatprep.subr.bf16.mxu1 %v11288_v3 }
0x3e6e   :  { %10664 = vmatpush3.bf16.msra.mxu1 %v6296_v22 }
0x3e6f   :  { %10675 = vmatprep.subr.bf16.mxu1 %v11288_v3 }
0x3eef   :  { %v6241_v61 = vpop.xlane.xlu0 %6240 }
0x3ef0   :  { %v6245_v59 = vmul.f32 0.03125, %v6241_v61 }
0x3ef2   :  { %v6247_v36 = vsub.f32 %v6235_v24, %v6245_v59 }
0x3ef3   :  { %v6244_v15 = vpop.xlane.xlu1 %6243 }
0x3ef4   :  { %v6246_v63 = vmul.f32 0.03125, %v6244_v15  ;;  %v6249_v19 = vmul.f32 %v6247_v36, %v6247_v36 }
0x3ef6   :  { %v6248_v16 = vsub.f32 %v6236_v0, %v6246_v63  ;;  %v6251_v1 = vsel %vm175_vm1, %v6249_v19, 0.0 }
0x3ef7   :  { %6252 = vadd.xlane.f32.xlu0 %v6251_v1 }
0x3ef8   :  { %v6250_v4 = vmul.f32 %v6248_v16, %v6248_v16 }
0x3efa   :  { %v6254_v11 = vsel %vm175_vm1, %v6250_v4, 0.0 }
0x3efb   :  { %6255 = vadd.xlane.f32.xlu1 %v6254_v11 }
0x3f80   :  { %v6253_v23 = vpop.xlane.xlu0 %6252 }
0x3f81   :  { %v6257_v25 = vmul.f32 0.03125, %v6253_v23 }
0x3f83   :  { %v6259_v33 = vadd.f32 1e-05, %v6257_v25 }
0x3f84   :  { %v6256_v56 = vpop.xlane.xlu1 %6255 }
0x3f85   :  { %11144 = vrsqrt.f32 %v6259_v33  ;;  %v6258_v57 = vmul.f32 0.03125, %v6256_v56 }
0x3f87   :  { %v6260_v35 = vadd.f32 1e-05, %v6258_v57 }
0x3f89   :  { %11146 = vrsqrt.f32 %v6260_v35 }
0x3f92   :  { %v11145_v37 = vpop.eup %11144 }
0x3f93   :  { %v6263_v38 = vmul.f32 %v11145_v37, %v6247_v36 }
0x3f95   :  { %v6271_v41 = vmul.f32 %v9528_v40, %v6263_v38 }
0x3f96   :  { %v11147_v27 = vpop.eup %11146 }
0x3f97   :  { %v6264_v54 = vmul.f32 %v11147_v27, %v6248_v16  ;;  %v12721_v43 = vadd.f32 %v9529_v32, %v6271_v41 }
0x3f99   :  { %v6272_v20 = vmul.f32 %v9528_v40, %v6264_v54 }
0x3f9b   :  { %v12723_v28 = vadd.f32 %v9529_v32, %v6272_v20  ;;  %v9535_v32 = vld [vmem:[%s13311_s21 + $0x20] sm:$0xff] }
0x3f9c   :  { %v6575_v20 = vpack.c.bf16 %v9535_v32, %v9535_v32 }
0x3f9d   :  { %v6295_v39 = vpack.c.bf16 %v12723_v28, %v12721_v43 }
0x3f9f   :  { %10666 = vmatmul.mubr.msk.bf16.vlgmr.msra.gmra.mxu1 %vm175_vm1, %v6295_v39  ;;  %v6580_v39 = vsel %vm362_vm3, %v6575_v20, 0 }
0x3fa0   :  { %10677 = vmatprep.mubr.msk.bf16.mxu1 %vm11289_vm0, %v11288_v3 }
0x405f   :  { %v6335_v49 = vpop.f32.mrf.mxu1 }
0x4060   :  { %v6348_v50 = vadd.f32 %v9541_v47, %v6335_v49 }
0x4061   :  { %v10667_v51 = vpop.f32.mrf.mxu1 }
0x4062   :  { %v12731_v30 = vpack.c.bf16 %v6348_v50, %v6348_v50  ;;  %v6350_v55 = vmul.f32 0.35355338, %v6348_v50 }
0x4063   :  { %v6338_v26 = vpop.f32.mrf.mxu1 }
0x4064   :  { %v6349_v52 = vadd.f32 %v9541_v47, %v6338_v26  ;;  %6357 = vrot.lane.b32.xlu0 %v12731_v30, %s11290_s0  ;;  %v12742_v53 = vpack.c.bf16 %v6350_v55, %v6350_v55 }
0x4065   :  { %v10668_v31 = vpop.f32.mrf.mxu1 }
0x4066   :  { %v12735_v62 = vpack.c.bf16 %v6349_v52, %v6349_v52  ;;  %v6351_v29 = vmul.f32 0.35355338, %v6349_v52 }
0x4068   :  { %6406 = vrot.lane.b32.xlu1 %v12735_v62, %s11290_s0  ;;  %v12749_v7 = vpack.c.bf16 %v6351_v29, %v6351_v29 }
0x40d6   :  { %v6358_v9 = vpop.permute.xlu0 %6357 }
0x40d7   :  { %v6363_v5 = vsel %vm237_vm2, %v6358_v9, 0 }
0x40d8   :  { %10670 = vmatpush3.bf16.xpose.msra.mxu0 %v6363_v5 }
0x40d9   :  { %10681 = vmatprep.subr.bf16.mxu0 %v11288_v3 }
0x40da   :  { %v6407_v12 = vpop.permute.xlu1 %6406 }
0x40db   :  { %v6412_v10 = vsel %vm237_vm2, %v6407_v12, 0 }
0x40dc   :  { %10676 = vmatpush3.bf16.xpose.msra.mxu1 %v6412_v10 }
0x40dd   :  { %10687 = vmatprep.subr.bf16.mxu1 %v11288_v3 }
0x40df   :  { %10672 = vmatmul.mubr.msk.bf16.vlgmr.msra.gmra.mxu0 %vm237_vm2, %v12742_v53 }
0x40e0   :  { %10683 = vmatprep.mubr.msk.bf16.mxu0 %vm11289_vm0, %v11288_v3 }
0x40e3   :  { %10678 = vmatmul.mubr.msk.bf16.vlgmr.msra.gmra.mxu1 %vm237_vm2, %v12749_v7 }
0x40e4   :  { %10689 = vmatprep.mubr.msk.bf16.mxu1 %vm11289_vm0, %v11288_v3 }
0x419f   :  { %v6399_v21 = vpop.f32.mrf.mxu0 }
0x41a0   :  { %v6454_v18 = vsel %vm237_vm2, %v6399_v21, -inf }
0x41a1   :  { %v10673_v24 = vpop.f32.mrf.mxu0  ;;  %6455 = vmax.xlane.f32.xlu1 %v6454_v18 }
0x41a3   :  { %v6402_v58 = vpop.f32.mrf.mxu0  ;;  %v6448_v60 = vpop.f32.mrf.mxu1 }
0x41a4   :  { %v6457_v0 = vsel %vm237_vm2, %v6448_v60, -inf }
0x41a5   :  { %v10674_v48 = vpop.f32.mrf.mxu0  ;;  %6458 = vmax.xlane.f32.xlu0 %v6457_v0  ;;  %v10679_v61 = vpop.f32.mrf.mxu1 }
0x41a7   :  { %v6451_v59 = vpop.f32.mrf.mxu1 }
0x41a9   :  { %v10680_v36 = vpop.f32.mrf.mxu1 }
0x422a   :  { %v6456_v15 = vpop.xlane.xlu1 %6455 }
0x422b   :  { %v6460_v63 = vsub.f32 %v6399_v21, %v6456_v15 }
0x422d   :  { %v6462_v19 = vmul.f32 1.442695, %v6460_v63 }
0x422e   :  { %v6459_v16 = vpop.xlane.xlu0 %6458 }
0x422f   :  { %11148 = vpow2.f32 %v6462_v19  ;;  %v6461_v1 = vsub.f32 %v6448_v60, %v6459_v16 }
0x4231   :  { %v6464_v4 = vmul.f32 1.442695, %v6461_v1 }
0x4233   :  { %11150 = vpow2.f32 %v6464_v4 }
0x423c   :  { %v11149_v11 = vpop.eup %11148 }
0x423d   :  { %v6466_v2 = vsel %vm237_vm2, %v11149_v11, 0.0 }
0x423e   :  { %6467 = vadd.xlane.f32.xlu0 %v6466_v2 }
0x4240   :  { %v11151_v13 = vpop.eup %11150 }
0x4241   :  { %v6469_v6 = vsel %vm237_vm2, %v11151_v13, 0.0 }
0x4242   :  { %6470 = vadd.xlane.f32.xlu1 %v6469_v6 }
0x4253   :  { %6526 = vrot.lane.b32.xlu1 %v12735_v62, %s11291_s5 }
0x4254   :  { %6478 = vrot.lane.b32.xlu0 %v12731_v30, %s11291_s5  ;;  %s13330_s5 = smov 40  }
0x4257   :  { %6628 = vrot.lane.b32.xlu1 %v12731_v30, %s11293_s16 }
0x4258   :  { %6679 = vrot.lane.b32.xlu0 %v12735_v62, %s11293_s16 }
0x425b   :  { %6626 = vrot.lane.b32.xlu1 %v12742_v53, %s11292_s15 }
0x425c   :  { %6677 = vrot.lane.b32.xlu0 %v12749_v7, %s11292_s15 }
0x42c7   :  { %v6468_v34 = vpop.xlane.xlu0 %6467 }
0x42c8   :  { %11152 = vrcp.f32 %v6468_v34 }
0x42cb   :  { %v6471_v17 = vpop.xlane.xlu1 %6470  ;;  %v6479_v22 = vpop.permute.xlu0 %6478 }
0x42cc   :  { %11154 = vrcp.f32 %v6471_v17  ;;  %v6484_v23 = vsel %vm362_vm3, %v6479_v22, 0 }
0x42cd   :  { %10682 = vmatpush3.bf16.msra.mxu0 %v6484_v23 }
0x42ce   :  { %10693 = vmatprep.subr.bf16.mxu0 %v11288_v3 }
0x42cf   :  { %v6527_v25 = vpop.permute.xlu1 %6526  ;;  %v6680_v50 = vpop.permute.xlu0 %6679 }
0x42d0   :  { %v6532_v33 = vsel %vm362_vm3, %v6527_v25, 0  ;;  %v6685_v5 = vsel %vm237_vm2, %v6680_v50, 0 }
0x42d1   :  { %10688 = vmatpush3.bf16.msra.mxu1 %v6532_v33 }
0x42d2   :  { %10699 = vmatprep.subr.bf16.mxu1 %v11288_v3 }
0x42d3   :  { %v6629_v40 = vpop.permute.xlu1 %6628  ;;  %v6678_v21 = vpop.permute.xlu0 %6677 }
0x42d4   :  { %v6634_v41 = vsel %vm237_vm2, %v6629_v40, 0 }
0x42d5   :  { %v11153_v56 = vpop.eup %11152 }
0x42d6   :  { %v6474_v57 = vmul.f32 %v11153_v56, %v11149_v11 }
0x42d7   :  { %v6627_v54 = vpop.permute.xlu1 %6626 }
0x42d8   :  { %v6476_v35 = vpack.c.bf16 %v6474_v57, %v6474_v57 }
0x42d9   :  { %v11155_v37 = vpop.eup %11154 }
0x42da   :  { %v6475_v38 = vmul.f32 %v11155_v37, %v11151_v13  ;;  %10684 = vmatmul.mubr.msk.bf16.vlgmr.msra.gmra.mxu0 %vm237_vm2, %v6476_v35  ;;  %v9536_v37 = vld [vmem:[%s13311_s21 + $0x28] sm:$0xff] }
0x42db   :  { %10695 = vmatprep.mubr.msk.bf16.mxu0 %vm11289_vm0, %v11288_v3  ;;  %10694 = vmatpush3.bf16.msra.mxu0 %v6580_v39 }
0x42dc   :  { %v6477_v27 = vpack.c.bf16 %v6475_v38, %v6475_v38  ;;  %10705 = vmatprep.subr.bf16.mxu0 %v11288_v3  ;;  %v6848_v38 = vpack.c.bf16 %v9536_v37, %v9536_v37 }
0x42de   :  { %10690 = vmatmul.mubr.msk.bf16.vlgmr.msra.gmra.mxu1 %vm237_vm2, %v6477_v27  ;;  %v6853_v40 = vsel %vm362_vm3, %v6848_v38, 0 }
0x42df   :  { %10700 = vmatpush3.bf16.xpose.msra.mxu1 %v6634_v41  ;;  %10701 = vmatprep.mubr.msk.bf16.mxu1 %vm11289_vm0, %v11288_v3 }
0x42e0   :  { %10711 = vmatprep.subr.bf16.mxu1 %v11288_v3 }
0x42e6   :  { %10702 = vmatmul.mubr.msk.bf16.vlgmr.msra.gmra.mxu1 %vm237_vm2, %v6627_v54 }
0x42e7   :  { %10713 = vmatprep.mubr.msk.bf16.mxu1 %vm11289_vm0, %v11288_v3 }
0x439a   :  { %v6520_v47 = vpop.f32.mrf.mxu0 }
0x439c   :  { %v10685_v49 = vpop.f32.mrf.mxu0 }
0x439e   :  { %v6523_v51 = vpop.f32.mrf.mxu0  ;;  %v6568_v26 = vpop.f32.mrf.mxu1 }
0x439f   :  { %v6574_v52 = vpack.c.bf16 %v6568_v26, %v6520_v47 }
0x43a0   :  { %v10686_v31 = vpop.f32.mrf.mxu0  ;;  %v10691_v9 = vpop.f32.mrf.mxu1 }
0x43a1   :  { %10696 = vmatmul.mubr.msk.bf16.vlgmr.msra.gmra.mxu0 %vm237_vm2, %v6574_v52 }
0x43a2   :  { %10706 = vmatpush3.bf16.xpose.msra.mxu0 %v6685_v5  ;;  %v6571_v55 = vpop.f32.mrf.mxu1  ;;  %10707 = vmatprep.mubr.msk.bf16.mxu0 %vm11289_vm0, %v11288_v3 }
0x43a3   :  { %10717 = vmatprep.subr.bf16.mxu0 %v11288_v3 }
0x43a4   :  { %v10692_v12 = vpop.f32.mrf.mxu1 }
0x43a6   :  { %v6670_v10 = vpop.f32.mrf.mxu1 }
0x43a7   :  { %v6727_v29 = vsel %vm237_vm2, %v6670_v10, -inf }
0x43a8   :  { %6728 = vmax.xlane.f32.xlu1 %v6727_v29  ;;  %v10703_v18 = vpop.f32.mrf.mxu1 }
0x43a9   :  { %10708 = vmatmul.mubr.msk.bf16.vlgmr.msra.gmra.mxu0 %vm237_vm2, %v6678_v21 }
0x43aa   :  { %v6673_v24 = vpop.f32.mrf.mxu1  ;;  %10719 = vmatprep.mubr.msk.bf16.mxu0 %vm11289_vm0, %v11288_v3 }
0x43ac   :  { %v10704_v58 = vpop.f32.mrf.mxu1 }
0x4431   :  { %v6729_v60 = vpop.xlane.xlu1 %6728 }
0x4432   :  { %v6733_v0 = vsub.f32 %v6670_v10, %v6729_v60 }
0x4434   :  { %v6735_v48 = vmul.f32 1.442695, %v6733_v0 }
0x4436   :  { %11156 = vpow2.f32 %v6735_v48 }
0x4443   :  { %v11157_v16 = vpop.eup %11156 }
0x4444   :  { %v6739_v11 = vsel %vm237_vm2, %v11157_v16, 0.0 }
0x4461   :  { %v12798_v61 = vpop.f32.mrf.mxu0 }
0x4463   :  { %v10697_v59 = vpop.f32.mrf.mxu0 }
0x4465   :  { %v12800_v36 = vpop.f32.mrf.mxu0 }
0x4467   :  { %v10698_v15 = vpop.f32.mrf.mxu0 }
0x4469   :  { %v6721_v63 = vpop.f32.mrf.mxu0 }
0x446a   :  { %v6730_v19 = vsel %vm237_vm2, %v6721_v63, -inf }
0x446b   :  { %6731 = vmax.xlane.f32.xlu0 %v6730_v19  ;;  %v10709_v1 = vpop.f32.mrf.mxu0 }
0x446d   :  { %v6724_v4 = vpop.f32.mrf.mxu0 }
0x446f   :  { %v10710_v2 = vpop.f32.mrf.mxu0  ;;  %6740 = vadd.xlane.f32.xlu0 %v6739_v11 }
0x4485   :  { %6751 = vrot.lane.b32.xlu0 %v12731_v30, %s11294_s18 }
0x4489   :  { %6950 = vrot.lane.b32.xlu0 %v12735_v62, %s11296_s23 }
0x448d   :  { %6948 = vrot.lane.b32.xlu0 %v12749_v7, %s11295_s22 }
0x44f4   :  { %v6732_v13 = vpop.xlane.xlu0 %6731 }
0x44f5   :  { %v6734_v6 = vsub.f32 %v6721_v63, %v6732_v13 }
0x44f7   :  { %v6737_v34 = vmul.f32 1.442695, %v6734_v6 }
0x44f8   :  { %v6741_v17 = vpop.xlane.xlu0 %6740 }
0x44f9   :  { %11158 = vpow2.f32 %v6737_v34 }
0x44fa   :  { %11160 = vrcp.f32 %v6741_v17 }
0x44fc   :  { %v6752_v22 = vpop.permute.xlu0 %6751 }
0x44fd   :  { %v6757_v23 = vsel %vm362_vm3, %v6752_v22, 0 }
0x44fe   :  { %10712 = vmatpush3.bf16.msra.mxu1 %v6757_v23 }
0x44ff   :  { %10723 = vmatprep.subr.bf16.mxu1 %v11288_v3 }
0x4500   :  { %v6951_v9 = vpop.permute.xlu0 %6950 }
0x4501   :  { %v6956_v10 = vsel %vm237_vm2, %v6951_v9, 0 }
0x4504   :  { %v6949_v58 = vpop.permute.xlu0 %6948 }
0x4506   :  { %v11159_v25 = vpop.eup %11158 }
0x4507   :  { %v11161_v33 = vpop.eup %11160  ;;  %v6742_v56 = vsel %vm237_vm2, %v11159_v25, 0.0 }
0x4508   :  { %v6747_v57 = vmul.f32 %v11161_v33, %v11157_v16  ;;  %6743 = vadd.xlane.f32.xlu1 %v6742_v56 }
0x450a   :  { %v6749_v35 = vpack.c.bf16 %v6747_v57, %v6747_v57 }
0x450c   :  { %10714 = vmatmul.mubr.msk.bf16.vlgmr.msra.gmra.mxu1 %vm237_vm2, %v6749_v35 }
0x450d   :  { %10725 = vmatprep.mubr.msk.bf16.mxu1 %vm11289_vm0, %v11288_v3  ;;  %10724 = vmatpush3.bf16.msra.mxu1 %v6853_v40 }
0x450e   :  { %10735 = vmatprep.subr.bf16.mxu1 %v11288_v3 }
0x4519   :  { %6799 = vrot.lane.b32.xlu1 %v12735_v62, %s11294_s18 }
0x451d   :  { %6900 = vrot.lane.b32.xlu1 %v12731_v30, %s11296_s23 }
0x4521   :  { %6898 = vrot.lane.b32.xlu1 %v12742_v53, %s11295_s22 }
0x4591   :  { %v6744_v27 = vpop.xlane.xlu1 %6743 }
0x4592   :  { %11162 = vrcp.f32 %v6744_v27 }
0x4595   :  { %v6800_v41 = vpop.permute.xlu1 %6799 }
0x4596   :  { %v6805_v54 = vsel %vm362_vm3, %v6800_v41, 0  ;;  %v9537_v41 = vld [vmem:[%s13311_s21 + $0x30] sm:$0xff] }
0x4597   :  { %10718 = vmatpush3.bf16.msra.mxu0 %v6805_v54  ;;  %v7119_v54 = vpack.c.bf16 %v9537_v41, %v9537_v41 }
0x4598   :  { %10729 = vmatprep.subr.bf16.mxu0 %v11288_v3 }
0x4599   :  { %v6901_v39 = vpop.permute.xlu1 %6900 }
0x459a   :  { %v6906_v49 = vsel %vm237_vm2, %v6901_v39, 0 }
0x459d   :  { %v6899_v50 = vpop.permute.xlu1 %6898 }
0x459f   :  { %v11163_v32 = vpop.eup %11162 }
0x45a0   :  { %v6748_v20 = vmul.f32 %v11163_v32, %v11159_v25  ;;  %v7124_v32 = vsel %vm362_vm3, %v7119_v54, 0 }
0x45a2   :  { %v6750_v47 = vpack.c.bf16 %v6748_v20, %v6748_v20 }
0x45a4   :  { %10720 = vmatmul.mubr.msk.bf16.vlgmr.msra.gmra.mxu0 %vm237_vm2, %v6750_v47 }
0x45a5   :  { %10730 = vmatpush3.bf16.xpose.msra.mxu0 %v6906_v49  ;;  %10731 = vmatprep.mubr.msk.bf16.mxu0 %vm11289_vm0, %v11288_v3 }
0x45a6   :  { %10741 = vmatprep.subr.bf16.mxu0 %v11288_v3 }
0x45ac   :  { %10732 = vmatmul.mubr.msk.bf16.vlgmr.msra.gmra.mxu0 %vm237_vm2, %v6899_v50 }
0x45ad   :  { %10743 = vmatprep.mubr.msk.bf16.mxu0 %vm11289_vm0, %v11288_v3 }
0x45cc   :  { %v6793_v51 = vpop.f32.mrf.mxu1 }
0x45ce   :  { %v10715_v26 = vpop.f32.mrf.mxu1 }
0x45d0   :  { %v6796_v52 = vpop.f32.mrf.mxu1 }
0x45d2   :  { %v10716_v31 = vpop.f32.mrf.mxu1 }
0x4664   :  { %v6841_v5 = vpop.f32.mrf.mxu0 }
0x4665   :  { %v6847_v55 = vpack.c.bf16 %v6841_v5, %v6793_v51 }
0x4666   :  { %v10721_v12 = vpop.f32.mrf.mxu0 }
0x4667   :  { %10726 = vmatmul.mubr.msk.bf16.vlgmr.msra.gmra.mxu1 %vm237_vm2, %v6847_v55 }
0x4668   :  { %10736 = vmatpush3.bf16.xpose.msra.mxu1 %v6956_v10  ;;  %v6844_v29 = vpop.f32.mrf.mxu0  ;;  %10737 = vmatprep.mubr.msk.bf16.mxu1 %vm11289_vm0, %v11288_v3 }
0x4669   :  { %10747 = vmatprep.subr.bf16.mxu1 %v11288_v3 }
0x466a   :  { %v10722_v21 = vpop.f32.mrf.mxu0 }
0x466c   :  { %v6942_v18 = vpop.f32.mrf.mxu0 }
0x466d   :  { %v6998_v24 = vsel %vm237_vm2, %v6942_v18, -inf }
0x466e   :  { %6999 = vmax.xlane.f32.xlu1 %v6998_v24  ;;  %v10733_v60 = vpop.f32.mrf.mxu0 }
0x466f   :  { %10738 = vmatmul.mubr.msk.bf16.vlgmr.msra.gmra.mxu1 %vm237_vm2, %v6949_v58 }
0x4670   :  { %v6945_v0 = vpop.f32.mrf.mxu0  ;;  %10749 = vmatprep.mubr.msk.bf16.mxu1 %vm11289_vm0, %v11288_v3 }
0x4672   :  { %v10734_v48 = vpop.f32.mrf.mxu0 }
0x46f7   :  { %v7000_v59 = vpop.xlane.xlu1 %6999 }
0x46f8   :  { %v7004_v15 = vsub.f32 %v6942_v18, %v7000_v59 }
0x46fa   :  { %v7006_v63 = vmul.f32 1.442695, %v7004_v15 }
0x46fc   :  { %11164 = vpow2.f32 %v7006_v63 }
0x4709   :  { %v11165_v13 = vpop.eup %11164 }
0x470a   :  { %v7010_v17 = vsel %vm237_vm2, %v11165_v13, 0.0 }
0x4727   :  { %v12844_v19 = vpop.f32.mrf.mxu1 }
0x4729   :  { %v10727_v16 = vpop.f32.mrf.mxu1 }
0x472b   :  { %v12846_v1 = vpop.f32.mrf.mxu1 }
0x472d   :  { %v10728_v4 = vpop.f32.mrf.mxu1 }
0x472f   :  { %v6992_v11 = vpop.f32.mrf.mxu1 }
0x4730   :  { %v7001_v2 = vsel %vm237_vm2, %v6992_v11, -inf }
0x4731   :  { %7002 = vmax.xlane.f32.xlu0 %v7001_v2  ;;  %v10739_v6 = vpop.f32.mrf.mxu1  ;;  %v6896_v2 = vadd.f32 %v12844_v19, %v12798_v61 }
0x4733   :  { %v6995_v34 = vpop.f32.mrf.mxu1 }
0x4735   :  { %7011 = vadd.xlane.f32.xlu0 %v7010_v17  ;;  %v10740_v22 = vpop.f32.mrf.mxu1  ;;  %v6897_v17 = vadd.f32 %v12846_v1, %v12800_v36 }
0x474b   :  { %7022 = vrot.lane.b32.xlu0 %v12731_v30, %s11297_s26 }
0x474f   :  { %7221 = vrot.lane.b32.xlu0 %v12735_v62, %s11298_s28 }
0x4753   :  { %7219 = vrot.lane.b32.xlu0 %v12749_v7, %s13329_s27 }
0x47ba   :  { %v7003_v23 = vpop.xlane.xlu0 %7002 }
0x47bb   :  { %v7005_v25 = vsub.f32 %v6992_v11, %v7003_v23 }
0x47bd   :  { %v7008_v33 = vmul.f32 1.442695, %v7005_v25 }
0x47be   :  { %v7012_v56 = vpop.xlane.xlu0 %7011 }
0x47bf   :  { %11166 = vpow2.f32 %v7008_v33 }
0x47c0   :  { %11168 = vrcp.f32 %v7012_v56 }
0x47c2   :  { %v7023_v57 = vpop.permute.xlu0 %7022 }
0x47c3   :  { %v7028_v35 = vsel %vm362_vm3, %v7023_v57, 0 }
0x47c4   :  { %10742 = vmatpush3.bf16.msra.mxu0 %v7028_v35 }
0x47c5   :  { %10753 = vmatprep.subr.bf16.mxu0 %v11288_v3 }
0x47c6   :  { %v7222_v12 = vpop.permute.xlu0 %7221 }
0x47c7   :  { %v7227_v18 = vsel %vm237_vm2, %v7222_v12, 0 }
0x47ca   :  { %v7220_v48 = vpop.permute.xlu0 %7219 }
0x47cc   :  { %v11167_v37 = vpop.eup %11166 }
0x47cd   :  { %v11169_v38 = vpop.eup %11168  ;;  %v7013_v40 = vsel %vm237_vm2, %v11167_v37, 0.0 }
0x47ce   :  { %v7018_v27 = vmul.f32 %v11169_v38, %v11165_v13  ;;  %7014 = vadd.xlane.f32.xlu1 %v7013_v40 }
0x47d0   :  { %v7020_v7 = vpack.c.bf16 %v7018_v27, %v7018_v27 }
0x47d2   :  { %10744 = vmatmul.mubr.msk.bf16.vlgmr.msra.gmra.mxu0 %vm237_vm2, %v7020_v7 }
0x47d3   :  { %10755 = vmatprep.mubr.msk.bf16.mxu0 %vm11289_vm0, %v11288_v3  ;;  %10754 = vmatpush3.bf16.msra.mxu0 %v7124_v32 }
0x47d4   :  { %10765 = vmatprep.subr.bf16.mxu0 %v11288_v3 }
0x47df   :  { %7070 = vrot.lane.b32.xlu1 %v12735_v62, %s11297_s26 }
0x47e3   :  { %7171 = vrot.lane.b32.xlu1 %v12731_v30, %s11298_s28 }
0x47e7   :  { %7169 = vrot.lane.b32.xlu1 %v12742_v53, %s13329_s27 }
0x4857   :  { %v7015_v20 = vpop.xlane.xlu1 %7014 }
0x4858   :  { %11170 = vrcp.f32 %v7015_v20 }
0x485b   :  { %v7071_v39 = vpop.permute.xlu1 %7070 }
0x485c   :  { %v7076_v47 = vsel %vm362_vm3, %v7071_v39, 0  ;;  %v9538_v39 = vld [vmem:[%s13311_s21 + $0x38] sm:$0xff] }
0x485d   :  { %10748 = vmatpush3.bf16.msra.mxu1 %v7076_v47  ;;  %v7390_v47 = vpack.c.bf16 %v9538_v39, %v9538_v39 }
0x485e   :  { %10759 = vmatprep.subr.bf16.mxu1 %v11288_v3 }
0x485f   :  { %v7172_v51 = vpop.permute.xlu1 %7171 }
0x4860   :  { %v7177_v53 = vsel %vm237_vm2, %v7172_v51, 0 }
0x4863   :  { %v7170_v52 = vpop.permute.xlu1 %7169 }
0x4865   :  { %v11171_v49 = vpop.eup %11170 }
0x4866   :  { %v7019_v50 = vmul.f32 %v11171_v49, %v11167_v37  ;;  %v7395_v49 = vsel %vm362_vm3, %v7390_v47, 0  ;;  %v9565_v47 = vld [vmem:[%s13317_s19 + $0x1] ss:$0 sm:$0xff] }
0x4868   :  { %v7021_v26 = vpack.c.bf16 %v7019_v50, %v7019_v50 }
0x486a   :  { %10750 = vmatmul.mubr.msk.bf16.vlgmr.msra.gmra.mxu1 %vm237_vm2, %v7021_v26 }
0x486b   :  { %10760 = vmatpush3.bf16.xpose.msra.mxu1 %v7177_v53  ;;  %10761 = vmatprep.mubr.msk.bf16.mxu1 %vm11289_vm0, %v11288_v3 }
0x486c   :  { %10771 = vmatprep.subr.bf16.mxu1 %v11288_v3 }
0x4872   :  { %10762 = vmatmul.mubr.msk.bf16.vlgmr.msra.gmra.mxu1 %vm237_vm2, %v7170_v52 }
0x4873   :  { %10773 = vmatprep.mubr.msk.bf16.mxu1 %vm11289_vm0, %v11288_v3 }
0x4892   :  { %v7064_v31 = vpop.f32.mrf.mxu0 }
0x4894   :  { %v10745_v9 = vpop.f32.mrf.mxu0 }
0x4896   :  { %v7067_v5 = vpop.f32.mrf.mxu0 }
0x4898   :  { %v10746_v55 = vpop.f32.mrf.mxu0 }
0x492a   :  { %v7112_v10 = vpop.f32.mrf.mxu1 }
0x492b   :  { %v7118_v29 = vpack.c.bf16 %v7112_v10, %v7064_v31 }
0x492c   :  { %v10751_v21 = vpop.f32.mrf.mxu1 }
0x492d   :  { %10756 = vmatmul.mubr.msk.bf16.vlgmr.msra.gmra.mxu0 %vm237_vm2, %v7118_v29 }
0x492e   :  { %10766 = vmatpush3.bf16.xpose.msra.mxu0 %v7227_v18  ;;  %v7115_v24 = vpop.f32.mrf.mxu1  ;;  %10767 = vmatprep.mubr.msk.bf16.mxu0 %vm11289_vm0, %v11288_v3 }
0x492f   :  { %10777 = vmatprep.subr.bf16.mxu0 %v11288_v3  ;;  %v9562_v24 = vld [vmem:[%s13312_s25 + $0x1] ss:$0 sm:$0xff] }
0x4930   :  { %v10752_v58 = vpop.f32.mrf.mxu1 }
0x4932   :  { %v7213_v60 = vpop.f32.mrf.mxu1 }
0x4933   :  { %v7269_v0 = vsel %vm237_vm2, %v7213_v60, -inf }
0x4934   :  { %7270 = vmax.xlane.f32.xlu1 %v7269_v0  ;;  %v10763_v59 = vpop.f32.mrf.mxu1 }
0x4935   :  { %10768 = vmatmul.mubr.msk.bf16.vlgmr.msra.gmra.mxu0 %vm237_vm2, %v7220_v48 }
0x4936   :  { %v7216_v15 = vpop.f32.mrf.mxu1  ;;  %10779 = vmatprep.mubr.msk.bf16.mxu0 %vm11289_vm0, %v11288_v3 }
0x4938   :  { %v10764_v63 = vpop.f32.mrf.mxu1 }
0x49bd   :  { %v7271_v16 = vpop.xlane.xlu1 %7270 }
0x49be   :  { %v7275_v4 = vsub.f32 %v7213_v60, %v7271_v16 }
0x49c0   :  { %v7277_v11 = vmul.f32 1.442695, %v7275_v4 }
0x49c2   :  { %11172 = vpow2.f32 %v7277_v11 }
0x49cf   :  { %v11173_v57 = vpop.eup %11172 }
0x49d0   :  { %v7281_v61 = vsel %vm237_vm2, %v11173_v57, 0.0 }
0x49ed   :  { %v7160_v13 = vpop.f32.mrf.mxu0 }
0x49ee   :  { %v12892_v6 = vadd.f32 %v7160_v13, %v6896_v2 }
0x49ef   :  { %v10757_v34 = vpop.f32.mrf.mxu0 }
0x49f0   :  { %v9570_v34 = vld [vmem:[%s13313_s29 + $0x38] sm:$0xff] }
0x49f1   :  { %v7163_v22 = vpop.f32.mrf.mxu0 }
0x49f2   :  { %v12896_v23 = vadd.f32 %v7163_v22, %v6897_v17  ;;  %v9567_v22 = vld [vmem:[%s13313_s29 + $0x20] sm:$0xff] }
0x49f3   :  { %v10758_v25 = vpop.f32.mrf.mxu0 }
0x49f5   :  { %v7263_v33 = vpop.f32.mrf.mxu0 }
0x49f6   :  { %v7272_v56 = vsel %vm237_vm2, %v7263_v33, -inf }
0x49f7   :  { %7273 = vmax.xlane.f32.xlu0 %v7272_v56  ;;  %v10769_v35 = vpop.f32.mrf.mxu0 }
0x49f9   :  { %v7266_v37 = vpop.f32.mrf.mxu0 }
0x49fb   :  { %v10770_v19 = vpop.f32.mrf.mxu0  ;;  %7282 = vadd.xlane.f32.xlu0 %v7281_v61 }
0x4a11   :  { %7293 = vrot.lane.b32.xlu0 %v12731_v30, %s13330_s5 }
0x4a80   :  { %v7274_v38 = vpop.xlane.xlu0 %7273 }
0x4a81   :  { %v7276_v36 = vsub.f32 %v7263_v33, %v7274_v38 }
0x4a83   :  { %v7279_v1 = vmul.f32 1.442695, %v7276_v36  ;;  %v9578_v36 = vld [vmem:[%s13314_s3 + $0x1] ss:$0 sm:$0xff] }
0x4a84   :  { %v7283_v40 = vpop.xlane.xlu0 %7282 }
0x4a85   :  { %11174 = vpow2.f32 %v7279_v1 }
0x4a86   :  { %11176 = vrcp.f32 %v7283_v40 }
0x4a88   :  { %v7294_v27 = vpop.permute.xlu0 %7293 }
0x4a89   :  { %v7299_v7 = vsel %vm362_vm3, %v7294_v27, 0 }
0x4a8a   :  { %10772 = vmatpush3.bf16.msra.mxu1 %v7299_v7 }
0x4a8b   :  { %10783 = vmatprep.subr.bf16.mxu1 %v11288_v3 }
0x4a92   :  { %v11175_v41 = vpop.eup %11174 }
0x4a93   :  { %v11177_v54 = vpop.eup %11176  ;;  %v7284_v32 = vsel %vm237_vm2, %v11175_v41, 0.0 }
0x4a94   :  { %v7289_v20 = vmul.f32 %v11177_v54, %v11173_v57  ;;  %7285 = vadd.xlane.f32.xlu1 %v7284_v32 }
0x4a96   :  { %v7291_v30 = vpack.c.bf16 %v7289_v20, %v7289_v20 }
0x4a98   :  { %10774 = vmatmul.mubr.msk.bf16.vlgmr.msra.gmra.mxu1 %vm237_vm2, %v7291_v30 }
0x4a99   :  { %10785 = vmatprep.mubr.msk.bf16.mxu1 %vm11289_vm0, %v11288_v3  ;;  %10784 = vmatpush3.bf16.msra.mxu1 %v7395_v49 }
0x4a9a   :  { %10797 = vmatprep.subr.bf16.mxu1 %v11288_v3 }
0x4aa5   :  { %7341 = vrot.lane.b32.xlu1 %v12735_v62, %s13330_s5 }
0x4b1d   :  { %v7286_v50 = vpop.xlane.xlu1 %7285 }
0x4b1e   :  { %11178 = vrcp.f32 %v7286_v50 }
0x4b21   :  { %v7342_v51 = vpop.permute.xlu1 %7341 }
0x4b22   :  { %v7347_v26 = vsel %vm362_vm3, %v7342_v51, 0 }
0x4b23   :  { %10778 = vmatpush3.bf16.msra.mxu0 %v7347_v26  ;;  %v9566_v26 = vld [vmem:[%s13318_s24 + $0x1] ss:$0 sm:$0xff] }
0x4b24   :  { %10789 = vmatprep.subr.bf16.mxu0 %v11288_v3 }
0x4b2b   :  { %v11179_v53 = vpop.eup %11178 }
0x4b2c   :  { %v7290_v52 = vmul.f32 %v11179_v53, %v11175_v41 }
0x4b2e   :  { %v7292_v31 = vpack.c.bf16 %v7290_v52, %v7290_v52 }
0x4b30   :  { %10780 = vmatmul.mubr.msk.bf16.vlgmr.msra.gmra.mxu0 %vm237_vm2, %v7292_v31 }
0x4b31   :  { %10793 = vmatprep.mubr.msk.bf16.mxu0 %vm11289_vm0, %v11288_v3 }
0x4b58   :  { %v7335_v62 = vpop.f32.mrf.mxu1 }
0x4b5a   :  { %v10775_v9 = vpop.f32.mrf.mxu1 }
0x4b5c   :  { %v7338_v5 = vpop.f32.mrf.mxu1 }
0x4b5e   :  { %v10776_v55 = vpop.f32.mrf.mxu1 }
0x4bf0   :  { %v7383_v12 = vpop.f32.mrf.mxu0 }
0x4bf1   :  { %v7389_v10 = vpack.c.bf16 %v7383_v12, %v7335_v62 }
0x4bf2   :  { %v10781_v29 = vpop.f32.mrf.mxu0 }
0x4bf3   :  { %10786 = vmatmul.mubr.msk.bf16.vlgmr.msra.gmra.mxu1 %vm237_vm2, %v7389_v10 }
0x4bf4   :  { %v7386_v21 = vpop.f32.mrf.mxu0  ;;  %10801 = vmatprep.mubr.msk.bf16.mxu1 %vm11289_vm0, %v11288_v3 }
0x4bf6   :  { %v10782_v18 = vpop.f32.mrf.mxu0 }
0x4cb3   :  { %v7431_v58 = vpop.f32.mrf.mxu1 }
0x4cb4   :  { %v7438_v60 = vadd.f32 %v7431_v58, %v12892_v6  ;;  %v9569_v6 = vld [vmem:[%s13313_s29 + $0x30] sm:$0xff] }
0x4cb5   :  { %v10787_v0 = vpop.f32.mrf.mxu1  ;;  %v7512_v17 = vpack.c.bf16 %v9570_v34, %v9569_v6 }
0x4cb6   :  { %v7446_v48 = vadd.f32 %v9562_v24, %v7438_v60 }
0x4cb7   :  { %v7434_v59 = vpop.f32.mrf.mxu1  ;;  %10790 = vmatpush3.bf16.msra.mxu0 %v7512_v17 }
0x4cb8   :  { %v7439_v15 = vadd.f32 %v7434_v59, %v12896_v23  ;;  %v7448_v63 = vadd.f32 %v7446_v48, %v12721_v43  ;;  %10791 = vmatprep.subr.bf16.mxu0 %v11288_v3  ;;  %v9568_v23 = vld [vmem:[%s13313_s29 + $0x28] sm:$0xff] }
0x4cb9   :  { %v10788_v16 = vpop.f32.mrf.mxu1  ;;  %v7511_v25 = vpack.c.bf16 %v9568_v23, %v9567_v22 }
0x4cba   :  { %v7447_v4 = vadd.f32 %v9562_v24, %v7439_v15  ;;  %v7454_v11 = vsel %vm175_vm1, %v7448_v63, 0.0 }
0x4cbb   :  { %7455 = vadd.xlane.f32.xlu1 %v7454_v11  ;;  %10792 = vmatpush3.bf16.msra.mxu0 %v7511_v25 }
0x4cbc   :  { %v7449_v2 = vadd.f32 %v7447_v4, %v12723_v28  ;;  %10805 = vmatprep.subr.bf16.mxu0 %v11288_v3 }
0x4cbe   :  { %v7457_v13 = vsel %vm175_vm1, %v7449_v2, 0.0 }
0x4cbf   :  { %7458 = vadd.xlane.f32.xlu0 %v7457_v13 }
0x4d44   :  { %v7456_v43 = vpop.xlane.xlu1 %7455 }
0x4d45   :  { %v7460_v33 = vmul.f32 0.03125, %v7456_v43 }
0x4d47   :  { %v7462_v56 = vsub.f32 %v7448_v63, %v7460_v33 }
0x4d48   :  { %v7459_v28 = vpop.xlane.xlu0 %7458 }
0x4d49   :  { %v7461_v57 = vmul.f32 0.03125, %v7459_v28  ;;  %v7464_v35 = vmul.f32 %v7462_v56, %v7462_v56 }
0x4d4b   :  { %v7463_v37 = vsub.f32 %v7449_v2, %v7461_v57  ;;  %v7466_v61 = vsel %vm175_vm1, %v7464_v35, 0.0 }
0x4d4c   :  { %7467 = vadd.xlane.f32.xlu0 %v7466_v61 }
0x4d4d   :  { %v7465_v19 = vmul.f32 %v7463_v37, %v7463_v37 }
0x4d4f   :  { %v7469_v38 = vsel %vm175_vm1, %v7465_v19, 0.0 }
0x4d50   :  { %7470 = vadd.xlane.f32.xlu1 %v7469_v38 }
0x4d61   :  { %7567 = vrot.lane.b32.xlu1 %v7511_v25, %s11290_s0 }
0x4d62   :  { %7569 = vrot.lane.b32.xlu0 %v7512_v17, %s11290_s0 }
0x4d65   :  { %7614 = vrot.lane.b32.xlu1 %v9578_v36, %s11290_s0 }
0x4dd5   :  { %v7468_v1 = vpop.xlane.xlu0 %7467 }
0x4dd6   :  { %v7472_v40 = vmul.f32 0.03125, %v7468_v1 }
0x4dd8   :  { %v7474_v27 = vadd.f32 1e-05, %v7472_v40 }
0x4dd9   :  { %v7471_v7 = vpop.xlane.xlu1 %7470  ;;  %v7570_v41 = vpop.permute.xlu0 %7569 }
0x4dda   :  { %11180 = vrsqrt.f32 %v7474_v27  ;;  %v7473_v54 = vmul.f32 0.03125, %v7471_v7  ;;  %10798 = vmatpush3.bf16.msra.mxu1 %v7570_v41 }
0x4ddb   :  { %10799 = vmatprep.subr.bf16.mxu1 %v11288_v3 }
0x4ddc   :  { %v7475_v32 = vadd.f32 1e-05, %v7473_v54 }
0x4ddd   :  { %v7568_v20 = vpop.permute.xlu1 %7567 }
0x4dde   :  { %11182 = vrsqrt.f32 %v7475_v32  ;;  %10800 = vmatpush3.bf16.msra.mxu1 %v7568_v20 }
0x4ddf   :  { %10811 = vmatprep.subr.bf16.mxu1 %v11288_v3 }
0x4de1   :  { %10802 = vmatmul.mubr.msk.bf16.vlgmr.msra.gmra.mxu1 %vm175_vm1, %v12398_v8  ;;  %v7615_v8 = vpop.permute.xlu1 %7614 }
0x4de2   :  { %10813 = vmatprep.mubr.msk.bf16.mxu1 %vm11289_vm0, %v11288_v3 }
0x4de7   :  { %v11181_v30 = vpop.eup %11180 }
0x4de8   :  { %v7478_v39 = vmul.f32 %v11181_v30, %v7462_v56 }
0x4dea   :  { %v7486_v50 = vmul.f32 %v9565_v47, %v7478_v39 }
0x4deb   :  { %v11183_v49 = vpop.eup %11182 }
0x4dec   :  { %v7479_v51 = vmul.f32 %v11183_v49, %v7463_v37  ;;  %v12948_v52 = vadd.f32 %v9566_v26, %v7486_v50 }
0x4dee   :  { %v7487_v53 = vmul.f32 %v9565_v47, %v7479_v51 }
0x4df0   :  { %v12950_v31 = vadd.f32 %v9566_v26, %v7487_v53 }
0x4df2   :  { %v7510_v62 = vpack.c.bf16 %v12950_v31, %v12948_v52 }
0x4df4   :  { %10794 = vmatmul.mubr.msk.bf16.vlgmr.msra.gmra.mxu0 %vm175_vm1, %v7510_v62 }
0x4df5   :  { %10807 = vmatprep.mubr.msk.bf16.mxu0 %vm11289_vm0, %v11288_v3 }
0x4ea1   :  { %v7607_v9 = vpop.f32.mrf.mxu1 }
0x4ea2   :  { %v7617_v5 = vadd.f32 %v7615_v8, %v7607_v9 }
0x4ea3   :  { %v10803_v55 = vpop.f32.mrf.mxu1 }
0x4ea4   :  { %v12957_v12 = vpack.c.bf16 %v7617_v5, %v7617_v5 }
0x4ea5   :  { %v7610_v10 = vpop.f32.mrf.mxu1 }
0x4ea6   :  { %v7618_v29 = vadd.f32 %v7615_v8, %v7610_v10  ;;  %v7629_v21 = vsel %vm237_vm2, %v12957_v12, 0  ;;  %v9572_v8 = vld [vmem:[%s13319_s30 + $0x20] sm:$0xff] }
0x4ea7   :  { %v10804_v18 = vpop.f32.mrf.mxu1  ;;  %10806 = vmatpush3.bf16.xpose.msra.mxu0 %v7629_v21  ;;  %v7840_v9 = vpack.c.bf16 %v9572_v8, %v9572_v8 }
0x4ea8   :  { %v12961_v24 = vpack.c.bf16 %v7618_v29, %v7618_v29  ;;  %10817 = vmatprep.subr.bf16.mxu0 %v11288_v3 }
0x4ea9   :  { %v7845_v5 = vsel %vm362_vm3, %v7840_v9, 0 }
0x4eaa   :  { %v7675_v58 = vsel %vm237_vm2, %v12961_v24, 0 }
0x4eab   :  { %10812 = vmatpush3.bf16.xpose.msra.mxu1 %v7675_v58 }
0x4eac   :  { %10823 = vmatprep.subr.bf16.mxu1 %v11288_v3 }
0x4eb4   :  { %v7550_v60 = vpop.f32.mrf.mxu0 }
0x4eb5   :  { %v7563_v0 = vadd.f32 %v9578_v36, %v7550_v60 }
0x4eb6   :  { %v10795_v48 = vpop.f32.mrf.mxu0 }
0x4eb7   :  { %v7619_v59 = vmul.f32 0.35355338, %v7563_v0 }
0x4eb8   :  { %v7553_v15 = vpop.f32.mrf.mxu0 }
0x4eb9   :  { %v12967_v63 = vpack.c.bf16 %v7619_v59, %v7619_v59  ;;  %v7564_v16 = vadd.f32 %v9578_v36, %v7553_v15 }
0x4eba   :  { %v10796_v4 = vpop.f32.mrf.mxu0 }
0x4ebb   :  { %v7620_v11 = vmul.f32 0.35355338, %v7564_v16  ;;  %10808 = vmatmul.mubr.msk.bf16.vlgmr.msra.gmra.mxu0 %vm237_vm2, %v12967_v63 }
0x4ebc   :  { %10819 = vmatprep.mubr.msk.bf16.mxu0 %vm11289_vm0, %v11288_v3 }
0x4ebd   :  { %v12973_v2 = vpack.c.bf16 %v7620_v11, %v7620_v11 }
0x4ebf   :  { %10814 = vmatmul.mubr.msk.bf16.vlgmr.msra.gmra.mxu1 %vm237_vm2, %v12973_v2 }
0x4ec0   :  { %10825 = vmatprep.mubr.msk.bf16.mxu1 %vm11289_vm0, %v11288_v3 }
0x4f7b   :  { %v7665_v13 = vpop.f32.mrf.mxu0 }
0x4f7c   :  { %v7717_v6 = vsel %vm237_vm2, %v7665_v13, -inf }
0x4f7d   :  { %7718 = vmax.xlane.f32.xlu0 %v7717_v6  ;;  %v10809_v34 = vpop.f32.mrf.mxu0 }
0x4f7f   :  { %v7668_v17 = vpop.f32.mrf.mxu0  ;;  %v7711_v22 = vpop.f32.mrf.mxu1 }
0x4f80   :  { %v7720_v23 = vsel %vm237_vm2, %v7711_v22, -inf }
0x4f81   :  { %v10810_v25 = vpop.f32.mrf.mxu0  ;;  %7721 = vmax.xlane.f32.xlu1 %v7720_v23  ;;  %v10815_v43 = vpop.f32.mrf.mxu1 }
0x4f83   :  { %v7714_v33 = vpop.f32.mrf.mxu1 }
0x4f85   :  { %v10816_v56 = vpop.f32.mrf.mxu1 }
0x4f92   :  { %7742 = vrot.lane.b32.xlu1 %v12957_v12, %s11290_s0 }
0x4f96   :  { %7893 = vrot.lane.b32.xlu1 %v12957_v12, %s11292_s15 }
0x4f9a   :  { %7944 = vrot.lane.b32.xlu1 %v12961_v24, %s11292_s15 }
0x4f9e   :  { %7942 = vrot.lane.b32.xlu1 %v12973_v2, %s11292_s15 }
0x5006   :  { %v7719_v28 = vpop.xlane.xlu0 %7718 }
0x5007   :  { %v7723_v57 = vsub.f32 %v7665_v13, %v7719_v28 }
0x5009   :  { %v7725_v35 = vmul.f32 1.442695, %v7723_v57 }
0x500a   :  { %v7722_v37 = vpop.xlane.xlu1 %7721 }
0x500b   :  { %11184 = vpow2.f32 %v7725_v35  ;;  %v7724_v61 = vsub.f32 %v7711_v22, %v7722_v37 }
0x500d   :  { %v7727_v19 = vmul.f32 1.442695, %v7724_v61 }
0x500e   :  { %v7743_v38 = vpop.permute.xlu1 %7742 }
0x500f   :  { %11186 = vpow2.f32 %v7727_v19  ;;  %v7748_v36 = vsel %vm362_vm3, %v7743_v38, 0 }
0x5010   :  { %10818 = vmatpush3.bf16.msra.mxu0 %v7748_v36 }
0x5011   :  { %10829 = vmatprep.subr.bf16.mxu0 %v11288_v3 }
0x5012   :  { %v7894_v51 = vpop.permute.xlu1 %7893 }
0x5013   :  { %v7899_v53 = vsel %vm237_vm2, %v7894_v51, 0 }
0x5016   :  { %v7945_v29 = vpop.permute.xlu1 %7944 }
0x5017   :  { %v7950_v48 = vsel %vm237_vm2, %v7945_v29, 0 }
0x5018   :  { %v11185_v1 = vpop.eup %11184 }
0x5019   :  { %v7729_v40 = vsel %vm237_vm2, %v11185_v1, 0.0 }
0x501a   :  { %7730 = vadd.xlane.f32.xlu0 %v7729_v40  ;;  %v7943_v11 = vpop.permute.xlu1 %7942 }
0x501c   :  { %v11187_v27 = vpop.eup %11186 }
0x501d   :  { %v7732_v7 = vsel %vm237_vm2, %v11187_v27, 0.0 }
0x501e   :  { %7733 = vadd.xlane.f32.xlu0 %v7732_v7 }
0x5034   :  { %7791 = vrot.lane.b32.xlu0 %v12961_v24, %s11290_s0  ;;  %s13331_s0 = sld [smem:[#allocation25_spill]] }
0x5038   :  { %7891 = vrot.lane.b32.xlu0 %v12967_v63, %s11292_s15 }
0x50a3   :  { %v7731_v41 = vpop.xlane.xlu0 %7730 }
0x50a4   :  { %11188 = vrcp.f32 %v7731_v41 }
0x50a7   :  { %v7734_v54 = vpop.xlane.xlu0 %7733 }
0x50a8   :  { %11190 = vrcp.f32 %v7734_v54 }
0x50ab   :  { %v7792_v32 = vpop.permute.xlu0 %7791 }
0x50ac   :  { %v7797_v20 = vsel %vm362_vm3, %v7792_v32, 0 }
0x50ad   :  { %10824 = vmatpush3.bf16.msra.mxu1 %v7797_v20 }
0x50ae   :  { %10835 = vmatprep.subr.bf16.mxu1 %v11288_v3 }
0x50af   :  { %v7892_v62 = vpop.permute.xlu0 %7891 }
0x50b1   :  { %v11189_v30 = vpop.eup %11188 }
0x50b2   :  { %v7737_v39 = vmul.f32 %v11189_v30, %v11185_v1 }
0x50b4   :  { %v7739_v47 = vpack.c.bf16 %v7737_v39, %v7737_v39 }
0x50b5   :  { %v11191_v49 = vpop.eup %11190 }
0x50b6   :  { %v7738_v50 = vmul.f32 %v11191_v49, %v11187_v27  ;;  %10820 = vmatmul.mubr.msk.bf16.vlgmr.msra.gmra.mxu0 %vm237_vm2, %v7739_v47  ;;  %v9573_v47 = vld [vmem:[%s13319_s30 + $0x28] sm:$0xff] }
0x50b7   :  { %10831 = vmatprep.mubr.msk.bf16.mxu0 %vm11289_vm0, %v11288_v3  ;;  %10830 = vmatpush3.bf16.msra.mxu0 %v7845_v5  ;;  %v8113_v49 = vpack.c.bf16 %v9573_v47, %v9573_v47 }
0x50b8   :  { %v7740_v26 = vpack.c.bf16 %v7738_v50, %v7738_v50  ;;  %10841 = vmatprep.subr.bf16.mxu0 %v11288_v3 }
0x50b9   :  { %v8118_v50 = vsel %vm362_vm3, %v8113_v49, 0 }
0x50ba   :  { %10826 = vmatmul.mubr.msk.bf16.vlgmr.msra.gmra.mxu1 %vm237_vm2, %v7740_v26 }
0x50bb   :  { %10836 = vmatpush3.bf16.xpose.msra.mxu1 %v7899_v53  ;;  %10837 = vmatprep.mubr.msk.bf16.mxu1 %vm11289_vm0, %v11288_v3 }
0x50bc   :  { %10847 = vmatprep.subr.bf16.mxu1 %v11288_v3 }
0x50c2   :  { %10838 = vmatmul.mubr.msk.bf16.vlgmr.msra.gmra.mxu1 %vm237_vm2, %v7892_v62 }
0x50c3   :  { %10849 = vmatprep.mubr.msk.bf16.mxu1 %vm11289_vm0, %v11288_v3 }
0x5176   :  { %v7784_v55 = vpop.f32.mrf.mxu0 }
0x5178   :  { %v10821_v10 = vpop.f32.mrf.mxu0 }
0x517a   :  { %v7787_v21 = vpop.f32.mrf.mxu0  ;;  %v7833_v18 = vpop.f32.mrf.mxu1 }
0x517b   :  { %v7839_v58 = vpack.c.bf16 %v7833_v18, %v7784_v55 }
0x517c   :  { %v10822_v60 = vpop.f32.mrf.mxu0  ;;  %v10827_v0 = vpop.f32.mrf.mxu1 }
0x517d   :  { %10832 = vmatmul.mubr.msk.bf16.vlgmr.msra.gmra.mxu0 %vm237_vm2, %v7839_v58 }
0x517e   :  { %10842 = vmatpush3.bf16.xpose.msra.mxu0 %v7950_v48  ;;  %v7836_v59 = vpop.f32.mrf.mxu1  ;;  %10843 = vmatprep.mubr.msk.bf16.mxu0 %vm11289_vm0, %v11288_v3 }
0x517f   :  { %10853 = vmatprep.subr.bf16.mxu0 %v11288_v3 }
0x5180   :  { %v10828_v15 = vpop.f32.mrf.mxu1 }
0x5182   :  { %v7935_v16 = vpop.f32.mrf.mxu1 }
0x5183   :  { %v7992_v4 = vsel %vm237_vm2, %v7935_v16, -inf }
0x5184   :  { %7993 = vmax.xlane.f32.xlu0 %v7992_v4  ;;  %v10839_v13 = vpop.f32.mrf.mxu1 }
0x5185   :  { %10844 = vmatmul.mubr.msk.bf16.vlgmr.msra.gmra.mxu0 %vm237_vm2, %v7943_v11 }
0x5186   :  { %v7938_v6 = vpop.f32.mrf.mxu1  ;;  %10855 = vmatprep.mubr.msk.bf16.mxu0 %vm11289_vm0, %v11288_v3 }
0x5188   :  { %v10840_v34 = vpop.f32.mrf.mxu1 }
0x520d   :  { %v7994_v17 = vpop.xlane.xlu0 %7993 }
0x520e   :  { %v7998_v22 = vsub.f32 %v7935_v16, %v7994_v17 }
0x5210   :  { %v8000_v23 = vmul.f32 1.442695, %v7998_v22 }
0x5212   :  { %11192 = vpow2.f32 %v8000_v23 }
0x521f   :  { %v11193_v25 = vpop.eup %11192 }
0x5220   :  { %v8004_v43 = vsel %vm237_vm2, %v11193_v25, 0.0 }
0x5221   :  { %8005 = vadd.xlane.f32.xlu0 %v8004_v43 }
0x523d   :  { %v13023_v33 = vpop.f32.mrf.mxu0 }
0x523f   :  { %v10833_v56 = vpop.f32.mrf.mxu0 }
0x5241   :  { %v13025_v28 = vpop.f32.mrf.mxu0 }
0x5243   :  { %v10834_v57 = vpop.f32.mrf.mxu0 }
0x5245   :  { %v7986_v35 = vpop.f32.mrf.mxu0 }
0x5246   :  { %v7995_v37 = vsel %vm237_vm2, %v7986_v35, -inf }
0x5247   :  { %7996 = vmax.xlane.f32.xlu1 %v7995_v37  ;;  %v10845_v61 = vpop.f32.mrf.mxu0 }
0x5249   :  { %v7989_v19 = vpop.f32.mrf.mxu0 }
0x524b   :  { %v10846_v38 = vpop.f32.mrf.mxu0 }
0x5258   :  { %8016 = vrot.lane.b32.xlu1 %v12957_v12, %s11293_s16 }
0x525c   :  { %8165 = vrot.lane.b32.xlu1 %v12957_v12, %s11295_s22 }
0x5260   :  { %8215 = vrot.lane.b32.xlu1 %v12961_v24, %s11295_s22 }
0x5264   :  { %8213 = vrot.lane.b32.xlu1 %v12973_v2, %s11295_s22 }
0x52aa   :  { %v8006_v36 = vpop.xlane.xlu0 %8005 }
0x52ab   :  { %11194 = vrcp.f32 %v8006_v36 }
0x52b8   :  { %v11195_v1 = vpop.eup %11194 }
0x52b9   :  { %v8012_v7 = vmul.f32 %v11195_v1, %v11193_v25 }
0x52bb   :  { %v8014_v20 = vpack.c.bf16 %v8012_v7, %v8012_v7 }
0x52d0   :  { %v7997_v40 = vpop.xlane.xlu1 %7996 }
0x52d1   :  { %v7999_v27 = vsub.f32 %v7986_v35, %v7997_v40 }
0x52d3   :  { %v8002_v41 = vmul.f32 1.442695, %v7999_v27 }
0x52d4   :  { %v8017_v54 = vpop.permute.xlu1 %8016 }
0x52d5   :  { %11196 = vpow2.f32 %v8002_v41  ;;  %v8022_v32 = vsel %vm362_vm3, %v8017_v54, 0 }
0x52d6   :  { %10848 = vmatpush3.bf16.msra.mxu1 %v8022_v32 }
0x52d7   :  { %10859 = vmatprep.subr.bf16.mxu1 %v11288_v3 }
0x52d8   :  { %v8166_v9 = vpop.permute.xlu1 %8165 }
0x52d9   :  { %10850 = vmatmul.mubr.msk.bf16.vlgmr.msra.gmra.mxu1 %vm237_vm2, %v8014_v20  ;;  %v8171_v55 = vsel %vm237_vm2, %v8166_v9, 0 }
0x52da   :  { %10861 = vmatprep.mubr.msk.bf16.mxu1 %vm11289_vm0, %v11288_v3  ;;  %10860 = vmatpush3.bf16.msra.mxu1 %v8118_v50 }
0x52db   :  { %10871 = vmatprep.subr.bf16.mxu1 %v11288_v3 }
0x52dc   :  { %v8216_v60 = vpop.permute.xlu1 %8215 }
0x52dd   :  { %v8221_v15 = vsel %vm237_vm2, %v8216_v60, 0 }
0x52e0   :  { %v8214_v6 = vpop.permute.xlu1 %8213 }
0x52e2   :  { %v11197_v30 = vpop.eup %11196 }
0x52e3   :  { %v8007_v39 = vsel %vm237_vm2, %v11197_v30, 0.0 }
0x52e4   :  { %8008 = vadd.xlane.f32.xlu0 %v8007_v39 }
0x52fa   :  { %8064 = vrot.lane.b32.xlu0 %v12961_v24, %s11293_s16 }
0x52fe   :  { %8163 = vrot.lane.b32.xlu0 %v12967_v63, %s11295_s22 }
0x536d   :  { %v8009_v51 = vpop.xlane.xlu0 %8008 }
0x536e   :  { %11198 = vrcp.f32 %v8009_v51  ;;  %v9574_v51 = vld [vmem:[%s13319_s30 + $0x30] sm:$0xff] }
0x5371   :  { %v8065_v26 = vpop.permute.xlu0 %8064 }
0x5372   :  { %v8070_v53 = vsel %vm362_vm3, %v8065_v26, 0  ;;  %v8384_v26 = vpack.c.bf16 %v9574_v51, %v9574_v51 }
0x5373   :  { %10854 = vmatpush3.bf16.msra.mxu0 %v8070_v53 }
0x5374   :  { %10865 = vmatprep.subr.bf16.mxu0 %v11288_v3  ;;  %v8389_v53 = vsel %vm362_vm3, %v8384_v26, 0 }
0x5375   :  { %v8164_v10 = vpop.permute.xlu0 %8163 }
0x537b   :  { %v11199_v62 = vpop.eup %11198 }
0x537c   :  { %v8013_v8 = vmul.f32 %v11199_v62, %v11197_v30 }
0x537e   :  { %v8015_v5 = vpack.c.bf16 %v8013_v8, %v8013_v8 }
0x5380   :  { %10856 = vmatmul.mubr.msk.bf16.vlgmr.msra.gmra.mxu0 %vm237_vm2, %v8015_v5 }
0x5381   :  { %10866 = vmatpush3.bf16.xpose.msra.mxu0 %v8171_v55  ;;  %10867 = vmatprep.mubr.msk.bf16.mxu0 %vm11289_vm0, %v11288_v3 }
0x5382   :  { %10877 = vmatprep.subr.bf16.mxu0 %v11288_v3 }
0x5388   :  { %10868 = vmatmul.mubr.msk.bf16.vlgmr.msra.gmra.mxu0 %vm237_vm2, %v8164_v10 }
0x5389   :  { %10879 = vmatprep.mubr.msk.bf16.mxu0 %vm11289_vm0, %v11288_v3 }
0x5399   :  { %v8058_v29 = vpop.f32.mrf.mxu1 }
0x539b   :  { %v10851_v21 = vpop.f32.mrf.mxu1 }
0x539d   :  { %v8061_v18 = vpop.f32.mrf.mxu1 }
0x539f   :  { %v10852_v58 = vpop.f32.mrf.mxu1 }
0x5440   :  { %v8106_v0 = vpop.f32.mrf.mxu0 }
0x5441   :  { %v8112_v48 = vpack.c.bf16 %v8106_v0, %v8058_v29 }
0x5442   :  { %v10857_v59 = vpop.f32.mrf.mxu0 }
0x5443   :  { %10862 = vmatmul.mubr.msk.bf16.vlgmr.msra.gmra.mxu1 %vm237_vm2, %v8112_v48 }
0x5444   :  { %10872 = vmatpush3.bf16.xpose.msra.mxu1 %v8221_v15  ;;  %v8109_v16 = vpop.f32.mrf.mxu0  ;;  %10873 = vmatprep.mubr.msk.bf16.mxu1 %vm11289_vm0, %v11288_v3 }
0x5445   :  { %10883 = vmatprep.subr.bf16.mxu1 %v11288_v3 }
0x5446   :  { %v10858_v4 = vpop.f32.mrf.mxu0 }
0x5448   :  { %v8207_v11 = vpop.f32.mrf.mxu0 }
0x5449   :  { %v8263_v13 = vsel %vm237_vm2, %v8207_v11, -inf }
0x544a   :  { %8264 = vmax.xlane.f32.xlu0 %v8263_v13  ;;  %v10869_v34 = vpop.f32.mrf.mxu0 }
0x544b   :  { %10874 = vmatmul.mubr.msk.bf16.vlgmr.msra.gmra.mxu1 %vm237_vm2, %v8214_v6 }
0x544c   :  { %v8210_v17 = vpop.f32.mrf.mxu0  ;;  %10885 = vmatprep.mubr.msk.bf16.mxu1 %vm11289_vm0, %v11288_v3 }
0x544e   :  { %v10870_v22 = vpop.f32.mrf.mxu0 }
0x54d3   :  { %v8265_v23 = vpop.xlane.xlu0 %8264 }
0x54d4   :  { %v8269_v25 = vsub.f32 %v8207_v11, %v8265_v23 }
0x54d6   :  { %v8271_v43 = vmul.f32 1.442695, %v8269_v25 }
0x54d8   :  { %11200 = vpow2.f32 %v8271_v43 }
0x54e5   :  { %v11201_v56 = vpop.eup %11200 }
0x54e6   :  { %v8275_v57 = vsel %vm237_vm2, %v11201_v56, 0.0 }
0x54e7   :  { %8276 = vadd.xlane.f32.xlu0 %v8275_v57 }
0x5503   :  { %v13069_v35 = vpop.f32.mrf.mxu1 }
0x5505   :  { %v10863_v37 = vpop.f32.mrf.mxu1 }
0x5507   :  { %v13071_v61 = vpop.f32.mrf.mxu1 }
0x5509   :  { %v10864_v19 = vpop.f32.mrf.mxu1 }
0x550b   :  { %v8257_v38 = vpop.f32.mrf.mxu1 }
0x550c   :  { %v8266_v36 = vsel %vm237_vm2, %v8257_v38, -inf }
0x550d   :  { %8267 = vmax.xlane.f32.xlu1 %v8266_v36  ;;  %v10875_v1 = vpop.f32.mrf.mxu1 }
0x550f   :  { %v8260_v40 = vpop.f32.mrf.mxu1 }
0x5511   :  { %v10876_v27 = vpop.f32.mrf.mxu1 }
0x5512   :  { %v8162_v27 = vadd.f32 %v13071_v61, %v13025_v28 }
0x551e   :  { %8287 = vrot.lane.b32.xlu1 %v12957_v12, %s11296_s23 }
0x5522   :  { %8436 = vrot.lane.b32.xlu1 %v12957_v12, %s13329_s27 }
0x5526   :  { %8486 = vrot.lane.b32.xlu1 %v12961_v24, %s13329_s27 }
0x552a   :  { %8484 = vrot.lane.b32.xlu1 %v12973_v2, %s13329_s27 }
0x5570   :  { %v8277_v7 = vpop.xlane.xlu0 %8276 }
0x5571   :  { %11202 = vrcp.f32 %v8277_v7 }
0x557e   :  { %v11203_v41 = vpop.eup %11202 }
0x557f   :  { %v8283_v20 = vmul.f32 %v11203_v41, %v11201_v56 }
0x5581   :  { %v8285_v49 = vpack.c.bf16 %v8283_v20, %v8283_v20 }
0x5596   :  { %v8268_v54 = vpop.xlane.xlu1 %8267 }
0x5597   :  { %v8270_v32 = vsub.f32 %v8257_v38, %v8268_v54  ;;  %v8161_v38 = vadd.f32 %v13069_v35, %v13023_v33 }
0x5599   :  { %v8273_v30 = vmul.f32 1.442695, %v8270_v32 }
0x559a   :  { %v8288_v39 = vpop.permute.xlu1 %8287 }
0x559b   :  { %11204 = vpow2.f32 %v8273_v30  ;;  %v8293_v47 = vsel %vm362_vm3, %v8288_v39, 0 }
0x559c   :  { %10878 = vmatpush3.bf16.msra.mxu0 %v8293_v47 }
0x559d   :  { %10889 = vmatprep.subr.bf16.mxu0 %v11288_v3 }
0x559e   :  { %v8437_v10 = vpop.permute.xlu1 %8436 }
0x559f   :  { %10880 = vmatmul.mubr.msk.bf16.vlgmr.msra.gmra.mxu0 %vm237_vm2, %v8285_v49 }
0x55a0   :  { %10891 = vmatprep.mubr.msk.bf16.mxu0 %vm11289_vm0, %v11288_v3  ;;  %10890 = vmatpush3.bf16.msra.mxu0 %v8389_v53 }
0x55a1   :  { %10901 = vmatprep.subr.bf16.mxu0 %v11288_v3 }
0x55a2   :  { %v8487_v48 = vpop.permute.xlu1 %8486 }
0x55a3   :  { %v8492_v4 = vsel %vm237_vm2, %v8487_v48, 0 }
0x55a6   :  { %v8485_v17 = vpop.permute.xlu1 %8484 }
0x55a8   :  { %v11205_v2 = vpop.eup %11204 }
0x55a9   :  { %v8278_v50 = vsel %vm237_vm2, %v11205_v2, 0.0 }
0x55aa   :  { %8279 = vadd.xlane.f32.xlu0 %v8278_v50 }
0x55c0   :  { %8335 = vrot.lane.b32.xlu0 %v12961_v24, %s11296_s23 }
0x55c4   :  { %8434 = vrot.lane.b32.xlu0 %v12967_v63, %s13329_s27  ;;  %v8442_v63 = vsel %vm237_vm2, %v8437_v10, 0 }
0x5633   :  { %v8280_v62 = vpop.xlane.xlu0 %8279 }
0x5634   :  { %11206 = vrcp.f32 %v8280_v62  ;;  %v9575_v62 = vld [vmem:[%s13319_s30 + $0x38] sm:$0xff] }
0x5637   :  { %v8336_v8 = vpop.permute.xlu0 %8335 }
0x5638   :  { %v8341_v9 = vsel %vm362_vm3, %v8336_v8, 0  ;;  %v8655_v8 = vpack.c.bf16 %v9575_v62, %v9575_v62  ;;  %v9609_v62 = vld [vmem:[%s13321_s7 + $0xa0] sm:$0xff] }
0x5639   :  { %10884 = vmatpush3.bf16.msra.mxu1 %v8341_v9 }
0x563a   :  { %10895 = vmatprep.subr.bf16.mxu1 %v11288_v3  ;;  %v8660_v9 = vsel %vm362_vm3, %v8655_v8, 0 }
0x563b   :  { %v8435_v21 = vpop.permute.xlu0 %8434 }
0x5641   :  { %v11207_v5 = vpop.eup %11206 }
0x5642   :  { %v8284_v55 = vmul.f32 %v11207_v5, %v11205_v2 }
0x5644   :  { %v8286_v29 = vpack.c.bf16 %v8284_v55, %v8284_v55 }
0x5646   :  { %10886 = vmatmul.mubr.msk.bf16.vlgmr.msra.gmra.mxu1 %vm237_vm2, %v8286_v29 }
0x5647   :  { %10896 = vmatpush3.bf16.xpose.msra.mxu1 %v8442_v63  ;;  %10897 = vmatprep.mubr.msk.bf16.mxu1 %vm11289_vm0, %v11288_v3 }
0x5648   :  { %10907 = vmatprep.subr.bf16.mxu1 %v11288_v3 }
0x564e   :  { %10898 = vmatmul.mubr.msk.bf16.vlgmr.msra.gmra.mxu1 %vm237_vm2, %v8435_v21 }
0x564f   :  { %10909 = vmatprep.mubr.msk.bf16.mxu1 %vm11289_vm0, %v11288_v3 }
0x565f   :  { %v8329_v18 = vpop.f32.mrf.mxu0 }
0x5661   :  { %v10881_v58 = vpop.f32.mrf.mxu0 }
0x5663   :  { %v8332_v60 = vpop.f32.mrf.mxu0 }
0x5665   :  { %v10882_v0 = vpop.f32.mrf.mxu0 }
0x5706   :  { %v8377_v59 = vpop.f32.mrf.mxu1 }
0x5707   :  { %v8383_v15 = vpack.c.bf16 %v8377_v59, %v8329_v18 }
0x5708   :  { %v10887_v16 = vpop.f32.mrf.mxu1 }
0x5709   :  { %10892 = vmatmul.mubr.msk.bf16.vlgmr.msra.gmra.mxu0 %vm237_vm2, %v8383_v15 }
0x570a   :  { %10902 = vmatpush3.bf16.xpose.msra.mxu0 %v8492_v4  ;;  %v8380_v11 = vpop.f32.mrf.mxu1  ;;  %10903 = vmatprep.mubr.msk.bf16.mxu0 %vm11289_vm0, %v11288_v3  ;;  %v9600_v4 = vld [vmem:[%s13320_s6 + $0x1] ss:$0 sm:$0xff] }
0x570b   :  { %10913 = vmatprep.subr.bf16.mxu0 %v11288_v3 }
0x570c   :  { %v10888_v13 = vpop.f32.mrf.mxu1 }
0x570e   :  { %v8478_v6 = vpop.f32.mrf.mxu1 }
0x570f   :  { %v8534_v34 = vsel %vm237_vm2, %v8478_v6, -inf }
0x5710   :  { %8535 = vmax.xlane.f32.xlu0 %v8534_v34  ;;  %v10899_v22 = vpop.f32.mrf.mxu1 }
0x5711   :  { %10904 = vmatmul.mubr.msk.bf16.vlgmr.msra.gmra.mxu0 %vm237_vm2, %v8485_v17 }
0x5712   :  { %v8481_v23 = vpop.f32.mrf.mxu1  ;;  %10915 = vmatprep.mubr.msk.bf16.mxu0 %vm11289_vm0, %v11288_v3 }
0x5714   :  { %v10900_v25 = vpop.f32.mrf.mxu1 }
0x5799   :  { %v8536_v43 = vpop.xlane.xlu0 %8535 }
0x579a   :  { %v8540_v56 = vsub.f32 %v8478_v6, %v8536_v43 }
0x579c   :  { %v8542_v57 = vmul.f32 1.442695, %v8540_v56 }
0x579e   :  { %11208 = vpow2.f32 %v8542_v57 }
0x57ab   :  { %v11209_v37 = vpop.eup %11208 }
0x57ac   :  { %v8546_v19 = vsel %vm237_vm2, %v11209_v37, 0.0 }
0x57ad   :  { %8547 = vadd.xlane.f32.xlu0 %v8546_v19 }
0x57c9   :  { %v8425_v36 = vpop.f32.mrf.mxu0 }
0x57ca   :  { %v8432_v1 = vadd.f32 %v8425_v36, %v8161_v38 }
0x57cb   :  { %v10893_v40 = vpop.f32.mrf.mxu0 }
0x57cd   :  { %v8428_v7 = vpop.f32.mrf.mxu0 }
0x57ce   :  { %v8433_v41 = vadd.f32 %v8428_v7, %v8162_v27 }
0x57cf   :  { %v10894_v54 = vpop.f32.mrf.mxu0 }
0x57d0   :  { %v9618_v54 = vld [vmem:[%s13321_s7 + $0xe8] sm:$0xff] }
0x57d1   :  { %v8528_v32 = vpop.f32.mrf.mxu0 }
0x57d2   :  { %v8537_v20 = vsel %vm237_vm2, %v8528_v32, -inf }
0x57d3   :  { %8538 = vmax.xlane.f32.xlu1 %v8537_v20  ;;  %v10905_v30 = vpop.f32.mrf.mxu0 }
0x57d4   :  { %v9620_v30 = vld [vmem:[%s13321_s7 + $0xf8] sm:$0xff] }
0x57d5   :  { %v8531_v39 = vpop.f32.mrf.mxu0 }
0x57d6   :  { %v9613_v39 = vld [vmem:[%s13321_s7 + $0xc0] sm:$0xff] }
0x57d7   :  { %v10906_v47 = vpop.f32.mrf.mxu0 }
0x57d8   :  { %v9617_v47 = vld [vmem:[%s13321_s7 + $0xe0] sm:$0xff] }
0x57e4   :  { %8558 = vrot.lane.b32.xlu1 %v12957_v12, %s11298_s28 }
0x5836   :  { %v8548_v33 = vpop.xlane.xlu0 %8547 }
0x5837   :  { %11210 = vrcp.f32 %v8548_v33 }
0x5844   :  { %v11211_v35 = vpop.eup %11210 }
0x5845   :  { %v8554_v28 = vmul.f32 %v11211_v35, %v11209_v37  ;;  %v8852_v35 = vpack.c.bf16 %v9617_v47, %v9613_v39  ;;  %v9649_v39 = vld [vmem:[%s13322_s10 + $0x2d8] sm:$0xff]  ;;  %v9680_v47 = vld [vmem:[%s13322_s10 + $0x3d0] sm:$0xff] }
0x5847   :  { %v8556_v26 = vpack.c.bf16 %v8554_v28, %v8554_v28 }
0x585c   :  { %v8539_v49 = vpop.xlane.xlu1 %8538 }
0x585d   :  { %v8541_v2 = vsub.f32 %v8528_v32, %v8539_v49  ;;  %v9616_v32 = vld [vmem:[%s13321_s7 + $0xd8] sm:$0xff]  ;;  %v9615_v49 = vld [vmem:[%s13321_s7 + $0xd0] sm:$0xff] }
0x585e   :  { %v8855_v33 = vpack.c.bf16 %v9620_v30, %v9616_v32  ;;  %v9666_v32 = vld [vmem:[%s13322_s10 + $0x360] sm:$0xff]  ;;  %v9648_v30 = vld [vmem:[%s13322_s10 + $0x2d0] sm:$0xff] }
0x585f   :  { %v8544_v61 = vmul.f32 1.442695, %v8541_v2  ;;  %v9619_v2 = vld [vmem:[%s13321_s7 + $0xf0] sm:$0xff] }
0x5860   :  { %v8559_v50 = vpop.permute.xlu1 %8558  ;;  %v8854_v28 = vpack.c.bf16 %v9619_v2, %v9615_v49  ;;  %v9632_v2 = vld [vmem:[%s13322_s10 + $0x250] sm:$0xff] }
0x5861   :  { %11212 = vpow2.f32 %v8544_v61  ;;  %v8564_v51 = vsel %vm362_vm3, %v8559_v50, 0  ;;  %v9606_v61 = vld [vmem:[%s13321_s7 + $0x88] sm:$0xff] }
0x5862   :  { %10908 = vmatpush3.bf16.msra.mxu1 %v8564_v51  ;;  %v9610_v50 = vld [vmem:[%s13321_s7 + $0xa8] sm:$0xff]  ;;  %v9608_v51 = vld [vmem:[%s13321_s7 + $0x98] sm:$0xff] }
0x5863   :  { %10919 = vmatprep.subr.bf16.mxu1 %v11288_v3 }
0x5865   :  { %10910 = vmatmul.mubr.msk.bf16.vlgmr.msra.gmra.mxu1 %vm237_vm2, %v8556_v26  ;;  %v8849_v26 = vpack.c.bf16 %v9610_v50, %v9606_v61  ;;  %v8999_v61 = vpack.c.bf16 %v9649_v39, %v9648_v30 }
0x5866   :  { %10921 = vmatprep.mubr.msk.bf16.mxu1 %vm11289_vm0, %v11288_v3  ;;  %10920 = vmatpush3.bf16.msra.mxu1 %v8660_v9 }
0x5867   :  { %8914 = vmatprep.subr.bf16.mxu1 %v8855_v33  ;;  %v9681_v33 = vld [vmem:[%s13322_s10 + $0x3d8] sm:$0xff] }
0x5868   :  { %v9015_v50 = vpack.c.bf16 %v9681_v33, %v9680_v47  ;;  %v9656_v47 = vld [vmem:[%s13322_s10 + $0x310] sm:$0xff]  ;;  %v9657_v33 = vld [vmem:[%s13322_s10 + $0x318] sm:$0xff] }
0x586e   :  { %v11213_v12 = vpop.eup %11212 }
0x586f   :  { %v8549_v53 = vsel %vm237_vm2, %v11213_v12, 0.0 }
0x5870   :  { %8550 = vadd.xlane.f32.xlu0 %v8549_v53  ;;  %v9605_v53 = vld [vmem:[%s13321_s7 + $0x80] sm:$0xff] }
0x5871   :  { %v8848_v9 = vpack.c.bf16 %v9609_v62, %v9605_v53  ;;  %v9647_v53 = vld [vmem:[%s13322_s10 + $0x2c8] sm:$0xff]  ;;  %v9678_v62 = vld [vmem:[%s13322_s10 + $0x3c0] sm:$0xff] }
0x5886   :  { %8606 = vrot.lane.b32.xlu0 %v12961_v24, %s11298_s28 }
0x58f9   :  { %v8551_v5 = vpop.xlane.xlu0 %8550 }
0x58fa   :  { %11214 = vrcp.f32 %v8551_v5  ;;  %v9607_v5 = vld [vmem:[%s13321_s7 + $0x90] sm:$0xff] }
0x58fd   :  { %v8607_v55 = vpop.permute.xlu0 %8606 }
0x58fe   :  { %v8612_v10 = vsel %vm362_vm3, %v8607_v55, 0  ;;  %v9611_v55 = vld [vmem:[%s13321_s7 + $0xb0] sm:$0xff] }
0x58ff   :  { %10914 = vmatpush3.bf16.msra.mxu0 %v8612_v10  ;;  %v8850_v10 = vpack.c.bf16 %v9611_v55, %v9607_v5  ;;  %v9630_v55 = vld [vmem:[%s13322_s10 + $0x240] sm:$0xff] }
0x5907   :  { %v11215_v29 = vpop.eup %11214 }
0x5908   :  { %v8555_v63 = vmul.f32 %v11215_v29, %v11213_v12  ;;  %v9612_v12 = vld [vmem:[%s13321_s7 + $0xb8] sm:$0xff]  ;;  %v9652_v29 = vld [vmem:[%s13322_s10 + $0x2f0] sm:$0xff] }
0x5909   :  { %v8851_v8 = vpack.c.bf16 %v9612_v12, %v9608_v51  ;;  %v9664_v51 = vld [vmem:[%s13322_s10 + $0x350] sm:$0xff]  ;;  %v9646_v12 = vld [vmem:[%s13322_s10 + $0x2c0] sm:$0xff] }
0x590a   :  { %v8557_v21 = vpack.c.bf16 %v8555_v63, %v8555_v63  ;;  %v9653_v63 = vld [vmem:[%s13322_s10 + $0x2f8] sm:$0xff] }
0x590c   :  { %10916 = vmatmul.mubr.msk.bf16.vlgmr.msra.gmra.mxu0 %vm237_vm2, %v8557_v21  ;;  %v9684_v21 = vld [vmem:[%s13322_s10 + $0x3f0] sm:$0xff] }
0x590d   :  { %8891 = vmatprep.mubr.bf16.mxu0 %v11301_v42 }
0x5925   :  { %v8600_v24 = vpop.f32.mrf.mxu1 }
0x5927   :  { %v10911_v18 = vpop.f32.mrf.mxu1 }
0x5928   :  { %v9685_v18 = vld [vmem:[%s13322_s10 + $0x3f8] sm:$0xff] }
0x5929   :  { %v8603_v58 = vpop.f32.mrf.mxu1 }
0x592a   :  { %v9017_v58 = vpack.c.bf16 %v9685_v18, %v9684_v21  ;;  %v9662_v21 = vld [vmem:[%s13322_s10 + $0x340] sm:$0xff]  ;;  %v9644_v18 = vld [vmem:[%s13322_s10 + $0x2b0] sm:$0xff] }
0x592b   :  { %v10912_v60 = vpop.f32.mrf.mxu1 }
0x59cc   :  { %v8648_v0 = vpop.f32.mrf.mxu0 }
0x59cd   :  { %v8654_v48 = vpack.c.bf16 %v8648_v0, %v8600_v24  ;;  %v9001_v24 = vpack.c.bf16 %v9653_v63, %v9652_v29  ;;  %v8998_v29 = vpack.c.bf16 %v9647_v53, %v9646_v12 }
0x59ce   :  { %v10917_v59 = vpop.f32.mrf.mxu0 }
0x59cf   :  { %10922 = vmatmul.mubr.msk.bf16.vlgmr.msra.gmra.mxu1 %vm237_vm2, %v8654_v48 }
0x59d0   :  { %v8651_v15 = vpop.f32.mrf.mxu0  ;;  %8934 = vmatprep.mubr.bf16.mxu1 %v11301_v42  ;;  %8915 = vmatpush1.bf16.msra.mxu1 %v8854_v28  ;;  %v9633_v28 = vld [vmem:[%s13322_s10 + $0x258] sm:$0xff] }
0x59d1   :  { %8916 = vmatprep.subr.bf16.mxu1 %v8851_v8  ;;  %v9679_v8 = vld [vmem:[%s13322_s10 + $0x3c8] sm:$0xff] }
0x59d2   :  { %v10918_v16 = vpop.f32.mrf.mxu0  ;;  %v9014_v63 = vpack.c.bf16 %v9679_v8, %v9678_v62  ;;  %v9654_v62 = vld [vmem:[%s13322_s10 + $0x300] sm:$0xff]  ;;  %v9655_v8 = vld [vmem:[%s13322_s10 + $0x308] sm:$0xff] }
0x59d4   :  { %8917 = vmatpush1.bf16.msra.mxu1 %v8850_v10  ;;  %v9631_v10 = vld [vmem:[%s13322_s10 + $0x248] sm:$0xff] }
0x59d5   :  { %10116 = vmatprep.subr.bf16.mxu1 %v9017_v58  ;;  %v9645_v58 = vld [vmem:[%s13322_s10 + $0x2b8] sm:$0xff] }
0x5a8f   :  { %v8696_v11 = vpop.f32.mrf.mxu1 }
0x5a90   :  { %v8703_v13 = vadd.f32 %v8696_v11, %v8432_v1 }
0x5a91   :  { %v10923_v6 = vpop.f32.mrf.mxu1 }
0x5a92   :  { %v8711_v34 = vadd.f32 %v9600_v4, %v8703_v13  ;;  %v9603_v13 = vld [vmem:[%s13323_s11 + $0x1] ss:$0 sm:$0xff] }
0x5a93   :  { %v8699_v17 = vpop.f32.mrf.mxu1 }
0x5a94   :  { %v8704_v22 = vadd.f32 %v8699_v17, %v8433_v41  ;;  %v8713_v23 = vadd.f32 %v8711_v34, %v12948_v52  ;;  %v9614_v41 = vld [vmem:[%s13321_s7 + $0xc8] sm:$0xff] }
0x5a95   :  { %v10924_v25 = vpop.f32.mrf.mxu1  ;;  %v8853_v20 = vpack.c.bf16 %v9618_v54, %v9614_v41 }
0x5a96   :  { %v8712_v43 = vadd.f32 %v9600_v4, %v8704_v22  ;;  %v8719_v56 = vsel %vm175_vm1, %v8713_v23, 0.0  ;;  %v9604_v22 = vld [vmem:[%s13324_s13 + $0x1] ss:$0 sm:$0xff]  ;;  %v9637_v25 = vld [vmem:[%s13322_s10 + $0x278] sm:$0xff] }
0x5a97   :  { %8720 = vadd.xlane.f32.xlu1 %v8719_v56  ;;  %8871 = vmatprep.subr.bf16.mxu0 %v8853_v20  ;;  %v9668_v56 = vld [vmem:[%s13322_s10 + $0x370] sm:$0xff]  ;;  %v9667_v20 = vld [vmem:[%s13322_s10 + $0x368] sm:$0xff] }
0x5a98   :  { %v8714_v57 = vadd.f32 %v8712_v43, %v12950_v31  ;;  %8872 = vmatpush1.bf16.msra.mxu0 %v8852_v35  ;;  %v9008_v49 = vpack.c.bf16 %v9667_v20, %v9666_v32  ;;  %v9624_v32 = vld [vmem:[%s13322_s10 + $0x210] sm:$0xff]  ;;  %v9625_v20 = vld [vmem:[%s13322_s10 + $0x218] sm:$0xff] }
0x5a99   :  { %8873 = vmatprep.subr.bf16.mxu0 %v8849_v26  ;;  %v9665_v26 = vld [vmem:[%s13322_s10 + $0x358] sm:$0xff]  ;;  %v8987_v39 = vpack.c.bf16 %v9625_v20, %v9624_v32 }
0x5a9a   :  { %v8722_v42 = vsel %vm175_vm1, %v8714_v57, 0.0  ;;  %v9007_v5 = vpack.c.bf16 %v9665_v26, %v9664_v51  ;;  %v9622_v51 = vld [vmem:[%s13322_s10 + $0x200] sm:$0xff]  ;;  %v9623_v26 = vld [vmem:[%s13322_s10 + $0x208] sm:$0xff] }
0x5a9b   :  { %8723 = vadd.xlane.f32.xlu0 %v8722_v42  ;;  %v9650_v42 = vld [vmem:[%s13322_s10 + $0x2e0] sm:$0xff]  ;;  %v8986_v53 = vpack.c.bf16 %v9623_v26, %v9622_v51 }
0x5a9c   :  { %8874 = vmatpush1.bf16.msra.mxu0 %v8848_v9  ;;  %v8991_v9 = vpack.c.bf16 %v9633_v28, %v9632_v2  ;;  %v9639_v2 = vld [vmem:[%s13322_s10 + $0x288] sm:$0xff]  ;;  %v9670_v28 = vld [vmem:[%s13322_s10 + $0x380] sm:$0xff] }
0x5a9d   :  { %10094 = vmatprep.subr.bf16.mxu0 %v9001_v24  ;;  %v9663_v24 = vld [vmem:[%s13322_s10 + $0x348] sm:$0xff] }
0x5b20   :  { %v8721_v37 = vpop.xlane.xlu1 %8720 }
0x5b21   :  { %v8725_v19 = vmul.f32 0.03125, %v8721_v37  ;;  %v9651_v37 = vld [vmem:[%s13322_s10 + $0x2e8] sm:$0xff] }
0x5b22   :  { %v9000_v41 = vpack.c.bf16 %v9651_v37, %v9650_v42  ;;  %v9627_v42 = vld [vmem:[%s13322_s10 + $0x228] sm:$0xff] }
0x5b23   :  { %v8727_v38 = vsub.f32 %v8713_v23, %v8725_v19  ;;  %v9636_v23 = vld [vmem:[%s13322_s10 + $0x270] sm:$0xff]  ;;  %v9682_v19 = vld [vmem:[%s13322_s10 + $0x3e0] sm:$0xff] }
0x5b24   :  { %v8724_v52 = vpop.xlane.xlu0 %8723 }
0x5b25   :  { %v8726_v36 = vmul.f32 0.03125, %v8724_v52  ;;  %v8729_v1 = vmul.f32 %v8727_v38, %v8727_v38 }
0x5b27   :  { %v8728_v40 = vsub.f32 %v8714_v57, %v8726_v36  ;;  %v8731_v27 = vsel %vm175_vm1, %v8729_v1, 0.0  ;;  %v9669_v57 = vld [vmem:[%s13322_s10 + $0x378] sm:$0xff]  ;;  %v8993_v1 = vpack.c.bf16 %v9637_v25, %v9636_v23  ;;  %v9643_v23 = vld [vmem:[%s13322_s10 + $0x2a8] sm:$0xff]  ;;  %v9674_v25 = vld [vmem:[%s13322_s10 + $0x3a0] sm:$0xff] }
0x5b28   :  { %8732 = vadd.xlane.f32.xlu1 %v8731_v27  ;;  %v9634_v27 = vld [vmem:[%s13322_s10 + $0x260] sm:$0xff] }
0x5b29   :  { %v8730_v31 = vmul.f32 %v8728_v40, %v8728_v40 }
0x5b2b   :  { %v8734_v7 = vsel %vm175_vm1, %v8730_v31, 0.0  ;;  %v9635_v31 = vld [vmem:[%s13322_s10 + $0x268] sm:$0xff] }
0x5b2c   :  { %8735 = vadd.xlane.f32.xlu0 %v8734_v7  ;;  %v8992_v35 = vpack.c.bf16 %v9635_v31, %v9634_v27  ;;  %v9640_v27 = vld [vmem:[%s13322_s10 + $0x290] sm:$0xff]  ;;  %v9641_v31 = vld [vmem:[%s13322_s10 + $0x298] sm:$0xff] }
0x5bb1   :  { %v8733_v60 = vpop.xlane.xlu1 %8732 }
0x5bb2   :  { %v8737_v0 = vmul.f32 0.03125, %v8733_v60  ;;  %v9676_v60 = vld [vmem:[%s13322_s10 + $0x3b0] sm:$0xff] }
0x5bb4   :  { %v8739_v48 = vadd.f32 1e-05, %v8737_v0  ;;  %v9677_v0 = vld [vmem:[%s13322_s10 + $0x3b8] sm:$0xff] }
0x5bb5   :  { %v8736_v59 = vpop.xlane.xlu0 %8735 }
0x5bb6   :  { %11216 = vrsqrt.f32 %v8739_v48  ;;  %v8738_v15 = vmul.f32 0.03125, %v8736_v59  ;;  %v8990_v48 = vpack.c.bf16 %v9631_v10, %v9630_v55  ;;  %v9006_v59 = vpack.c.bf16 %v9663_v24, %v9662_v21 }
0x5bb8   :  { %v8740_v16 = vadd.f32 1e-05, %v8738_v15  ;;  %v9628_v15 = vld [vmem:[%s13322_s10 + $0x230] sm:$0xff] }
0x5bba   :  { %11218 = vrsqrt.f32 %v8740_v16  ;;  %v8997_v16 = vpack.c.bf16 %v9645_v58, %v9644_v18 }
0x5bc3   :  { %v11217_v4 = vpop.eup %11216 }
0x5bc4   :  { %v8743_v11 = vmul.f32 %v11217_v4, %v8727_v38  ;;  %v9683_v38 = vld [vmem:[%s13322_s10 + $0x3e8] sm:$0xff]  ;;  %v9013_v4 = vpack.c.bf16 %v9677_v0, %v9676_v60 }
0x5bc5   :  { %v9016_v54 = vpack.c.bf16 %v9683_v38, %v9682_v19  ;;  %v9658_v38 = vld [vmem:[%s13322_s10 + $0x320] sm:$0xff] }
0x5bc6   :  { %v8751_v34 = vmul.f32 %v9603_v13, %v8743_v11  ;;  %v9629_v11 = vld [vmem:[%s13322_s10 + $0x238] sm:$0xff] }
0x5bc7   :  { %v11219_v6 = vpop.eup %11218 }
0x5bc8   :  { %v8744_v17 = vmul.f32 %v11219_v6, %v8728_v40  ;;  %v13174_v52 = vadd.f32 %v9604_v22, %v8751_v34  ;;  %v9009_v40 = vpack.c.bf16 %v9669_v57, %v9668_v56  ;;  %v9661_v6 = vld [vmem:[%s13322_s10 + $0x338] sm:$0xff]  ;;  %v8989_v34 = vpack.c.bf16 %v9629_v11, %v9628_v15  ;;  %v9675_v56 = vld [vmem:[%s13322_s10 + $0x3a8] sm:$0xff]  ;;  %v9626_v57 = vld [vmem:[%s13322_s10 + $0x220] sm:$0xff] }
0x5bc9   :  { %v9012_v37 = vpack.c.bf16 %v9675_v56, %v9674_v25  ;;  %v8988_v19 = vpack.c.bf16 %v9627_v42, %v9626_v57 }
0x5bca   :  { %v8752_v43 = vmul.f32 %v9603_v13, %v8744_v17  ;;  %v9660_v13 = vld [vmem:[%s13322_s10 + $0x330] sm:$0xff] }
0x5bcb   :  { %v9005_v17 = vpack.c.bf16 %v9661_v6, %v9660_v13 }
0x5bcc   :  { %v13176_v36 = vadd.f32 %v9604_v22, %v8752_v43  ;;  %v9642_v22 = vld [vmem:[%s13322_s10 + $0x2a0] sm:$0xff] }
0x5bcd   :  { %v8996_v43 = vpack.c.bf16 %v9643_v23, %v9642_v22 }
0x5bce   :  { %v8847_v7 = vpack.c.bf16 %v13176_v36, %v13174_v52 }
0x5bd0   :  { %9687 = vmatmul.mubr.msk.bf16.vlgmr.msra.gmra.mxu0 %vm175_vm1, %v8847_v7  ;;  %9688 = vmatmul.mubr.msk.bf16.vlgmr.msra.gmra.mxu1 %vm175_vm1, %v8847_v7  ;;  %v9672_v7 = vld [vmem:[%s13322_s10 + $0x390] sm:$0xff] }
0x5bd1   :  { %10095 = vmatpush3.bf16.msra.mxu0 %v8993_v1  ;;  %10117 = vmatpush3.bf16.msra.mxu1 %v9009_v40  ;;  %v9659_v1 = vld [vmem:[%s13322_s10 + $0x328] sm:$0xff] }
0x5bd2   :  { %10096 = vmatprep.subr.bf16.mxu0 %v9000_v41  ;;  %10118 = vmatprep.subr.bf16.mxu1 %v9016_v54  ;;  %v9004_v40 = vpack.c.bf16 %v9659_v1, %v9658_v38  ;;  %v8995_v41 = vpack.c.bf16 %v9641_v31, %v9640_v27  ;;  %v9673_v54 = vld [vmem:[%s13322_s10 + $0x398] sm:$0xff] }
0x5bd3   :  { %v9011_v30 = vpack.c.bf16 %v9673_v54, %v9672_v7  ;;  %v9689_v7 = vld [vmem:[%s13326_s14 + $0x1] ss:$0 sm:$0xff] }
0x5bd5   :  { %10097 = vmatpush3.bf16.msra.mxu0 %v8992_v35  ;;  %10119 = vmatpush3.bf16.msra.mxu1 %v9008_v49  ;;  %v9003_v35 = vpack.c.bf16 %v9657_v33, %v9656_v47  ;;  %v9638_v49 = vld [vmem:[%s13322_s10 + $0x280] sm:$0xff] }
0x5bd6   :  { %10098 = vmatprep.subr.bf16.mxu0 %v8999_v61  ;;  %10120 = vmatprep.subr.bf16.mxu1 %v9015_v50  ;;  %v8994_v61 = vpack.c.bf16 %v9639_v2, %v9638_v49  ;;  %v9671_v50 = vld [vmem:[%s13322_s10 + $0x388] sm:$0xff] }
0x5bd7   :  { %v9010_v12 = vpack.c.bf16 %v9671_v50, %v9670_v28 }
0x5bd9   :  { %10099 = vmatpush3.bf16.msra.mxu0 %v8991_v9  ;;  %10121 = vmatpush3.bf16.msra.mxu1 %v9007_v5  ;;  %v9002_v9 = vpack.c.bf16 %v9655_v8, %v9654_v62  ;;  %v9621_v5 = vld [vmem:[%s13325_s8 + $0x4] sm:$0xf] }
0x5bda   :  { %10100 = vmatprep.subr.bf16.mxu0 %v8998_v29  ;;  %10122 = vmatprep.subr.bf16.mxu1 %v9014_v63  ;;  %v8953_v29 = vrot.slane %v9621_v5, %v11810_v44  ;;  %v8961_v63 = vrot.slane %v9621_v5, %v11812_v45  ;;  %v8949_v21 = vrot.slane %v9621_v5, %v11814_v14 }
0x5bdb   :  { %v8957_v24 = vrot.slane %v9621_v5, %v11816_v46 }
0x5bdd   :  { %10101 = vmatpush3.bf16.msra.mxu0 %v8990_v48  ;;  %10123 = vmatpush3.bf16.msra.mxu1 %v9006_v59 }
0x5bde   :  { %10102 = vmatprep.subr.bf16.mxu0 %v8997_v16  ;;  %10124 = vmatprep.subr.bf16.mxu1 %v9013_v4 }
0x5be1   :  { %10103 = vmatpush3.bf16.msra.mxu0 %v8989_v34  ;;  %10125 = vmatpush3.bf16.msra.mxu1 %v9005_v17 }
0x5be2   :  { %10104 = vmatprep.subr.bf16.mxu0 %v8996_v43  ;;  %10126 = vmatprep.subr.bf16.mxu1 %v9012_v37 }
0x5be5   :  { %10105 = vmatpush3.bf16.msra.mxu0 %v8988_v19  ;;  %10127 = vmatpush3.bf16.msra.mxu1 %v9004_v40 }
0x5be6   :  { %10106 = vmatprep.subr.bf16.mxu0 %v8995_v41  ;;  %10128 = vmatprep.subr.bf16.mxu1 %v9011_v30 }
0x5be9   :  { %10107 = vmatpush3.bf16.msra.mxu0 %v8987_v39  ;;  %10129 = vmatpush3.bf16.msra.mxu1 %v9003_v35 }
0x5bea   :  { %10108 = vmatprep.subr.bf16.mxu0 %v8994_v61  ;;  %10130 = vmatprep.subr.bf16.mxu1 %v9010_v12 }
0x5bed   :  { %10109 = vmatpush3.bf16.msra.mxu0 %v8986_v53  ;;  %10131 = vmatpush3.bf16.msra.mxu1 %v9002_v9 }
0x5bee   :  { %10925 = vmatprep.subr.bf16.mxu0 %v11288_v3 }
0x5c90   :  { %v8893_v55 = vpop.f32.mrf.mxu0  ;;  %v8936_v10 = vpop.f32.mrf.mxu1 }
0x5c91   :  { %v8966_v4 = vadd.f32 %v8949_v21, %v8893_v55  ;;  %v8968_v11 = vadd.f32 %v8957_v24, %v8936_v10 }
0x5c92   :  { %v8895_v18 = vpop.f32.mrf.mxu0  ;;  %v8938_v58 = vpop.f32.mrf.mxu1 }
0x5c93   :  { %v8967_v48 = vadd.f32 %v8953_v29, %v8895_v18  ;;  %v8969_v59 = vadd.f32 %v8961_v63, %v8938_v58  ;;  %v8974_v25 = vmax.f32 %v8966_v4, 0.0  ;;  %v8976_v43 = vmax.f32 %v8968_v11, 0.0  ;;  %v9692_v58 = vld [vmem:[%s13327_s2 + $0x1] ss:$0 sm:$0xff] }
0x5c94   :  { %v8897_v60 = vpop.f32.mrf.mxu0  ;;  %v8940_v0 = vpop.f32.mrf.mxu1 }
0x5c95   :  { %v8970_v15 = vadd.f32 %v8949_v21, %v8897_v60  ;;  %v8972_v16 = vadd.f32 %v8957_v24, %v8940_v0  ;;  %v8975_v22 = vmax.f32 %v8967_v48, 0.0  ;;  %v8977_v14 = vmax.f32 %v8969_v59, 0.0  ;;  %v9693_v0 = vld [vmem:[%s13328_s1 + $0x1] ss:$0 sm:$0xff] }
0x5c96   :  { %v8899_v13 = vpop.f32.mrf.mxu0  ;;  %v8942_v6 = vpop.f32.mrf.mxu1 }
0x5c97   :  { %v8971_v34 = vadd.f32 %v8953_v29, %v8899_v13  ;;  %v8973_v44 = vadd.f32 %v8961_v63, %v8942_v6  ;;  %v8978_v17 = vmax.f32 %v8970_v15, 0.0  ;;  %v8980_v45 = vmax.f32 %v8972_v16, 0.0 }
0x5c99   :  { %v8979_v23 = vmax.f32 %v8971_v34, 0.0  ;;  %v8981_v46 = vmax.f32 %v8973_v44, 0.0  ;;  %v8982_v42 = vpack.c.bf16 %v8978_v17, %v8974_v25  ;;  %v8984_v37 = vpack.c.bf16 %v8980_v45, %v8976_v43 }
0x5c9b   :  { %v8983_v56 = vpack.c.bf16 %v8979_v23, %v8975_v22  ;;  %v8985_v57 = vpack.c.bf16 %v8981_v46, %v8977_v14 }
0x5c9d   :  { %9050 = vmatprep.mubr.bf16.mxu0 %v8983_v56  ;;  %9091 = vmatprep.mubr.bf16.mxu1 %v8985_v57  ;;  %v9202_v56 = vld [vmem:[%s11493_s9 + $0x10] sm:$0xff]  ;;  %v9203_v57 = vld [vmem:[%s11493_s9 + $0x18] sm:$0xff] }
0x5c9e   :  { %9051 = vmatmul.mubr.bf16.vlgmr.msra.gmra.mxu0 %v8982_v42  ;;  %9092 = vmatmul.mubr.bf16.vlgmr.msra.gmra.mxu1 %v8984_v37  ;;  %v9207_v42 = vpack.c.bf16 %v9203_v57, %v9202_v56  ;;  %v9200_v37 = vld [vmem:[%s11493_s9] sm:$0xff] }
0x5c9f   :  { %10929 = vmatprep.mubr.msk.bf16.mxu0 %vm11289_vm0, %v11288_v3 }
0x5ca0   :  { %10926 = vmatpush3.bf16.msra.mxu0 %v9207_v42 }
0x5ca1   :  { %10927 = vmatprep.subr.bf16.mxu0 %v11288_v3 }
0x5d5e   :  { %v10110_v19 = vpop.f32.mrf.mxu0  ;;  %v10132_v38 = vpop.f32.mrf.mxu1 }
0x5d60   :  { %v10111_v1 = vpop.f32.mrf.mxu0  ;;  %v10133_v40 = vpop.f32.mrf.mxu1 }
0x5d61   :  { %v10112_v27 = vadd.f32 %v10111_v1, %v10110_v19  ;;  %v10134_v31 = vadd.f32 %v10133_v40, %v10132_v38  ;;  %v9201_v19 = vld [vmem:[%s11493_s9 + $0x8] sm:$0xff]  ;;  %s11302_s9 = smov [#allocation2]  }
0x5d62   :  { %v10113_v41 = vpop.f32.mrf.mxu0  ;;  %v10135_v54 = vpop.f32.mrf.mxu1  ;;  %v9206_v38 = vpack.c.bf16 %v9201_v19, %v9200_v37  ;;  %s9267_s15 = sshll.u32 %s11302_s9, 4  ;;  %s9268_s15 = int_to_ptr.vmem [resolvable:$true] %s9267_s15 }
0x5d63   :  { %v9094_v32 = vadd.f32 %v10134_v31, %v10112_v27  ;;  %s11228_s16 = scalar_lea.vmem %s9268_s15, 256  ;;  %p11233_p1 = scmp.lt.s32.totalorder %s9268_s15, %s9268_s15 }
0x5d64   :  { %v10114_v20 = vpop.f32.mrf.mxu0  ;;  %v10136_v30 = vpop.f32.mrf.mxu1  ;;  %10928 = vmatpush3.bf16.msra.mxu0 %v9206_v38  ;;  %p11229_p0 = scmp.ne.s32.totalorder %s9268_s15, %s11228_s16  ;;  %p11234_p2 = scmp.lt.s32.totalorder %s11228_s16, %s11228_s16 }
0x5d65   :  { %v9106_v39 = vadd.f32 %v9689_v7, %v9094_v32  ;;  %v10115_v47 = vadd.f32 %v10114_v20, %v10113_v41  ;;  %v10137_v33 = vadd.f32 %v10136_v30, %v10135_v54  ;;  %v9694_v20 = vld [vmem:[%s13331_s0] ss:$0 sm:$0xff] }
0x5d66   :  { %p11235_p3 = por %p11234_p2, %p11233_p1 }
0x5d67   :  { %v9097_v35 = vadd.f32 %v10137_v33, %v10115_v47  ;;  %v9108_v49 = vadd.f32 %v9106_v39, %v13174_v52  ;;  %v9695_v47 = vld [vmem:[%s11488_s20] ss:$0 sm:$0xff] }
0x5d68   :  { %p11236_p4 = pnand %p11235_p3, %p11229_p0 }
0x5d69   :  { %v9107_v2 = vadd.f32 %v9689_v7, %v9097_v35  ;;  %v9114_v28 = vsel %vm175_vm1, %v9108_v49, 0.0 }
0x5d6a   :  { %9115 = vadd.xlane.f32.xlu1 %v9114_v28  ;;  %v9697_v28 = vld [vmem:[%s11498_s4] ss:$0 sm:$0xff] }
0x5d6b   :  { %v9109_v61 = vadd.f32 %v9107_v2, %v13176_v36 }
0x5d6d   :  { %v9117_v50 = vsel %vm175_vm1, %v9109_v61, 0.0 }
0x5d6e   :  { %9118 = vadd.xlane.f32.xlu0 %v9117_v50 }
0x5df3   :  { %v9116_v51 = vpop.xlane.xlu1 %9115 }
0x5df4   :  { %v9120_v26 = vmul.f32 0.03125, %v9116_v51 }
0x5df6   :  { %v9122_v12 = vsub.f32 %v9108_v49, %v9120_v26 }
0x5df7   :  { %v9119_v53 = vpop.xlane.xlu0 %9118 }
0x5df8   :  { %v9121_v62 = vmul.f32 0.03125, %v9119_v53  ;;  %v9124_v8 = vmul.f32 %v9122_v12, %v9122_v12 }
0x5dfa   :  { %v9123_v9 = vsub.f32 %v9109_v61, %v9121_v62  ;;  %v9126_v5 = vsel %vm175_vm1, %v9124_v8, 0.0 }
0x5dfb   :  { %9127 = vadd.xlane.f32.xlu1 %v9126_v5 }
0x5dfc   :  { %v9125_v52 = vmul.f32 %v9123_v9, %v9123_v9 }
0x5dfe   :  { %v9129_v55 = vsel %vm175_vm1, %v9125_v52, 0.0 }
0x5dff   :  { %9130 = vadd.xlane.f32.xlu0 %v9129_v55 }
0x5e84   :  { %v9128_v36 = vpop.xlane.xlu1 %9127 }
0x5e85   :  { %v9132_v10 = vmul.f32 0.03125, %v9128_v36 }
0x5e87   :  { %v9134_v29 = vadd.f32 1e-05, %v9132_v10 }
0x5e88   :  { %v9131_v63 = vpop.xlane.xlu0 %9130 }
0x5e89   :  { %11220 = vrsqrt.f32 %v9134_v29  ;;  %v9133_v21 = vmul.f32 0.03125, %v9131_v63 }
0x5e8b   :  { %v9135_v24 = vadd.f32 1e-05, %v9133_v21 }
0x5e8d   :  { %11222 = vrsqrt.f32 %v9135_v24 }
0x5e96   :  { %v11221_v18 = vpop.eup %11220 }
0x5e97   :  { %v9138_v60 = vmul.f32 %v11221_v18, %v9122_v12 }
0x5e99   :  { %v9146_v48 = vmul.f32 %v9692_v58, %v9138_v60 }
0x5e9a   :  { %v11223_v59 = vpop.eup %11222 }
0x5e9b   :  { %v9154_v15 = vadd.f32 %v9693_v0, %v9146_v48  ;;  %v9139_v16 = vmul.f32 %v11223_v59, %v9123_v9 }
0x5e9d   :  { %v9158_v4 = vsel %vm175_vm1, %v9154_v15, 0.0  ;;  %v9147_v11 = vmul.f32 %v9692_v58, %v9139_v16 }
0x5e9e   :  { %9159 = vadd.xlane.f32.xlu1 %v9158_v4 }
0x5e9f   :  { %v9155_v13 = vadd.f32 %v9693_v0, %v9147_v11 }
0x5ea1   :  { %v9161_v6 = vsel %vm175_vm1, %v9155_v13, 0.0 }
0x5ea2   :  { %9162 = vadd.xlane.f32.xlu0 %v9161_v6 }
0x5f27   :  { %v9160_v34 = vpop.xlane.xlu1 %9159 }
0x5f28   :  { %v9164_v44 = vmul.f32 0.03125, %v9160_v34 }
0x5f2a   :  { %v9166_v17 = vsub.f32 %v9154_v15, %v9164_v44 }
0x5f2b   :  { %v9163_v45 = vpop.xlane.xlu0 %9162 }
0x5f2c   :  { %v9165_v22 = vmul.f32 0.03125, %v9163_v45  ;;  %v9168_v14 = vmul.f32 %v9166_v17, %v9166_v17 }
0x5f2e   :  { %v9167_v23 = vsub.f32 %v9155_v13, %v9165_v22  ;;  %v9170_v46 = vsel %vm175_vm1, %v9168_v14, 0.0 }
0x5f2f   :  { %9171 = vadd.xlane.f32.xlu1 %v9170_v46 }
0x5f30   :  { %v9169_v25 = vmul.f32 %v9167_v23, %v9167_v23 }
0x5f32   :  { %v9173_v43 = vsel %vm175_vm1, %v9169_v25, 0.0 }
0x5f33   :  { %9174 = vadd.xlane.f32.xlu0 %v9173_v43 }
0x5fb8   :  { %v9172_v1 = vpop.xlane.xlu1 %9171 }
0x5fb9   :  { %v9176_v40 = vmul.f32 0.03125, %v9172_v1 }
0x5fbb   :  { %v9178_v27 = vadd.f32 1e-05, %v9176_v40 }
0x5fbc   :  { %v9175_v31 = vpop.xlane.xlu0 %9174 }
0x5fbd   :  { %11224 = vrsqrt.f32 %v9178_v27  ;;  %v9177_v7 = vmul.f32 0.03125, %v9175_v31 }
0x5fbf   :  { %v9179_v41 = vadd.f32 1e-05, %v9177_v7 }
0x5fc1   :  { %11226 = vrsqrt.f32 %v9179_v41 }
0x5fca   :  { %v11225_v54 = vpop.eup %11224 }
0x5fcb   :  { %v9182_v32 = vmul.f32 %v11225_v54, %v9166_v17 }
0x5fcd   :  { %v9190_v39 = vmul.f32 %v9694_v20, %v9182_v32 }
0x5fce   :  { %v11227_v30 = vpop.eup %11226 }
0x5fcf   :  { %v9183_v3 = vmul.f32 %v11227_v30, %v9167_v23  ;;  %v9198_v35 = vadd.f32 %v9695_v47, %v9190_v39 }
0x5fd1   :  { %v9191_v33 = vmul.f32 %v9694_v20, %v9183_v3 }
0x5fd3   :  { %v9199_v49 = vadd.f32 %v9695_v47, %v9191_v33 }
0x5fd5   :  { %v9205_v2 = vpack.c.bf16 %v9199_v49, %v9198_v35 }
0x5fd7   :  { %10930 = vmatmul.mubr.msk.bf16.vlgmr.msra.gmra.mxu0 %vm175_vm1, %v9205_v2 }
0x6097   :  { %v9245_v61 = vpop.f32.mrf.mxu0 }
0x6098   :  { %v9258_v50 = vadd.f32 %v9697_v28, %v9245_v61 }
0x6099   :  { %v10931_v51 = vpop.f32.mrf.mxu0 }
0x609a   :  { %9260 = vst [vmem:[#allocation2] sm:$0xff] %v9258_v50 }
0x609b   :  { %v9248_v26 = vpop.f32.mrf.mxu0 }
0x609c   :  { %v9259_v12 = vadd.f32 %v9697_v28, %v9248_v26 }
0x609d   :  { %v10932_v53 = vpop.f32.mrf.mxu0 }
0x609e   :  { %9261 = vst [vmem:[#allocation2 + $0x8] sm:$0xff] %v9259_v12 }
0x609f   :  { %11239 = shalt.err (!%p11236_p4)
}
0x60a0   :  { %s11303_s20 = smov 128   ;;  %s11304_s4 = smov 8  }
0x60a1   :  { %9273 = dma.vmem_to_hbm [thread:$0]  %s9268_s15, 256, %s11503_s12, [#allocation3], %s11303_s20, %s11303_s20, %s11304_s4  }
0x60a2   :  { %11248 = dma.done.wait [#allocation3], 256  }
0x60a3   :  { %11249 = vsyncadd [#allocation3], 4294967040 }
0x60a4   :  { %9277 = vsyncpa [#allocation3], 1 }

</bundles_post_ra>
